<compile_context>
chip_gen: v7x
topology: tpu7x:2x2x1
jax: 0.10.0
libtpu: 0.0.40
codegen_flags: <defaults>
</compile_context>

<pallas_src>
import math
import jax
import jax.numpy as jnp
from jax.experimental import pallas as pl
from jax.experimental.pallas import tpu as pltpu

COMPUTE_DTYPE = jnp.bfloat16          # MXU inputs / activation storage
VMEM_LIMIT_BYTES = 32 * 1024 * 1024   # safe on v5e / v6e / v7x

_M_TILE_CANDIDATES = (256, 128, 64, 32, 16, 8)


def _pick_m_tile(m):
    for c in _M_TILE_CANDIDATES:
        if m % c == 0:
            return c
    return None


def _pick_n_tile(n):
    if n > 256 and n % 256 == 0:
        return 256
    if n > 128 and n % 128 == 0:
        return 128
    return n  # small channel counts: full dim (allowed by BlockSpec rules)


def _pick_k_tile(k):
    if k > 512 and k % 512 == 0:
        return 512
    if k > 256 and k % 256 == 0:
        return 256
    return k


# ----------------------------------------------------------------------------
# Pallas kernels
# ----------------------------------------------------------------------------
def _gemm_kernel(x_ref, w_ref, b_ref, o_ref, acc_ref):
    """K-tiled GEMM + bias + SiLU.  Grid = (M tiles, N tiles, K tiles)."""
    @pl.when(pl.program_id(2) == 0)
    def _():
        acc_ref[...] = jnp.zeros_like(acc_ref)

    acc_ref[...] += jnp.dot(x_ref[...], w_ref[...],
                            preferred_element_type=jnp.float32)

    @pl.when(pl.program_id(2) == pl.num_programs(2) - 1)
    def _():
        y = acc_ref[...] + b_ref[...]
        o_ref[...] = (y * (1.0 / (1.0 + jnp.exp(-y)))).astype(o_ref.dtype)


def _gemm_res_kernel(x_ref, w_ref, b_ref, r_ref, o_ref, acc_ref):
    """Same as above plus the Bottleneck shortcut add (post-activation)."""
    @pl.when(pl.program_id(2) == 0)
    def _():
        acc_ref[...] = jnp.zeros_like(acc_ref)

    acc_ref[...] += jnp.dot(x_ref[...], w_ref[...],
                            preferred_element_type=jnp.float32)

    @pl.when(pl.program_id(2) == pl.num_programs(2) - 1)
    def _():
        y = acc_ref[...] + b_ref[...]
        o_ref[...] = (y * (1.0 / (1.0 + jnp.exp(-y)))
                      + r_ref[...].astype(jnp.float32)).astype(o_ref.dtype)


def _make_concat_1x1_kernel(n_inputs):
    """1x1 Conv+BN+SiLU over a virtual channel-concat of n_inputs tensors.

    refs = (x_0..x_{n-1}, w_0..w_{n-1}, bias, out)."""
    def kernel(*refs):
        xs = refs[:n_inputs]
        ws = refs[n_inputs:2 * n_inputs]
        b_ref = refs[2 * n_inputs]
        o_ref = refs[2 * n_inputs + 1]
        y = jnp.dot(xs[0][...], ws[0][...], preferred_element_type=jnp.float32)
        for xi, wi in zip(xs[1:], ws[1:]):
            y += jnp.dot(xi[...], wi[...], preferred_element_type=jnp.float32)
        y = y + b_ref[...]
        o_ref[...] = (y * (1.0 / (1.0 + jnp.exp(-y)))).astype(o_ref.dtype)
    return kernel


# ----------------------------------------------------------------------------
# Pallas wrappers
# ----------------------------------------------------------------------------
def pallas_conv_gemm(patches, w_mat, bias, residual=None):
    """patches: (M, K) bf16, w_mat: (K, Cout) bf16, bias: (1, Cout) f32,
    residual: optional (M, Cout) bf16.  Returns (M, Cout) bf16."""
    M, K = patches.shape
    Cout = w_mat.shape[1]
    orig_m = M

    tile_m = _pick_m_tile(M)
    if tile_m is None:  # ragged M (never for YOLO spatial sizes): pad to 8
        m_pad = pl.cdiv(M, 8) * 8
        patches = jnp.pad(patches, ((0, m_pad - M), (0, 0)))
        if residual is not None:
            residual = jnp.pad(residual, ((0, m_pad - M), (0, 0)))
        M = m_pad
        tile_m = _pick_m_tile(M)

    tile_n = _pick_n_tile(Cout)
    tile_k = _pick_k_tile(K)
    grid = (M // tile_m, Cout // tile_n, K // tile_k)

    in_specs = [
        pl.BlockSpec((tile_m, tile_k), lambda i, j, k: (i, k)),
        pl.BlockSpec((tile_k, tile_n), lambda i, j, k: (k, j)),
        pl.BlockSpec((1, tile_n), lambda i, j, k: (0, j)),
    ]
    args = [patches, w_mat, bias]
    kernel = _gemm_kernel
    if residual is not None:
        in_specs.append(pl.BlockSpec((tile_m, tile_n), lambda i, j, k: (i, j)))
        args.append(residual)
        kernel = _gemm_res_kernel

    flops = 2 * M * K * Cout + 4 * M * Cout
    bytes_accessed = (patches.size * 2 + w_mat.size * 2 + bias.size * 4
                      + M * Cout * 2
                      + (residual.size * 2 if residual is not None else 0))

    out = pl.pallas_call(
        kernel,
        out_shape=jax.ShapeDtypeStruct((M, Cout), COMPUTE_DTYPE),
        grid_spec=pltpu.PrefetchScalarGridSpec(
            num_scalar_prefetch=0,
            grid=grid,
            in_specs=in_specs,
            out_specs=pl.BlockSpec((tile_m, tile_n), lambda i, j, k: (i, j)),
            scratch_shapes=[pltpu.VMEM((tile_m, tile_n), jnp.float32)],
        ),
        compiler_params=pltpu.CompilerParams(
            dimension_semantics=("parallel", "parallel", "arbitrary"),
            vmem_limit_bytes=VMEM_LIMIT_BYTES,
        ),
        cost_estimate=pl.CostEstimate(
            flops=flops, transcendentals=M * Cout, bytes_accessed=bytes_accessed),
    )(*args)
    return out[:orig_m] if M != orig_m else out


def pallas_conv1x1_concat(xs_flat, w_pieces, bias):
    """Fused 1x1 conv over the channel-concat of xs_flat (list of (M, Ci) bf16)
    without materializing the concat.  Returns (M, Cout) bf16."""
    M = xs_flat[0].shape[0]
    Cout = w_pieces[0].shape[1]
    n = len(xs_flat)
    orig_m = M

    tile_m = _pick_m_tile(M)
    if tile_m is None:
        m_pad = pl.cdiv(M, 8) * 8
        xs_flat = [jnp.pad(x, ((0, m_pad - M), (0, 0))) for x in xs_flat]
        M = m_pad
        tile_m = _pick_m_tile(M)

    tile_n = _pick_n_tile(Cout)
    grid = (M // tile_m, Cout // tile_n)

    in_specs = [pl.BlockSpec((tile_m, x.shape[1]), lambda i, j: (i, 0))
                for x in xs_flat]
    in_specs += [pl.BlockSpec((w.shape[0], tile_n), lambda i, j: (0, j))
                 for w in w_pieces]
    in_specs.append(pl.BlockSpec((1, tile_n), lambda i, j: (0, j)))

    k_total = sum(x.shape[1] for x in xs_flat)
    flops = 2 * M * k_total * Cout + 4 * M * Cout
    bytes_accessed = (sum(x.size for x in xs_flat) * 2
                      + sum(w.size for w in w_pieces) * 2
                      + bias.size * 4 + M * Cout * 2)

    out = pl.pallas_call(
        _make_concat_1x1_kernel(n),
        out_shape=jax.ShapeDtypeStruct((M, Cout), COMPUTE_DTYPE),
        grid_spec=pltpu.PrefetchScalarGridSpec(
            num_scalar_prefetch=0,
            grid=grid,
            in_specs=in_specs,
            out_specs=pl.BlockSpec((tile_m, tile_n), lambda i, j: (i, j)),
        ),
        compiler_params=pltpu.CompilerParams(
            dimension_semantics=("parallel", "parallel"),
            vmem_limit_bytes=VMEM_LIMIT_BYTES,
        ),
        cost_estimate=pl.CostEstimate(
            flops=flops, transcendentals=M * Cout, bytes_accessed=bytes_accessed),
    )(*xs_flat, *w_pieces, bias)
    return out[:orig_m] if M != orig_m else out


# ----------------------------------------------------------------------------
# Conv / Bottleneck / C2f building blocks (params are plain dicts)
# ----------------------------------------------------------------------------
def _fold_bn(key_g, key_b, c2):
    gamma = 1.0 + 0.05 * jax.random.normal(key_g, (c2,), jnp.float32)
    beta = 0.05 * jax.random.normal(key_b, (c2,), jnp.float32)
    mean = jnp.zeros((c2,), jnp.float32)
    var = jnp.ones((c2,), jnp.float32)
    eps = 1e-3
    scale = gamma / jnp.sqrt(var + eps)
    bias = beta - mean * scale
    return scale, bias


def init_conv(key, c1, c2, k, s=1, p=None):
    """k x k Conv + folded BN (scale merged into weights) + SiLU."""
    if p is None:
        p = k // 2  # autopad
    kw, kg, kb = jax.random.split(key, 3)
    w = jax.random.normal(kw, (c2, c1, k, k), jnp.float32) * (0.5 / math.sqrt(c1 * k * k))
    scale, bias = _fold_bn(kg, kb, c2)
    # (Cout, Cin, kh, kw) -> (kh, kw, Cin, Cout) -> (k*k*Cin, Cout), BN scale folded.
    w_mat = jnp.transpose(w, (2, 3, 1, 0)).reshape(k * k * c1, c2)
    w_mat = (w_mat * scale[None, :]).astype(COMPUTE_DTYPE)
    return {"w": w_mat, "bias": bias.reshape(1, c2).astype(jnp.float32),
            "k": k, "s": s, "p": p}


def init_conv1x1(key, c_ins, c2):
    """1x1 Conv + folded BN + SiLU over a channel-concat of pieces c_ins."""
    c1 = sum(c_ins)
    kw, kg, kb = jax.random.split(key, 3)
    w = jax.random.normal(kw, (c2, c1, 1, 1), jnp.float32) * (0.5 / math.sqrt(c1))
    scale, bias = _fold_bn(kg, kb, c2)
    w_mat = jnp.transpose(w, (2, 3, 1, 0)).reshape(c1, c2)
    w_mat = (w_mat * scale[None, :]).astype(COMPUTE_DTYPE)
    # Pre-split the weight along K at the concat boundaries so the kernel can
    # consume the concat pieces directly (no HBM concat materialization).
    pieces, off = [], 0
    for ci in c_ins:
        pieces.append(w_mat[off:off + ci])
        off += ci
    return {"w_pieces": pieces, "bias": bias.reshape(1, c2).astype(jnp.float32)}


def _im2col(x, k, s, p):
    """x: (B, H, W, C) bf16 -> patches (B*Ho*Wo, k*k*C) with (kh, kw, cin) order."""
    # TODO(synk): fuse im2col into the GEMM DMA (direct conv over taps) to avoid
    # the k*k activation inflation in HBM for the 3x3 layers.
    B, H, W, C = x.shape
    xp = jnp.pad(x, ((0, 0), (p, p), (p, p), (0, 0)))
    Ho = (H + 2 * p - k) // s + 1
    Wo = (W + 2 * p - k) // s + 1
    pieces = []
    for kh in range(k):
        for kw in range(k):
            pieces.append(xp[:, kh:kh + s * Ho:s, kw:kw + s * Wo:s, :])
    pat = jnp.stack(pieces, axis=-2)  # (B, Ho, Wo, k*k, C)
    return pat.reshape(B * Ho * Wo, k * k * C), (B, Ho, Wo)


def conv_apply(x, prm, residual_flat=None):
    patches, (B, Ho, Wo) = _im2col(x, prm["k"], prm["s"], prm["p"])
    out = pallas_conv_gemm(patches, prm["w"], prm["bias"], residual_flat)
    return out.reshape(B, Ho, Wo, -1)


def conv1x1_apply(xs, prm):
    """1x1 Conv+BN+SiLU over the (virtual) channel-concat of the list xs."""
    B, H, W, _ = xs[0].shape
    xs_flat = [x.reshape(B * H * W, x.shape[-1]) for x in xs]
    out = pallas_conv1x1_concat(xs_flat, prm["w_pieces"], prm["bias"])
    return out.reshape(B, H, W, -1)


def init_bottleneck(key, c):
    k1, k2 = jax.random.split(key)
    # C2f bottlenecks: k=((3,3),(3,3)), e=1.0, shortcut=True, c1==c2
    return {"cv1": init_conv(k1, c, c, 3, 1), "cv2": init_conv(k2, c, c, 3, 1)}


def bottleneck_apply(x, prm):
    h = conv_apply(x, prm["cv1"])
    B, H, W, C = x.shape
    return conv_apply(h, prm["cv2"], residual_flat=x.reshape(B * H * W, C))


def init_c2f(key, c1_list, c2, n):
    c = int(c2 * 0.5)
    keys = jax.random.split(key, 2 + n)
    return {
        "c": c,
        "cv1": init_conv1x1(keys[0], list(c1_list), 2 * c),
        "cv2": init_conv1x1(keys[1], [c] * (2 + n), c2),
        "m": [init_bottleneck(keys[2 + i], c) for i in range(n)],
    }


def c2f_apply(x_list, prm):
    y = conv1x1_apply(x_list, prm["cv1"])
    c = prm["c"]
    ys = [y[..., :c], y[..., c:]]
    for bp in prm["m"]:
        ys.append(bottleneck_apply(ys[-1], bp))
    # cv2 consumes the (2+n)-way concat directly inside the fused kernel.
    return conv1x1_apply(ys, prm["cv2"])


def upsample2x(x):  # nearest neighbour, NHWC
    # TODO(synk): express the nearest-neighbour upsample in the consuming conv's
    # index_map instead of materializing it in HBM.
    return jnp.repeat(jnp.repeat(x, 2, axis=1), 2, axis=2)


# ----------------------------------------------------------------------------
# Neck
# ----------------------------------------------------------------------------
def init_neck(key, w, r, n):
    ch1 = int(256 * w)
    ch2 = int(512 * w)
    ch3 = int(512 * w * r)
    ks = jax.random.split(key, 6)
    return {
        "c2f_p4_td": init_c2f(ks[0], [ch3, ch2], ch2, n),
        "c2f_p3_out": init_c2f(ks[1], [ch2, ch1], ch1, n),
        "p3_down": init_conv(ks[2], ch1, ch1, 3, 2, 1),
        "c2f_p4_out": init_c2f(ks[3], [ch1, ch2], ch2, n),
        "p4_down": init_conv(ks[4], ch2, ch2, 3, 2, 1),
        "c2f_p5_out": init_c2f(ks[5], [ch2, ch3], ch3, n),
    }


def neck_forward(params, feat1, feat2, feat3):
    """feat1/2/3 are NHWC (equivalent of the PyTorch NCHW inputs)."""
    feat1 = feat1.astype(COMPUTE_DTYPE)
    feat2 = feat2.astype(COMPUTE_DTYPE)
    feat3 = feat3.astype(COMPUTE_DTYPE)

    p5_up = upsample2x(feat3)
    p4_td = c2f_apply([p5_up, feat2], params["c2f_p4_td"])
    p4_up = upsample2x(p4_td)
    p3_out = c2f_apply([p4_up, feat1], params["c2f_p3_out"])
    p3_dn = conv_apply(p3_out, params["p3_down"])
    p4_out = c2f_apply([p3_dn, p4_td], params["c2f_p4_out"])
    p4_dn = conv_apply(p4_out, params["p4_down"])
    p5_out = c2f_apply([p4_dn, feat3], params["c2f_p5_out"])
    return (p4_td.astype(jnp.float32), p3_out.astype(jnp.float32),
            p4_out.astype(jnp.float32), p5_out.astype(jnp.float32))


if __name__ == "__main__":
    # Small synthetic config: w=1/64, r=2, n=1  ->  channels (4, 8, 16)
    w_mult, r_mult, n_blocks = 1.0 / 64.0, 2.0, 1
    ch1, ch2, ch3 = int(256 * w_mult), int(512 * w_mult), int(512 * w_mult * r_mult)
    B, H1 = 2, 16  # spatial pyramid 16 / 8 / 4 (stands in for 80 / 40 / 20)

    key = jax.random.PRNGKey(0)
    kp, k1, k2, k3 = jax.random.split(key, 4)
    params = init_neck(kp, w_mult, r_mult, n_blocks)

    feat1 = jax.random.normal(k1, (B, H1, H1, ch1), jnp.float32)
    feat2 = jax.random.normal(k2, (B, H1 // 2, H1 // 2, ch2), jnp.float32)
    feat3 = jax.random.normal(k3, (B, H1 // 4, H1 // 4, ch3), jnp.float32)

    fwd = jax.jit(lambda f1, f2, f3: neck_forward(params, f1, f2, f3))
    p4_td, p3_out, p4_out, p5_out = fwd(feat1, feat2, feat3)
    for t in (p4_td, p3_out, p4_out, p5_out):
        jax.block_until_ready(t)

    assert p4_td.shape == (B, H1 // 2, H1 // 2, ch2)
    assert p3_out.shape == (B, H1, H1, ch1)
    assert p4_out.shape == (B, H1 // 2, H1 // 2, ch2)
    assert p5_out.shape == (B, H1 // 4, H1 // 4, ch3)
    print("KERNEL_OK")
</pallas_src>

<mosaic_0001>
module attributes {stable_mosaic.version = 11 : i64} {
  func.func @kernel(%arg0: i32, %arg1: i32, %arg2: memref<128x16xbf16, #tpu.memory_space<vmem>>, %arg3: memref<128x8xbf16, #tpu.memory_space<vmem>>, %arg4: memref<16x8xbf16, #tpu.memory_space<vmem>>, %arg5: memref<8x8xbf16, #tpu.memory_space<vmem>>, %arg6: memref<1x8xf32, #tpu.memory_space<vmem>>, %arg7: memref<128x8xbf16, #tpu.memory_space<vmem>>) attributes {dimension_semantics = [#tpu.dimension_semantics<parallel>, #tpu.dimension_semantics<parallel>], iteration_bounds = array<i64: 1, 1>, scalar_prefetch = 0 : i64, scratch_operands = 0 : i64, tpu.core_type = #tpu.core_type<tc>, window_params = [{transform_indices = @transform_0, window_bounds = array<i64: 128, 16>}, {transform_indices = @transform_1, window_bounds = array<i64: 128, 8>}, {transform_indices = @transform_2, window_bounds = array<i64: 16, 8>}, {transform_indices = @transform_3, window_bounds = array<i64: 8, 8>}, {transform_indices = @transform_4, window_bounds = array<i64: 1, 8>}, {transform_indices = @transform_5, window_bounds = array<i64: 128, 8>}]} {
    %c0 = arith.constant 0 : index
    %c0_0 = arith.constant 0 : index
    %0 = vector.load %arg2[%c0, %c0_0] : memref<128x16xbf16, #tpu.memory_space<vmem>>, vector<128x16xbf16>
    %c0_1 = arith.constant 0 : index
    %c0_2 = arith.constant 0 : index
    %1 = vector.load %arg4[%c0_1, %c0_2] : memref<16x8xbf16, #tpu.memory_space<vmem>>, vector<16x8xbf16>
    %cst = arith.constant dense<0.000000e+00> : vector<128x8xf32>
    %2 = tpu.matmul %0, %1, %cst {dimension_numbers = #tpu.dot_dimension_numbers<[1], [0], [0], [1], [0, 0, 1, 1], [], []>} : vector<128x16xbf16>, vector<16x8xbf16>, vector<128x8xf32> -> vector<128x8xf32>
    %c0_3 = arith.constant 0 : index
    %c0_4 = arith.constant 0 : index
    %3 = vector.load %arg3[%c0_3, %c0_4] : memref<128x8xbf16, #tpu.memory_space<vmem>>, vector<128x8xbf16>
    %c0_5 = arith.constant 0 : index
    %c0_6 = arith.constant 0 : index
    %4 = vector.load %arg5[%c0_5, %c0_6] : memref<8x8xbf16, #tpu.memory_space<vmem>>, vector<8x8xbf16>
    %cst_7 = arith.constant dense<0.000000e+00> : vector<128x8xf32>
    %5 = tpu.matmul %3, %4, %cst_7 {dimension_numbers = #tpu.dot_dimension_numbers<[1], [0], [0], [1], [0, 0, 1, 1], [], []>} : vector<128x8xbf16>, vector<8x8xbf16>, vector<128x8xf32> -> vector<128x8xf32>
    %6 = arith.addf %2, %5 : vector<128x8xf32>
    %c0_8 = arith.constant 0 : index
    %c0_9 = arith.constant 0 : index
    %7 = vector.load %arg6[%c0_8, %c0_9] : memref<1x8xf32, #tpu.memory_space<vmem>>, vector<1x8xf32>
    %8 = vector.broadcast %7 : vector<1x8xf32> to vector<128x8xf32>
    %9 = arith.addf %6, %8 : vector<128x8xf32>
    %cst_10 = arith.constant 0.000000e+00 : f32
    %10 = vector.broadcast %cst_10 : f32 to vector<128x8xf32>
    %11 = arith.subf %10, %9 : vector<128x8xf32>
    %12 = math.exp %11 : vector<128x8xf32>
    %cst_11 = arith.constant 1.000000e+00 : f32
    %13 = vector.broadcast %cst_11 : f32 to vector<128x8xf32>
    %14 = arith.addf %13, %12 : vector<128x8xf32>
    %cst_12 = arith.constant 1.000000e+00 : f32
    %15 = vector.broadcast %cst_12 : f32 to vector<128x8xf32>
    %16 = arith.divf %15, %14 : vector<128x8xf32>
    %17 = arith.mulf %9, %16 : vector<128x8xf32>
    %18 = arith.truncf %17 : vector<128x8xf32> to vector<128x8xbf16>
    %c0_13 = arith.constant 0 : index
    %c0_14 = arith.constant 0 : index
    %19 = vector.load %arg7[%c0_13, %c0_14] : memref<128x8xbf16, #tpu.memory_space<vmem>>, vector<128x8xbf16>
    tpu.vector_store %arg7[%c0_13, %c0_14], %18 {strides = array<i32>} : memref<128x8xbf16, #tpu.memory_space<vmem>>, vector<128x8xbf16>,
    return
  }
  func.func @transform_0(%arg0: i32, %arg1: i32) -> (i32, i32) {
    %c0_i32 = arith.constant 0 : i32
    %c0_i32_0 = arith.constant 0 : i32
    return %arg0, %c0_i32 : i32, i32
  }
  func.func @transform_1(%arg0: i32, %arg1: i32) -> (i32, i32) {
    %c0_i32 = arith.constant 0 : i32
    %c0_i32_0 = arith.constant 0 : i32
    return %arg0, %c0_i32 : i32, i32
  }
  func.func @transform_2(%arg0: i32, %arg1: i32) -> (i32, i32) {
    %c0_i32 = arith.constant 0 : i32
    %c0_i32_0 = arith.constant 0 : i32
    return %c0_i32, %arg1 : i32, i32
  }
  func.func @transform_3(%arg0: i32, %arg1: i32) -> (i32, i32) {
    %c0_i32 = arith.constant 0 : i32
    %c0_i32_0 = arith.constant 0 : i32
    return %c0_i32, %arg1 : i32, i32
  }
  func.func @transform_4(%arg0: i32, %arg1: i32) -> (i32, i32) {
    %c0_i32 = arith.constant 0 : i32
    %c0_i32_0 = arith.constant 0 : i32
    return %c0_i32, %arg1 : i32, i32
  }
  func.func @transform_5(%arg0: i32, %arg1: i32) -> (i32, i32) {
    %c0_i32 = arith.constant 0 : i32
    return %arg0, %arg1 : i32, i32
  }
}

module attributes {stable_mosaic.version = 11 : i64} {
  func.func @_gemm_kernel(%arg0: i32, %arg1: i32, %arg2: i32, %arg3: memref<128x36xbf16, #tpu.memory_space<vmem>>, %arg4: memref<36x4xbf16, #tpu.memory_space<vmem>>, %arg5: memref<1x4xf32, #tpu.memory_space<vmem>>, %arg6: memref<128x4xbf16, #tpu.memory_space<vmem>>, %arg7: memref<128x4xf32, #tpu.memory_space<vmem>>) attributes {dimension_semantics = [#tpu.dimension_semantics<parallel>, #tpu.dimension_semantics<parallel>, #tpu.dimension_semantics<arbitrary>], iteration_bounds = array<i64: 1, 1, 1>, scalar_prefetch = 0 : i64, scratch_operands = 1 : i64, tpu.core_type = #tpu.core_type<tc>, window_params = [{transform_indices = @transform_0, window_bounds = array<i64: 128, 36>}, {transform_indices = @transform_1, window_bounds = array<i64: 36, 4>}, {transform_indices = @transform_2, window_bounds = array<i64: 1, 4>}, {transform_indices = @transform_3, window_bounds = array<i64: 128, 4>}]} {
    %c0_i32 = arith.constant 0 : i32
    %0 = arith.cmpi eq, %arg2, %c0_i32 : i32
    %1 = arith.extui %0 : i1 to i32
    %c0_i32_0 = arith.constant 0 : i32
    %2 = arith.cmpi ne, %1, %c0_i32_0 : i32
    scf.if %2 {
      %cst_10 = arith.constant 0.000000e+00 : f32
      %12 = vector.broadcast %cst_10 : f32 to vector<128x4xf32>
      %c0_11 = arith.constant 0 : index
      %c0_12 = arith.constant 0 : index
      %13 = vector.load %arg7[%c0_11, %c0_12] : memref<128x4xf32, #tpu.memory_space<vmem>>, vector<128x4xf32>
      tpu.vector_store %arg7[%c0_11, %c0_12], %12 {strides = array<i32>} : memref<128x4xf32, #tpu.memory_space<vmem>>, vector<128x4xf32>,
    } else {
    }
    %c0 = arith.constant 0 : index
    %c0_1 = arith.constant 0 : index
    %3 = vector.load %arg7[%c0, %c0_1] : memref<128x4xf32, #tpu.memory_space<vmem>>, vector<128x4xf32>
    %c0_2 = arith.constant 0 : index
    %c0_3 = arith.constant 0 : index
    %4 = vector.load %arg3[%c0_2, %c0_3] : memref<128x36xbf16, #tpu.memory_space<vmem>>, vector<128x36xbf16>
    %c0_4 = arith.constant 0 : index
    %c0_5 = arith.constant 0 : index
    %5 = vector.load %arg4[%c0_4, %c0_5] : memref<36x4xbf16, #tpu.memory_space<vmem>>, vector<36x4xbf16>
    %cst = arith.constant dense<0.000000e+00> : vector<128x4xf32>
    %6 = tpu.matmul %4, %5, %cst {dimension_numbers = #tpu.dot_dimension_numbers<[1], [0], [0], [1], [0, 0, 1, 1], [], []>} : vector<128x36xbf16>, vector<36x4xbf16>, vector<128x4xf32> -> vector<128x4xf32>
    %7 = arith.addf %3, %6 : vector<128x4xf32>
    %c0_6 = arith.constant 0 : index
    %c0_7 = arith.constant 0 : index
    %8 = vector.load %arg7[%c0_6, %c0_7] : memref<128x4xf32, #tpu.memory_space<vmem>>, vector<128x4xf32>
    tpu.vector_store %arg7[%c0_6, %c0_7], %7 {strides = array<i32>} : memref<128x4xf32, #tpu.memory_space<vmem>>, vector<128x4xf32>,
    %c0_i32_8 = arith.constant 0 : i32
    %9 = arith.cmpi eq, %arg2, %c0_i32_8 : i32
    %10 = arith.extui %9 : i1 to i32
    %c0_i32_9 = arith.constant 0 : i32
    %11 = arith.cmpi ne, %10, %c0_i32_9 : i32
    scf.if %11 {
      %c0_10 = arith.constant 0 : index
      %c0_11 = arith.constant 0 : index
      %12 = vector.load %arg7[%c0_10, %c0_11] : memref<128x4xf32, #tpu.memory_space<vmem>>, vector<128x4xf32>
      %c0_12 = arith.constant 0 : index
      %c0_13 = arith.constant 0 : index
      %13 = vector.load %arg5[%c0_12, %c0_13] : memref<1x4xf32, #tpu.memory_space<vmem>>, vector<1x4xf32>
      %14 = vector.broadcast %13 : vector<1x4xf32> to vector<128x4xf32>
      %15 = arith.addf %12, %14 : vector<128x4xf32>
      %cst_14 = arith.constant 0.000000e+00 : f32
      %16 = vector.broadcast %cst_14 : f32 to vector<128x4xf32>
      %17 = arith.subf %16, %15 : vector<128x4xf32>
      %18 = math.exp %17 : vector<128x4xf32>
      %cst_15 = arith.constant 1.000000e+00 : f32
      %19 = vector.broadcast %cst_15 : f32 to vector<128x4xf32>
      %20 = arith.addf %19, %18 : vector<128x4xf32>
      %cst_16 = arith.constant 1.000000e+00 : f32
      %21 = vector.broadcast %cst_16 : f32 to vector<128x4xf32>
      %22 = arith.divf %21, %20 : vector<128x4xf32>
      %23 = arith.mulf %15, %22 : vector<128x4xf32>
      %24 = arith.truncf %23 : vector<128x4xf32> to vector<128x4xbf16>
      %c0_17 = arith.constant 0 : index
      %c0_18 = arith.constant 0 : index
      %25 = vector.load %arg6[%c0_17, %c0_18] : memref<128x4xbf16, #tpu.memory_space<vmem>>, vector<128x4xbf16>
      tpu.vector_store %arg6[%c0_17, %c0_18], %24 {strides = array<i32>} : memref<128x4xbf16, #tpu.memory_space<vmem>>, vector<128x4xbf16>,
    } else {
    }
    return
  }
  func.func @transform_0(%arg0: i32, %arg1: i32, %arg2: i32) -> (i32, i32) {
    %c0_i32 = arith.constant 0 : i32
    return %arg0, %arg2 : i32, i32
  }
  func.func @transform_1(%arg0: i32, %arg1: i32, %arg2: i32) -> (i32, i32) {
    %c0_i32 = arith.constant 0 : i32
    return %arg2, %arg1 : i32, i32
  }
  func.func @transform_2(%arg0: i32, %arg1: i32, %arg2: i32) -> (i32, i32) {
    %c0_i32 = arith.constant 0 : i32
    %c0_i32_0 = arith.constant 0 : i32
    return %c0_i32, %arg1 : i32, i32
  }
  func.func @transform_3(%arg0: i32, %arg1: i32, %arg2: i32) -> (i32, i32) {
    %c0_i32 = arith.constant 0 : i32
    return %arg0, %arg1 : i32, i32
  }
}

module attributes {stable_mosaic.version = 11 : i64} {
  func.func @_gemm_res_kernel(%arg0: i32, %arg1: i32, %arg2: i32, %arg3: memref<128x36xbf16, #tpu.memory_space<vmem>>, %arg4: memref<36x4xbf16, #tpu.memory_space<vmem>>, %arg5: memref<1x4xf32, #tpu.memory_space<vmem>>, %arg6: memref<128x4xbf16, #tpu.memory_space<vmem>>, %arg7: memref<128x4xbf16, #tpu.memory_space<vmem>>, %arg8: memref<128x4xf32, #tpu.memory_space<vmem>>) attributes {dimension_semantics = [#tpu.dimension_semantics<parallel>, #tpu.dimension_semantics<parallel>, #tpu.dimension_semantics<arbitrary>], iteration_bounds = array<i64: 1, 1, 1>, scalar_prefetch = 0 : i64, scratch_operands = 1 : i64, tpu.core_type = #tpu.core_type<tc>, window_params = [{transform_indices = @transform_0, window_bounds = array<i64: 128, 36>}, {transform_indices = @transform_1, window_bounds = array<i64: 36, 4>}, {transform_indices = @transform_2, window_bounds = array<i64: 1, 4>}, {transform_indices = @transform_3, window_bounds = array<i64: 128, 4>}, {transform_indices = @transform_4, window_bounds = array<i64: 128, 4>}]} {
    %c0_i32 = arith.constant 0 : i32
    %0 = arith.cmpi eq, %arg2, %c0_i32 : i32
    %1 = arith.extui %0 : i1 to i32
    %c0_i32_0 = arith.constant 0 : i32
    %2 = arith.cmpi ne, %1, %c0_i32_0 : i32
    scf.if %2 {
      %cst_10 = arith.constant 0.000000e+00 : f32
      %12 = vector.broadcast %cst_10 : f32 to vector<128x4xf32>
      %c0_11 = arith.constant 0 : index
      %c0_12 = arith.constant 0 : index
      %13 = vector.load %arg8[%c0_11, %c0_12] : memref<128x4xf32, #tpu.memory_space<vmem>>, vector<128x4xf32>
      tpu.vector_store %arg8[%c0_11, %c0_12], %12 {strides = array<i32>} : memref<128x4xf32, #tpu.memory_space<vmem>>, vector<128x4xf32>,
    } else {
    }
    %c0 = arith.constant 0 : index
    %c0_1 = arith.constant 0 : index
    %3 = vector.load %arg8[%c0, %c0_1] : memref<128x4xf32, #tpu.memory_space<vmem>>, vector<128x4xf32>
    %c0_2 = arith.constant 0 : index
    %c0_3 = arith.constant 0 : index
    %4 = vector.load %arg3[%c0_2, %c0_3] : memref<128x36xbf16, #tpu.memory_space<vmem>>, vector<128x36xbf16>
    %c0_4 = arith.constant 0 : index
    %c0_5 = arith.constant 0 : index
    %5 = vector.load %arg4[%c0_4, %c0_5] : memref<36x4xbf16, #tpu.memory_space<vmem>>, vector<36x4xbf16>
    %cst = arith.constant dense<0.000000e+00> : vector<128x4xf32>
    %6 = tpu.matmul %4, %5, %cst {dimension_numbers = #tpu.dot_dimension_numbers<[1], [0], [0], [1], [0, 0, 1, 1], [], []>} : vector<128x36xbf16>, vector<36x4xbf16>, vector<128x4xf32> -> vector<128x4xf32>
    %7 = arith.addf %3, %6 : vector<128x4xf32>
    %c0_6 = arith.constant 0 : index
    %c0_7 = arith.constant 0 : index
    %8 = vector.load %arg8[%c0_6, %c0_7] : memref<128x4xf32, #tpu.memory_space<vmem>>, vector<128x4xf32>
    tpu.vector_store %arg8[%c0_6, %c0_7], %7 {strides = array<i32>} : memref<128x4xf32, #tpu.memory_space<vmem>>, vector<128x4xf32>,
    %c0_i32_8 = arith.constant 0 : i32
    %9 = arith.cmpi eq, %arg2, %c0_i32_8 : i32
    %10 = arith.extui %9 : i1 to i32
    %c0_i32_9 = arith.constant 0 : i32
    %11 = arith.cmpi ne, %10, %c0_i32_9 : i32
    scf.if %11 {
      %c0_10 = arith.constant 0 : index
      %c0_11 = arith.constant 0 : index
      %12 = vector.load %arg8[%c0_10, %c0_11] : memref<128x4xf32, #tpu.memory_space<vmem>>, vector<128x4xf32>
      %c0_12 = arith.constant 0 : index
      %c0_13 = arith.constant 0 : index
      %13 = vector.load %arg5[%c0_12, %c0_13] : memref<1x4xf32, #tpu.memory_space<vmem>>, vector<1x4xf32>
      %14 = vector.broadcast %13 : vector<1x4xf32> to vector<128x4xf32>
      %15 = arith.addf %12, %14 : vector<128x4xf32>
      %cst_14 = arith.constant 0.000000e+00 : f32
      %16 = vector.broadcast %cst_14 : f32 to vector<128x4xf32>
      %17 = arith.subf %16, %15 : vector<128x4xf32>
      %18 = math.exp %17 : vector<128x4xf32>
      %cst_15 = arith.constant 1.000000e+00 : f32
      %19 = vector.broadcast %cst_15 : f32 to vector<128x4xf32>
      %20 = arith.addf %19, %18 : vector<128x4xf32>
      %cst_16 = arith.constant 1.000000e+00 : f32
      %21 = vector.broadcast %cst_16 : f32 to vector<128x4xf32>
      %22 = arith.divf %21, %20 : vector<128x4xf32>
      %23 = arith.mulf %15, %22 : vector<128x4xf32>
      %c0_17 = arith.constant 0 : index
      %c0_18 = arith.constant 0 : index
      %24 = vector.load %arg6[%c0_17, %c0_18] : memref<128x4xbf16, #tpu.memory_space<vmem>>, vector<128x4xbf16>
      %25 = arith.extf %24 : vector<128x4xbf16> to vector<128x4xf32>
      %26 = arith.addf %23, %25 : vector<128x4xf32>
      %27 = arith.truncf %26 : vector<128x4xf32> to vector<128x4xbf16>
      %c0_19 = arith.constant 0 : index
      %c0_20 = arith.constant 0 : index
      %28 = vector.load %arg7[%c0_19, %c0_20] : memref<128x4xbf16, #tpu.memory_space<vmem>>, vector<128x4xbf16>
      tpu.vector_store %arg7[%c0_19, %c0_20], %27 {strides = array<i32>} : memref<128x4xbf16, #tpu.memory_space<vmem>>, vector<128x4xbf16>,
    } else {
    }
    return
  }
  func.func @transform_0(%arg0: i32, %arg1: i32, %arg2: i32) -> (i32, i32) {
    %c0_i32 = arith.constant 0 : i32
    return %arg0, %arg2 : i32, i32
  }
  func.func @transform_1(%arg0: i32, %arg1: i32, %arg2: i32) -> (i32, i32) {
    %c0_i32 = arith.constant 0 : i32
    return %arg2, %arg1 : i32, i32
  }
  func.func @transform_2(%arg0: i32, %arg1: i32, %arg2: i32) -> (i32, i32) {
    %c0_i32 = arith.constant 0 : i32
    %c0_i32_0 = arith.constant 0 : i32
    return %c0_i32, %arg1 : i32, i32
  }
  func.func @transform_3(%arg0: i32, %arg1: i32, %arg2: i32) -> (i32, i32) {
    %c0_i32 = arith.constant 0 : i32
    return %arg0, %arg1 : i32, i32
  }
  func.func @transform_4(%arg0: i32, %arg1: i32, %arg2: i32) -> (i32, i32) {
    %c0_i32 = arith.constant 0 : i32
    return %arg0, %arg1 : i32, i32
  }
}

module attributes {stable_mosaic.version = 11 : i64} {
  func.func @kernel(%arg0: i32, %arg1: i32, %arg2: memref<128x4xbf16, #tpu.memory_space<vmem>>, %arg3: memref<128x4xbf16, #tpu.memory_space<vmem>>, %arg4: memref<128x4xbf16, #tpu.memory_space<vmem>>, %arg5: memref<4x8xbf16, #tpu.memory_space<vmem>>, %arg6: memref<4x8xbf16, #tpu.memory_space<vmem>>, %arg7: memref<4x8xbf16, #tpu.memory_space<vmem>>, %arg8: memref<1x8xf32, #tpu.memory_space<vmem>>, %arg9: memref<128x8xbf16, #tpu.memory_space<vmem>>) attributes {dimension_semantics = [#tpu.dimension_semantics<parallel>, #tpu.dimension_semantics<parallel>], iteration_bounds = array<i64: 1, 1>, scalar_prefetch = 0 : i64, scratch_operands = 0 : i64, tpu.core_type = #tpu.core_type<tc>, window_params = [{transform_indices = @transform_0, window_bounds = array<i64: 128, 4>}, {transform_indices = @transform_1, window_bounds = array<i64: 128, 4>}, {transform_indices = @transform_2, window_bounds = array<i64: 128, 4>}, {transform_indices = @transform_3, window_bounds = array<i64: 4, 8>}, {transform_indices = @transform_4, window_bounds = array<i64: 4, 8>}, {transform_indices = @transform_5, window_bounds = array<i64: 4, 8>}, {transform_indices = @transform_6, window_bounds = array<i64: 1, 8>}, {transform_indices = @transform_7, window_bounds = array<i64: 128, 8>}]} {
    %c0 = arith.constant 0 : index
    %c0_0 = arith.constant 0 : index
    %0 = vector.load %arg2[%c0, %c0_0] : memref<128x4xbf16, #tpu.memory_space<vmem>>, vector<128x4xbf16>
    %c0_1 = arith.constant 0 : index
    %c0_2 = arith.constant 0 : index
    %1 = vector.load %arg5[%c0_1, %c0_2] : memref<4x8xbf16, #tpu.memory_space<vmem>>, vector<4x8xbf16>
    %cst = arith.constant dense<0.000000e+00> : vector<128x8xf32>
    %2 = tpu.matmul %0, %1, %cst {dimension_numbers = #tpu.dot_dimension_numbers<[1], [0], [0], [1], [0, 0, 1, 1], [], []>} : vector<128x4xbf16>, vector<4x8xbf16>, vector<128x8xf32> -> vector<128x8xf32>
    %c0_3 = arith.constant 0 : index
    %c0_4 = arith.constant 0 : index
    %3 = vector.load %arg3[%c0_3, %c0_4] : memref<128x4xbf16, #tpu.memory_space<vmem>>, vector<128x4xbf16>
    %c0_5 = arith.constant 0 : index
    %c0_6 = arith.constant 0 : index
    %4 = vector.load %arg6[%c0_5, %c0_6] : memref<4x8xbf16, #tpu.memory_space<vmem>>, vector<4x8xbf16>
    %cst_7 = arith.constant dense<0.000000e+00> : vector<128x8xf32>
    %5 = tpu.matmul %3, %4, %cst_7 {dimension_numbers = #tpu.dot_dimension_numbers<[1], [0], [0], [1], [0, 0, 1, 1], [], []>} : vector<128x4xbf16>, vector<4x8xbf16>, vector<128x8xf32> -> vector<128x8xf32>
    %6 = arith.addf %2, %5 : vector<128x8xf32>
    %c0_8 = arith.constant 0 : index
    %c0_9 = arith.constant 0 : index
    %7 = vector.load %arg4[%c0_8, %c0_9] : memref<128x4xbf16, #tpu.memory_space<vmem>>, vector<128x4xbf16>
    %c0_10 = arith.constant 0 : index
    %c0_11 = arith.constant 0 : index
    %8 = vector.load %arg7[%c0_10, %c0_11] : memref<4x8xbf16, #tpu.memory_space<vmem>>, vector<4x8xbf16>
    %cst_12 = arith.constant dense<0.000000e+00> : vector<128x8xf32>
    %9 = tpu.matmul %7, %8, %cst_12 {dimension_numbers = #tpu.dot_dimension_numbers<[1], [0], [0], [1], [0, 0, 1, 1], [], []>} : vector<128x4xbf16>, vector<4x8xbf16>, vector<128x8xf32> -> vector<128x8xf32>
    %10 = arith.addf %6, %9 : vector<128x8xf32>
    %c0_13 = arith.constant 0 : index
    %c0_14 = arith.constant 0 : index
    %11 = vector.load %arg8[%c0_13, %c0_14] : memref<1x8xf32, #tpu.memory_space<vmem>>, vector<1x8xf32>
    %12 = vector.broadcast %11 : vector<1x8xf32> to vector<128x8xf32>
    %13 = arith.addf %10, %12 : vector<128x8xf32>
    %cst_15 = arith.constant 0.000000e+00 : f32
    %14 = vector.broadcast %cst_15 : f32 to vector<128x8xf32>
    %15 = arith.subf %14, %13 : vector<128x8xf32>
    %16 = math.exp %15 : vector<128x8xf32>
    %cst_16 = arith.constant 1.000000e+00 : f32
    %17 = vector.broadcast %cst_16 : f32 to vector<128x8xf32>
    %18 = arith.addf %17, %16 : vector<128x8xf32>
    %cst_17 = arith.constant 1.000000e+00 : f32
    %19 = vector.broadcast %cst_17 : f32 to vector<128x8xf32>
    %20 = arith.divf %19, %18 : vector<128x8xf32>
    %21 = arith.mulf %13, %20 : vector<128x8xf32>
    %22 = arith.truncf %21 : vector<128x8xf32> to vector<128x8xbf16>
    %c0_18 = arith.constant 0 : index
    %c0_19 = arith.constant 0 : index
    %23 = vector.load %arg9[%c0_18, %c0_19] : memref<128x8xbf16, #tpu.memory_space<vmem>>, vector<128x8xbf16>
    tpu.vector_store %arg9[%c0_18, %c0_19], %22 {strides = array<i32>} : memref<128x8xbf16, #tpu.memory_space<vmem>>, vector<128x8xbf16>,
    return
  }
  func.func @transform_0(%arg0: i32, %arg1: i32) -> (i32, i32) {
    %c0_i32 = arith.constant 0 : i32
    %c0_i32_0 = arith.constant 0 : i32
    return %arg0, %c0_i32 : i32, i32
  }
  func.func @transform_1(%arg0: i32, %arg1: i32) -> (i32, i32) {
    %c0_i32 = arith.constant 0 : i32
    %c0_i32_0 = arith.constant 0 : i32
    return %arg0, %c0_i32 : i32, i32
  }
  func.func @transform_2(%arg0: i32, %arg1: i32) -> (i32, i32) {
    %c0_i32 = arith.constant 0 : i32
    %c0_i32_0 = arith.constant 0 : i32
    return %arg0, %c0_i32 : i32, i32
  }
  func.func @transform_3(%arg0: i32, %arg1: i32) -> (i32, i32) {
    %c0_i32 = arith.constant 0 : i32
    %c0_i32_0 = arith.constant 0 : i32
    return %c0_i32, %arg1 : i32, i32
  }
  func.func @transform_4(%arg0: i32, %arg1: i32) -> (i32, i32) {
    %c0_i32 = arith.constant 0 : i32
    %c0_i32_0 = arith.constant 0 : i32
    return %c0_i32, %arg1 : i32, i32
  }
  func.func @transform_5(%arg0: i32, %arg1: i32) -> (i32, i32) {
    %c0_i32 = arith.constant 0 : i32
    %c0_i32_0 = arith.constant 0 : i32
    return %c0_i32, %arg1 : i32, i32
  }
  func.func @transform_6(%arg0: i32, %arg1: i32) -> (i32, i32) {
    %c0_i32 = arith.constant 0 : i32
    %c0_i32_0 = arith.constant 0 : i32
    return %c0_i32, %arg1 : i32, i32
  }
  func.func @transform_7(%arg0: i32, %arg1: i32) -> (i32, i32) {
    %c0_i32 = arith.constant 0 : i32
    return %arg0, %arg1 : i32, i32
  }
}

module attributes {stable_mosaic.version = 11 : i64} {
  func.func @kernel(%arg0: i32, %arg1: i32, %arg2: memref<256x8xbf16, #tpu.memory_space<vmem>>, %arg3: memref<256x4xbf16, #tpu.memory_space<vmem>>, %arg4: memref<8x4xbf16, #tpu.memory_space<vmem>>, %arg5: memref<4x4xbf16, #tpu.memory_space<vmem>>, %arg6: memref<1x4xf32, #tpu.memory_space<vmem>>, %arg7: memref<256x4xbf16, #tpu.memory_space<vmem>>) attributes {dimension_semantics = [#tpu.dimension_semantics<parallel>, #tpu.dimension_semantics<parallel>], iteration_bounds = array<i64: 2, 1>, scalar_prefetch = 0 : i64, scratch_operands = 0 : i64, tpu.core_type = #tpu.core_type<tc>, window_params = [{transform_indices = @transform_0, window_bounds = array<i64: 256, 8>}, {transform_indices = @transform_1, window_bounds = array<i64: 256, 4>}, {transform_indices = @transform_2, window_bounds = array<i64: 8, 4>}, {transform_indices = @transform_3, window_bounds = array<i64: 4, 4>}, {transform_indices = @transform_4, window_bounds = array<i64: 1, 4>}, {transform_indices = @transform_5, window_bounds = array<i64: 256, 4>}]} {
    %c0 = arith.constant 0 : index
    %c0_0 = arith.constant 0 : index
    %0 = vector.load %arg2[%c0, %c0_0] : memref<256x8xbf16, #tpu.memory_space<vmem>>, vector<256x8xbf16>
    %c0_1 = arith.constant 0 : index
    %c0_2 = arith.constant 0 : index
    %1 = vector.load %arg4[%c0_1, %c0_2] : memref<8x4xbf16, #tpu.memory_space<vmem>>, vector<8x4xbf16>
    %cst = arith.constant dense<0.000000e+00> : vector<256x4xf32>
    %2 = tpu.matmul %0, %1, %cst {dimension_numbers = #tpu.dot_dimension_numbers<[1], [0], [0], [1], [0, 0, 1, 1], [], []>} : vector<256x8xbf16>, vector<8x4xbf16>, vector<256x4xf32> -> vector<256x4xf32>
    %c0_3 = arith.constant 0 : index
    %c0_4 = arith.constant 0 : index
    %3 = vector.load %arg3[%c0_3, %c0_4] : memref<256x4xbf16, #tpu.memory_space<vmem>>, vector<256x4xbf16>
    %c0_5 = arith.constant 0 : index
    %c0_6 = arith.constant 0 : index
    %4 = vector.load %arg5[%c0_5, %c0_6] : memref<4x4xbf16, #tpu.memory_space<vmem>>, vector<4x4xbf16>
    %cst_7 = arith.constant dense<0.000000e+00> : vector<256x4xf32>
    %5 = tpu.matmul %3, %4, %cst_7 {dimension_numbers = #tpu.dot_dimension_numbers<[1], [0], [0], [1], [0, 0, 1, 1], [], []>} : vector<256x4xbf16>, vector<4x4xbf16>, vector<256x4xf32> -> vector<256x4xf32>
    %6 = arith.addf %2, %5 : vector<256x4xf32>
    %c0_8 = arith.constant 0 : index
    %c0_9 = arith.constant 0 : index
    %7 = vector.load %arg6[%c0_8, %c0_9] : memref<1x4xf32, #tpu.memory_space<vmem>>, vector<1x4xf32>
    %8 = vector.broadcast %7 : vector<1x4xf32> to vector<256x4xf32>
    %9 = arith.addf %6, %8 : vector<256x4xf32>
    %cst_10 = arith.constant 0.000000e+00 : f32
    %10 = vector.broadcast %cst_10 : f32 to vector<256x4xf32>
    %11 = arith.subf %10, %9 : vector<256x4xf32>
    %12 = math.exp %11 : vector<256x4xf32>
    %cst_11 = arith.constant 1.000000e+00 : f32
    %13 = vector.broadcast %cst_11 : f32 to vector<256x4xf32>
    %14 = arith.addf %13, %12 : vector<256x4xf32>
    %cst_12 = arith.constant 1.000000e+00 : f32
    %15 = vector.broadcast %cst_12 : f32 to vector<256x4xf32>
    %16 = arith.divf %15, %14 : vector<256x4xf32>
    %17 = arith.mulf %9, %16 : vector<256x4xf32>
    %18 = arith.truncf %17 : vector<256x4xf32> to vector<256x4xbf16>
    %c0_13 = arith.constant 0 : index
    %c0_14 = arith.constant 0 : index
    %19 = vector.load %arg7[%c0_13, %c0_14] : memref<256x4xbf16, #tpu.memory_space<vmem>>, vector<256x4xbf16>
    tpu.vector_store %arg7[%c0_13, %c0_14], %18 {strides = array<i32>} : memref<256x4xbf16, #tpu.memory_space<vmem>>, vector<256x4xbf16>,
    return
  }
  func.func @transform_0(%arg0: i32, %arg1: i32) -> (i32, i32) {
    %c0_i32 = arith.constant 0 : i32
    %c0_i32_0 = arith.constant 0 : i32
    return %arg0, %c0_i32 : i32, i32
  }
  func.func @transform_1(%arg0: i32, %arg1: i32) -> (i32, i32) {
    %c0_i32 = arith.constant 0 : i32
    %c0_i32_0 = arith.constant 0 : i32
    return %arg0, %c0_i32 : i32, i32
  }
  func.func @transform_2(%arg0: i32, %arg1: i32) -> (i32, i32) {
    %c0_i32 = arith.constant 0 : i32
    %c0_i32_0 = arith.constant 0 : i32
    return %c0_i32, %arg1 : i32, i32
  }
  func.func @transform_3(%arg0: i32, %arg1: i32) -> (i32, i32) {
    %c0_i32 = arith.constant 0 : i32
    %c0_i32_0 = arith.constant 0 : i32
    return %c0_i32, %arg1 : i32, i32
  }
  func.func @transform_4(%arg0: i32, %arg1: i32) -> (i32, i32) {
    %c0_i32 = arith.constant 0 : i32
    %c0_i32_0 = arith.constant 0 : i32
    return %c0_i32, %arg1 : i32, i32
  }
  func.func @transform_5(%arg0: i32, %arg1: i32) -> (i32, i32) {
    %c0_i32 = arith.constant 0 : i32
    return %arg0, %arg1 : i32, i32
  }
}

module attributes {stable_mosaic.version = 11 : i64} {
  func.func @_gemm_kernel(%arg0: i32, %arg1: i32, %arg2: i32, %arg3: memref<256x18xbf16, #tpu.memory_space<vmem>>, %arg4: memref<18x2xbf16, #tpu.memory_space<vmem>>, %arg5: memref<1x2xf32, #tpu.memory_space<vmem>>, %arg6: memref<256x2xbf16, #tpu.memory_space<vmem>>, %arg7: memref<256x2xf32, #tpu.memory_space<vmem>>) attributes {dimension_semantics = [#tpu.dimension_semantics<parallel>, #tpu.dimension_semantics<parallel>, #tpu.dimension_semantics<arbitrary>], iteration_bounds = array<i64: 2, 1, 1>, scalar_prefetch = 0 : i64, scratch_operands = 1 : i64, tpu.core_type = #tpu.core_type<tc>, window_params = [{transform_indices = @transform_0, window_bounds = array<i64: 256, 18>}, {transform_indices = @transform_1, window_bounds = array<i64: 18, 2>}, {transform_indices = @transform_2, window_bounds = array<i64: 1, 2>}, {transform_indices = @transform_3, window_bounds = array<i64: 256, 2>}]} {
    %c0_i32 = arith.constant 0 : i32
    %0 = arith.cmpi eq, %arg2, %c0_i32 : i32
    %1 = arith.extui %0 : i1 to i32
    %c0_i32_0 = arith.constant 0 : i32
    %2 = arith.cmpi ne, %1, %c0_i32_0 : i32
    scf.if %2 {
      %cst_10 = arith.constant 0.000000e+00 : f32
      %12 = vector.broadcast %cst_10 : f32 to vector<256x2xf32>
      %c0_11 = arith.constant 0 : index
      %c0_12 = arith.constant 0 : index
      %13 = vector.load %arg7[%c0_11, %c0_12] : memref<256x2xf32, #tpu.memory_space<vmem>>, vector<256x2xf32>
      tpu.vector_store %arg7[%c0_11, %c0_12], %12 {strides = array<i32>} : memref<256x2xf32, #tpu.memory_space<vmem>>, vector<256x2xf32>,
    } else {
    }
    %c0 = arith.constant 0 : index
    %c0_1 = arith.constant 0 : index
    %3 = vector.load %arg7[%c0, %c0_1] : memref<256x2xf32, #tpu.memory_space<vmem>>, vector<256x2xf32>
    %c0_2 = arith.constant 0 : index
    %c0_3 = arith.constant 0 : index
    %4 = vector.load %arg3[%c0_2, %c0_3] : memref<256x18xbf16, #tpu.memory_space<vmem>>, vector<256x18xbf16>
    %c0_4 = arith.constant 0 : index
    %c0_5 = arith.constant 0 : index
    %5 = vector.load %arg4[%c0_4, %c0_5] : memref<18x2xbf16, #tpu.memory_space<vmem>>, vector<18x2xbf16>
    %cst = arith.constant dense<0.000000e+00> : vector<256x2xf32>
    %6 = tpu.matmul %4, %5, %cst {dimension_numbers = #tpu.dot_dimension_numbers<[1], [0], [0], [1], [0, 0, 1, 1], [], []>} : vector<256x18xbf16>, vector<18x2xbf16>, vector<256x2xf32> -> vector<256x2xf32>
    %7 = arith.addf %3, %6 : vector<256x2xf32>
    %c0_6 = arith.constant 0 : index
    %c0_7 = arith.constant 0 : index
    %8 = vector.load %arg7[%c0_6, %c0_7] : memref<256x2xf32, #tpu.memory_space<vmem>>, vector<256x2xf32>
    tpu.vector_store %arg7[%c0_6, %c0_7], %7 {strides = array<i32>} : memref<256x2xf32, #tpu.memory_space<vmem>>, vector<256x2xf32>,
    %c0_i32_8 = arith.constant 0 : i32
    %9 = arith.cmpi eq, %arg2, %c0_i32_8 : i32
    %10 = arith.extui %9 : i1 to i32
    %c0_i32_9 = arith.constant 0 : i32
    %11 = arith.cmpi ne, %10, %c0_i32_9 : i32
    scf.if %11 {
      %c0_10 = arith.constant 0 : index
      %c0_11 = arith.constant 0 : index
      %12 = vector.load %arg7[%c0_10, %c0_11] : memref<256x2xf32, #tpu.memory_space<vmem>>, vector<256x2xf32>
      %c0_12 = arith.constant 0 : index
      %c0_13 = arith.constant 0 : index
      %13 = vector.load %arg5[%c0_12, %c0_13] : memref<1x2xf32, #tpu.memory_space<vmem>>, vector<1x2xf32>
      %14 = vector.broadcast %13 : vector<1x2xf32> to vector<256x2xf32>
      %15 = arith.addf %12, %14 : vector<256x2xf32>
      %cst_14 = arith.constant 0.000000e+00 : f32
      %16 = vector.broadcast %cst_14 : f32 to vector<256x2xf32>
      %17 = arith.subf %16, %15 : vector<256x2xf32>
      %18 = math.exp %17 : vector<256x2xf32>
      %cst_15 = arith.constant 1.000000e+00 : f32
      %19 = vector.broadcast %cst_15 : f32 to vector<256x2xf32>
      %20 = arith.addf %19, %18 : vector<256x2xf32>
      %cst_16 = arith.constant 1.000000e+00 : f32
      %21 = vector.broadcast %cst_16 : f32 to vector<256x2xf32>
      %22 = arith.divf %21, %20 : vector<256x2xf32>
      %23 = arith.mulf %15, %22 : vector<256x2xf32>
      %24 = arith.truncf %23 : vector<256x2xf32> to vector<256x2xbf16>
      %c0_17 = arith.constant 0 : index
      %c0_18 = arith.constant 0 : index
      %25 = vector.load %arg6[%c0_17, %c0_18] : memref<256x2xbf16, #tpu.memory_space<vmem>>, vector<256x2xbf16>
      tpu.vector_store %arg6[%c0_17, %c0_18], %24 {strides = array<i32>} : memref<256x2xbf16, #tpu.memory_space<vmem>>, vector<256x2xbf16>,
    } else {
    }
    return
  }
  func.func @transform_0(%arg0: i32, %arg1: i32, %arg2: i32) -> (i32, i32) {
    %c0_i32 = arith.constant 0 : i32
    return %arg0, %arg2 : i32, i32
  }
  func.func @transform_1(%arg0: i32, %arg1: i32, %arg2: i32) -> (i32, i32) {
    %c0_i32 = arith.constant 0 : i32
    return %arg2, %arg1 : i32, i32
  }
  func.func @transform_2(%arg0: i32, %arg1: i32, %arg2: i32) -> (i32, i32) {
    %c0_i32 = arith.constant 0 : i32
    %c0_i32_0 = arith.constant 0 : i32
    return %c0_i32, %arg1 : i32, i32
  }
  func.func @transform_3(%arg0: i32, %arg1: i32, %arg2: i32) -> (i32, i32) {
    %c0_i32 = arith.constant 0 : i32
    return %arg0, %arg1 : i32, i32
  }
}

module attributes {stable_mosaic.version = 11 : i64} {
  func.func @_gemm_res_kernel(%arg0: i32, %arg1: i32, %arg2: i32, %arg3: memref<256x18xbf16, #tpu.memory_space<vmem>>, %arg4: memref<18x2xbf16, #tpu.memory_space<vmem>>, %arg5: memref<1x2xf32, #tpu.memory_space<vmem>>, %arg6: memref<256x2xbf16, #tpu.memory_space<vmem>>, %arg7: memref<256x2xbf16, #tpu.memory_space<vmem>>, %arg8: memref<256x2xf32, #tpu.memory_space<vmem>>) attributes {dimension_semantics = [#tpu.dimension_semantics<parallel>, #tpu.dimension_semantics<parallel>, #tpu.dimension_semantics<arbitrary>], iteration_bounds = array<i64: 2, 1, 1>, scalar_prefetch = 0 : i64, scratch_operands = 1 : i64, tpu.core_type = #tpu.core_type<tc>, window_params = [{transform_indices = @transform_0, window_bounds = array<i64: 256, 18>}, {transform_indices = @transform_1, window_bounds = array<i64: 18, 2>}, {transform_indices = @transform_2, window_bounds = array<i64: 1, 2>}, {transform_indices = @transform_3, window_bounds = array<i64: 256, 2>}, {transform_indices = @transform_4, window_bounds = array<i64: 256, 2>}]} {
    %c0_i32 = arith.constant 0 : i32
    %0 = arith.cmpi eq, %arg2, %c0_i32 : i32
    %1 = arith.extui %0 : i1 to i32
    %c0_i32_0 = arith.constant 0 : i32
    %2 = arith.cmpi ne, %1, %c0_i32_0 : i32
    scf.if %2 {
      %cst_10 = arith.constant 0.000000e+00 : f32
      %12 = vector.broadcast %cst_10 : f32 to vector<256x2xf32>
      %c0_11 = arith.constant 0 : index
      %c0_12 = arith.constant 0 : index
      %13 = vector.load %arg8[%c0_11, %c0_12] : memref<256x2xf32, #tpu.memory_space<vmem>>, vector<256x2xf32>
      tpu.vector_store %arg8[%c0_11, %c0_12], %12 {strides = array<i32>} : memref<256x2xf32, #tpu.memory_space<vmem>>, vector<256x2xf32>,
    } else {
    }
    %c0 = arith.constant 0 : index
    %c0_1 = arith.constant 0 : index
    %3 = vector.load %arg8[%c0, %c0_1] : memref<256x2xf32, #tpu.memory_space<vmem>>, vector<256x2xf32>
    %c0_2 = arith.constant 0 : index
    %c0_3 = arith.constant 0 : index
    %4 = vector.load %arg3[%c0_2, %c0_3] : memref<256x18xbf16, #tpu.memory_space<vmem>>, vector<256x18xbf16>
    %c0_4 = arith.constant 0 : index
    %c0_5 = arith.constant 0 : index
    %5 = vector.load %arg4[%c0_4, %c0_5] : memref<18x2xbf16, #tpu.memory_space<vmem>>, vector<18x2xbf16>
    %cst = arith.constant dense<0.000000e+00> : vector<256x2xf32>
    %6 = tpu.matmul %4, %5, %cst {dimension_numbers = #tpu.dot_dimension_numbers<[1], [0], [0], [1], [0, 0, 1, 1], [], []>} : vector<256x18xbf16>, vector<18x2xbf16>, vector<256x2xf32> -> vector<256x2xf32>
    %7 = arith.addf %3, %6 : vector<256x2xf32>
    %c0_6 = arith.constant 0 : index
    %c0_7 = arith.constant 0 : index
    %8 = vector.load %arg8[%c0_6, %c0_7] : memref<256x2xf32, #tpu.memory_space<vmem>>, vector<256x2xf32>
    tpu.vector_store %arg8[%c0_6, %c0_7], %7 {strides = array<i32>} : memref<256x2xf32, #tpu.memory_space<vmem>>, vector<256x2xf32>,
    %c0_i32_8 = arith.constant 0 : i32
    %9 = arith.cmpi eq, %arg2, %c0_i32_8 : i32
    %10 = arith.extui %9 : i1 to i32
    %c0_i32_9 = arith.constant 0 : i32
    %11 = arith.cmpi ne, %10, %c0_i32_9 : i32
    scf.if %11 {
      %c0_10 = arith.constant 0 : index
      %c0_11 = arith.constant 0 : index
      %12 = vector.load %arg8[%c0_10, %c0_11] : memref<256x2xf32, #tpu.memory_space<vmem>>, vector<256x2xf32>
      %c0_12 = arith.constant 0 : index
      %c0_13 = arith.constant 0 : index
      %13 = vector.load %arg5[%c0_12, %c0_13] : memref<1x2xf32, #tpu.memory_space<vmem>>, vector<1x2xf32>
      %14 = vector.broadcast %13 : vector<1x2xf32> to vector<256x2xf32>
      %15 = arith.addf %12, %14 : vector<256x2xf32>
      %cst_14 = arith.constant 0.000000e+00 : f32
      %16 = vector.broadcast %cst_14 : f32 to vector<256x2xf32>
      %17 = arith.subf %16, %15 : vector<256x2xf32>
      %18 = math.exp %17 : vector<256x2xf32>
      %cst_15 = arith.constant 1.000000e+00 : f32
      %19 = vector.broadcast %cst_15 : f32 to vector<256x2xf32>
      %20 = arith.addf %19, %18 : vector<256x2xf32>
      %cst_16 = arith.constant 1.000000e+00 : f32
      %21 = vector.broadcast %cst_16 : f32 to vector<256x2xf32>
      %22 = arith.divf %21, %20 : vector<256x2xf32>
      %23 = arith.mulf %15, %22 : vector<256x2xf32>
      %c0_17 = arith.constant 0 : index
      %c0_18 = arith.constant 0 : index
      %24 = vector.load %arg6[%c0_17, %c0_18] : memref<256x2xbf16, #tpu.memory_space<vmem>>, vector<256x2xbf16>
      %25 = arith.extf %24 : vector<256x2xbf16> to vector<256x2xf32>
      %26 = arith.addf %23, %25 : vector<256x2xf32>
      %27 = arith.truncf %26 : vector<256x2xf32> to vector<256x2xbf16>
      %c0_19 = arith.constant 0 : index
      %c0_20 = arith.constant 0 : index
      %28 = vector.load %arg7[%c0_19, %c0_20] : memref<256x2xbf16, #tpu.memory_space<vmem>>, vector<256x2xbf16>
      tpu.vector_store %arg7[%c0_19, %c0_20], %27 {strides = array<i32>} : memref<256x2xbf16, #tpu.memory_space<vmem>>, vector<256x2xbf16>,
    } else {
    }
    return
  }
  func.func @transform_0(%arg0: i32, %arg1: i32, %arg2: i32) -> (i32, i32) {
    %c0_i32 = arith.constant 0 : i32
    return %arg0, %arg2 : i32, i32
  }
  func.func @transform_1(%arg0: i32, %arg1: i32, %arg2: i32) -> (i32, i32) {
    %c0_i32 = arith.constant 0 : i32
    return %arg2, %arg1 : i32, i32
  }
  func.func @transform_2(%arg0: i32, %arg1: i32, %arg2: i32) -> (i32, i32) {
    %c0_i32 = arith.constant 0 : i32
    %c0_i32_0 = arith.constant 0 : i32
    return %c0_i32, %arg1 : i32, i32
  }
  func.func @transform_3(%arg0: i32, %arg1: i32, %arg2: i32) -> (i32, i32) {
    %c0_i32 = arith.constant 0 : i32
    return %arg0, %arg1 : i32, i32
  }
  func.func @transform_4(%arg0: i32, %arg1: i32, %arg2: i32) -> (i32, i32) {
    %c0_i32 = arith.constant 0 : i32
    return %arg0, %arg1 : i32, i32
  }
}

module attributes {stable_mosaic.version = 11 : i64} {
  func.func @kernel(%arg0: i32, %arg1: i32, %arg2: memref<256x2xbf16, #tpu.memory_space<vmem>>, %arg3: memref<256x2xbf16, #tpu.memory_space<vmem>>, %arg4: memref<256x2xbf16, #tpu.memory_space<vmem>>, %arg5: memref<2x4xbf16, #tpu.memory_space<vmem>>, %arg6: memref<2x4xbf16, #tpu.memory_space<vmem>>, %arg7: memref<2x4xbf16, #tpu.memory_space<vmem>>, %arg8: memref<1x4xf32, #tpu.memory_space<vmem>>, %arg9: memref<256x4xbf16, #tpu.memory_space<vmem>>) attributes {dimension_semantics = [#tpu.dimension_semantics<parallel>, #tpu.dimension_semantics<parallel>], iteration_bounds = array<i64: 2, 1>, scalar_prefetch = 0 : i64, scratch_operands = 0 : i64, tpu.core_type = #tpu.core_type<tc>, window_params = [{transform_indices = @transform_0, window_bounds = array<i64: 256, 2>}, {transform_indices = @transform_1, window_bounds = array<i64: 256, 2>}, {transform_indices = @transform_2, window_bounds = array<i64: 256, 2>}, {transform_indices = @transform_3, window_bounds = array<i64: 2, 4>}, {transform_indices = @transform_4, window_bounds = array<i64: 2, 4>}, {transform_indices = @transform_5, window_bounds = array<i64: 2, 4>}, {transform_indices = @transform_6, window_bounds = array<i64: 1, 4>}, {transform_indices = @transform_7, window_bounds = array<i64: 256, 4>}]} {
    %c0 = arith.constant 0 : index
    %c0_0 = arith.constant 0 : index
    %0 = vector.load %arg2[%c0, %c0_0] : memref<256x2xbf16, #tpu.memory_space<vmem>>, vector<256x2xbf16>
    %c0_1 = arith.constant 0 : index
    %c0_2 = arith.constant 0 : index
    %1 = vector.load %arg5[%c0_1, %c0_2] : memref<2x4xbf16, #tpu.memory_space<vmem>>, vector<2x4xbf16>
    %cst = arith.constant dense<0.000000e+00> : vector<256x4xf32>
    %2 = tpu.matmul %0, %1, %cst {dimension_numbers = #tpu.dot_dimension_numbers<[1], [0], [0], [1], [0, 0, 1, 1], [], []>} : vector<256x2xbf16>, vector<2x4xbf16>, vector<256x4xf32> -> vector<256x4xf32>
    %c0_3 = arith.constant 0 : index
    %c0_4 = arith.constant 0 : index
    %3 = vector.load %arg3[%c0_3, %c0_4] : memref<256x2xbf16, #tpu.memory_space<vmem>>, vector<256x2xbf16>
    %c0_5 = arith.constant 0 : index
    %c0_6 = arith.constant 0 : index
    %4 = vector.load %arg6[%c0_5, %c0_6] : memref<2x4xbf16, #tpu.memory_space<vmem>>, vector<2x4xbf16>
    %cst_7 = arith.constant dense<0.000000e+00> : vector<256x4xf32>
    %5 = tpu.matmul %3, %4, %cst_7 {dimension_numbers = #tpu.dot_dimension_numbers<[1], [0], [0], [1], [0, 0, 1, 1], [], []>} : vector<256x2xbf16>, vector<2x4xbf16>, vector<256x4xf32> -> vector<256x4xf32>
    %6 = arith.addf %2, %5 : vector<256x4xf32>
    %c0_8 = arith.constant 0 : index
    %c0_9 = arith.constant 0 : index
    %7 = vector.load %arg4[%c0_8, %c0_9] : memref<256x2xbf16, #tpu.memory_space<vmem>>, vector<256x2xbf16>
    %c0_10 = arith.constant 0 : index
    %c0_11 = arith.constant 0 : index
    %8 = vector.load %arg7[%c0_10, %c0_11] : memref<2x4xbf16, #tpu.memory_space<vmem>>, vector<2x4xbf16>
    %cst_12 = arith.constant dense<0.000000e+00> : vector<256x4xf32>
    %9 = tpu.matmul %7, %8, %cst_12 {dimension_numbers = #tpu.dot_dimension_numbers<[1], [0], [0], [1], [0, 0, 1, 1], [], []>} : vector<256x2xbf16>, vector<2x4xbf16>, vector<256x4xf32> -> vector<256x4xf32>
    %10 = arith.addf %6, %9 : vector<256x4xf32>
    %c0_13 = arith.constant 0 : index
    %c0_14 = arith.constant 0 : index
    %11 = vector.load %arg8[%c0_13, %c0_14] : memref<1x4xf32, #tpu.memory_space<vmem>>, vector<1x4xf32>
    %12 = vector.broadcast %11 : vector<1x4xf32> to vector<256x4xf32>
    %13 = arith.addf %10, %12 : vector<256x4xf32>
    %cst_15 = arith.constant 0.000000e+00 : f32
    %14 = vector.broadcast %cst_15 : f32 to vector<256x4xf32>
    %15 = arith.subf %14, %13 : vector<256x4xf32>
    %16 = math.exp %15 : vector<256x4xf32>
    %cst_16 = arith.constant 1.000000e+00 : f32
    %17 = vector.broadcast %cst_16 : f32 to vector<256x4xf32>
    %18 = arith.addf %17, %16 : vector<256x4xf32>
    %cst_17 = arith.constant 1.000000e+00 : f32
    %19 = vector.broadcast %cst_17 : f32 to vector<256x4xf32>
    %20 = arith.divf %19, %18 : vector<256x4xf32>
    %21 = arith.mulf %13, %20 : vector<256x4xf32>
    %22 = arith.truncf %21 : vector<256x4xf32> to vector<256x4xbf16>
    %c0_18 = arith.constant 0 : index
    %c0_19 = arith.constant 0 : index
    %23 = vector.load %arg9[%c0_18, %c0_19] : memref<256x4xbf16, #tpu.memory_space<vmem>>, vector<256x4xbf16>
    tpu.vector_store %arg9[%c0_18, %c0_19], %22 {strides = array<i32>} : memref<256x4xbf16, #tpu.memory_space<vmem>>, vector<256x4xbf16>,
    return
  }
  func.func @transform_0(%arg0: i32, %arg1: i32) -> (i32, i32) {
    %c0_i32 = arith.constant 0 : i32
    %c0_i32_0 = arith.constant 0 : i32
    return %arg0, %c0_i32 : i32, i32
  }
  func.func @transform_1(%arg0: i32, %arg1: i32) -> (i32, i32) {
    %c0_i32 = arith.constant 0 : i32
    %c0_i32_0 = arith.constant 0 : i32
    return %arg0, %c0_i32 : i32, i32
  }
  func.func @transform_2(%arg0: i32, %arg1: i32) -> (i32, i32) {
    %c0_i32 = arith.constant 0 : i32
    %c0_i32_0 = arith.constant 0 : i32
    return %arg0, %c0_i32 : i32, i32
  }
  func.func @transform_3(%arg0: i32, %arg1: i32) -> (i32, i32) {
    %c0_i32 = arith.constant 0 : i32
    %c0_i32_0 = arith.constant 0 : i32
    return %c0_i32, %arg1 : i32, i32
  }
  func.func @transform_4(%arg0: i32, %arg1: i32) -> (i32, i32) {
    %c0_i32 = arith.constant 0 : i32
    %c0_i32_0 = arith.constant 0 : i32
    return %c0_i32, %arg1 : i32, i32
  }
  func.func @transform_5(%arg0: i32, %arg1: i32) -> (i32, i32) {
    %c0_i32 = arith.constant 0 : i32
    %c0_i32_0 = arith.constant 0 : i32
    return %c0_i32, %arg1 : i32, i32
  }
  func.func @transform_6(%arg0: i32, %arg1: i32) -> (i32, i32) {
    %c0_i32 = arith.constant 0 : i32
    %c0_i32_0 = arith.constant 0 : i32
    return %c0_i32, %arg1 : i32, i32
  }
  func.func @transform_7(%arg0: i32, %arg1: i32) -> (i32, i32) {
    %c0_i32 = arith.constant 0 : i32
    return %arg0, %arg1 : i32, i32
  }
}

module attributes {stable_mosaic.version = 11 : i64} {
  func.func @kernel(%arg0: i32, %arg1: i32, %arg2: memref<128x4xbf16, #tpu.memory_space<vmem>>, %arg3: memref<128x8xbf16, #tpu.memory_space<vmem>>, %arg4: memref<4x8xbf16, #tpu.memory_space<vmem>>, %arg5: memref<8x8xbf16, #tpu.memory_space<vmem>>, %arg6: memref<1x8xf32, #tpu.memory_space<vmem>>, %arg7: memref<128x8xbf16, #tpu.memory_space<vmem>>) attributes {dimension_semantics = [#tpu.dimension_semantics<parallel>, #tpu.dimension_semantics<parallel>], iteration_bounds = array<i64: 1, 1>, scalar_prefetch = 0 : i64, scratch_operands = 0 : i64, tpu.core_type = #tpu.core_type<tc>, window_params = [{transform_indices = @transform_0, window_bounds = array<i64: 128, 4>}, {transform_indices = @transform_1, window_bounds = array<i64: 128, 8>}, {transform_indices = @transform_2, window_bounds = array<i64: 4, 8>}, {transform_indices = @transform_3, window_bounds = array<i64: 8, 8>}, {transform_indices = @transform_4, window_bounds = array<i64: 1, 8>}, {transform_indices = @transform_5, window_bounds = array<i64: 128, 8>}]} {
    %c0 = arith.constant 0 : index
    %c0_0 = arith.constant 0 : index
    %0 = vector.load %arg2[%c0, %c0_0] : memref<128x4xbf16, #tpu.memory_space<vmem>>, vector<128x4xbf16>
    %c0_1 = arith.constant 0 : index
    %c0_2 = arith.constant 0 : index
    %1 = vector.load %arg4[%c0_1, %c0_2] : memref<4x8xbf16, #tpu.memory_space<vmem>>, vector<4x8xbf16>
    %cst = arith.constant dense<0.000000e+00> : vector<128x8xf32>
    %2 = tpu.matmul %0, %1, %cst {dimension_numbers = #tpu.dot_dimension_numbers<[1], [0], [0], [1], [0, 0, 1, 1], [], []>} : vector<128x4xbf16>, vector<4x8xbf16>, vector<128x8xf32> -> vector<128x8xf32>
    %c0_3 = arith.constant 0 : index
    %c0_4 = arith.constant 0 : index
    %3 = vector.load %arg3[%c0_3, %c0_4] : memref<128x8xbf16, #tpu.memory_space<vmem>>, vector<128x8xbf16>
    %c0_5 = arith.constant 0 : index
    %c0_6 = arith.constant 0 : index
    %4 = vector.load %arg5[%c0_5, %c0_6] : memref<8x8xbf16, #tpu.memory_space<vmem>>, vector<8x8xbf16>
    %cst_7 = arith.constant dense<0.000000e+00> : vector<128x8xf32>
    %5 = tpu.matmul %3, %4, %cst_7 {dimension_numbers = #tpu.dot_dimension_numbers<[1], [0], [0], [1], [0, 0, 1, 1], [], []>} : vector<128x8xbf16>, vector<8x8xbf16>, vector<128x8xf32> -> vector<128x8xf32>
    %6 = arith.addf %2, %5 : vector<128x8xf32>
    %c0_8 = arith.constant 0 : index
    %c0_9 = arith.constant 0 : index
    %7 = vector.load %arg6[%c0_8, %c0_9] : memref<1x8xf32, #tpu.memory_space<vmem>>, vector<1x8xf32>
    %8 = vector.broadcast %7 : vector<1x8xf32> to vector<128x8xf32>
    %9 = arith.addf %6, %8 : vector<128x8xf32>
    %cst_10 = arith.constant 0.000000e+00 : f32
    %10 = vector.broadcast %cst_10 : f32 to vector<128x8xf32>
    %11 = arith.subf %10, %9 : vector<128x8xf32>
    %12 = math.exp %11 : vector<128x8xf32>
    %cst_11 = arith.constant 1.000000e+00 : f32
    %13 = vector.broadcast %cst_11 : f32 to vector<128x8xf32>
    %14 = arith.addf %13, %12 : vector<128x8xf32>
    %cst_12 = arith.constant 1.000000e+00 : f32
    %15 = vector.broadcast %cst_12 : f32 to vector<128x8xf32>
    %16 = arith.divf %15, %14 : vector<128x8xf32>
    %17 = arith.mulf %9, %16 : vector<128x8xf32>
    %18 = arith.truncf %17 : vector<128x8xf32> to vector<128x8xbf16>
    %c0_13 = arith.constant 0 : index
    %c0_14 = arith.constant 0 : index
    %19 = vector.load %arg7[%c0_13, %c0_14] : memref<128x8xbf16, #tpu.memory_space<vmem>>, vector<128x8xbf16>
    tpu.vector_store %arg7[%c0_13, %c0_14], %18 {strides = array<i32>} : memref<128x8xbf16, #tpu.memory_space<vmem>>, vector<128x8xbf16>,
    return
  }
  func.func @transform_0(%arg0: i32, %arg1: i32) -> (i32, i32) {
    %c0_i32 = arith.constant 0 : i32
    %c0_i32_0 = arith.constant 0 : i32
    return %arg0, %c0_i32 : i32, i32
  }
  func.func @transform_1(%arg0: i32, %arg1: i32) -> (i32, i32) {
    %c0_i32 = arith.constant 0 : i32
    %c0_i32_0 = arith.constant 0 : i32
    return %arg0, %c0_i32 : i32, i32
  }
  func.func @transform_2(%arg0: i32, %arg1: i32) -> (i32, i32) {
    %c0_i32 = arith.constant 0 : i32
    %c0_i32_0 = arith.constant 0 : i32
    return %c0_i32, %arg1 : i32, i32
  }
  func.func @transform_3(%arg0: i32, %arg1: i32) -> (i32, i32) {
    %c0_i32 = arith.constant 0 : i32
    %c0_i32_0 = arith.constant 0 : i32
    return %c0_i32, %arg1 : i32, i32
  }
  func.func @transform_4(%arg0: i32, %arg1: i32) -> (i32, i32) {
    %c0_i32 = arith.constant 0 : i32
    %c0_i32_0 = arith.constant 0 : i32
    return %c0_i32, %arg1 : i32, i32
  }
  func.func @transform_5(%arg0: i32, %arg1: i32) -> (i32, i32) {
    %c0_i32 = arith.constant 0 : i32
    return %arg0, %arg1 : i32, i32
  }
}

module attributes {stable_mosaic.version = 11 : i64} {
  func.func @_gemm_kernel(%arg0: i32, %arg1: i32, %arg2: i32, %arg3: memref<32x72xbf16, #tpu.memory_space<vmem>>, %arg4: memref<72x8xbf16, #tpu.memory_space<vmem>>, %arg5: memref<1x8xf32, #tpu.memory_space<vmem>>, %arg6: memref<32x8xbf16, #tpu.memory_space<vmem>>, %arg7: memref<32x8xf32, #tpu.memory_space<vmem>>) attributes {dimension_semantics = [#tpu.dimension_semantics<parallel>, #tpu.dimension_semantics<parallel>, #tpu.dimension_semantics<arbitrary>], iteration_bounds = array<i64: 1, 1, 1>, scalar_prefetch = 0 : i64, scratch_operands = 1 : i64, tpu.core_type = #tpu.core_type<tc>, window_params = [{transform_indices = @transform_0, window_bounds = array<i64: 32, 72>}, {transform_indices = @transform_1, window_bounds = array<i64: 72, 8>}, {transform_indices = @transform_2, window_bounds = array<i64: 1, 8>}, {transform_indices = @transform_3, window_bounds = array<i64: 32, 8>}]} {
    %c0_i32 = arith.constant 0 : i32
    %0 = arith.cmpi eq, %arg2, %c0_i32 : i32
    %1 = arith.extui %0 : i1 to i32
    %c0_i32_0 = arith.constant 0 : i32
    %2 = arith.cmpi ne, %1, %c0_i32_0 : i32
    scf.if %2 {
      %cst_10 = arith.constant 0.000000e+00 : f32
      %12 = vector.broadcast %cst_10 : f32 to vector<32x8xf32>
      %c0_11 = arith.constant 0 : index
      %c0_12 = arith.constant 0 : index
      %13 = vector.load %arg7[%c0_11, %c0_12] : memref<32x8xf32, #tpu.memory_space<vmem>>, vector<32x8xf32>
      tpu.vector_store %arg7[%c0_11, %c0_12], %12 {strides = array<i32>} : memref<32x8xf32, #tpu.memory_space<vmem>>, vector<32x8xf32>,
    } else {
    }
    %c0 = arith.constant 0 : index
    %c0_1 = arith.constant 0 : index
    %3 = vector.load %arg7[%c0, %c0_1] : memref<32x8xf32, #tpu.memory_space<vmem>>, vector<32x8xf32>
    %c0_2 = arith.constant 0 : index
    %c0_3 = arith.constant 0 : index
    %4 = vector.load %arg3[%c0_2, %c0_3] : memref<32x72xbf16, #tpu.memory_space<vmem>>, vector<32x72xbf16>
    %c0_4 = arith.constant 0 : index
    %c0_5 = arith.constant 0 : index
    %5 = vector.load %arg4[%c0_4, %c0_5] : memref<72x8xbf16, #tpu.memory_space<vmem>>, vector<72x8xbf16>
    %cst = arith.constant dense<0.000000e+00> : vector<32x8xf32>
    %6 = tpu.matmul %4, %5, %cst {dimension_numbers = #tpu.dot_dimension_numbers<[1], [0], [0], [1], [0, 0, 1, 1], [], []>} : vector<32x72xbf16>, vector<72x8xbf16>, vector<32x8xf32> -> vector<32x8xf32>
    %7 = arith.addf %3, %6 : vector<32x8xf32>
    %c0_6 = arith.constant 0 : index
    %c0_7 = arith.constant 0 : index
    %8 = vector.load %arg7[%c0_6, %c0_7] : memref<32x8xf32, #tpu.memory_space<vmem>>, vector<32x8xf32>
    tpu.vector_store %arg7[%c0_6, %c0_7], %7 {strides = array<i32>} : memref<32x8xf32, #tpu.memory_space<vmem>>, vector<32x8xf32>,
    %c0_i32_8 = arith.constant 0 : i32
    %9 = arith.cmpi eq, %arg2, %c0_i32_8 : i32
    %10 = arith.extui %9 : i1 to i32
    %c0_i32_9 = arith.constant 0 : i32
    %11 = arith.cmpi ne, %10, %c0_i32_9 : i32
    scf.if %11 {
      %c0_10 = arith.constant 0 : index
      %c0_11 = arith.constant 0 : index
      %12 = vector.load %arg7[%c0_10, %c0_11] : memref<32x8xf32, #tpu.memory_space<vmem>>, vector<32x8xf32>
      %c0_12 = arith.constant 0 : index
      %c0_13 = arith.constant 0 : index
      %13 = vector.load %arg5[%c0_12, %c0_13] : memref<1x8xf32, #tpu.memory_space<vmem>>, vector<1x8xf32>
      %14 = vector.broadcast %13 : vector<1x8xf32> to vector<32x8xf32>
      %15 = arith.addf %12, %14 : vector<32x8xf32>
      %cst_14 = arith.constant 0.000000e+00 : f32
      %16 = vector.broadcast %cst_14 : f32 to vector<32x8xf32>
      %17 = arith.subf %16, %15 : vector<32x8xf32>
      %18 = math.exp %17 : vector<32x8xf32>
      %cst_15 = arith.constant 1.000000e+00 : f32
      %19 = vector.broadcast %cst_15 : f32 to vector<32x8xf32>
      %20 = arith.addf %19, %18 : vector<32x8xf32>
      %cst_16 = arith.constant 1.000000e+00 : f32
      %21 = vector.broadcast %cst_16 : f32 to vector<32x8xf32>
      %22 = arith.divf %21, %20 : vector<32x8xf32>
      %23 = arith.mulf %15, %22 : vector<32x8xf32>
      %24 = arith.truncf %23 : vector<32x8xf32> to vector<32x8xbf16>
      %c0_17 = arith.constant 0 : index
      %c0_18 = arith.constant 0 : index
      %25 = vector.load %arg6[%c0_17, %c0_18] : memref<32x8xbf16, #tpu.memory_space<vmem>>, vector<32x8xbf16>
      tpu.vector_store %arg6[%c0_17, %c0_18], %24 {strides = array<i32>} : memref<32x8xbf16, #tpu.memory_space<vmem>>, vector<32x8xbf16>,
    } else {
    }
    return
  }
  func.func @transform_0(%arg0: i32, %arg1: i32, %arg2: i32) -> (i32, i32) {
    %c0_i32 = arith.constant 0 : i32
    return %arg0, %arg2 : i32, i32
  }
  func.func @transform_1(%arg0: i32, %arg1: i32, %arg2: i32) -> (i32, i32) {
    %c0_i32 = arith.constant 0 : i32
    return %arg2, %arg1 : i32, i32
  }
  func.func @transform_2(%arg0: i32, %arg1: i32, %arg2: i32) -> (i32, i32) {
    %c0_i32 = arith.constant 0 : i32
    %c0_i32_0 = arith.constant 0 : i32
    return %c0_i32, %arg1 : i32, i32
  }
  func.func @transform_3(%arg0: i32, %arg1: i32, %arg2: i32) -> (i32, i32) {
    %c0_i32 = arith.constant 0 : i32
    return %arg0, %arg1 : i32, i32
  }
}

module attributes {stable_mosaic.version = 11 : i64} {
  func.func @kernel(%arg0: i32, %arg1: i32, %arg2: memref<32x8xbf16, #tpu.memory_space<vmem>>, %arg3: memref<32x16xbf16, #tpu.memory_space<vmem>>, %arg4: memref<8x16xbf16, #tpu.memory_space<vmem>>, %arg5: memref<16x16xbf16, #tpu.memory_space<vmem>>, %arg6: memref<1x16xf32, #tpu.memory_space<vmem>>, %arg7: memref<32x16xbf16, #tpu.memory_space<vmem>>) attributes {dimension_semantics = [#tpu.dimension_semantics<parallel>, #tpu.dimension_semantics<parallel>], iteration_bounds = array<i64: 1, 1>, scalar_prefetch = 0 : i64, scratch_operands = 0 : i64, tpu.core_type = #tpu.core_type<tc>, window_params = [{transform_indices = @transform_0, window_bounds = array<i64: 32, 8>}, {transform_indices = @transform_1, window_bounds = array<i64: 32, 16>}, {transform_indices = @transform_2, window_bounds = array<i64: 8, 16>}, {transform_indices = @transform_3, window_bounds = array<i64: 16, 16>}, {transform_indices = @transform_4, window_bounds = array<i64: 1, 16>}, {transform_indices = @transform_5, window_bounds = array<i64: 32, 16>}]} {
    %c0 = arith.constant 0 : index
    %c0_0 = arith.constant 0 : index
    %0 = vector.load %arg2[%c0, %c0_0] : memref<32x8xbf16, #tpu.memory_space<vmem>>, vector<32x8xbf16>
    %c0_1 = arith.constant 0 : index
    %c0_2 = arith.constant 0 : index
    %1 = vector.load %arg4[%c0_1, %c0_2] : memref<8x16xbf16, #tpu.memory_space<vmem>>, vector<8x16xbf16>
    %cst = arith.constant dense<0.000000e+00> : vector<32x16xf32>
    %2 = tpu.matmul %0, %1, %cst {dimension_numbers = #tpu.dot_dimension_numbers<[1], [0], [0], [1], [0, 0, 1, 1], [], []>} : vector<32x8xbf16>, vector<8x16xbf16>, vector<32x16xf32> -> vector<32x16xf32>
    %c0_3 = arith.constant 0 : index
    %c0_4 = arith.constant 0 : index
    %3 = vector.load %arg3[%c0_3, %c0_4] : memref<32x16xbf16, #tpu.memory_space<vmem>>, vector<32x16xbf16>
    %c0_5 = arith.constant 0 : index
    %c0_6 = arith.constant 0 : index
    %4 = vector.load %arg5[%c0_5, %c0_6] : memref<16x16xbf16, #tpu.memory_space<vmem>>, vector<16x16xbf16>
    %cst_7 = arith.constant dense<0.000000e+00> : vector<32x16xf32>
    %5 = tpu.matmul %3, %4, %cst_7 {dimension_numbers = #tpu.dot_dimension_numbers<[1], [0], [0], [1], [0, 0, 1, 1], [], []>} : vector<32x16xbf16>, vector<16x16xbf16>, vector<32x16xf32> -> vector<32x16xf32>
    %6 = arith.addf %2, %5 : vector<32x16xf32>
    %c0_8 = arith.constant 0 : index
    %c0_9 = arith.constant 0 : index
    %7 = vector.load %arg6[%c0_8, %c0_9] : memref<1x16xf32, #tpu.memory_space<vmem>>, vector<1x16xf32>
    %8 = vector.broadcast %7 : vector<1x16xf32> to vector<32x16xf32>
    %9 = arith.addf %6, %8 : vector<32x16xf32>
    %cst_10 = arith.constant 0.000000e+00 : f32
    %10 = vector.broadcast %cst_10 : f32 to vector<32x16xf32>
    %11 = arith.subf %10, %9 : vector<32x16xf32>
    %12 = math.exp %11 : vector<32x16xf32>
    %cst_11 = arith.constant 1.000000e+00 : f32
    %13 = vector.broadcast %cst_11 : f32 to vector<32x16xf32>
    %14 = arith.addf %13, %12 : vector<32x16xf32>
    %cst_12 = arith.constant 1.000000e+00 : f32
    %15 = vector.broadcast %cst_12 : f32 to vector<32x16xf32>
    %16 = arith.divf %15, %14 : vector<32x16xf32>
    %17 = arith.mulf %9, %16 : vector<32x16xf32>
    %18 = arith.truncf %17 : vector<32x16xf32> to vector<32x16xbf16>
    %c0_13 = arith.constant 0 : index
    %c0_14 = arith.constant 0 : index
    %19 = vector.load %arg7[%c0_13, %c0_14] : memref<32x16xbf16, #tpu.memory_space<vmem>>, vector<32x16xbf16>
    tpu.vector_store %arg7[%c0_13, %c0_14], %18 {strides = array<i32>} : memref<32x16xbf16, #tpu.memory_space<vmem>>, vector<32x16xbf16>,
    return
  }
  func.func @transform_0(%arg0: i32, %arg1: i32) -> (i32, i32) {
    %c0_i32 = arith.constant 0 : i32
    %c0_i32_0 = arith.constant 0 : i32
    return %arg0, %c0_i32 : i32, i32
  }
  func.func @transform_1(%arg0: i32, %arg1: i32) -> (i32, i32) {
    %c0_i32 = arith.constant 0 : i32
    %c0_i32_0 = arith.constant 0 : i32
    return %arg0, %c0_i32 : i32, i32
  }
  func.func @transform_2(%arg0: i32, %arg1: i32) -> (i32, i32) {
    %c0_i32 = arith.constant 0 : i32
    %c0_i32_0 = arith.constant 0 : i32
    return %c0_i32, %arg1 : i32, i32
  }
  func.func @transform_3(%arg0: i32, %arg1: i32) -> (i32, i32) {
    %c0_i32 = arith.constant 0 : i32
    %c0_i32_0 = arith.constant 0 : i32
    return %c0_i32, %arg1 : i32, i32
  }
  func.func @transform_4(%arg0: i32, %arg1: i32) -> (i32, i32) {
    %c0_i32 = arith.constant 0 : i32
    %c0_i32_0 = arith.constant 0 : i32
    return %c0_i32, %arg1 : i32, i32
  }
  func.func @transform_5(%arg0: i32, %arg1: i32) -> (i32, i32) {
    %c0_i32 = arith.constant 0 : i32
    return %arg0, %arg1 : i32, i32
  }
}

module attributes {stable_mosaic.version = 11 : i64} {
  func.func @kernel(%arg0: i32, %arg1: i32, %arg2: memref<32x8xbf16, #tpu.memory_space<vmem>>, %arg3: memref<32x8xbf16, #tpu.memory_space<vmem>>, %arg4: memref<32x8xbf16, #tpu.memory_space<vmem>>, %arg5: memref<8x16xbf16, #tpu.memory_space<vmem>>, %arg6: memref<8x16xbf16, #tpu.memory_space<vmem>>, %arg7: memref<8x16xbf16, #tpu.memory_space<vmem>>, %arg8: memref<1x16xf32, #tpu.memory_space<vmem>>, %arg9: memref<32x16xbf16, #tpu.memory_space<vmem>>) attributes {dimension_semantics = [#tpu.dimension_semantics<parallel>, #tpu.dimension_semantics<parallel>], iteration_bounds = array<i64: 1, 1>, scalar_prefetch = 0 : i64, scratch_operands = 0 : i64, tpu.core_type = #tpu.core_type<tc>, window_params = [{transform_indices = @transform_0, window_bounds = array<i64: 32, 8>}, {transform_indices = @transform_1, window_bounds = array<i64: 32, 8>}, {transform_indices = @transform_2, window_bounds = array<i64: 32, 8>}, {transform_indices = @transform_3, window_bounds = array<i64: 8, 16>}, {transform_indices = @transform_4, window_bounds = array<i64: 8, 16>}, {transform_indices = @transform_5, window_bounds = array<i64: 8, 16>}, {transform_indices = @transform_6, window_bounds = array<i64: 1, 16>}, {transform_indices = @transform_7, window_bounds = array<i64: 32, 16>}]} {
    %c0 = arith.constant 0 : index
    %c0_0 = arith.constant 0 : index
    %0 = vector.load %arg2[%c0, %c0_0] : memref<32x8xbf16, #tpu.memory_space<vmem>>, vector<32x8xbf16>
    %c0_1 = arith.constant 0 : index
    %c0_2 = arith.constant 0 : index
    %1 = vector.load %arg5[%c0_1, %c0_2] : memref<8x16xbf16, #tpu.memory_space<vmem>>, vector<8x16xbf16>
    %cst = arith.constant dense<0.000000e+00> : vector<32x16xf32>
    %2 = tpu.matmul %0, %1, %cst {dimension_numbers = #tpu.dot_dimension_numbers<[1], [0], [0], [1], [0, 0, 1, 1], [], []>} : vector<32x8xbf16>, vector<8x16xbf16>, vector<32x16xf32> -> vector<32x16xf32>
    %c0_3 = arith.constant 0 : index
    %c0_4 = arith.constant 0 : index
    %3 = vector.load %arg3[%c0_3, %c0_4] : memref<32x8xbf16, #tpu.memory_space<vmem>>, vector<32x8xbf16>
    %c0_5 = arith.constant 0 : index
    %c0_6 = arith.constant 0 : index
    %4 = vector.load %arg6[%c0_5, %c0_6] : memref<8x16xbf16, #tpu.memory_space<vmem>>, vector<8x16xbf16>
    %cst_7 = arith.constant dense<0.000000e+00> : vector<32x16xf32>
    %5 = tpu.matmul %3, %4, %cst_7 {dimension_numbers = #tpu.dot_dimension_numbers<[1], [0], [0], [1], [0, 0, 1, 1], [], []>} : vector<32x8xbf16>, vector<8x16xbf16>, vector<32x16xf32> -> vector<32x16xf32>
    %6 = arith.addf %2, %5 : vector<32x16xf32>
    %c0_8 = arith.constant 0 : index
    %c0_9 = arith.constant 0 : index
    %7 = vector.load %arg4[%c0_8, %c0_9] : memref<32x8xbf16, #tpu.memory_space<vmem>>, vector<32x8xbf16>
    %c0_10 = arith.constant 0 : index
    %c0_11 = arith.constant 0 : index
    %8 = vector.load %arg7[%c0_10, %c0_11] : memref<8x16xbf16, #tpu.memory_space<vmem>>, vector<8x16xbf16>
    %cst_12 = arith.constant dense<0.000000e+00> : vector<32x16xf32>
    %9 = tpu.matmul %7, %8, %cst_12 {dimension_numbers = #tpu.dot_dimension_numbers<[1], [0], [0], [1], [0, 0, 1, 1], [], []>} : vector<32x8xbf16>, vector<8x16xbf16>, vector<32x16xf32> -> vector<32x16xf32>
    %10 = arith.addf %6, %9 : vector<32x16xf32>
    %c0_13 = arith.constant 0 : index
    %c0_14 = arith.constant 0 : index
    %11 = vector.load %arg8[%c0_13, %c0_14] : memref<1x16xf32, #tpu.memory_space<vmem>>, vector<1x16xf32>
    %12 = vector.broadcast %11 : vector<1x16xf32> to vector<32x16xf32>
    %13 = arith.addf %10, %12 : vector<32x16xf32>
    %cst_15 = arith.constant 0.000000e+00 : f32
    %14 = vector.broadcast %cst_15 : f32 to vector<32x16xf32>
    %15 = arith.subf %14, %13 : vector<32x16xf32>
    %16 = math.exp %15 : vector<32x16xf32>
    %cst_16 = arith.constant 1.000000e+00 : f32
    %17 = vector.broadcast %cst_16 : f32 to vector<32x16xf32>
    %18 = arith.addf %17, %16 : vector<32x16xf32>
    %cst_17 = arith.constant 1.000000e+00 : f32
    %19 = vector.broadcast %cst_17 : f32 to vector<32x16xf32>
    %20 = arith.divf %19, %18 : vector<32x16xf32>
    %21 = arith.mulf %13, %20 : vector<32x16xf32>
    %22 = arith.truncf %21 : vector<32x16xf32> to vector<32x16xbf16>
    %c0_18 = arith.constant 0 : index
    %c0_19 = arith.constant 0 : index
    %23 = vector.load %arg9[%c0_18, %c0_19] : memref<32x16xbf16, #tpu.memory_space<vmem>>, vector<32x16xbf16>
    tpu.vector_store %arg9[%c0_18, %c0_19], %22 {strides = array<i32>} : memref<32x16xbf16, #tpu.memory_space<vmem>>, vector<32x16xbf16>,
    return
  }
  func.func @transform_0(%arg0: i32, %arg1: i32) -> (i32, i32) {
    %c0_i32 = arith.constant 0 : i32
    %c0_i32_0 = arith.constant 0 : i32
    return %arg0, %c0_i32 : i32, i32
  }
  func.func @transform_1(%arg0: i32, %arg1: i32) -> (i32, i32) {
    %c0_i32 = arith.constant 0 : i32
    %c0_i32_0 = arith.constant 0 : i32
    return %arg0, %c0_i32 : i32, i32
  }
  func.func @transform_2(%arg0: i32, %arg1: i32) -> (i32, i32) {
    %c0_i32 = arith.constant 0 : i32
    %c0_i32_0 = arith.constant 0 : i32
    return %arg0, %c0_i32 : i32, i32
  }
  func.func @transform_3(%arg0: i32, %arg1: i32) -> (i32, i32) {
    %c0_i32 = arith.constant 0 : i32
    %c0_i32_0 = arith.constant 0 : i32
    return %c0_i32, %arg1 : i32, i32
  }
  func.func @transform_4(%arg0: i32, %arg1: i32) -> (i32, i32) {
    %c0_i32 = arith.constant 0 : i32
    %c0_i32_0 = arith.constant 0 : i32
    return %c0_i32, %arg1 : i32, i32
  }
  func.func @transform_5(%arg0: i32, %arg1: i32) -> (i32, i32) {
    %c0_i32 = arith.constant 0 : i32
    %c0_i32_0 = arith.constant 0 : i32
    return %c0_i32, %arg1 : i32, i32
  }
  func.func @transform_6(%arg0: i32, %arg1: i32) -> (i32, i32) {
    %c0_i32 = arith.constant 0 : i32
    %c0_i32_0 = arith.constant 0 : i32
    return %c0_i32, %arg1 : i32, i32
  }
  func.func @transform_7(%arg0: i32, %arg1: i32) -> (i32, i32) {
    %c0_i32 = arith.constant 0 : i32
    return %arg0, %arg1 : i32, i32
  }
}

module attributes {stable_mosaic.version = 11 : i64} {
  func.func @_gemm_res_kernel(%arg0: i32, %arg1: i32, %arg2: i32, %arg3: memref<32x72xbf16, #tpu.memory_space<vmem>>, %arg4: memref<72x8xbf16, #tpu.memory_space<vmem>>, %arg5: memref<1x8xf32, #tpu.memory_space<vmem>>, %arg6: memref<32x8xbf16, #tpu.memory_space<vmem>>, %arg7: memref<32x8xbf16, #tpu.memory_space<vmem>>, %arg8: memref<32x8xf32, #tpu.memory_space<vmem>>) attributes {dimension_semantics = [#tpu.dimension_semantics<parallel>, #tpu.dimension_semantics<parallel>, #tpu.dimension_semantics<arbitrary>], iteration_bounds = array<i64: 1, 1, 1>, scalar_prefetch = 0 : i64, scratch_operands = 1 : i64, tpu.core_type = #tpu.core_type<tc>, window_params = [{transform_indices = @transform_0, window_bounds = array<i64: 32, 72>}, {transform_indices = @transform_1, window_bounds = array<i64: 72, 8>}, {transform_indices = @transform_2, window_bounds = array<i64: 1, 8>}, {transform_indices = @transform_3, window_bounds = array<i64: 32, 8>}, {transform_indices = @transform_4, window_bounds = array<i64: 32, 8>}]} {
    %c0_i32 = arith.constant 0 : i32
    %0 = arith.cmpi eq, %arg2, %c0_i32 : i32
    %1 = arith.extui %0 : i1 to i32
    %c0_i32_0 = arith.constant 0 : i32
    %2 = arith.cmpi ne, %1, %c0_i32_0 : i32
    scf.if %2 {
      %cst_10 = arith.constant 0.000000e+00 : f32
      %12 = vector.broadcast %cst_10 : f32 to vector<32x8xf32>
      %c0_11 = arith.constant 0 : index
      %c0_12 = arith.constant 0 : index
      %13 = vector.load %arg8[%c0_11, %c0_12] : memref<32x8xf32, #tpu.memory_space<vmem>>, vector<32x8xf32>
      tpu.vector_store %arg8[%c0_11, %c0_12], %12 {strides = array<i32>} : memref<32x8xf32, #tpu.memory_space<vmem>>, vector<32x8xf32>,
    } else {
    }
    %c0 = arith.constant 0 : index
    %c0_1 = arith.constant 0 : index
    %3 = vector.load %arg8[%c0, %c0_1] : memref<32x8xf32, #tpu.memory_space<vmem>>, vector<32x8xf32>
    %c0_2 = arith.constant 0 : index
    %c0_3 = arith.constant 0 : index
    %4 = vector.load %arg3[%c0_2, %c0_3] : memref<32x72xbf16, #tpu.memory_space<vmem>>, vector<32x72xbf16>
    %c0_4 = arith.constant 0 : index
    %c0_5 = arith.constant 0 : index
    %5 = vector.load %arg4[%c0_4, %c0_5] : memref<72x8xbf16, #tpu.memory_space<vmem>>, vector<72x8xbf16>
    %cst = arith.constant dense<0.000000e+00> : vector<32x8xf32>
    %6 = tpu.matmul %4, %5, %cst {dimension_numbers = #tpu.dot_dimension_numbers<[1], [0], [0], [1], [0, 0, 1, 1], [], []>} : vector<32x72xbf16>, vector<72x8xbf16>, vector<32x8xf32> -> vector<32x8xf32>
    %7 = arith.addf %3, %6 : vector<32x8xf32>
    %c0_6 = arith.constant 0 : index
    %c0_7 = arith.constant 0 : index
    %8 = vector.load %arg8[%c0_6, %c0_7] : memref<32x8xf32, #tpu.memory_space<vmem>>, vector<32x8xf32>
    tpu.vector_store %arg8[%c0_6, %c0_7], %7 {strides = array<i32>} : memref<32x8xf32, #tpu.memory_space<vmem>>, vector<32x8xf32>,
    %c0_i32_8 = arith.constant 0 : i32
    %9 = arith.cmpi eq, %arg2, %c0_i32_8 : i32
    %10 = arith.extui %9 : i1 to i32
    %c0_i32_9 = arith.constant 0 : i32
    %11 = arith.cmpi ne, %10, %c0_i32_9 : i32
    scf.if %11 {
      %c0_10 = arith.constant 0 : index
      %c0_11 = arith.constant 0 : index
      %12 = vector.load %arg8[%c0_10, %c0_11] : memref<32x8xf32, #tpu.memory_space<vmem>>, vector<32x8xf32>
      %c0_12 = arith.constant 0 : index
      %c0_13 = arith.constant 0 : index
      %13 = vector.load %arg5[%c0_12, %c0_13] : memref<1x8xf32, #tpu.memory_space<vmem>>, vector<1x8xf32>
      %14 = vector.broadcast %13 : vector<1x8xf32> to vector<32x8xf32>
      %15 = arith.addf %12, %14 : vector<32x8xf32>
      %cst_14 = arith.constant 0.000000e+00 : f32
      %16 = vector.broadcast %cst_14 : f32 to vector<32x8xf32>
      %17 = arith.subf %16, %15 : vector<32x8xf32>
      %18 = math.exp %17 : vector<32x8xf32>
      %cst_15 = arith.constant 1.000000e+00 : f32
      %19 = vector.broadcast %cst_15 : f32 to vector<32x8xf32>
      %20 = arith.addf %19, %18 : vector<32x8xf32>
      %cst_16 = arith.constant 1.000000e+00 : f32
      %21 = vector.broadcast %cst_16 : f32 to vector<32x8xf32>
      %22 = arith.divf %21, %20 : vector<32x8xf32>
      %23 = arith.mulf %15, %22 : vector<32x8xf32>
      %c0_17 = arith.constant 0 : index
      %c0_18 = arith.constant 0 : index
      %24 = vector.load %arg6[%c0_17, %c0_18] : memref<32x8xbf16, #tpu.memory_space<vmem>>, vector<32x8xbf16>
      %25 = arith.extf %24 : vector<32x8xbf16> to vector<32x8xf32>
      %26 = arith.addf %23, %25 : vector<32x8xf32>
      %27 = arith.truncf %26 : vector<32x8xf32> to vector<32x8xbf16>
      %c0_19 = arith.constant 0 : index
      %c0_20 = arith.constant 0 : index
      %28 = vector.load %arg7[%c0_19, %c0_20] : memref<32x8xbf16, #tpu.memory_space<vmem>>, vector<32x8xbf16>
      tpu.vector_store %arg7[%c0_19, %c0_20], %27 {strides = array<i32>} : memref<32x8xbf16, #tpu.memory_space<vmem>>, vector<32x8xbf16>,
    } else {
    }
    return
  }
  func.func @transform_0(%arg0: i32, %arg1: i32, %arg2: i32) -> (i32, i32) {
    %c0_i32 = arith.constant 0 : i32
    return %arg0, %arg2 : i32, i32
  }
  func.func @transform_1(%arg0: i32, %arg1: i32, %arg2: i32) -> (i32, i32) {
    %c0_i32 = arith.constant 0 : i32
    return %arg2, %arg1 : i32, i32
  }
  func.func @transform_2(%arg0: i32, %arg1: i32, %arg2: i32) -> (i32, i32) {
    %c0_i32 = arith.constant 0 : i32
    %c0_i32_0 = arith.constant 0 : i32
    return %c0_i32, %arg1 : i32, i32
  }
  func.func @transform_3(%arg0: i32, %arg1: i32, %arg2: i32) -> (i32, i32) {
    %c0_i32 = arith.constant 0 : i32
    return %arg0, %arg1 : i32, i32
  }
  func.func @transform_4(%arg0: i32, %arg1: i32, %arg2: i32) -> (i32, i32) {
    %c0_i32 = arith.constant 0 : i32
    return %arg0, %arg1 : i32, i32
  }
}

</mosaic_0001>

<bundles_post_ra>
// kernel: _lambda_.18
= control target key start
LH: loop header
LB: loop body
LE: loop exit
PB: predicated region body
PF: predicated region fallthrough
CT: control target
= control target key end

     0   :  { %vm121_vm0 = vcmask 1043456   ;;  %vm96_vm1 = vcmask 64512   ;;  %vm268_vm2 = vcmask 130048   ;;  %vm589_vm3 = vcmask 60416   ;;  %s1077_s3 = inlined_call_operand.vmem [shape: bf16[8,8], index: 3, kind: input, shape index: {}]   ;;  %s1078_s2 = inlined_call_operand.vmem [shape: bf16[16,8], index: 2, kind: input, shape index: {}]   ;;  %s1079_s1 = inlined_call_operand.vmem [shape: bf16[128,8], index: 1, kind: input, shape index: {}]   ;;  %s1080_s0 = inlined_call_operand.vmem [shape: bf16[128,16], index: 0, kind: input, shape index: {}]   ;;  %s1081_s4 = inlined_call_operand.vmem [shape: f32[1,8], index: 4, kind: input, shape index: {}]   ;;  %s1082_s5 = inlined_call_operand.vmem [shape: bf16[128,8], index: 5, kind: output, shape index: {}]  }
   0x1   :  { %v55_v0 = vld [vmem:[%s1077_s3] sm:$0xf]  ;;  %v749_v4 = vld [vmem:[%s1079_s1 + $0x8] sm:$0xff]   ;;  %v752_v7 = vld [vmem:[%s1079_s1 + $0x10] sm:$0xff]  }
   0x2   :  { %746 = vmatprep.subr.msk.bf16.mxu1 %vm121_vm0, %v55_v0  ;;  %v123_v1 = vsel %vm121_vm0, %v55_v0, 0  ;;  %v747_v2 = vld [vmem:[%s1078_s2] sm:$0xff]   ;;  %v751_v6 = vld [vmem:[%s1080_s0 + $0x8] sm:$0xff]   ;;  %v754_v8 = vld [vmem:[%s1080_s0 + $0x10] sm:$0xff]  }
   0x3   :  { %695 = vmatpush3.bf16.msra.mxu1 %v123_v1  ;;  %v748_v3 = vld [vmem:[%s1079_s1] sm:$0xff]   ;;  %712 = vmatprep.subr.bf16.mxu0 %v747_v2  ;;  %v753_v9 = vld [vmem:[%s1079_s1 + $0x18] sm:$0xff]   ;;  %v757_v13 = vld [vmem:[%s1079_s1 + $0x28] sm:$0xff]  }
   0x4   :  { %696 = vmatprep.mubr.msk.bf16.mxu1 %vm96_vm1, %v748_v3  ;;  %713 = vmatpush3.bf16.msra.mxu0 %v747_v2  ;;  %v750_v5 = vld [vmem:[%s1080_s0] sm:$0xff]   ;;  %v755_v11 = vld [vmem:[%s1080_s0 + $0x18] sm:$0xff]   ;;  %v760_v14 = vld [vmem:[%s1079_s1 + $0x30] sm:$0xff]  }
   0x5   :  { %714 = vmatprep.mubr.msk.bf16.mxu0 %vm268_vm2, %v750_v5  ;;  %v756_v10 = vld [vmem:[%s1079_s1 + $0x20] sm:$0xff]   ;;  %v759_v15 = vld [vmem:[%s1080_s0 + $0x28] sm:$0xff]   ;;  %v762_v16 = vld [vmem:[%s1080_s0 + $0x30] sm:$0xff]  }
   0x6   :  { %697 = vmatmul.mubr.msk.bf16.vlgmr.msra.gmra.mrb[0].mxu1 %vm96_vm1, %v749_v4  ;;  %v758_v12 = vld [vmem:[%s1080_s0 + $0x20] sm:$0xff]   ;;  %v761_v17 = vld [vmem:[%s1079_s1 + $0x38] sm:$0xff]  }
   0x7   :  { %715 = vmatmul.mubr.msk.bf16.vlgmr.msra.gmra.mrb[0].mxu0 %vm268_vm2, %v751_v6  ;;  %700 = vmatprep.mubr.msk.bf16.mxu1 %vm96_vm1, %v752_v7  ;;  %v763_v18 = vld [vmem:[%s1080_s0 + $0x38] sm:$0xff]   ;;  %v931_v23 = vld [vmem:[%s1081_s4] ss:$0 sm:$0xff] }
   0x8   :  { %718 = vmatprep.mubr.msk.bf16.mxu0 %vm268_vm2, %v754_v8 }
   0xe   :  { %701 = vmatmul.mubr.msk.bf16.gmra.mrb[4].mxu1 %vm96_vm1, %v753_v9 }
   0xf   :  { %704 = vmatprep.mubr.msk.bf16.mxu1 %vm96_vm1, %v756_v10  ;;  %719 = vmatmul.mubr.msk.bf16.gmra.mrb[4].mxu0 %vm268_vm2, %v755_v11 }
  0x10   :  { %722 = vmatprep.mubr.msk.bf16.mxu0 %vm268_vm2, %v758_v12 }
  0x16   :  { %705 = vmatmul.mubr.msk.bf16.gmra.mrb[8].mxu1 %vm96_vm1, %v757_v13 }
  0x17   :  { %708 = vmatprep.mubr.msk.bf16.mxu1 %vm96_vm1, %v760_v14  ;;  %723 = vmatmul.mubr.msk.bf16.gmra.mrb[8].mxu0 %vm268_vm2, %v759_v15 }
  0x18   :  { %726 = vmatprep.mubr.msk.bf16.mxu0 %vm268_vm2, %v762_v16 }
  0x1e   :  { %709 = vmatmul.mubr.msk.bf16.gmra.mrb[12].mxu1 %vm96_vm1, %v761_v17 }
  0x1f   :  { %727 = vmatmul.mubr.msk.bf16.gmra.mrb[12].mxu0 %vm268_vm2, %v763_v18 }
  0xd9   :  { %v698_v19 = vpop.f32.mrb[0].mxu1 }
  0xda   :  { %v159_v20 = vpop.f32.mrb[1].mxu1  ;;  %v716_v22 = vpop.f32.mrb[0].mxu0 }
  0xdb   :  { %v699_v21 = vpop.f32.mrb[2].mxu1  ;;  %v336_v24 = vadd.f32 %v716_v22, %v698_v19  ;;  %v327_v26 = vpop.f32.mrb[1].mxu0 }
  0xdc   :  { %v162_v25 = vpop.f32.mrb[3].mxu1  ;;  %v328_v27 = vadd.f32 %v327_v26, %v159_v20  ;;  %v717_v28 = vpop.f32.mrb[2].mxu0 }
  0xdd   :  { %v934_v29 = vadd.f32 %v931_v23, %v336_v24  ;;  %v339_v30 = vadd.f32 %v717_v28, %v699_v21  ;;  %v330_v31 = vpop.f32.mrb[3].mxu0 }
  0xde   :  { %v937_v32 = vadd.f32 %v931_v23, %v328_v27  ;;  %v331_v33 = vadd.f32 %v330_v31, %v162_v25 }
  0xdf   :  { %v415_v34 = vsub.f32 0.0, %v934_v29  ;;  %v941_v35 = vadd.f32 %v931_v23, %v339_v30 }
  0xe0   :  { %v413_v36 = vsub.f32 0.0, %v937_v32  ;;  %v945_v37 = vadd.f32 %v931_v23, %v331_v33 }
  0xe1   :  { %v702_v38 = vpop.f32.mrb[4].mxu1  ;;  %v433_v39 = vmul.f32 1.442695, %v415_v34  ;;  %v416_v40 = vsub.f32 0.0, %v941_v35 }
  0xe2   :  { %v175_v41 = vpop.f32.mrb[5].mxu1  ;;  %v429_v42 = vmul.f32 1.442695, %v413_v36  ;;  %v414_v43 = vsub.f32 0.0, %v945_v37  ;;  %v720_v45 = vpop.f32.mrb[4].mxu0 }
  0xe3   :  { %v703_v44 = vpop.f32.mrb[6].mxu1  ;;  %764 = vpow2.f32 %v433_v39  ;;  %v435_v46 = vmul.f32 1.442695, %v416_v40  ;;  %v352_v47 = vadd.f32 %v720_v45, %v702_v38  ;;  %v343_v49 = vpop.f32.mrb[5].mxu0 }
  0xe4   :  { %v178_v48 = vpop.f32.mrb[7].mxu1  ;;  %766 = vpow2.f32 %v429_v42  ;;  %v431_v50 = vmul.f32 1.442695, %v414_v43  ;;  %v344_v51 = vadd.f32 %v343_v49, %v175_v41  ;;  %v721_v52 = vpop.f32.mrb[6].mxu0 }
  0xe5   :  { %768 = vpow2.f32 %v435_v46  ;;  %v950_v53 = vadd.f32 %v931_v23, %v352_v47  ;;  %v355_v54 = vadd.f32 %v721_v52, %v703_v44  ;;  %v346_v55 = vpop.f32.mrb[7].mxu0 }
  0xe6   :  { %770 = vpow2.f32 %v431_v50  ;;  %v953_v56 = vadd.f32 %v931_v23, %v344_v51  ;;  %v347_v57 = vadd.f32 %v346_v55, %v178_v48 }
  0xe7   :  { %v419_v58 = vsub.f32 0.0, %v950_v53  ;;  %v957_v59 = vadd.f32 %v931_v23, %v355_v54 }
  0xe8   :  { %v417_v60 = vsub.f32 0.0, %v953_v56  ;;  %v961_v61 = vadd.f32 %v931_v23, %v347_v57 }
  0xe9   :  { %v706_v62 = vpop.f32.mrb[8].mxu1  ;;  %v441_v63 = vmul.f32 1.442695, %v419_v58  ;;  %v420_v0 = vsub.f32 0.0, %v957_v59 }
  0xea   :  { %v191_v1 = vpop.f32.mrb[9].mxu1  ;;  %v437_v2 = vmul.f32 1.442695, %v417_v60  ;;  %v418_v3 = vsub.f32 0.0, %v961_v61  ;;  %v724_v5 = vpop.f32.mrb[8].mxu0 }
  0xeb   :  { %v707_v4 = vpop.f32.mrb[10].mxu1  ;;  %772 = vpow2.f32 %v441_v63  ;;  %v443_v6 = vmul.f32 1.442695, %v420_v0  ;;  %v368_v7 = vadd.f32 %v724_v5, %v706_v62  ;;  %v359_v9 = vpop.f32.mrb[9].mxu0 }
  0xec   :  { %v194_v8 = vpop.f32.mrb[11].mxu1  ;;  %774 = vpow2.f32 %v437_v2  ;;  %v439_v10 = vmul.f32 1.442695, %v418_v3  ;;  %v360_v11 = vadd.f32 %v359_v9, %v191_v1  ;;  %v725_v12 = vpop.f32.mrb[10].mxu0 }
  0xed   :  { %v765_v13 = vpop.eup %764  ;;  %776 = vpow2.f32 %v443_v6  ;;  %v966_v14 = vadd.f32 %v931_v23, %v368_v7  ;;  %v371_v15 = vadd.f32 %v725_v12, %v707_v4  ;;  %v362_v16 = vpop.f32.mrb[11].mxu0 }
  0xee   :  { %v767_v17 = vpop.eup %766  ;;  %v463_v18 = vadd.f32 1.0, %v765_v13  ;;  %778 = vpow2.f32 %v439_v10  ;;  %v969_v19 = vadd.f32 %v931_v23, %v360_v11  ;;  %v363_v20 = vadd.f32 %v362_v16, %v194_v8 }
  0xef   :  { %v769_v21 = vpop.eup %768  ;;  %v461_v22 = vadd.f32 1.0, %v767_v17  ;;  %v423_v24 = vsub.f32 0.0, %v966_v14  ;;  %v973_v25 = vadd.f32 %v931_v23, %v371_v15 }
  0xf0   :  { %v771_v26 = vpop.eup %770  ;;  %780 = vrcp.f32 %v463_v18  ;;  %v464_v27 = vadd.f32 1.0, %v769_v21  ;;  %v421_v28 = vsub.f32 0.0, %v969_v19  ;;  %v977_v30 = vadd.f32 %v931_v23, %v363_v20 }
  0xf1   :  { %v710_v31 = vpop.f32.mrb[12].mxu1  ;;  %782 = vrcp.f32 %v461_v22  ;;  %v462_v33 = vadd.f32 1.0, %v771_v26  ;;  %v449_v34 = vmul.f32 1.442695, %v423_v24  ;;  %v424_v36 = vsub.f32 0.0, %v973_v25 }
  0xf2   :  { %v207_v38 = vpop.f32.mrb[13].mxu1  ;;  %784 = vrcp.f32 %v464_v27  ;;  %v445_v39 = vmul.f32 1.442695, %v421_v28  ;;  %v422_v40 = vsub.f32 0.0, %v977_v30  ;;  %v728_v42 = vpop.f32.mrb[12].mxu0 }
  0xf3   :  { %v711_v41 = vpop.f32.mrb[14].mxu1  ;;  %786 = vrcp.f32 %v462_v33  ;;  %v451_v43 = vmul.f32 1.442695, %v424_v36  ;;  %v384_v44 = vadd.f32 %v728_v42, %v710_v31  ;;  %v375_v46 = vpop.f32.mrb[13].mxu0 }
  0xf4   :  { %v210_v45 = vpop.f32.mrb[15].mxu1  ;;  %788 = vpow2.f32 %v449_v34  ;;  %v447_v47 = vmul.f32 1.442695, %v422_v40  ;;  %v376_v48 = vadd.f32 %v375_v46, %v207_v38  ;;  %v729_v49 = vpop.f32.mrb[14].mxu0 }
  0xf5   :  { %v773_v50 = vpop.eup %772  ;;  %790 = vpow2.f32 %v445_v39  ;;  %v982_v51 = vadd.f32 %v931_v23, %v384_v44  ;;  %v387_v52 = vadd.f32 %v729_v49, %v711_v41  ;;  %v378_v54 = vpop.f32.mrb[15].mxu0 }
  0xf6   :  { %v775_v55 = vpop.eup %774  ;;  %v467_v57 = vadd.f32 1.0, %v773_v50  ;;  %792 = vpow2.f32 %v451_v43  ;;  %v985_v58 = vadd.f32 %v931_v23, %v376_v48  ;;  %v379_v60 = vadd.f32 %v378_v54, %v210_v45 }
  0xf7   :  { %v777_v62 = vpop.eup %776  ;;  %v465_v63 = vadd.f32 1.0, %v775_v55  ;;  %794 = vpow2.f32 %v447_v47  ;;  %v427_v0 = vsub.f32 0.0, %v982_v51  ;;  %v989_v1 = vadd.f32 %v931_v23, %v387_v52 }
  0xf8   :  { %v779_v2 = vpop.eup %778  ;;  %796 = vrcp.f32 %v467_v57  ;;  %v468_v3 = vadd.f32 1.0, %v777_v62  ;;  %v425_v4 = vsub.f32 0.0, %v985_v58  ;;  %v993_v5 = vadd.f32 %v931_v23, %v379_v60 }
  0xf9   :  { %798 = vrcp.f32 %v465_v63  ;;  %v466_v6 = vadd.f32 1.0, %v779_v2  ;;  %v457_v7 = vmul.f32 1.442695, %v427_v0  ;;  %v428_v8 = vsub.f32 0.0, %v989_v1 }
  0xfa   :  { %v781_v9 = vpop.eup %780  ;;  %800 = vrcp.f32 %v468_v3  ;;  %v453_v10 = vmul.f32 1.442695, %v425_v4  ;;  %v426_v11 = vsub.f32 0.0, %v993_v5 }
  0xfb   :  { %v783_v12 = vpop.eup %782  ;;  %v511_v13 = vmul.f32 %v781_v9, %v934_v29  ;;  %802 = vrcp.f32 %v466_v6  ;;  %v459_v15 = vmul.f32 1.442695, %v428_v8 }
  0xfc   :  { %v785_v16 = vpop.eup %784  ;;  %v509_v23 = vmul.f32 %v783_v12, %v937_v32  ;;  %804 = vpow2.f32 %v457_v7  ;;  %v455_v17 = vmul.f32 1.442695, %v426_v11 }
  0xfd   :  { %v787_v18 = vpop.eup %786  ;;  %v662_v20 = vpack.c.bf16 %v511_v13, %v511_v13  ;;  %v512_v21 = vmul.f32 %v785_v16, %v941_v35  ;;  %806 = vpow2.f32 %v453_v10 }
  0xfe   :  { %v789_v22 = vpop.eup %788  ;;  %v660_v24 = vpack.c.bf16 %v509_v23, %v509_v23  ;;  %v510_v26 = vmul.f32 %v787_v18, %v945_v37  ;;  %808 = vpow2.f32 %v459_v15 }
  0xff   :  { %v791_v27 = vpop.eup %790  ;;  %592 = vst.msk [vmem:[%s1082_s5 + $0x8] sm:$0xf] %vm589_vm3, %v662_v20  ;;  %v663_v29 = vpack.c.bf16 %v512_v21, %v512_v21  ;;  %v471_v32 = vadd.f32 1.0, %v789_v22  ;;  %810 = vpow2.f32 %v455_v17 }
 0x100   :  { %v793_v28 = vpop.eup %792  ;;  %590 = vst.msk [vmem:[%s1082_s5] sm:$0xf] %vm589_vm3, %v660_v24  ;;  %v661_v35 = vpack.c.bf16 %v510_v26, %v510_v26  ;;  %v469_v31 = vadd.f32 1.0, %v791_v27 }
 0x101   :  { %v795_v33 = vpop.eup %794  ;;  %593 = vst.msk [vmem:[%s1082_s5 + $0xc] sm:$0xf] %vm589_vm3, %v663_v29  ;;  %812 = vrcp.f32 %v471_v32  ;;  %v472_v37 = vadd.f32 1.0, %v793_v28 }
 0x102   :  { %v797_v34 = vpop.eup %796  ;;  %591 = vst.msk [vmem:[%s1082_s5 + $0x4] sm:$0xf] %vm589_vm3, %v661_v35  ;;  %814 = vrcp.f32 %v469_v31  ;;  %v470_v36 = vadd.f32 1.0, %v795_v33 }
 0x103   :  { %v799_v38 = vpop.eup %798  ;;  %v515_v39 = vmul.f32 %v797_v34, %v950_v53  ;;  %816 = vrcp.f32 %v472_v37 }
 0x104   :  { %v801_v40 = vpop.eup %800  ;;  %v513_v41 = vmul.f32 %v799_v38, %v953_v56  ;;  %818 = vrcp.f32 %v470_v36 }
 0x105   :  { %v803_v42 = vpop.eup %802  ;;  %v666_v43 = vpack.c.bf16 %v515_v39, %v515_v39  ;;  %v516_v44 = vmul.f32 %v801_v40, %v957_v59 }
 0x106   :  { %v805_v45 = vpop.eup %804  ;;  %v664_v46 = vpack.c.bf16 %v513_v41, %v513_v41  ;;  %v514_v47 = vmul.f32 %v803_v42, %v961_v61 }
 0x107   :  { %v807_v48 = vpop.eup %806  ;;  %596 = vst.msk [vmem:[%s1082_s5 + $0x18] sm:$0xf] %vm589_vm3, %v666_v43  ;;  %v667_v53 = vpack.c.bf16 %v516_v44, %v516_v44  ;;  %v475_v49 = vadd.f32 1.0, %v805_v45 }
 0x108   :  { %v809_v50 = vpop.eup %808  ;;  %594 = vst.msk [vmem:[%s1082_s5 + $0x10] sm:$0xf] %vm589_vm3, %v664_v46  ;;  %v665_v56 = vpack.c.bf16 %v514_v47, %v514_v47  ;;  %v473_v59 = vadd.f32 1.0, %v807_v48 }
 0x109   :  { %v811_v52 = vpop.eup %810  ;;  %597 = vst.msk [vmem:[%s1082_s5 + $0x1c] sm:$0xf] %vm589_vm3, %v667_v53  ;;  %820 = vrcp.f32 %v475_v49  ;;  %v476_v61 = vadd.f32 1.0, %v809_v50 }
 0x10a   :  { %595 = vst.msk [vmem:[%s1082_s5 + $0x14] sm:$0xf] %vm589_vm3, %v665_v56  ;;  %822 = vrcp.f32 %v473_v59  ;;  %v474_v54 = vadd.f32 1.0, %v811_v52 }
 0x10b   :  { %v813_v55 = vpop.eup %812  ;;  %824 = vrcp.f32 %v476_v61 }
 0x10c   :  { %v815_v57 = vpop.eup %814  ;;  %v519_v60 = vmul.f32 %v813_v55, %v966_v14  ;;  %826 = vrcp.f32 %v474_v54 }
 0x10d   :  { %v817_v62 = vpop.eup %816  ;;  %v517_v63 = vmul.f32 %v815_v57, %v969_v19 }
 0x10e   :  { %v819_v0 = vpop.eup %818  ;;  %v670_v2 = vpack.c.bf16 %v519_v60, %v519_v60  ;;  %v520_v3 = vmul.f32 %v817_v62, %v973_v25 }
 0x10f   :  { %v668_v4 = vpack.c.bf16 %v517_v63, %v517_v63  ;;  %v518_v6 = vmul.f32 %v819_v0, %v977_v30 }
 0x110   :  { %600 = vst.msk [vmem:[%s1082_s5 + $0x28] sm:$0xf] %vm589_vm3, %v670_v2  ;;  %v671_v7 = vpack.c.bf16 %v520_v3, %v520_v3 }
 0x111   :  { %598 = vst.msk [vmem:[%s1082_s5 + $0x20] sm:$0xf] %vm589_vm3, %v668_v4  ;;  %v669_v14 = vpack.c.bf16 %v518_v6, %v518_v6 }
 0x112   :  { %601 = vst.msk [vmem:[%s1082_s5 + $0x2c] sm:$0xf] %vm589_vm3, %v671_v7 }
 0x113   :  { %v821_v19 = vpop.eup %820  ;;  %599 = vst.msk [vmem:[%s1082_s5 + $0x24] sm:$0xf] %vm589_vm3, %v669_v14 }
 0x114   :  { %v823_v25 = vpop.eup %822  ;;  %v523_v30 = vmul.f32 %v821_v19, %v982_v51 }
 0x115   :  { %v825_v8 = vpop.eup %824  ;;  %v521_v9 = vmul.f32 %v823_v25, %v985_v58 }
 0x116   :  { %v827_v10 = vpop.eup %826  ;;  %v674_v11 = vpack.c.bf16 %v523_v30, %v523_v30  ;;  %v524_v12 = vmul.f32 %v825_v8, %v989_v1 }
 0x117   :  { %v672_v13 = vpack.c.bf16 %v521_v9, %v521_v9  ;;  %v522_v15 = vmul.f32 %v827_v10, %v993_v5 }
 0x118   :  { %604 = vst.msk [vmem:[%s1082_s5 + $0x38] sm:$0xf] %vm589_vm3, %v674_v11  ;;  %v675_v16 = vpack.c.bf16 %v524_v12, %v524_v12 }
 0x119   :  { %602 = vst.msk [vmem:[%s1082_s5 + $0x30] sm:$0xf] %vm589_vm3, %v672_v13  ;;  %v673_v51 = vpack.c.bf16 %v522_v15, %v522_v15 }
 0x11a   :  { %605 = vst.msk [vmem:[%s1082_s5 + $0x3c] sm:$0xf] %vm589_vm3, %v675_v16 }
 0x11b   :  { %603 = vst.msk [vmem:[%s1082_s5 + $0x34] sm:$0xf] %vm589_vm3, %v673_v51 }

// kernel: _lambda_.19
= control target key start
LH: loop header
LB: loop body
LE: loop exit
PB: predicated region body
PF: predicated region fallthrough
CT: control target
= control target key end

     0   :  { %vm19_vm0 = vcmask 31744   ;;  %v695_v1 = vmov 0.0   ;;  %vm128_vm1 = vcmask 293888   ;;  %vm153_vm2 = vcmask 1041408   ;;  %s938_s1 = inlined_call_operand.vmem [shape: bf16[36,4], index: 1, kind: input, shape index: {}]   ;;  %s939_s0 = inlined_call_operand.vmem [shape: bf16[128,36], index: 0, kind: input, shape index: {}]   ;;  %s940_s2 = inlined_call_operand.vmem [shape: f32[1,4], index: 2, kind: input, shape index: {}]   ;;  %s941_s3 = inlined_call_operand.vmem [shape: bf16[128,4], index: 3, kind: output, shape index: {}]  }
   0x1   :  { %v620_v0 = vld [vmem:[%s938_s1] sm:$0xff]   ;;  %22 = vst.msk [vmem:[#allocation2 + $0x10] sm:$0xff] %vm19_vm0, %v695_v1  ;;  %20 = vst.msk [vmem:[#allocation2] sm:$0xff] %vm19_vm0, %v695_v1  ;;  %v621_v2 = vld [vmem:[%s938_s1 + $0x8] sm:$0xff]   ;;  %vm505_vm3 = vcmask 27648  }
   0x2   :  { %21 = vst.msk [vmem:[#allocation2 + $0x8] sm:$0xff] %vm19_vm0, %v695_v1  ;;  %23 = vst.msk [vmem:[#allocation2 + $0x18] sm:$0xff] %vm19_vm0, %v695_v1  ;;  %589 = vmatprep.subr.bf16.mxu0 %v620_v0  ;;  %611 = vmatprep.subr.bf16.mxu1 %v620_v0  ;;  %v622_v3 = vld [vmem:[%s938_s1 + $0x10] ss:$0 sps:$4 sm:$0x33]   ;;  %v623_v4 = vld [vmem:[%s939_s0] sm:$0xff]  }
   0x3   :  { %24 = vst.msk [vmem:[#allocation2 + $0x20] sm:$0xff] %vm19_vm0, %v695_v1  ;;  %25 = vst.msk [vmem:[#allocation2 + $0x28] sm:$0xff] %vm19_vm0, %v695_v1  ;;  %590 = vmatpush3.bf16.msra.mxu0 %v620_v0  ;;  %614 = vmatpush3.bf16.msra.mxu1 %v620_v0  ;;  %v624_v5 = vld [vmem:[%s939_s0 + $0x20] sm:$0xff]   ;;  %v155_v6 = vsel %vm153_vm2, %v622_v3, 0  ;;  %v625_v7 = vld [vmem:[%s939_s0 + $0x8] sm:$0xff]  }
   0x4   :  { %26 = vst.msk [vmem:[#allocation2 + $0x30] sm:$0xff] %vm19_vm0, %v695_v1  ;;  %27 = vst.msk [vmem:[#allocation2 + $0x38] sm:$0xff] %vm19_vm0, %v695_v1  ;;  %591 = vmatprep.subr.bf16.mxu0 %v621_v2  ;;  %612 = vmatprep.subr.bf16.mxu1 %v621_v2  ;;  %v626_v8 = vld [vmem:[%s939_s0 + $0x28] sm:$0xff]   ;;  %v627_v9 = vld [vmem:[%s939_s0 + $0x10] sm:$0xff]  }
   0x5   :  { %28 = vst.msk [vmem:[#allocation2 + $0x40] sm:$0xff] %vm19_vm0, %v695_v1  ;;  %29 = vst.msk [vmem:[#allocation2 + $0x48] sm:$0xff] %vm19_vm0, %v695_v1  ;;  %595 = vmatprep.mubr.msk.bf16.mxu0 %vm128_vm1, %v623_v4  ;;  %603 = vmatprep.mubr.msk.bf16.mxu1 %vm128_vm1, %v624_v5  ;;  %v628_v10 = vld [vmem:[%s939_s0 + $0x30] sm:$0xff]   ;;  %v629_v11 = vld [vmem:[%s939_s0 + $0x18] sm:$0xff]  }
   0x6   :  { %30 = vst.msk [vmem:[#allocation2 + $0x50] sm:$0xff] %vm19_vm0, %v695_v1  ;;  %31 = vst.msk [vmem:[#allocation2 + $0x58] sm:$0xff] %vm19_vm0, %v695_v1  ;;  %v630_v12 = vld [vmem:[%s939_s0 + $0x38] sm:$0xff]   ;;  %v784_v41 = vld [vmem:[%s940_s2] ss:$0 sm:$0xff] }
   0x7   :  { %32 = vst.msk [vmem:[#allocation2 + $0x60] sm:$0xff] %vm19_vm0, %v695_v1  ;;  %33 = vst.msk [vmem:[#allocation2 + $0x68] sm:$0xff] %vm19_vm0, %v695_v1  ;;  %592 = vmatpush3.bf16.msra.mxu0 %v621_v2  ;;  %615 = vmatpush3.bf16.msra.mxu1 %v621_v2 }
   0x8   :  { %34 = vst.msk [vmem:[#allocation2 + $0x70] sm:$0xff] %vm19_vm0, %v695_v1  ;;  %35 = vst.msk [vmem:[#allocation2 + $0x78] sm:$0xff] %vm19_vm0, %v695_v1  ;;  %617 = vmatprep.subr.msk.bf16.mxu0 %vm153_vm2, %v622_v3  ;;  %618 = vmatprep.subr.msk.bf16.mxu1 %vm153_vm2, %v622_v3  ;;  %v38_v13 = vld [vmem:[#allocation2 + $0x10] sm:$0xff]  ;;  %v36_v15 = vld [vmem:[#allocation2] sm:$0xff] }
   0x9   :  { %v39_v19 = vld [vmem:[#allocation2 + $0x18] sm:$0xff]  ;;  %v37_v25 = vld [vmem:[#allocation2 + $0x8] sm:$0xff] }
   0xa   :  { %v40_v39 = vld [vmem:[#allocation2 + $0x20] sm:$0xff]  ;;  %v41_v50 = vld [vmem:[#allocation2 + $0x28] sm:$0xff] }
   0xb   :  { %594 = vmatpush3.bf16.msra.mxu0 %v155_v6  ;;  %616 = vmatpush3.bf16.msra.mxu1 %v155_v6  ;;  %v42_v37 = vld [vmem:[#allocation2 + $0x30] sm:$0xff]  ;;  %v43_v44 = vld [vmem:[#allocation2 + $0x38] sm:$0xff] }
   0xc   :  { %v44_v16 = vld [vmem:[#allocation2 + $0x40] sm:$0xff]  ;;  %v45_v26 = vld [vmem:[#allocation2 + $0x48] sm:$0xff] }
   0xd   :  { %v46_v14 = vld [vmem:[#allocation2 + $0x50] sm:$0xff]  ;;  %v47_v20 = vld [vmem:[#allocation2 + $0x58] sm:$0xff] }
   0xe   :  { %596 = vmatmul.mubr.msk.bf16.vlgmr.msra.gmra.mrb[0].mxu0 %vm128_vm1, %v625_v7  ;;  %604 = vmatmul.mubr.msk.bf16.vlgmr.msra.gmra.mrb[0].mxu1 %vm128_vm1, %v626_v8  ;;  %v48_v40 = vld [vmem:[#allocation2 + $0x60] sm:$0xff]  ;;  %v49_v51 = vld [vmem:[#allocation2 + $0x68] sm:$0xff] }
   0xf   :  { %599 = vmatprep.mubr.msk.bf16.mxu0 %vm128_vm1, %v627_v9  ;;  %607 = vmatprep.mubr.msk.bf16.mxu1 %vm128_vm1, %v628_v10  ;;  %v50_v38 = vld [vmem:[#allocation2 + $0x70] sm:$0xff]  ;;  %v51_v45 = vld [vmem:[#allocation2 + $0x78] sm:$0xff] }
  0x16   :  { %600 = vmatmul.mubr.msk.bf16.gmra.mrb[4].mxu0 %vm128_vm1, %v629_v11  ;;  %608 = vmatmul.mubr.msk.bf16.gmra.mrb[4].mxu1 %vm128_vm1, %v630_v12 }
  0xe1   :  { %v597_v17 = vpop.f32.mrb[0].mxu0  ;;  %v605_v18 = vpop.f32.mrb[0].mxu1 }
  0xe2   :  { %v256_v21 = vadd.f32 %v597_v17, %v38_v13  ;;  %v264_v22 = vadd.f32 %v605_v18, %v46_v14  ;;  %v191_v23 = vpop.f32.mrb[1].mxu0  ;;  %v223_v24 = vpop.f32.mrb[1].mxu1 }
  0xe3   :  { %v254_v27 = vadd.f32 %v191_v23, %v36_v15  ;;  %v262_v28 = vadd.f32 %v223_v24, %v44_v16  ;;  %v598_v29 = vpop.f32.mrb[2].mxu0  ;;  %v606_v30 = vpop.f32.mrb[2].mxu1 }
  0xe4   :  { %273 = vst.msk [vmem:[#allocation2 + $0x10] sm:$0xff] %vm19_vm0, %v256_v21  ;;  %281 = vst.msk [vmem:[#allocation2 + $0x50] sm:$0xff] %vm19_vm0, %v264_v22  ;;  %v257_v31 = vadd.f32 %v598_v29, %v39_v19  ;;  %v265_v32 = vadd.f32 %v606_v30, %v47_v20  ;;  %v194_v33 = vpop.f32.mrb[3].mxu0  ;;  %v226_v34 = vpop.f32.mrb[3].mxu1 }
  0xe5   :  { %271 = vst.msk [vmem:[#allocation2] sm:$0xff] %vm19_vm0, %v254_v27  ;;  %279 = vst.msk [vmem:[#allocation2 + $0x40] sm:$0xff] %vm19_vm0, %v262_v28  ;;  %v255_v35 = vadd.f32 %v194_v33, %v37_v25  ;;  %v263_v36 = vadd.f32 %v226_v34, %v45_v26 }
  0xe6   :  { %274 = vst.msk [vmem:[#allocation2 + $0x18] sm:$0xff] %vm19_vm0, %v257_v31  ;;  %282 = vst.msk [vmem:[#allocation2 + $0x58] sm:$0xff] %vm19_vm0, %v265_v32 }
  0xe7   :  { %272 = vst.msk [vmem:[#allocation2 + $0x8] sm:$0xff] %vm19_vm0, %v255_v35  ;;  %280 = vst.msk [vmem:[#allocation2 + $0x48] sm:$0xff] %vm19_vm0, %v263_v36 }
  0xe9   :  { %v601_v42 = vpop.f32.mrb[4].mxu0  ;;  %v609_v43 = vpop.f32.mrb[4].mxu1 }
  0xea   :  { %v260_v46 = vadd.f32 %v601_v42, %v42_v37  ;;  %v268_v47 = vadd.f32 %v609_v43, %v50_v38  ;;  %v207_v48 = vpop.f32.mrb[5].mxu0  ;;  %v239_v49 = vpop.f32.mrb[5].mxu1 }
  0xeb   :  { %v292_v52 = vld [vmem:[#allocation2 + $0x10] sm:$0xff]  ;;  %v258_v54 = vadd.f32 %v207_v48, %v40_v39  ;;  %v266_v55 = vadd.f32 %v239_v49, %v48_v40  ;;  %v602_v56 = vpop.f32.mrb[6].mxu0  ;;  %v610_v57 = vpop.f32.mrb[6].mxu1 }
  0xec   :  { %v300_v53 = vld [vmem:[#allocation2 + $0x50] sm:$0xff]  ;;  %v787_v58 = vadd.f32 %v784_v41, %v292_v52  ;;  %v290_v60 = vld [vmem:[#allocation2] sm:$0xff]  ;;  %277 = vst.msk [vmem:[#allocation2 + $0x30] sm:$0xff] %vm19_vm0, %v260_v46  ;;  %285 = vst.msk [vmem:[#allocation2 + $0x70] sm:$0xff] %vm19_vm0, %v268_v47  ;;  %v261_v62 = vadd.f32 %v602_v56, %v43_v44  ;;  %v269_v63 = vadd.f32 %v610_v57, %v51_v45  ;;  %v210_v0 = vpop.f32.mrb[7].mxu0  ;;  %v242_v1 = vpop.f32.mrb[7].mxu1 }
  0xed   :  { %v790_v59 = vadd.f32 %v784_v41, %v300_v53  ;;  %v298_v61 = vld [vmem:[#allocation2 + $0x40] sm:$0xff]  ;;  %v795_v2 = vadd.f32 %v784_v41, %v290_v60  ;;  %v293_v4 = vld [vmem:[#allocation2 + $0x18] sm:$0xff]  ;;  %275 = vst.msk [vmem:[#allocation2 + $0x20] sm:$0xff] %vm19_vm0, %v258_v54  ;;  %283 = vst.msk [vmem:[#allocation2 + $0x60] sm:$0xff] %vm19_vm0, %v266_v55  ;;  %v259_v6 = vadd.f32 %v210_v0, %v41_v50 }
  0xee   :  { %v798_v3 = vadd.f32 %v784_v41, %v298_v61  ;;  %v301_v5 = vld [vmem:[#allocation2 + $0x58] sm:$0xff]  ;;  %v267_v7 = vadd.f32 %v242_v1, %v49_v51  ;;  %v331_v8 = vsub.f32 0.0, %v787_v58  ;;  %v805_v10 = vadd.f32 %v784_v41, %v293_v4  ;;  %v291_v12 = vld [vmem:[#allocation2 + $0x8] sm:$0xff]  ;;  %278 = vst.msk [vmem:[#allocation2 + $0x38] sm:$0xff] %vm19_vm0, %v261_v62  ;;  %286 = vst.msk [vmem:[#allocation2 + $0x78] sm:$0xff] %vm19_vm0, %v269_v63 }
  0xef   :  { %v339_v9 = vsub.f32 0.0, %v790_v59  ;;  %v808_v11 = vadd.f32 %v784_v41, %v301_v5  ;;  %v299_v13 = vld [vmem:[#allocation2 + $0x48] sm:$0xff]  ;;  %v329_v14 = vsub.f32 0.0, %v795_v2  ;;  %v815_v16 = vadd.f32 %v784_v41, %v291_v12  ;;  %276 = vst.msk [vmem:[#allocation2 + $0x28] sm:$0xff] %vm19_vm0, %v259_v6 }
  0xf0   :  { %v337_v15 = vsub.f32 0.0, %v798_v3  ;;  %v818_v17 = vadd.f32 %v784_v41, %v299_v13  ;;  %284 = vst.msk [vmem:[#allocation2 + $0x68] sm:$0xff] %vm19_vm0, %v267_v7  ;;  %v349_v18 = vmul.f32 1.442695, %v331_v8  ;;  %v332_v20 = vsub.f32 0.0, %v805_v10 }
  0xf1   :  { %v365_v19 = vmul.f32 1.442695, %v339_v9  ;;  %v340_v21 = vsub.f32 0.0, %v808_v11  ;;  %v345_v22 = vmul.f32 1.442695, %v329_v14  ;;  %v330_v24 = vsub.f32 0.0, %v815_v16 }
  0xf2   :  { %v361_v23 = vmul.f32 1.442695, %v337_v15  ;;  %v338_v25 = vsub.f32 0.0, %v818_v17  ;;  %631 = vpow2.f32 %v349_v18  ;;  %v351_v26 = vmul.f32 1.442695, %v332_v20 }
  0xf3   :  { %633 = vpow2.f32 %v365_v19  ;;  %v367_v27 = vmul.f32 1.442695, %v340_v21  ;;  %v296_v28 = vld [vmem:[#allocation2 + $0x30] sm:$0xff]  ;;  %v347_v30 = vmul.f32 1.442695, %v330_v24 }
  0xf4   :  { %v304_v29 = vld [vmem:[#allocation2 + $0x70] sm:$0xff]  ;;  %635 = vpow2.f32 %v345_v22  ;;  %v827_v31 = vadd.f32 %v784_v41, %v296_v28  ;;  %v294_v33 = vld [vmem:[#allocation2 + $0x20] sm:$0xff]  ;;  %v363_v35 = vmul.f32 1.442695, %v338_v25 }
  0xf5   :  { %v830_v32 = vadd.f32 %v784_v41, %v304_v29  ;;  %v302_v34 = vld [vmem:[#allocation2 + $0x60] sm:$0xff]  ;;  %637 = vpow2.f32 %v361_v23  ;;  %v833_v36 = vadd.f32 %v784_v41, %v294_v33  ;;  %v297_v38 = vld [vmem:[#allocation2 + $0x38] sm:$0xff] }
  0xf6   :  { %v836_v37 = vadd.f32 %v784_v41, %v302_v34  ;;  %639 = vpow2.f32 %v351_v26  ;;  %v335_v39 = vsub.f32 0.0, %v827_v31  ;;  %v841_v42 = vadd.f32 %v784_v41, %v297_v38  ;;  %v305_v54 = vld [vmem:[#allocation2 + $0x78] sm:$0xff]  ;;  %v295_v57 = vld [vmem:[#allocation2 + $0x28] sm:$0xff] }
  0xf7   :  { %v343_v40 = vsub.f32 0.0, %v830_v32  ;;  %641 = vpow2.f32 %v367_v27  ;;  %v333_v43 = vsub.f32 0.0, %v833_v36  ;;  %v303_v62 = vld [vmem:[#allocation2 + $0x68] sm:$0xff]  ;;  %v847_v1 = vadd.f32 %v784_v41, %v305_v54 }
  0xf8   :  { %v341_v44 = vsub.f32 0.0, %v836_v37  ;;  %643 = vpow2.f32 %v347_v30  ;;  %v357_v45 = vmul.f32 1.442695, %v335_v39  ;;  %v336_v47 = vsub.f32 0.0, %v841_v42 }
  0xf9   :  { %v373_v46 = vmul.f32 1.442695, %v343_v40  ;;  %645 = vpow2.f32 %v363_v35  ;;  %v353_v48 = vmul.f32 1.442695, %v333_v43  ;;  %v850_v6 = vadd.f32 %v784_v41, %v295_v57 }
  0xfa   :  { %v369_v49 = vmul.f32 1.442695, %v341_v44  ;;  %647 = vpow2.f32 %v357_v45  ;;  %v359_v50 = vmul.f32 1.442695, %v336_v47  ;;  %v853_v9 = vadd.f32 %v784_v41, %v303_v62 }
  0xfb   :  { %649 = vpow2.f32 %v373_v46  ;;  %v344_v18 = vsub.f32 0.0, %v847_v1  ;;  %v334_v21 = vsub.f32 0.0, %v850_v6 }
  0xfc   :  { %v632_v51 = vpop.eup %631  ;;  %651 = vpow2.f32 %v353_v48  ;;  %v342_v24 = vsub.f32 0.0, %v853_v9 }
  0xfd   :  { %v634_v52 = vpop.eup %633  ;;  %v379_v53 = vadd.f32 1.0, %v632_v51  ;;  %653 = vpow2.f32 %v369_v49  ;;  %v375_v28 = vmul.f32 1.442695, %v344_v18  ;;  %v355_v33 = vmul.f32 1.442695, %v334_v21 }
  0xfe   :  { %v636_v55 = vpop.eup %635  ;;  %v387_v56 = vadd.f32 1.0, %v634_v52  ;;  %655 = vpow2.f32 %v359_v50  ;;  %v371_v38 = vmul.f32 1.442695, %v342_v24 }
  0xff   :  { %v638_v60 = vpop.eup %637  ;;  %657 = vrcp.f32 %v379_v53  ;;  %v377_v61 = vadd.f32 1.0, %v636_v55 }
 0x100   :  { %v640_v63 = vpop.eup %639  ;;  %659 = vrcp.f32 %v387_v56  ;;  %v385_v0 = vadd.f32 1.0, %v638_v60 }
 0x101   :  { %v642_v4 = vpop.eup %641  ;;  %661 = vrcp.f32 %v377_v61  ;;  %v380_v5 = vadd.f32 1.0, %v640_v63 }
 0x102   :  { %v644_v7 = vpop.eup %643  ;;  %663 = vrcp.f32 %v385_v0  ;;  %v388_v8 = vadd.f32 1.0, %v642_v4 }
 0x103   :  { %v646_v12 = vpop.eup %645  ;;  %665 = vrcp.f32 %v380_v5  ;;  %v378_v13 = vadd.f32 1.0, %v644_v7 }
 0x104   :  { %v648_v14 = vpop.eup %647  ;;  %667 = vrcp.f32 %v388_v8  ;;  %v386_v15 = vadd.f32 1.0, %v646_v12 }
 0x105   :  { %v650_v19 = vpop.eup %649  ;;  %669 = vrcp.f32 %v378_v13  ;;  %v383_v20 = vadd.f32 1.0, %v648_v14 }
 0x106   :  { %v652_v22 = vpop.eup %651  ;;  %671 = vrcp.f32 %v386_v15  ;;  %v391_v23 = vadd.f32 1.0, %v650_v19 }
 0x107   :  { %v654_v41 = vpop.eup %653  ;;  %673 = vrcp.f32 %v383_v20  ;;  %v381_v25 = vadd.f32 1.0, %v652_v22 }
 0x108   :  { %v656_v26 = vpop.eup %655  ;;  %675 = vrcp.f32 %v391_v23  ;;  %v389_v27 = vadd.f32 1.0, %v654_v41 }
 0x109   :  { %v658_v29 = vpop.eup %657  ;;  %677 = vrcp.f32 %v381_v25  ;;  %v384_v30 = vadd.f32 1.0, %v656_v26 }
 0x10a   :  { %v660_v34 = vpop.eup %659  ;;  %v427_v35 = vmul.f32 %v658_v29, %v787_v58  ;;  %679 = vrcp.f32 %v389_v27 }
 0x10b   :  { %v662_v39 = vpop.eup %661  ;;  %v435_v40 = vmul.f32 %v660_v34, %v790_v59  ;;  %681 = vrcp.f32 %v384_v30 }
 0x10c   :  { %v664_v43 = vpop.eup %663  ;;  %v564_v44 = vpack.c.bf16 %v427_v35, %v427_v35  ;;  %v425_v45 = vmul.f32 %v662_v39, %v795_v2  ;;  %683 = vpow2.f32 %v375_v28 }
 0x10d   :  { %v666_v46 = vpop.eup %665  ;;  %v572_v47 = vpack.c.bf16 %v435_v40, %v435_v40  ;;  %v433_v48 = vmul.f32 %v664_v43, %v798_v3  ;;  %685 = vpow2.f32 %v355_v33 }
 0x10e   :  { %v668_v49 = vpop.eup %667  ;;  %508 = vst.msk [vmem:[%s941_s3 + $0x8] sm:$0xf] %vm505_vm3, %v564_v44  ;;  %v562_v58 = vpack.c.bf16 %v425_v45, %v425_v45  ;;  %v428_v59 = vmul.f32 %v666_v46, %v805_v10  ;;  %687 = vpow2.f32 %v371_v38 }
 0x10f   :  { %v670_v50 = vpop.eup %669  ;;  %516 = vst.msk [vmem:[%s941_s3 + $0x28] sm:$0xf] %vm505_vm3, %v572_v47  ;;  %v570_v2 = vpack.c.bf16 %v433_v48, %v433_v48  ;;  %v436_v3 = vmul.f32 %v668_v49, %v808_v11 }
 0x110   :  { %v672_v51 = vpop.eup %671  ;;  %506 = vst.msk [vmem:[%s941_s3] sm:$0xf] %vm505_vm3, %v562_v58  ;;  %v565_v52 = vpack.c.bf16 %v428_v59, %v428_v59  ;;  %v426_v53 = vmul.f32 %v670_v50, %v815_v16 }
 0x111   :  { %v674_v10 = vpop.eup %673  ;;  %514 = vst.msk [vmem:[%s941_s3 + $0x20] sm:$0xf] %vm505_vm3, %v570_v2  ;;  %v573_v54 = vpack.c.bf16 %v436_v3, %v436_v3  ;;  %v434_v55 = vmul.f32 %v672_v51, %v818_v17 }
 0x112   :  { %v676_v56 = vpop.eup %675  ;;  %509 = vst.msk [vmem:[%s941_s3 + $0xc] sm:$0xf] %vm505_vm3, %v565_v52  ;;  %v563_v11 = vpack.c.bf16 %v426_v53, %v426_v53  ;;  %v431_v57 = vmul.f32 %v674_v10, %v827_v31 }
 0x113   :  { %v678_v60 = vpop.eup %677  ;;  %517 = vst.msk [vmem:[%s941_s3 + $0x2c] sm:$0xf] %vm505_vm3, %v573_v54  ;;  %v571_v16 = vpack.c.bf16 %v434_v55, %v434_v55  ;;  %v439_v61 = vmul.f32 %v676_v56, %v830_v32 }
 0x114   :  { %v680_v62 = vpop.eup %679  ;;  %507 = vst.msk [vmem:[%s941_s3 + $0x4] sm:$0xf] %vm505_vm3, %v563_v11  ;;  %v568_v17 = vpack.c.bf16 %v431_v57, %v431_v57  ;;  %v429_v63 = vmul.f32 %v678_v60, %v833_v36 }
 0x115   :  { %v682_v0 = vpop.eup %681  ;;  %515 = vst.msk [vmem:[%s941_s3 + $0x24] sm:$0xf] %vm505_vm3, %v571_v16  ;;  %v576_v31 = vpack.c.bf16 %v439_v61, %v439_v61  ;;  %v437_v4 = vmul.f32 %v680_v62, %v836_v37 }
 0x116   :  { %v684_v5 = vpop.eup %683  ;;  %512 = vst.msk [vmem:[%s941_s3 + $0x18] sm:$0xf] %vm505_vm3, %v568_v17  ;;  %v566_v32 = vpack.c.bf16 %v429_v63, %v429_v63  ;;  %v432_v7 = vmul.f32 %v682_v0, %v841_v42 }
 0x117   :  { %v686_v8 = vpop.eup %685  ;;  %520 = vst.msk [vmem:[%s941_s3 + $0x38] sm:$0xf] %vm505_vm3, %v576_v31  ;;  %v574_v36 = vpack.c.bf16 %v437_v4, %v437_v4  ;;  %v392_v12 = vadd.f32 1.0, %v684_v5 }
 0x118   :  { %v688_v13 = vpop.eup %687  ;;  %510 = vst.msk [vmem:[%s941_s3 + $0x10] sm:$0xf] %vm505_vm3, %v566_v32  ;;  %v569_v37 = vpack.c.bf16 %v432_v7, %v432_v7  ;;  %v382_v14 = vadd.f32 1.0, %v686_v8 }
 0x119   :  { %518 = vst.msk [vmem:[%s941_s3 + $0x30] sm:$0xf] %vm505_vm3, %v574_v36  ;;  %689 = vrcp.f32 %v392_v12  ;;  %v390_v42 = vadd.f32 1.0, %v688_v13 }
 0x11a   :  { %513 = vst.msk [vmem:[%s941_s3 + $0x1c] sm:$0xf] %vm505_vm3, %v569_v37  ;;  %691 = vrcp.f32 %v382_v14 }
 0x11b   :  { %693 = vrcp.f32 %v390_v42 }
 0x123   :  { %v690_v15 = vpop.eup %689 }
 0x124   :  { %v692_v18 = vpop.eup %691  ;;  %v440_v19 = vmul.f32 %v690_v15, %v847_v1 }
 0x125   :  { %v694_v20 = vpop.eup %693  ;;  %v430_v21 = vmul.f32 %v692_v18, %v850_v6 }
 0x126   :  { %v577_v22 = vpack.c.bf16 %v440_v19, %v440_v19  ;;  %v438_v23 = vmul.f32 %v694_v20, %v853_v9 }
 0x127   :  { %v567_v24 = vpack.c.bf16 %v430_v21, %v430_v21 }
 0x128   :  { %521 = vst.msk [vmem:[%s941_s3 + $0x3c] sm:$0xf] %vm505_vm3, %v577_v22  ;;  %v575_v41 = vpack.c.bf16 %v438_v23, %v438_v23 }
 0x129   :  { %511 = vst.msk [vmem:[%s941_s3 + $0x14] sm:$0xf] %vm505_vm3, %v567_v24 }
 0x12a   :  { %519 = vst.msk [vmem:[%s941_s3 + $0x34] sm:$0xf] %vm505_vm3, %v575_v41 }

// kernel: _lambda_.20
= control target key start
LH: loop header
LB: loop body
LE: loop exit
PB: predicated region body
PF: predicated region fallthrough
CT: control target
= control target key end

     0   :  { %vm22_vm0 = vcmask 31744   ;;  %v785_v1 = vmov 0.0   ;;  %vm131_vm1 = vcmask 293888   ;;  %vm156_vm2 = vcmask 1041408   ;;  %s1089_s1 = inlined_call_operand.vmem [shape: bf16[36,4], index: 1, kind: input, shape index: {}]   ;;  %s1090_s0 = inlined_call_operand.vmem [shape: bf16[128,36], index: 0, kind: input, shape index: {}]   ;;  %s1091_s2 = inlined_call_operand.vmem [shape: f32[1,4], index: 2, kind: input, shape index: {}]   ;;  %s1092_s3 = inlined_call_operand.vmem [shape: bf16[128,4], index: 3, kind: input, shape index: {}]   ;;  %s1093_s4 = inlined_call_operand.vmem [shape: bf16[128,4], index: 4, kind: output, shape index: {}]  }
   0x1   :  { %v710_v0 = vld [vmem:[%s1089_s1] sm:$0xff]   ;;  %25 = vst.msk [vmem:[#allocation2 + $0x10] sm:$0xff] %vm22_vm0, %v785_v1  ;;  %23 = vst.msk [vmem:[#allocation2] sm:$0xff] %vm22_vm0, %v785_v1  ;;  %v711_v2 = vld [vmem:[%s1089_s1 + $0x8] sm:$0xff]   ;;  %vm556_vm3 = vcmask 27648  }
   0x2   :  { %24 = vst.msk [vmem:[#allocation2 + $0x8] sm:$0xff] %vm22_vm0, %v785_v1  ;;  %26 = vst.msk [vmem:[#allocation2 + $0x18] sm:$0xff] %vm22_vm0, %v785_v1  ;;  %679 = vmatprep.subr.bf16.mxu0 %v710_v0  ;;  %701 = vmatprep.subr.bf16.mxu1 %v710_v0  ;;  %v712_v3 = vld [vmem:[%s1089_s1 + $0x10] ss:$0 sps:$4 sm:$0x33]   ;;  %v713_v4 = vld [vmem:[%s1090_s0] sm:$0xff]  }
   0x3   :  { %27 = vst.msk [vmem:[#allocation2 + $0x20] sm:$0xff] %vm22_vm0, %v785_v1  ;;  %28 = vst.msk [vmem:[#allocation2 + $0x28] sm:$0xff] %vm22_vm0, %v785_v1  ;;  %680 = vmatpush3.bf16.msra.mxu0 %v710_v0  ;;  %704 = vmatpush3.bf16.msra.mxu1 %v710_v0  ;;  %v714_v5 = vld [vmem:[%s1090_s0 + $0x20] sm:$0xff]   ;;  %v158_v6 = vsel %vm156_vm2, %v712_v3, 0  ;;  %v715_v7 = vld [vmem:[%s1090_s0 + $0x8] sm:$0xff]  }
   0x4   :  { %29 = vst.msk [vmem:[#allocation2 + $0x30] sm:$0xff] %vm22_vm0, %v785_v1  ;;  %30 = vst.msk [vmem:[#allocation2 + $0x38] sm:$0xff] %vm22_vm0, %v785_v1  ;;  %681 = vmatprep.subr.bf16.mxu0 %v711_v2  ;;  %702 = vmatprep.subr.bf16.mxu1 %v711_v2  ;;  %v716_v8 = vld [vmem:[%s1090_s0 + $0x28] sm:$0xff]   ;;  %v717_v9 = vld [vmem:[%s1090_s0 + $0x10] sm:$0xff]  }
   0x5   :  { %31 = vst.msk [vmem:[#allocation2 + $0x40] sm:$0xff] %vm22_vm0, %v785_v1  ;;  %32 = vst.msk [vmem:[#allocation2 + $0x48] sm:$0xff] %vm22_vm0, %v785_v1  ;;  %685 = vmatprep.mubr.msk.bf16.mxu0 %vm131_vm1, %v713_v4  ;;  %693 = vmatprep.mubr.msk.bf16.mxu1 %vm131_vm1, %v714_v5  ;;  %v718_v10 = vld [vmem:[%s1090_s0 + $0x30] sm:$0xff]   ;;  %v719_v11 = vld [vmem:[%s1090_s0 + $0x18] sm:$0xff]  }
   0x6   :  { %33 = vst.msk [vmem:[#allocation2 + $0x50] sm:$0xff] %vm22_vm0, %v785_v1  ;;  %34 = vst.msk [vmem:[#allocation2 + $0x58] sm:$0xff] %vm22_vm0, %v785_v1  ;;  %v720_v12 = vld [vmem:[%s1090_s0 + $0x38] sm:$0xff]   ;;  %v879_v41 = vld [vmem:[%s1091_s2] ss:$0 sm:$0xff] }
   0x7   :  { %35 = vst.msk [vmem:[#allocation2 + $0x60] sm:$0xff] %vm22_vm0, %v785_v1  ;;  %36 = vst.msk [vmem:[#allocation2 + $0x68] sm:$0xff] %vm22_vm0, %v785_v1  ;;  %682 = vmatpush3.bf16.msra.mxu0 %v711_v2  ;;  %705 = vmatpush3.bf16.msra.mxu1 %v711_v2 }
   0x8   :  { %37 = vst.msk [vmem:[#allocation2 + $0x70] sm:$0xff] %vm22_vm0, %v785_v1  ;;  %38 = vst.msk [vmem:[#allocation2 + $0x78] sm:$0xff] %vm22_vm0, %v785_v1  ;;  %707 = vmatprep.subr.msk.bf16.mxu0 %vm156_vm2, %v712_v3  ;;  %708 = vmatprep.subr.msk.bf16.mxu1 %vm156_vm2, %v712_v3  ;;  %v41_v13 = vld [vmem:[#allocation2 + $0x10] sm:$0xff]  ;;  %v39_v15 = vld [vmem:[#allocation2] sm:$0xff] }
   0x9   :  { %v42_v19 = vld [vmem:[#allocation2 + $0x18] sm:$0xff]  ;;  %v40_v25 = vld [vmem:[#allocation2 + $0x8] sm:$0xff] }
   0xa   :  { %v43_v39 = vld [vmem:[#allocation2 + $0x20] sm:$0xff]  ;;  %v44_v50 = vld [vmem:[#allocation2 + $0x28] sm:$0xff] }
   0xb   :  { %684 = vmatpush3.bf16.msra.mxu0 %v158_v6  ;;  %706 = vmatpush3.bf16.msra.mxu1 %v158_v6  ;;  %v45_v37 = vld [vmem:[#allocation2 + $0x30] sm:$0xff]  ;;  %v46_v44 = vld [vmem:[#allocation2 + $0x38] sm:$0xff] }
   0xc   :  { %v47_v16 = vld [vmem:[#allocation2 + $0x40] sm:$0xff]  ;;  %v48_v26 = vld [vmem:[#allocation2 + $0x48] sm:$0xff] }
   0xd   :  { %v49_v14 = vld [vmem:[#allocation2 + $0x50] sm:$0xff]  ;;  %v50_v20 = vld [vmem:[#allocation2 + $0x58] sm:$0xff] }
   0xe   :  { %686 = vmatmul.mubr.msk.bf16.vlgmr.msra.gmra.mrb[0].mxu0 %vm131_vm1, %v715_v7  ;;  %694 = vmatmul.mubr.msk.bf16.vlgmr.msra.gmra.mrb[0].mxu1 %vm131_vm1, %v716_v8  ;;  %v51_v40 = vld [vmem:[#allocation2 + $0x60] sm:$0xff]  ;;  %v52_v51 = vld [vmem:[#allocation2 + $0x68] sm:$0xff] }
   0xf   :  { %689 = vmatprep.mubr.msk.bf16.mxu0 %vm131_vm1, %v717_v9  ;;  %697 = vmatprep.mubr.msk.bf16.mxu1 %vm131_vm1, %v718_v10  ;;  %v53_v38 = vld [vmem:[#allocation2 + $0x70] sm:$0xff]  ;;  %v54_v45 = vld [vmem:[#allocation2 + $0x78] sm:$0xff] }
  0x16   :  { %690 = vmatmul.mubr.msk.bf16.gmra.mrb[4].mxu0 %vm131_vm1, %v719_v11  ;;  %698 = vmatmul.mubr.msk.bf16.gmra.mrb[4].mxu1 %vm131_vm1, %v720_v12 }
  0xe1   :  { %v687_v17 = vpop.f32.mrb[0].mxu0  ;;  %v695_v18 = vpop.f32.mrb[0].mxu1 }
  0xe2   :  { %v259_v21 = vadd.f32 %v687_v17, %v41_v13  ;;  %v267_v22 = vadd.f32 %v695_v18, %v49_v14  ;;  %v194_v23 = vpop.f32.mrb[1].mxu0  ;;  %v226_v24 = vpop.f32.mrb[1].mxu1 }
  0xe3   :  { %v257_v27 = vadd.f32 %v194_v23, %v39_v15  ;;  %v265_v28 = vadd.f32 %v226_v24, %v47_v16  ;;  %v688_v29 = vpop.f32.mrb[2].mxu0  ;;  %v696_v30 = vpop.f32.mrb[2].mxu1 }
  0xe4   :  { %276 = vst.msk [vmem:[#allocation2 + $0x10] sm:$0xff] %vm22_vm0, %v259_v21  ;;  %284 = vst.msk [vmem:[#allocation2 + $0x50] sm:$0xff] %vm22_vm0, %v267_v22  ;;  %v260_v31 = vadd.f32 %v688_v29, %v42_v19  ;;  %v268_v32 = vadd.f32 %v696_v30, %v50_v20  ;;  %v197_v33 = vpop.f32.mrb[3].mxu0  ;;  %v229_v34 = vpop.f32.mrb[3].mxu1 }
  0xe5   :  { %274 = vst.msk [vmem:[#allocation2] sm:$0xff] %vm22_vm0, %v257_v27  ;;  %282 = vst.msk [vmem:[#allocation2 + $0x40] sm:$0xff] %vm22_vm0, %v265_v28  ;;  %v258_v35 = vadd.f32 %v197_v33, %v40_v25  ;;  %v266_v36 = vadd.f32 %v229_v34, %v48_v26 }
  0xe6   :  { %277 = vst.msk [vmem:[#allocation2 + $0x18] sm:$0xff] %vm22_vm0, %v260_v31  ;;  %285 = vst.msk [vmem:[#allocation2 + $0x58] sm:$0xff] %vm22_vm0, %v268_v32 }
  0xe7   :  { %275 = vst.msk [vmem:[#allocation2 + $0x8] sm:$0xff] %vm22_vm0, %v258_v35  ;;  %283 = vst.msk [vmem:[#allocation2 + $0x48] sm:$0xff] %vm22_vm0, %v266_v36 }
  0xe9   :  { %v691_v42 = vpop.f32.mrb[4].mxu0  ;;  %v699_v43 = vpop.f32.mrb[4].mxu1 }
  0xea   :  { %v263_v46 = vadd.f32 %v691_v42, %v45_v37  ;;  %v271_v47 = vadd.f32 %v699_v43, %v53_v38  ;;  %v210_v48 = vpop.f32.mrb[5].mxu0  ;;  %v242_v49 = vpop.f32.mrb[5].mxu1 }
  0xeb   :  { %v295_v52 = vld [vmem:[#allocation2 + $0x10] sm:$0xff]  ;;  %v261_v54 = vadd.f32 %v210_v48, %v43_v39  ;;  %v269_v55 = vadd.f32 %v242_v49, %v51_v40  ;;  %v692_v56 = vpop.f32.mrb[6].mxu0  ;;  %v700_v57 = vpop.f32.mrb[6].mxu1 }
  0xec   :  { %v303_v53 = vld [vmem:[#allocation2 + $0x50] sm:$0xff]  ;;  %v882_v58 = vadd.f32 %v879_v41, %v295_v52  ;;  %v293_v60 = vld [vmem:[#allocation2] sm:$0xff]  ;;  %280 = vst.msk [vmem:[#allocation2 + $0x30] sm:$0xff] %vm22_vm0, %v263_v46  ;;  %288 = vst.msk [vmem:[#allocation2 + $0x70] sm:$0xff] %vm22_vm0, %v271_v47  ;;  %v264_v62 = vadd.f32 %v692_v56, %v46_v44  ;;  %v272_v63 = vadd.f32 %v700_v57, %v54_v45  ;;  %v213_v0 = vpop.f32.mrb[7].mxu0  ;;  %v245_v1 = vpop.f32.mrb[7].mxu1 }
  0xed   :  { %v885_v59 = vadd.f32 %v879_v41, %v303_v53  ;;  %v301_v61 = vld [vmem:[#allocation2 + $0x40] sm:$0xff]  ;;  %v890_v2 = vadd.f32 %v879_v41, %v293_v60  ;;  %v296_v4 = vld [vmem:[#allocation2 + $0x18] sm:$0xff]  ;;  %278 = vst.msk [vmem:[#allocation2 + $0x20] sm:$0xff] %vm22_vm0, %v261_v54  ;;  %286 = vst.msk [vmem:[#allocation2 + $0x60] sm:$0xff] %vm22_vm0, %v269_v55  ;;  %v262_v6 = vadd.f32 %v213_v0, %v44_v50 }
  0xee   :  { %v893_v3 = vadd.f32 %v879_v41, %v301_v61  ;;  %v304_v5 = vld [vmem:[#allocation2 + $0x58] sm:$0xff]  ;;  %v270_v7 = vadd.f32 %v245_v1, %v52_v51  ;;  %v334_v8 = vsub.f32 0.0, %v882_v58  ;;  %v900_v10 = vadd.f32 %v879_v41, %v296_v4  ;;  %v294_v12 = vld [vmem:[#allocation2 + $0x8] sm:$0xff]  ;;  %281 = vst.msk [vmem:[#allocation2 + $0x38] sm:$0xff] %vm22_vm0, %v264_v62  ;;  %289 = vst.msk [vmem:[#allocation2 + $0x78] sm:$0xff] %vm22_vm0, %v272_v63 }
  0xef   :  { %v342_v9 = vsub.f32 0.0, %v885_v59  ;;  %v903_v11 = vadd.f32 %v879_v41, %v304_v5  ;;  %v302_v13 = vld [vmem:[#allocation2 + $0x48] sm:$0xff]  ;;  %v332_v14 = vsub.f32 0.0, %v890_v2  ;;  %v910_v16 = vadd.f32 %v879_v41, %v294_v12  ;;  %279 = vst.msk [vmem:[#allocation2 + $0x28] sm:$0xff] %vm22_vm0, %v262_v6 }
  0xf0   :  { %v340_v15 = vsub.f32 0.0, %v893_v3  ;;  %v913_v17 = vadd.f32 %v879_v41, %v302_v13  ;;  %287 = vst.msk [vmem:[#allocation2 + $0x68] sm:$0xff] %vm22_vm0, %v270_v7  ;;  %v352_v18 = vmul.f32 1.442695, %v334_v8  ;;  %v335_v20 = vsub.f32 0.0, %v900_v10 }
  0xf1   :  { %v368_v19 = vmul.f32 1.442695, %v342_v9  ;;  %v343_v21 = vsub.f32 0.0, %v903_v11  ;;  %v348_v22 = vmul.f32 1.442695, %v332_v14  ;;  %v333_v24 = vsub.f32 0.0, %v910_v16 }
  0xf2   :  { %v364_v23 = vmul.f32 1.442695, %v340_v15  ;;  %v341_v25 = vsub.f32 0.0, %v913_v17  ;;  %721 = vpow2.f32 %v352_v18  ;;  %v354_v26 = vmul.f32 1.442695, %v335_v20  ;;  %v953_v15 = vld [vmem:[%s1092_s3 + $0x8] sm:$0xff]  }
  0xf3   :  { %723 = vpow2.f32 %v368_v19  ;;  %v370_v27 = vmul.f32 1.442695, %v343_v21  ;;  %v299_v28 = vld [vmem:[#allocation2 + $0x30] sm:$0xff]  ;;  %v350_v30 = vmul.f32 1.442695, %v333_v24  ;;  %v959_v21 = vld [vmem:[%s1092_s3 + $0x28] sm:$0xff]  }
  0xf4   :  { %v307_v29 = vld [vmem:[#allocation2 + $0x70] sm:$0xff]  ;;  %725 = vpow2.f32 %v348_v22  ;;  %v922_v31 = vadd.f32 %v879_v41, %v299_v28  ;;  %v297_v33 = vld [vmem:[#allocation2 + $0x20] sm:$0xff]  ;;  %v366_v35 = vmul.f32 1.442695, %v341_v25  ;;  %v635_v28 = vunpack.c.l.bf16 %v953_v15 }
  0xf5   :  { %v925_v32 = vadd.f32 %v879_v41, %v307_v29  ;;  %v305_v34 = vld [vmem:[#allocation2 + $0x60] sm:$0xff]  ;;  %727 = vpow2.f32 %v364_v23  ;;  %v928_v36 = vadd.f32 %v879_v41, %v297_v33  ;;  %v300_v38 = vld [vmem:[#allocation2 + $0x38] sm:$0xff] }
  0xf6   :  { %v931_v37 = vadd.f32 %v879_v41, %v305_v34  ;;  %729 = vpow2.f32 %v354_v26  ;;  %v338_v39 = vsub.f32 0.0, %v922_v31  ;;  %v936_v42 = vadd.f32 %v879_v41, %v300_v38  ;;  %v308_v54 = vld [vmem:[#allocation2 + $0x78] sm:$0xff]  ;;  %v298_v57 = vld [vmem:[#allocation2 + $0x28] sm:$0xff]  ;;  %v965_v24 = vld [vmem:[%s1092_s3] sm:$0xff]  }
  0xf7   :  { %v346_v40 = vsub.f32 0.0, %v925_v32  ;;  %731 = vpow2.f32 %v370_v27  ;;  %v336_v43 = vsub.f32 0.0, %v928_v36  ;;  %v306_v62 = vld [vmem:[#allocation2 + $0x68] sm:$0xff]  ;;  %v942_v1 = vadd.f32 %v879_v41, %v308_v54  ;;  %v972_v29 = vld [vmem:[%s1092_s3 + $0x20] sm:$0xff]  }
  0xf8   :  { %v344_v44 = vsub.f32 0.0, %v931_v37  ;;  %733 = vpow2.f32 %v350_v30  ;;  %v360_v45 = vmul.f32 1.442695, %v338_v39  ;;  %v339_v47 = vsub.f32 0.0, %v936_v42 }
  0xf9   :  { %v376_v46 = vmul.f32 1.442695, %v346_v40  ;;  %735 = vpow2.f32 %v366_v35  ;;  %v356_v48 = vmul.f32 1.442695, %v336_v43  ;;  %v945_v6 = vadd.f32 %v879_v41, %v298_v57 }
  0xfa   :  { %v372_v49 = vmul.f32 1.442695, %v344_v44  ;;  %737 = vpow2.f32 %v360_v45  ;;  %v362_v50 = vmul.f32 1.442695, %v339_v47  ;;  %v948_v9 = vadd.f32 %v879_v41, %v306_v62 }
  0xfb   :  { %739 = vpow2.f32 %v376_v46  ;;  %v347_v19 = vsub.f32 0.0, %v942_v1  ;;  %v337_v22 = vsub.f32 0.0, %v945_v6  ;;  %v651_v34 = vunpack.c.l.bf16 %v959_v21 }
  0xfc   :  { %v722_v51 = vpop.eup %721  ;;  %741 = vpow2.f32 %v356_v48  ;;  %v345_v26 = vsub.f32 0.0, %v948_v9  ;;  %v631_v40 = vunpack.c.l.bf16 %v965_v24  ;;  %v647_v47 = vunpack.c.l.bf16 %v972_v29 }
  0xfd   :  { %v724_v52 = vpop.eup %723  ;;  %v382_v53 = vadd.f32 1.0, %v722_v51  ;;  %743 = vpow2.f32 %v372_v49  ;;  %v378_v38 = vmul.f32 1.442695, %v347_v19  ;;  %v358_v44 = vmul.f32 1.442695, %v337_v22 }
  0xfe   :  { %v726_v55 = vpop.eup %725  ;;  %v390_v56 = vadd.f32 1.0, %v724_v52  ;;  %745 = vpow2.f32 %v362_v50  ;;  %v374_v48 = vmul.f32 1.442695, %v345_v26  ;;  %v636_v51 = vunpack.c.h.bf16 %v953_v15 }
  0xff   :  { %v728_v60 = vpop.eup %727  ;;  %747 = vrcp.f32 %v382_v53  ;;  %v380_v61 = vadd.f32 1.0, %v726_v55  ;;  %v652_v55 = vunpack.c.h.bf16 %v959_v21 }
 0x100   :  { %v730_v63 = vpop.eup %729  ;;  %749 = vrcp.f32 %v390_v56  ;;  %v388_v0 = vadd.f32 1.0, %v728_v60  ;;  %v632_v60 = vunpack.c.h.bf16 %v965_v24 }
 0x101   :  { %v732_v4 = vpop.eup %731  ;;  %751 = vrcp.f32 %v380_v61  ;;  %v383_v5 = vadd.f32 1.0, %v730_v63 }
 0x102   :  { %v734_v7 = vpop.eup %733  ;;  %753 = vrcp.f32 %v388_v0  ;;  %v391_v8 = vadd.f32 1.0, %v732_v4  ;;  %v993_v0 = vld [vmem:[%s1092_s3 + $0x38] sm:$0xff]  }
 0x103   :  { %v736_v12 = vpop.eup %735  ;;  %755 = vrcp.f32 %v383_v5  ;;  %v381_v13 = vadd.f32 1.0, %v734_v7  ;;  %v659_v22 = vunpack.c.l.bf16 %v993_v0 }
 0x104   :  { %v738_v14 = vpop.eup %737  ;;  %757 = vrcp.f32 %v391_v8  ;;  %v389_v18 = vadd.f32 1.0, %v736_v12  ;;  %v648_v8 = vunpack.c.h.bf16 %v972_v29  ;;  %v1000_v12 = vld [vmem:[%s1092_s3 + $0x10] sm:$0xff]  }
 0x105   :  { %v740_v20 = vpop.eup %739  ;;  %759 = vrcp.f32 %v381_v13  ;;  %v386_v41 = vadd.f32 1.0, %v738_v14  ;;  %v639_v26 = vunpack.c.l.bf16 %v1000_v12 }
 0x106   :  { %v742_v23 = vpop.eup %741  ;;  %761 = vrcp.f32 %v389_v18  ;;  %v394_v25 = vadd.f32 1.0, %v740_v20 }
 0x107   :  { %v744_v27 = vpop.eup %743  ;;  %763 = vrcp.f32 %v386_v41  ;;  %v384_v30 = vadd.f32 1.0, %v742_v23 }
 0x108   :  { %v746_v33 = vpop.eup %745  ;;  %765 = vrcp.f32 %v394_v25  ;;  %v392_v35 = vadd.f32 1.0, %v744_v27 }
 0x109   :  { %v748_v39 = vpop.eup %747  ;;  %767 = vrcp.f32 %v384_v30  ;;  %v387_v43 = vadd.f32 1.0, %v746_v33 }
 0x10a   :  { %v750_v45 = vpop.eup %749  ;;  %v430_v46 = vmul.f32 %v748_v39, %v882_v58  ;;  %769 = vrcp.f32 %v392_v35 }
 0x10b   :  { %v752_v49 = vpop.eup %751  ;;  %v438_v50 = vmul.f32 %v750_v45, %v885_v59  ;;  %771 = vrcp.f32 %v387_v43  ;;  %v987_v59 = vld [vmem:[%s1092_s3 + $0x18] sm:$0xff]  }
 0x10c   :  { %v754_v52 = vpop.eup %753  ;;  %v478_v53 = vadd.f32 %v635_v28, %v430_v46  ;;  %v428_v54 = vmul.f32 %v752_v49, %v890_v2  ;;  %773 = vpow2.f32 %v378_v38  ;;  %v643_v18 = vunpack.c.l.bf16 %v987_v59 }
 0x10d   :  { %v756_v56 = vpop.eup %755  ;;  %v486_v58 = vadd.f32 %v651_v34, %v438_v50  ;;  %v436_v57 = vmul.f32 %v754_v52, %v893_v3  ;;  %775 = vpow2.f32 %v358_v44  ;;  %v644_v38 = vunpack.c.h.bf16 %v987_v59 }
 0x10e   :  { %v758_v61 = vpop.eup %757  ;;  %v615_v62 = vpack.c.bf16 %v478_v53, %v478_v53  ;;  %v476_v63 = vadd.f32 %v631_v40, %v428_v54  ;;  %v431_v2 = vmul.f32 %v756_v56, %v900_v10  ;;  %777 = vpow2.f32 %v374_v48 }
 0x10f   :  { %v760_v3 = vpop.eup %759  ;;  %v623_v4 = vpack.c.bf16 %v486_v58, %v486_v58  ;;  %v484_v5 = vadd.f32 %v647_v47, %v436_v57  ;;  %v439_v7 = vmul.f32 %v758_v61, %v903_v11  ;;  %v1011_v11 = vld [vmem:[%s1092_s3 + $0x30] sm:$0xff]   ;;  %v660_v56 = vunpack.c.h.bf16 %v993_v0 }
 0x110   :  { %v762_v13 = vpop.eup %761  ;;  %559 = vst.msk [vmem:[%s1093_s4 + $0x8] sm:$0xf] %vm556_vm3, %v615_v62  ;;  %v613_v10 = vpack.c.bf16 %v476_v63, %v476_v63  ;;  %v479_v14 = vadd.f32 %v636_v51, %v431_v2  ;;  %v429_v15 = vmul.f32 %v760_v3, %v910_v16  ;;  %v655_v30 = vunpack.c.l.bf16 %v1011_v11 }
 0x111   :  { %v764_v19 = vpop.eup %763  ;;  %567 = vst.msk [vmem:[%s1093_s4 + $0x28] sm:$0xf] %vm556_vm3, %v623_v4  ;;  %v621_v20 = vpack.c.bf16 %v484_v5, %v484_v5  ;;  %v487_v21 = vadd.f32 %v652_v55, %v439_v7  ;;  %v437_v41 = vmul.f32 %v762_v13, %v913_v17  ;;  %v640_v57 = vunpack.c.h.bf16 %v1000_v12 }
 0x112   :  { %v766_v16 = vpop.eup %765  ;;  %557 = vst.msk [vmem:[%s1093_s4] sm:$0xf] %vm556_vm3, %v613_v10  ;;  %v616_v23 = vpack.c.bf16 %v479_v14, %v479_v14  ;;  %v477_v24 = vadd.f32 %v632_v60, %v429_v15  ;;  %v434_v25 = vmul.f32 %v764_v19, %v922_v31  ;;  %v656_v61 = vunpack.c.h.bf16 %v1011_v11 }
 0x113   :  { %v768_v27 = vpop.eup %767  ;;  %565 = vst.msk [vmem:[%s1093_s4 + $0x20] sm:$0xf] %vm556_vm3, %v621_v20  ;;  %v624_v17 = vpack.c.bf16 %v487_v21, %v487_v21  ;;  %v485_v28 = vadd.f32 %v648_v8, %v437_v41  ;;  %v442_v29 = vmul.f32 %v766_v16, %v925_v32 }
 0x114   :  { %v770_v33 = vpop.eup %769  ;;  %560 = vst.msk [vmem:[%s1093_s4 + $0xc] sm:$0xf] %vm556_vm3, %v616_v23  ;;  %v614_v31 = vpack.c.bf16 %v477_v24, %v477_v24  ;;  %v482_v34 = vadd.f32 %v643_v18, %v434_v25  ;;  %v432_v35 = vmul.f32 %v768_v27, %v928_v36 }
 0x115   :  { %v772_v39 = vpop.eup %771  ;;  %568 = vst.msk [vmem:[%s1093_s4 + $0x2c] sm:$0xf] %vm556_vm3, %v624_v17  ;;  %v622_v32 = vpack.c.bf16 %v485_v28, %v485_v28  ;;  %v490_v40 = vadd.f32 %v659_v22, %v442_v29  ;;  %v440_v43 = vmul.f32 %v770_v33, %v931_v37 }
 0x116   :  { %v774_v44 = vpop.eup %773  ;;  %558 = vst.msk [vmem:[%s1093_s4 + $0x4] sm:$0xf] %vm556_vm3, %v614_v31  ;;  %v619_v45 = vpack.c.bf16 %v482_v34, %v482_v34  ;;  %v480_v36 = vadd.f32 %v639_v26, %v432_v35  ;;  %v435_v46 = vmul.f32 %v772_v39, %v936_v42 }
 0x117   :  { %v776_v47 = vpop.eup %775  ;;  %566 = vst.msk [vmem:[%s1093_s4 + $0x24] sm:$0xf] %vm556_vm3, %v622_v32  ;;  %v627_v48 = vpack.c.bf16 %v490_v40, %v490_v40  ;;  %v488_v49 = vadd.f32 %v655_v30, %v440_v43  ;;  %v395_v50 = vadd.f32 1.0, %v774_v44 }
 0x118   :  { %v778_v37 = vpop.eup %777  ;;  %563 = vst.msk [vmem:[%s1093_s4 + $0x18] sm:$0xf] %vm556_vm3, %v619_v45  ;;  %v617_v51 = vpack.c.bf16 %v480_v36, %v480_v36  ;;  %v483_v52 = vadd.f32 %v644_v38, %v435_v46  ;;  %v385_v53 = vadd.f32 1.0, %v776_v47 }
 0x119   :  { %571 = vst.msk [vmem:[%s1093_s4 + $0x38] sm:$0xf] %vm556_vm3, %v627_v48  ;;  %v625_v42 = vpack.c.bf16 %v488_v49, %v488_v49  ;;  %779 = vrcp.f32 %v395_v50  ;;  %v393_v54 = vadd.f32 1.0, %v778_v37 }
 0x11a   :  { %561 = vst.msk [vmem:[%s1093_s4 + $0x10] sm:$0xf] %vm556_vm3, %v617_v51  ;;  %v620_v55 = vpack.c.bf16 %v483_v52, %v483_v52  ;;  %781 = vrcp.f32 %v385_v53 }
 0x11b   :  { %569 = vst.msk [vmem:[%s1093_s4 + $0x30] sm:$0xf] %vm556_vm3, %v625_v42  ;;  %783 = vrcp.f32 %v393_v54 }
 0x11c   :  { %564 = vst.msk [vmem:[%s1093_s4 + $0x1c] sm:$0xf] %vm556_vm3, %v620_v55 }
 0x123   :  { %v780_v58 = vpop.eup %779 }
 0x124   :  { %v782_v60 = vpop.eup %781  ;;  %v443_v59 = vmul.f32 %v780_v58, %v942_v1 }
 0x125   :  { %v784_v62 = vpop.eup %783  ;;  %v433_v63 = vmul.f32 %v782_v60, %v945_v6 }
 0x126   :  { %v491_v2 = vadd.f32 %v660_v56, %v443_v59  ;;  %v441_v3 = vmul.f32 %v784_v62, %v948_v9 }
 0x127   :  { %v481_v4 = vadd.f32 %v640_v57, %v433_v63 }
 0x128   :  { %v628_v5 = vpack.c.bf16 %v491_v2, %v491_v2  ;;  %v489_v7 = vadd.f32 %v656_v61, %v441_v3 }
 0x129   :  { %v618_v8 = vpack.c.bf16 %v481_v4, %v481_v4 }
 0x12a   :  { %572 = vst.msk [vmem:[%s1093_s4 + $0x3c] sm:$0xf] %vm556_vm3, %v628_v5  ;;  %v626_v0 = vpack.c.bf16 %v489_v7, %v489_v7 }
 0x12b   :  { %562 = vst.msk [vmem:[%s1093_s4 + $0x14] sm:$0xf] %vm556_vm3, %v618_v8 }
 0x12c   :  { %570 = vst.msk [vmem:[%s1093_s4 + $0x34] sm:$0xf] %vm556_vm3, %v626_v0 }

// kernel: _lambda_.21
= control target key start
LH: loop header
LB: loop body
LE: loop exit
PB: predicated region body
PF: predicated region fallthrough
CT: control target
= control target key end

     0   :  { %vm126_vm0 = vcmask 1041408   ;;  %vm101_vm1 = vcmask 31744   ;;  %vm787_vm2 = vcmask 60416   ;;  %s1397_s4 = inlined_call_operand.vmem [shape: bf16[4,8], index: 4, kind: input, shape index: {}]   ;;  %s1398_s3 = inlined_call_operand.vmem [shape: bf16[4,8], index: 3, kind: input, shape index: {}]   ;;  %s1399_s1 = inlined_call_operand.vmem [shape: bf16[128,4], index: 1, kind: input, shape index: {}]   ;;  %s1400_s0 = inlined_call_operand.vmem [shape: bf16[128,4], index: 0, kind: input, shape index: {}]   ;;  %s1401_s5 = inlined_call_operand.vmem [shape: bf16[4,8], index: 5, kind: input, shape index: {}]   ;;  %s1402_s2 = inlined_call_operand.vmem [shape: bf16[128,4], index: 2, kind: input, shape index: {}]   ;;  %s1403_s6 = inlined_call_operand.vmem [shape: f32[1,8], index: 6, kind: input, shape index: {}]   ;;  %s1404_s7 = inlined_call_operand.vmem [shape: bf16[128,8], index: 7, kind: output, shape index: {}]  }
   0x1   :  { %v60_v0 = vld [vmem:[%s1397_s4] sm:$0x3]  ;;  %v1010_v6 = vld [vmem:[%s1399_s1 + $0x8] sm:$0xff]   ;;  %v1012_v10 = vld [vmem:[%s1399_s1 + $0x10] sm:$0xff]  }
   0x2   :  { %v43_v1 = vld [vmem:[%s1398_s3] sm:$0x3]  ;;  %1004 = vmatprep.subr.msk.bf16.mxu1 %vm126_vm0, %v60_v0  ;;  %v128_v2 = vsel %vm126_vm0, %v60_v0, 0  ;;  %v1011_v7 = vld [vmem:[%s1400_s0 + $0x8] sm:$0xff]   ;;  %v1013_v11 = vld [vmem:[%s1400_s0 + $0x10] sm:$0xff]  }
   0x3   :  { %1005 = vmatprep.subr.msk.bf16.mxu0 %vm126_vm0, %v43_v1  ;;  %v292_v3 = vsel %vm126_vm0, %v43_v1, 0  ;;  %v1008_v4 = vld [vmem:[%s1399_s1] sm:$0xff]   ;;  %917 = vmatpush3.bf16.msra.mxu1 %v128_v2  ;;  %v1014_v12 = vld [vmem:[%s1399_s1 + $0x18] sm:$0xff]   ;;  %v1018_v16 = vld [vmem:[%s1399_s1 + $0x28] sm:$0xff]  }
   0x4   :  { %v1009_v5 = vld [vmem:[%s1400_s0] sm:$0xff]   ;;  %935 = vmatpush3.bf16.msra.mxu0 %v292_v3  ;;  %918 = vmatprep.mubr.msk.bf16.mxu1 %vm101_vm1, %v1008_v4  ;;  %v1015_v13 = vld [vmem:[%s1400_s0 + $0x18] sm:$0xff]   ;;  %v1019_v17 = vld [vmem:[%s1402_s2 + $0x8] sm:$0xff]  }
   0x5   :  { %936 = vmatprep.mubr.msk.bf16.mxu0 %vm101_vm1, %v1009_v5  ;;  %1006 = vmatprep.subr.msk.bf16.mxu1 %vm126_vm0, %v43_v1  ;;  %v407_v8 = vld [vmem:[%s1401_s5] sm:$0x3]  ;;  %v1020_v18 = vld [vmem:[%s1399_s1 + $0x30] sm:$0xff]   ;;  %v1022_v20 = vld [vmem:[%s1399_s1 + $0x38] sm:$0xff]  }
   0x6   :  { %919 = vmatmul.mubr.msk.bf16.vlgmr.msra.gmra.mrb[0].mxu1 %vm101_vm1, %v1010_v6  ;;  %1007 = vmatprep.subr.msk.bf16.mxu0 %vm126_vm0, %v407_v8  ;;  %v473_v9 = vsel %vm126_vm0, %v407_v8, 0  ;;  %v1016_v14 = vld [vmem:[%s1399_s1 + $0x20] sm:$0xff]   ;;  %v1021_v19 = vld [vmem:[%s1402_s2 + $0x10] sm:$0xff]   ;;  %v1023_v21 = vld [vmem:[%s1402_s2 + $0x18] sm:$0xff]  }
   0x7   :  { %937 = vmatmul.mubr.msk.bf16.vlgmr.msra.gmra.mrb[0].mxu0 %vm101_vm1, %v1011_v7  ;;  %971 = vmatpush3.bf16.msra.mxu1 %v292_v3  ;;  %v1017_v15 = vld [vmem:[%s1402_s2] sm:$0xff]   ;;  %v1026_v24 = vld [vmem:[%s1400_s0 + $0x28] sm:$0xff]   ;;  %v1028_v26 = vld [vmem:[%s1400_s0 + $0x30] sm:$0xff]  }
   0x8   :  { %953 = vmatpush3.bf16.msra.mxu0 %v473_v9  ;;  %922 = vmatprep.mubr.msk.bf16.mxu1 %vm101_vm1, %v1012_v10  ;;  %v1024_v22 = vld [vmem:[%s1400_s0 + $0x20] sm:$0xff]   ;;  %v1027_v25 = vld [vmem:[%s1402_s2 + $0x28] sm:$0xff]   ;;  %v1029_v27 = vld [vmem:[%s1402_s2 + $0x30] sm:$0xff]  }
   0x9   :  { %940 = vmatprep.mubr.msk.bf16.mxu0 %vm101_vm1, %v1013_v11  ;;  %v1025_v23 = vld [vmem:[%s1402_s2 + $0x20] sm:$0xff]   ;;  %v1030_v28 = vld [vmem:[%s1400_s0 + $0x38] sm:$0xff]  }
   0xa   :  { %v1031_v29 = vld [vmem:[%s1402_s2 + $0x38] sm:$0xff]   ;;  %v1251_v39 = vld [vmem:[%s1403_s6] ss:$0 sm:$0xff] }
   0xe   :  { %923 = vmatmul.mubr.msk.bf16.gmra.mrb[4].mxu1 %vm101_vm1, %v1014_v12 }
   0xf   :  { %941 = vmatmul.mubr.msk.bf16.gmra.mrb[4].mxu0 %vm101_vm1, %v1015_v13  ;;  %926 = vmatprep.mubr.msk.bf16.mxu1 %vm101_vm1, %v1016_v14 }
  0x10   :  { %954 = vmatprep.mubr.msk.bf16.mxu0 %vm101_vm1, %v1017_v15 }
  0x16   :  { %927 = vmatmul.mubr.msk.bf16.gmra.mrb[8].mxu1 %vm101_vm1, %v1018_v16 }
  0x17   :  { %955 = vmatmul.mubr.msk.bf16.vlgmr.msra.gmra.mrb[0].mxu0 %vm101_vm1, %v1019_v17  ;;  %930 = vmatprep.mubr.msk.bf16.mxu1 %vm101_vm1, %v1020_v18 }
  0x18   :  { %958 = vmatprep.mubr.msk.bf16.mxu0 %vm101_vm1, %v1021_v19 }
  0x1e   :  { %931 = vmatmul.mubr.msk.bf16.gmra.mrb[12].mxu1 %vm101_vm1, %v1022_v20 }
  0x1f   :  { %959 = vmatmul.mubr.msk.bf16.gmra.mrb[4].mxu0 %vm101_vm1, %v1023_v21  ;;  %944 = vmatprep.mubr.msk.bf16.mxu1 %vm101_vm1, %v1024_v22 }
  0x20   :  { %962 = vmatprep.mubr.msk.bf16.mxu0 %vm101_vm1, %v1025_v23 }
  0x26   :  { %945 = vmatmul.mubr.msk.bf16.vlgmr.msra.gmra.mrb[8].mxu1 %vm101_vm1, %v1026_v24 }
  0x27   :  { %963 = vmatmul.mubr.msk.bf16.gmra.mrb[8].mxu0 %vm101_vm1, %v1027_v25  ;;  %948 = vmatprep.mubr.msk.bf16.mxu1 %vm101_vm1, %v1028_v26 }
  0x28   :  { %966 = vmatprep.mubr.msk.bf16.mxu0 %vm101_vm1, %v1029_v27 }
  0x2e   :  { %949 = vmatmul.mubr.msk.bf16.gmra.mrb[12].mxu1 %vm101_vm1, %v1030_v28 }
  0x2f   :  { %967 = vmatmul.mubr.msk.bf16.gmra.mrb[12].mxu0 %vm101_vm1, %v1031_v29 }
  0xd9   :  { %v920_v30 = vpop.f32.mrb[0].mxu1 }
  0xda   :  { %v164_v31 = vpop.f32.mrb[1].mxu1 }
  0xdb   :  { %v921_v32 = vpop.f32.mrb[2].mxu1 }
  0xdc   :  { %v167_v33 = vpop.f32.mrb[3].mxu1 }
  0xe1   :  { %v924_v34 = vpop.f32.mrb[4].mxu1 }
  0xe2   :  { %v180_v35 = vpop.f32.mrb[5].mxu1 }
  0xe3   :  { %v925_v36 = vpop.f32.mrb[6].mxu1 }
  0xe4   :  { %v183_v37 = vpop.f32.mrb[7].mxu1 }
  0xea   :  { %v956_v38 = vpop.f32.mrb[0].mxu0 }
  0xeb   :  { %v972_v40 = vadd.f32 %v956_v38, %v920_v30  ;;  %v509_v41 = vpop.f32.mrb[1].mxu0 }
  0xec   :  { %v973_v42 = vadd.f32 %v509_v41, %v164_v31  ;;  %v957_v43 = vpop.f32.mrb[2].mxu0 }
  0xed   :  { %v1254_v44 = vadd.f32 %v972_v40, %v1251_v39  ;;  %v974_v45 = vadd.f32 %v957_v43, %v921_v32  ;;  %v512_v46 = vpop.f32.mrb[3].mxu0 }
  0xee   :  { %v1257_v47 = vadd.f32 %v973_v42, %v1251_v39  ;;  %v975_v48 = vadd.f32 %v512_v46, %v167_v33 }
  0xef   :  { %v613_v49 = vsub.f32 0.0, %v1254_v44  ;;  %v1261_v50 = vadd.f32 %v974_v45, %v1251_v39 }
  0xf0   :  { %v611_v51 = vsub.f32 0.0, %v1257_v47  ;;  %v1265_v52 = vadd.f32 %v975_v48, %v1251_v39 }
  0xf1   :  { %v631_v53 = vmul.f32 1.442695, %v613_v49  ;;  %v614_v54 = vsub.f32 0.0, %v1261_v50 }
  0xf2   :  { %v627_v55 = vmul.f32 1.442695, %v611_v51  ;;  %v612_v56 = vsub.f32 0.0, %v1265_v52  ;;  %v960_v57 = vpop.f32.mrb[4].mxu0 }
  0xf3   :  { %1032 = vpow2.f32 %v631_v53  ;;  %v633_v58 = vmul.f32 1.442695, %v614_v54  ;;  %v976_v59 = vadd.f32 %v960_v57, %v924_v34  ;;  %v525_v60 = vpop.f32.mrb[5].mxu0 }
  0xf4   :  { %1034 = vpow2.f32 %v627_v55  ;;  %v629_v61 = vmul.f32 1.442695, %v612_v56  ;;  %v977_v62 = vadd.f32 %v525_v60, %v180_v35  ;;  %v961_v63 = vpop.f32.mrb[6].mxu0 }
  0xf5   :  { %1036 = vpow2.f32 %v633_v58  ;;  %v1270_v0 = vadd.f32 %v976_v59, %v1251_v39  ;;  %v978_v1 = vadd.f32 %v961_v63, %v925_v36  ;;  %v528_v2 = vpop.f32.mrb[7].mxu0 }
  0xf6   :  { %1038 = vpow2.f32 %v629_v61  ;;  %v1273_v3 = vadd.f32 %v977_v62, %v1251_v39  ;;  %v979_v4 = vadd.f32 %v528_v2, %v183_v37 }
  0xf7   :  { %v617_v5 = vsub.f32 0.0, %v1270_v0  ;;  %v1277_v6 = vadd.f32 %v978_v1, %v1251_v39 }
  0xf8   :  { %v615_v7 = vsub.f32 0.0, %v1273_v3  ;;  %v1281_v8 = vadd.f32 %v979_v4, %v1251_v39 }
  0xf9   :  { %v639_v9 = vmul.f32 1.442695, %v617_v5  ;;  %v618_v10 = vsub.f32 0.0, %v1277_v6  ;;  %v946_v11 = vpop.f32.mrb[8].mxu1 }
  0xfa   :  { %v635_v12 = vmul.f32 1.442695, %v615_v7  ;;  %v616_v13 = vsub.f32 0.0, %v1281_v8  ;;  %v964_v14 = vpop.f32.mrb[8].mxu0  ;;  %v360_v15 = vpop.f32.mrb[9].mxu1 }
  0xfb   :  { %1040 = vpow2.f32 %v639_v9  ;;  %v641_v16 = vmul.f32 1.442695, %v618_v10  ;;  %v980_v17 = vadd.f32 %v964_v14, %v946_v11  ;;  %v541_v18 = vpop.f32.mrb[9].mxu0  ;;  %v947_v19 = vpop.f32.mrb[10].mxu1 }
  0xfc   :  { %1042 = vpow2.f32 %v635_v12  ;;  %v637_v20 = vmul.f32 1.442695, %v616_v13  ;;  %v981_v21 = vadd.f32 %v541_v18, %v360_v15  ;;  %v965_v22 = vpop.f32.mrb[10].mxu0  ;;  %v363_v23 = vpop.f32.mrb[11].mxu1 }
  0xfd   :  { %v1033_v24 = vpop.eup %1032  ;;  %1044 = vpow2.f32 %v641_v16  ;;  %v1286_v25 = vadd.f32 %v980_v17, %v1251_v39  ;;  %v982_v26 = vadd.f32 %v965_v22, %v947_v19  ;;  %v544_v27 = vpop.f32.mrb[11].mxu0 }
  0xfe   :  { %v1035_v28 = vpop.eup %1034  ;;  %v661_v29 = vadd.f32 1.0, %v1033_v24  ;;  %1046 = vpow2.f32 %v637_v20  ;;  %v1289_v30 = vadd.f32 %v981_v21, %v1251_v39  ;;  %v983_v31 = vadd.f32 %v544_v27, %v363_v23 }
  0xff   :  { %v1037_v32 = vpop.eup %1036  ;;  %v659_v33 = vadd.f32 1.0, %v1035_v28  ;;  %v621_v34 = vsub.f32 0.0, %v1286_v25  ;;  %v1293_v35 = vadd.f32 %v982_v26, %v1251_v39 }
 0x100   :  { %v1039_v36 = vpop.eup %1038  ;;  %1048 = vrcp.f32 %v661_v29  ;;  %v662_v37 = vadd.f32 1.0, %v1037_v32  ;;  %v619_v38 = vsub.f32 0.0, %v1289_v30  ;;  %v1297_v40 = vadd.f32 %v983_v31, %v1251_v39 }
 0x101   :  { %1050 = vrcp.f32 %v659_v33  ;;  %v660_v41 = vadd.f32 1.0, %v1039_v36  ;;  %v647_v42 = vmul.f32 1.442695, %v621_v34  ;;  %v622_v43 = vsub.f32 0.0, %v1293_v35  ;;  %v950_v45 = vpop.f32.mrb[12].mxu1 }
 0x102   :  { %1052 = vrcp.f32 %v662_v37  ;;  %v643_v46 = vmul.f32 1.442695, %v619_v38  ;;  %v620_v48 = vsub.f32 0.0, %v1297_v40  ;;  %v968_v49 = vpop.f32.mrb[12].mxu0  ;;  %v376_v51 = vpop.f32.mrb[13].mxu1 }
 0x103   :  { %1054 = vrcp.f32 %v660_v41  ;;  %v649_v53 = vmul.f32 1.442695, %v622_v43  ;;  %v984_v54 = vadd.f32 %v968_v49, %v950_v45  ;;  %v557_v55 = vpop.f32.mrb[13].mxu0  ;;  %v951_v56 = vpop.f32.mrb[14].mxu1 }
 0x104   :  { %1056 = vpow2.f32 %v647_v42  ;;  %v645_v57 = vmul.f32 1.442695, %v620_v48  ;;  %v985_v58 = vadd.f32 %v557_v55, %v376_v51  ;;  %v969_v59 = vpop.f32.mrb[14].mxu0  ;;  %v379_v60 = vpop.f32.mrb[15].mxu1 }
 0x105   :  { %v1041_v61 = vpop.eup %1040  ;;  %1058 = vpow2.f32 %v643_v46  ;;  %v1302_v62 = vadd.f32 %v984_v54, %v1251_v39  ;;  %v986_v63 = vadd.f32 %v969_v59, %v951_v56  ;;  %v560_v1 = vpop.f32.mrb[15].mxu0 }
 0x106   :  { %v1043_v2 = vpop.eup %1042  ;;  %v665_v4 = vadd.f32 1.0, %v1041_v61  ;;  %1060 = vpow2.f32 %v649_v53  ;;  %v1305_v5 = vadd.f32 %v985_v58, %v1251_v39  ;;  %v987_v7 = vadd.f32 %v560_v1, %v379_v60 }
 0x107   :  { %v1045_v9 = vpop.eup %1044  ;;  %v663_v10 = vadd.f32 1.0, %v1043_v2  ;;  %1062 = vpow2.f32 %v645_v57  ;;  %v625_v11 = vsub.f32 0.0, %v1302_v62  ;;  %v1309_v12 = vadd.f32 %v986_v63, %v1251_v39 }
 0x108   :  { %v1047_v13 = vpop.eup %1046  ;;  %1064 = vrcp.f32 %v665_v4  ;;  %v666_v14 = vadd.f32 1.0, %v1045_v9  ;;  %v623_v15 = vsub.f32 0.0, %v1305_v5  ;;  %v1313_v16 = vadd.f32 %v987_v7, %v1251_v39 }
 0x109   :  { %1066 = vrcp.f32 %v663_v10  ;;  %v664_v17 = vadd.f32 1.0, %v1047_v13  ;;  %v655_v18 = vmul.f32 1.442695, %v625_v11  ;;  %v626_v19 = vsub.f32 0.0, %v1309_v12 }
 0x10a   :  { %v1049_v20 = vpop.eup %1048  ;;  %1068 = vrcp.f32 %v666_v14  ;;  %v651_v21 = vmul.f32 1.442695, %v623_v15  ;;  %v624_v22 = vsub.f32 0.0, %v1313_v16 }
 0x10b   :  { %v1051_v23 = vpop.eup %1050  ;;  %v709_v24 = vmul.f32 %v1049_v20, %v1254_v44  ;;  %1070 = vrcp.f32 %v664_v17  ;;  %v657_v26 = vmul.f32 1.442695, %v626_v19 }
 0x10c   :  { %v1053_v27 = vpop.eup %1052  ;;  %v707_v39 = vmul.f32 %v1051_v23, %v1257_v47  ;;  %1072 = vpow2.f32 %v655_v18  ;;  %v653_v28 = vmul.f32 1.442695, %v624_v22 }
 0x10d   :  { %v1055_v29 = vpop.eup %1054  ;;  %v875_v31 = vpack.c.bf16 %v709_v24, %v709_v24  ;;  %v710_v32 = vmul.f32 %v1053_v27, %v1261_v50  ;;  %1074 = vpow2.f32 %v651_v21 }
 0x10e   :  { %v1057_v33 = vpop.eup %1056  ;;  %v873_v34 = vpack.c.bf16 %v707_v39, %v707_v39  ;;  %v708_v36 = vmul.f32 %v1055_v29, %v1265_v52  ;;  %1076 = vpow2.f32 %v657_v26 }
 0x10f   :  { %v1059_v37 = vpop.eup %1058  ;;  %790 = vst.msk [vmem:[%s1404_s7 + $0x8] sm:$0xf] %vm787_vm2, %v875_v31  ;;  %v876_v44 = vpack.c.bf16 %v710_v32, %v710_v32  ;;  %v669_v47 = vadd.f32 1.0, %v1057_v33  ;;  %1078 = vpow2.f32 %v653_v28 }
 0x110   :  { %v1061_v38 = vpop.eup %1060  ;;  %788 = vst.msk [vmem:[%s1404_s7] sm:$0xf] %vm787_vm2, %v873_v34  ;;  %v874_v50 = vpack.c.bf16 %v708_v36, %v708_v36  ;;  %v667_v41 = vadd.f32 1.0, %v1059_v37 }
 0x111   :  { %v1063_v42 = vpop.eup %1062  ;;  %791 = vst.msk [vmem:[%s1404_s7 + $0xc] sm:$0xf] %vm787_vm2, %v876_v44  ;;  %1080 = vrcp.f32 %v669_v47  ;;  %v670_v52 = vadd.f32 1.0, %v1061_v38 }
 0x112   :  { %v1065_v43 = vpop.eup %1064  ;;  %789 = vst.msk [vmem:[%s1404_s7 + $0x4] sm:$0xf] %vm787_vm2, %v874_v50  ;;  %1082 = vrcp.f32 %v667_v41  ;;  %v668_v45 = vadd.f32 1.0, %v1063_v42 }
 0x113   :  { %v1067_v46 = vpop.eup %1066  ;;  %v713_v48 = vmul.f32 %v1065_v43, %v1270_v0  ;;  %1084 = vrcp.f32 %v670_v52 }
 0x114   :  { %v1069_v49 = vpop.eup %1068  ;;  %v711_v51 = vmul.f32 %v1067_v46, %v1273_v3  ;;  %1086 = vrcp.f32 %v668_v45 }
 0x115   :  { %v1071_v53 = vpop.eup %1070  ;;  %v879_v54 = vpack.c.bf16 %v713_v48, %v713_v48  ;;  %v714_v55 = vmul.f32 %v1069_v49, %v1277_v6 }
 0x116   :  { %v1073_v56 = vpop.eup %1072  ;;  %v877_v57 = vpack.c.bf16 %v711_v51, %v711_v51  ;;  %v712_v58 = vmul.f32 %v1071_v53, %v1281_v8 }
 0x117   :  { %v1075_v59 = vpop.eup %1074  ;;  %794 = vst.msk [vmem:[%s1404_s7 + $0x18] sm:$0xf] %vm787_vm2, %v879_v54  ;;  %v880_v0 = vpack.c.bf16 %v714_v55, %v714_v55  ;;  %v673_v60 = vadd.f32 1.0, %v1073_v56 }
 0x118   :  { %v1077_v61 = vpop.eup %1076  ;;  %792 = vst.msk [vmem:[%s1404_s7 + $0x10] sm:$0xf] %vm787_vm2, %v877_v57  ;;  %v878_v3 = vpack.c.bf16 %v712_v58, %v712_v58  ;;  %v671_v6 = vadd.f32 1.0, %v1075_v59 }
 0x119   :  { %v1079_v63 = vpop.eup %1078  ;;  %795 = vst.msk [vmem:[%s1404_s7 + $0x1c] sm:$0xf] %vm787_vm2, %v880_v0  ;;  %1088 = vrcp.f32 %v673_v60  ;;  %v674_v8 = vadd.f32 1.0, %v1077_v61 }
 0x11a   :  { %793 = vst.msk [vmem:[%s1404_s7 + $0x14] sm:$0xf] %vm787_vm2, %v878_v3  ;;  %1090 = vrcp.f32 %v671_v6  ;;  %v672_v1 = vadd.f32 1.0, %v1079_v63 }
 0x11b   :  { %v1081_v2 = vpop.eup %1080  ;;  %1092 = vrcp.f32 %v674_v8 }
 0x11c   :  { %v1083_v4 = vpop.eup %1082  ;;  %v717_v7 = vmul.f32 %v1081_v2, %v1286_v25  ;;  %1094 = vrcp.f32 %v672_v1 }
 0x11d   :  { %v1085_v9 = vpop.eup %1084  ;;  %v715_v10 = vmul.f32 %v1083_v4, %v1289_v30 }
 0x11e   :  { %v1087_v11 = vpop.eup %1086  ;;  %v883_v13 = vpack.c.bf16 %v717_v7, %v717_v7  ;;  %v718_v14 = vmul.f32 %v1085_v9, %v1293_v35 }
 0x11f   :  { %v881_v15 = vpack.c.bf16 %v715_v10, %v715_v10  ;;  %v716_v17 = vmul.f32 %v1087_v11, %v1297_v40 }
 0x120   :  { %798 = vst.msk [vmem:[%s1404_s7 + $0x28] sm:$0xf] %vm787_vm2, %v883_v13  ;;  %v884_v18 = vpack.c.bf16 %v718_v14, %v718_v14 }
 0x121   :  { %796 = vst.msk [vmem:[%s1404_s7 + $0x20] sm:$0xf] %vm787_vm2, %v881_v15  ;;  %v882_v25 = vpack.c.bf16 %v716_v17, %v716_v17 }
 0x122   :  { %799 = vst.msk [vmem:[%s1404_s7 + $0x2c] sm:$0xf] %vm787_vm2, %v884_v18 }
 0x123   :  { %v1089_v30 = vpop.eup %1088  ;;  %797 = vst.msk [vmem:[%s1404_s7 + $0x24] sm:$0xf] %vm787_vm2, %v882_v25 }
 0x124   :  { %v1091_v35 = vpop.eup %1090  ;;  %v721_v40 = vmul.f32 %v1089_v30, %v1302_v62 }
 0x125   :  { %v1093_v19 = vpop.eup %1092  ;;  %v719_v20 = vmul.f32 %v1091_v35, %v1305_v5 }
 0x126   :  { %v1095_v21 = vpop.eup %1094  ;;  %v887_v22 = vpack.c.bf16 %v721_v40, %v721_v40  ;;  %v722_v23 = vmul.f32 %v1093_v19, %v1309_v12 }
 0x127   :  { %v885_v24 = vpack.c.bf16 %v719_v20, %v719_v20  ;;  %v720_v26 = vmul.f32 %v1095_v21, %v1313_v16 }
 0x128   :  { %802 = vst.msk [vmem:[%s1404_s7 + $0x38] sm:$0xf] %vm787_vm2, %v887_v22  ;;  %v888_v27 = vpack.c.bf16 %v722_v23, %v722_v23 }
 0x129   :  { %800 = vst.msk [vmem:[%s1404_s7 + $0x30] sm:$0xf] %vm787_vm2, %v885_v24  ;;  %v886_v62 = vpack.c.bf16 %v720_v26, %v720_v26 }
 0x12a   :  { %803 = vst.msk [vmem:[%s1404_s7 + $0x3c] sm:$0xf] %vm787_vm2, %v888_v27 }
 0x12b   :  { %801 = vst.msk [vmem:[%s1404_s7 + $0x34] sm:$0xf] %vm787_vm2, %v886_v62 }

// kernel: _lambda_.22
= control target key start
LH: loop header
LB: loop body
LE: loop exit
PB: predicated region body
PF: predicated region fallthrough
CT: control target
= control target key end

     0   :  { %s2045_s18 = smov 0   ;;  %s2047_s19 = smov 0   ;;  %s2391_s0 = inlined_call_operand.vmem [shape: bf16[512,8], index: 0, kind: input, shape index: {}]   ;;  %s2392_s1 = inlined_call_operand.vmem [shape: bf16[512,4], index: 1, kind: input, shape index: {}]   ;;  %s2393_s2 = inlined_call_operand.vmem [shape: bf16[8,4], index: 2, kind: input, shape index: {}]   ;;  %s2394_s3 = inlined_call_operand.vmem [shape: bf16[4,4], index: 3, kind: input, shape index: {}]   ;;  %s2395_s4 = inlined_call_operand.vmem [shape: f32[1,4], index: 4, kind: input, shape index: {}]   ;;  %s2396_s5 = inlined_call_operand.vmem [shape: bf16[512,4], index: 5, kind: output, shape index: {}]  }
   0x1   :  { %s2049_s20 = smov 0  }
   0x2 LB: > { %s27_s21 = sadd.s32 1, %s2009_s19  ;;  %p1533_p0 = scmp.ge.s32.totalorder %s2013_s20, 1  ;;  %s2013_s20 = sphi %s2049_s20, %s15_s20   ;;  %s2009_s19 = sphi %s2047_s19, %s2398_s19   ;;  %s2005_s18 = sphi %s2045_s18, %s2397_s18  }
   0x3   : > { %p29_p1 = scmp.ge.s32.totalorder %s27_s21, 2  ;;  %p239_p2 = scmp.lt.s32.totalorder %s2013_s20, 3 }
   0x5   : > { %s2400_s21 = smov (%p29_p1, %s27_s21), 0  ;;  %p240_p3 = pnand %p1533_p0, %p239_p2 }
   0x6   : > { %v384_v0 = vld [vmem:[%s2394_s3] sm:$0x3] (!%p240_p3)  ;;  %vm514_vm0 = vcmask (!%p240_p3), 1041408   ;;  %vm808_vm1 = vcmask (!%p240_p3), 1043456   ;;  %s1534_s26 = sshll.u32 (!%p240_p3), %s2005_s18, 5  ;;  %vm465_vm2 = vcmask (!%p240_p3), 31744  }
   0x7   : > { %243 = sbr.rel (%p240_p3) target bundleno = 337 (0x151), region = 40  ;;  %v351_v1 = vld [vmem:[%s2393_s2] sm:$0xf] (!%p240_p3)  ;;  %1805 = vmatprep.subr.msk.bf16.mxu1 (!%p240_p3), %vm514_vm0, %v384_v0  ;;  %v516_v2 = vsel (!%p240_p3), %vm514_vm0, %v384_v0, 0  ;;  %p287_p4 = scmp.lt.s32.totalorder (!%p240_p3), %s1534_s26, 63  ;;  %vm759_vm3 = vcmask (!%p240_p3), 64512  }
   0x8   : > { %1806 = vmatprep.subr.msk.bf16.mxu0 (!%p240_p3), %vm808_vm1, %v351_v1  ;;  %v810_v3 = vsel (!%p240_p3), %vm808_vm1, %v351_v1, 0  ;;  %1706 = vmatpush3.bf16.msra.mxu1 (!%p240_p3), %v516_v2  ;;  %v2150_v38 = vld [vmem:[%s2395_s4] ss:$0 sm:$0xff] (!%p240_p3)  ;;  %vm1364_vm4 = vcmask (!%p240_p3), 27648  }
   0x9   : > { %1740 = vmatpush3.bf16.msra.mxu0 (!%p240_p3), %v810_v3 }
   0xe   : > { %s2402_s26 = smov (!%p287_p4, %s1534_s26), 63 }
   0xf   : > { %s2069_s27 = sshll.u32 %s2402_s26, 2 }
  0x10   : > { %s2075_s30 = scalar_lea.vmem %s2392_s1, %s2069_s27  ;;  %s2082_s8 = scalar_lea.vmem %s2391_s0, %s2069_s27 }
  0x11   : > { %v1831_v4 = vld [vmem:[%s2075_s30] sm:$0xff]   ;;  %v1833_v6 = vld [vmem:[%s2075_s30 + $0x8] sm:$0xff]   ;;  %v1835_v8 = vld [vmem:[%s2075_s30 + $0x10] sm:$0xff]   ;;  %s2221_s13 = scalar_lea.vmem %s2396_s5, %s2069_s27 }
  0x12   : > { %v1832_v5 = vld [vmem:[%s2082_s8] sm:$0xff]   ;;  %1707 = vmatprep.mubr.msk.bf16.mxu1 %vm465_vm2, %v1831_v4  ;;  %v1834_v7 = vld [vmem:[%s2082_s8 + $0x8] sm:$0xff]   ;;  %v1836_v9 = vld [vmem:[%s2082_s8 + $0x10] sm:$0xff]  }
  0x13   : > { %1741 = vmatprep.mubr.msk.bf16.mxu0 %vm759_vm3, %v1832_v5  ;;  %1708 = vmatmul.mubr.msk.bf16.vlgmr.msra.gmra.mrb[0].mxu1 %vm465_vm2, %v1833_v6  ;;  %v1837_v10 = vld [vmem:[%s2075_s30 + $0x18] sm:$0xff]   ;;  %v1839_v12 = vld [vmem:[%s2075_s30 + $0x20] sm:$0xff]   ;;  %v1841_v14 = vld [vmem:[%s2075_s30 + $0x28] sm:$0xff]  }
  0x14   : > { %1742 = vmatmul.mubr.msk.bf16.vlgmr.msra.gmra.mrb[0].mxu0 %vm759_vm3, %v1834_v7  ;;  %1711 = vmatprep.mubr.msk.bf16.mxu1 %vm465_vm2, %v1835_v8  ;;  %v1838_v11 = vld [vmem:[%s2082_s8 + $0x18] sm:$0xff]   ;;  %v1840_v13 = vld [vmem:[%s2082_s8 + $0x20] sm:$0xff]   ;;  %v1842_v15 = vld [vmem:[%s2082_s8 + $0x28] sm:$0xff]  }
  0x15   : > { %1745 = vmatprep.mubr.msk.bf16.mxu0 %vm759_vm3, %v1836_v9  ;;  %v1843_v16 = vld [vmem:[%s2075_s30 + $0x30] sm:$0xff]   ;;  %v1845_v18 = vld [vmem:[%s2075_s30 + $0x38] sm:$0xff]   ;;  %v1847_v20 = vld [vmem:[%s2075_s30 + $0x40] sm:$0xff]  }
  0x16   : > { %v1844_v17 = vld [vmem:[%s2082_s8 + $0x30] sm:$0xff]   ;;  %v1846_v19 = vld [vmem:[%s2082_s8 + $0x38] sm:$0xff]   ;;  %v1848_v21 = vld [vmem:[%s2082_s8 + $0x40] sm:$0xff]  }
  0x17   : > { %v1849_v22 = vld [vmem:[%s2075_s30 + $0x48] sm:$0xff]   ;;  %v1851_v24 = vld [vmem:[%s2075_s30 + $0x50] sm:$0xff]   ;;  %v1853_v26 = vld [vmem:[%s2075_s30 + $0x58] sm:$0xff]  }
  0x18   : > { %v1850_v23 = vld [vmem:[%s2082_s8 + $0x48] sm:$0xff]   ;;  %v1852_v25 = vld [vmem:[%s2082_s8 + $0x50] sm:$0xff]   ;;  %v1854_v27 = vld [vmem:[%s2082_s8 + $0x58] sm:$0xff]  }
  0x19   : > { %v1855_v28 = vld [vmem:[%s2075_s30 + $0x60] sm:$0xff]   ;;  %v1857_v30 = vld [vmem:[%s2075_s30 + $0x68] sm:$0xff]   ;;  %v1859_v32 = vld [vmem:[%s2075_s30 + $0x70] sm:$0xff]  }
  0x1a   : > { %v1856_v29 = vld [vmem:[%s2082_s8 + $0x60] sm:$0xff]   ;;  %v1858_v31 = vld [vmem:[%s2082_s8 + $0x68] sm:$0xff]   ;;  %v1860_v33 = vld [vmem:[%s2082_s8 + $0x70] sm:$0xff]  }
  0x1b   : > { %1712 = vmatmul.mubr.msk.bf16.gmra.mrb[4].mxu1 %vm465_vm2, %v1837_v10  ;;  %v1861_v34 = vld [vmem:[%s2075_s30 + $0x78] sm:$0xff]  }
  0x1c   : > { %1746 = vmatmul.mubr.msk.bf16.gmra.mrb[4].mxu0 %vm759_vm3, %v1838_v11  ;;  %1715 = vmatprep.mubr.msk.bf16.mxu1 %vm465_vm2, %v1839_v12  ;;  %v1862_v35 = vld [vmem:[%s2082_s8 + $0x78] sm:$0xff]  }
  0x1d   : > { %1749 = vmatprep.mubr.msk.bf16.mxu0 %vm759_vm3, %v1840_v13 }
  0x23   : > { %1716 = vmatmul.mubr.msk.bf16.gmra.mrb[8].mxu1 %vm465_vm2, %v1841_v14 }
  0x24   : > { %1750 = vmatmul.mubr.msk.bf16.gmra.mrb[8].mxu0 %vm759_vm3, %v1842_v15  ;;  %1719 = vmatprep.mubr.msk.bf16.mxu1 %vm465_vm2, %v1843_v16 }
  0x25   : > { %1753 = vmatprep.mubr.msk.bf16.mxu0 %vm759_vm3, %v1844_v17 }
  0x2b   : > { %1720 = vmatmul.mubr.msk.bf16.gmra.mrb[12].mxu1 %vm465_vm2, %v1845_v18 }
  0x2c   : > { %1754 = vmatmul.mubr.msk.bf16.gmra.mrb[12].mxu0 %vm759_vm3, %v1846_v19  ;;  %1723 = vmatprep.mubr.msk.bf16.mxu1 %vm465_vm2, %v1847_v20 }
  0x2d   : > { %1757 = vmatprep.mubr.msk.bf16.mxu0 %vm759_vm3, %v1848_v21 }
  0x33   : > { %1724 = vmatmul.mubr.msk.bf16.gmra.mrb[16].mxu1 %vm465_vm2, %v1849_v22 }
  0x34   : > { %1758 = vmatmul.mubr.msk.bf16.gmra.mrb[16].mxu0 %vm759_vm3, %v1850_v23  ;;  %1727 = vmatprep.mubr.msk.bf16.mxu1 %vm465_vm2, %v1851_v24 }
  0x35   : > { %1761 = vmatprep.mubr.msk.bf16.mxu0 %vm759_vm3, %v1852_v25 }
  0x3b   : > { %1728 = vmatmul.mubr.msk.bf16.gmra.mrb[20].mxu1 %vm465_vm2, %v1853_v26 }
  0x3c   : > { %1762 = vmatmul.mubr.msk.bf16.gmra.mrb[20].mxu0 %vm759_vm3, %v1854_v27  ;;  %1731 = vmatprep.mubr.msk.bf16.mxu1 %vm465_vm2, %v1855_v28 }
  0x3d   : > { %1765 = vmatprep.mubr.msk.bf16.mxu0 %vm759_vm3, %v1856_v29 }
  0x43   : > { %1732 = vmatmul.mubr.msk.bf16.gmra.mrb[24].mxu1 %vm465_vm2, %v1857_v30 }
  0x44   : > { %1766 = vmatmul.mubr.msk.bf16.gmra.mrb[24].mxu0 %vm759_vm3, %v1858_v31  ;;  %1735 = vmatprep.mubr.msk.bf16.mxu1 %vm465_vm2, %v1859_v32 }
  0x45   : > { %1769 = vmatprep.mubr.msk.bf16.mxu0 %vm759_vm3, %v1860_v33 }
  0x4b   : > { %1736 = vmatmul.mubr.msk.bf16.gmra.mrb[28].mxu1 %vm465_vm2, %v1861_v34 }
  0x4c   : > { %1770 = vmatmul.mubr.msk.bf16.gmra.mrb[28].mxu0 %vm759_vm3, %v1862_v35 }
  0xe6   : > { %v1709_v36 = vpop.f32.mrb[0].mxu1 }
  0xe7   : > { %v1743_v37 = vpop.f32.mrb[0].mxu0  ;;  %v552_v39 = vpop.f32.mrb[1].mxu1 }
  0xe8   : > { %v855_v40 = vadd.f32 %v1743_v37, %v1709_v36  ;;  %v846_v41 = vpop.f32.mrb[1].mxu0  ;;  %v1710_v42 = vpop.f32.mrb[2].mxu1 }
  0xe9   : > { %v847_v43 = vadd.f32 %v846_v41, %v552_v39  ;;  %v1744_v44 = vpop.f32.mrb[2].mxu0  ;;  %v555_v45 = vpop.f32.mrb[3].mxu1 }
  0xea   : > { %v2153_v46 = vadd.f32 %v2150_v38, %v855_v40  ;;  %v858_v47 = vadd.f32 %v1744_v44, %v1710_v42  ;;  %v849_v48 = vpop.f32.mrb[3].mxu0 }
  0xeb   : > { %v2156_v49 = vadd.f32 %v2150_v38, %v847_v43  ;;  %v850_v50 = vadd.f32 %v849_v48, %v555_v45 }
  0xec   : > { %v1014_v51 = vsub.f32 0.0, %v2153_v46  ;;  %v2160_v52 = vadd.f32 %v2150_v38, %v858_v47 }
  0xed   : > { %v1012_v53 = vsub.f32 0.0, %v2156_v49  ;;  %v2164_v54 = vadd.f32 %v2150_v38, %v850_v50 }
  0xee   : > { %v1048_v55 = vmul.f32 1.442695, %v1014_v51  ;;  %v1015_v56 = vsub.f32 0.0, %v2160_v52  ;;  %v1713_v57 = vpop.f32.mrb[4].mxu1 }
  0xef   : > { %v1044_v58 = vmul.f32 1.442695, %v1012_v53  ;;  %v1013_v59 = vsub.f32 0.0, %v2164_v54  ;;  %v1747_v60 = vpop.f32.mrb[4].mxu0  ;;  %v568_v61 = vpop.f32.mrb[5].mxu1 }
  0xf0   : > { %1863 = vpow2.f32 %v1048_v55  ;;  %v1050_v62 = vmul.f32 1.442695, %v1015_v56  ;;  %v871_v63 = vadd.f32 %v1747_v60, %v1713_v57  ;;  %v862_v0 = vpop.f32.mrb[5].mxu0  ;;  %v1714_v1 = vpop.f32.mrb[6].mxu1 }
  0xf1   : > { %1865 = vpow2.f32 %v1044_v58  ;;  %v1046_v2 = vmul.f32 1.442695, %v1013_v59  ;;  %v863_v3 = vadd.f32 %v862_v0, %v568_v61  ;;  %v1748_v4 = vpop.f32.mrb[6].mxu0  ;;  %v571_v5 = vpop.f32.mrb[7].mxu1 }
  0xf2   : > { %1867 = vpow2.f32 %v1050_v62  ;;  %v2169_v6 = vadd.f32 %v2150_v38, %v871_v63  ;;  %v874_v7 = vadd.f32 %v1748_v4, %v1714_v1  ;;  %v865_v8 = vpop.f32.mrb[7].mxu0 }
  0xf3   : > { %1869 = vpow2.f32 %v1046_v2  ;;  %v2172_v9 = vadd.f32 %v2150_v38, %v863_v3  ;;  %v866_v10 = vadd.f32 %v865_v8, %v571_v5 }
  0xf4   : > { %v1018_v11 = vsub.f32 0.0, %v2169_v6  ;;  %v2176_v12 = vadd.f32 %v2150_v38, %v874_v7 }
  0xf5   : > { %v1016_v13 = vsub.f32 0.0, %v2172_v9  ;;  %v2180_v14 = vadd.f32 %v2150_v38, %v866_v10 }
  0xf6   : > { %v1056_v15 = vmul.f32 1.442695, %v1018_v11  ;;  %v1019_v16 = vsub.f32 0.0, %v2176_v12  ;;  %v1717_v17 = vpop.f32.mrb[8].mxu1 }
  0xf7   : > { %v1052_v18 = vmul.f32 1.442695, %v1016_v13  ;;  %v1017_v19 = vsub.f32 0.0, %v2180_v14  ;;  %v1751_v20 = vpop.f32.mrb[8].mxu0  ;;  %v584_v21 = vpop.f32.mrb[9].mxu1 }
  0xf8   : > { %1871 = vpow2.f32 %v1056_v15  ;;  %v1058_v22 = vmul.f32 1.442695, %v1019_v16  ;;  %v887_v23 = vadd.f32 %v1751_v20, %v1717_v17  ;;  %v878_v24 = vpop.f32.mrb[9].mxu0  ;;  %v1718_v25 = vpop.f32.mrb[10].mxu1 }
  0xf9   : > { %1873 = vpow2.f32 %v1052_v18  ;;  %v1054_v26 = vmul.f32 1.442695, %v1017_v19  ;;  %v879_v27 = vadd.f32 %v878_v24, %v584_v21  ;;  %v1752_v28 = vpop.f32.mrb[10].mxu0  ;;  %v587_v29 = vpop.f32.mrb[11].mxu1 }
  0xfa   : > { %v1864_v30 = vpop.eup %1863  ;;  %1875 = vpow2.f32 %v1058_v22  ;;  %v2185_v31 = vadd.f32 %v2150_v38, %v887_v23  ;;  %v890_v32 = vadd.f32 %v1752_v28, %v1718_v25  ;;  %v881_v33 = vpop.f32.mrb[11].mxu0 }
  0xfb   : > { %v1866_v34 = vpop.eup %1865  ;;  %v1110_v35 = vadd.f32 1.0, %v1864_v30  ;;  %1877 = vpow2.f32 %v1054_v26  ;;  %v2188_v36 = vadd.f32 %v2150_v38, %v879_v27  ;;  %v882_v37 = vadd.f32 %v881_v33, %v587_v29 }
  0xfc   : > { %v1868_v39 = vpop.eup %1867  ;;  %v1108_v40 = vadd.f32 1.0, %v1866_v34  ;;  %v1022_v41 = vsub.f32 0.0, %v2185_v31  ;;  %v2192_v42 = vadd.f32 %v2150_v38, %v890_v32 }
  0xfd   : > { %v1870_v43 = vpop.eup %1869  ;;  %1879 = vrcp.f32 %v1110_v35  ;;  %v1111_v44 = vadd.f32 1.0, %v1868_v39  ;;  %v1020_v45 = vsub.f32 0.0, %v2188_v36  ;;  %v2196_v47 = vadd.f32 %v2150_v38, %v882_v37 }
  0xfe   : > { %1881 = vrcp.f32 %v1108_v40  ;;  %v1109_v48 = vadd.f32 1.0, %v1870_v43  ;;  %v1064_v50 = vmul.f32 1.442695, %v1022_v41  ;;  %v1023_v51 = vsub.f32 0.0, %v2192_v42  ;;  %v1721_v53 = vpop.f32.mrb[12].mxu1 }
  0xff   : > { %1883 = vrcp.f32 %v1111_v44  ;;  %v1060_v55 = vmul.f32 1.442695, %v1020_v45  ;;  %v1021_v56 = vsub.f32 0.0, %v2196_v47  ;;  %v1755_v57 = vpop.f32.mrb[12].mxu0  ;;  %v600_v58 = vpop.f32.mrb[13].mxu1 }
 0x100   : > { %1885 = vrcp.f32 %v1109_v48  ;;  %v1066_v59 = vmul.f32 1.442695, %v1023_v51  ;;  %v903_v60 = vadd.f32 %v1755_v57, %v1721_v53  ;;  %v894_v61 = vpop.f32.mrb[13].mxu0  ;;  %v1722_v62 = vpop.f32.mrb[14].mxu1 }
 0x101   : > { %1887 = vpow2.f32 %v1064_v50  ;;  %v1062_v63 = vmul.f32 1.442695, %v1021_v56  ;;  %v895_v0 = vadd.f32 %v894_v61, %v600_v58  ;;  %v1756_v1 = vpop.f32.mrb[14].mxu0  ;;  %v603_v2 = vpop.f32.mrb[15].mxu1 }
 0x102   : > { %v1872_v3 = vpop.eup %1871  ;;  %1889 = vpow2.f32 %v1060_v55  ;;  %v2201_v4 = vadd.f32 %v2150_v38, %v903_v60  ;;  %v906_v5 = vadd.f32 %v1756_v1, %v1722_v62  ;;  %v897_v7 = vpop.f32.mrb[15].mxu0 }
 0x103   : > { %v1874_v8 = vpop.eup %1873  ;;  %v1114_v10 = vadd.f32 1.0, %v1872_v3  ;;  %1891 = vpow2.f32 %v1066_v59  ;;  %v2204_v11 = vadd.f32 %v2150_v38, %v895_v0  ;;  %v898_v13 = vadd.f32 %v897_v7, %v603_v2 }
 0x104   : > { %v1876_v15 = vpop.eup %1875  ;;  %v1112_v16 = vadd.f32 1.0, %v1874_v8  ;;  %1893 = vpow2.f32 %v1062_v63  ;;  %v1026_v17 = vsub.f32 0.0, %v2201_v4  ;;  %v2208_v18 = vadd.f32 %v2150_v38, %v906_v5 }
 0x105   : > { %v1878_v19 = vpop.eup %1877  ;;  %1895 = vrcp.f32 %v1114_v10  ;;  %v1115_v20 = vadd.f32 1.0, %v1876_v15  ;;  %v1024_v21 = vsub.f32 0.0, %v2204_v11  ;;  %v2212_v22 = vadd.f32 %v2150_v38, %v898_v13 }
 0x106   : > { %1897 = vrcp.f32 %v1112_v16  ;;  %v1113_v23 = vadd.f32 1.0, %v1878_v19  ;;  %v1072_v24 = vmul.f32 1.442695, %v1026_v17  ;;  %v1027_v25 = vsub.f32 0.0, %v2208_v18  ;;  %v1725_v26 = vpop.f32.mrb[16].mxu1 }
 0x107   : > { %v1880_v27 = vpop.eup %1879  ;;  %1899 = vrcp.f32 %v1115_v20  ;;  %v1068_v28 = vmul.f32 1.442695, %v1024_v21  ;;  %v1025_v29 = vsub.f32 0.0, %v2212_v22  ;;  %v1759_v30 = vpop.f32.mrb[16].mxu0 }
 0x108   : > { %v616_v32 = vpop.f32.mrb[17].mxu1  ;;  %v1882_v33 = vpop.eup %1881  ;;  %v1206_v34 = vmul.f32 %v1880_v27, %v2153_v46  ;;  %1901 = vrcp.f32 %v1113_v23  ;;  %v1074_v35 = vmul.f32 1.442695, %v1027_v25  ;;  %v919_v37 = vadd.f32 %v1759_v30, %v1725_v26 }
 0x109   : > { %v910_v39 = vpop.f32.mrb[17].mxu0  ;;  %v1726_v40 = vpop.f32.mrb[18].mxu1  ;;  %v1204_v43 = vmul.f32 %v1882_v33, %v2156_v49  ;;  %1903 = vpow2.f32 %v1072_v24  ;;  %v1070_v44 = vmul.f32 1.442695, %v1025_v29 }
 0x10a   : > { %v1884_v41 = vpop.eup %1883  ;;  %v911_v45 = vadd.f32 %v910_v39, %v616_v32  ;;  %v1760_v48 = vpop.f32.mrb[18].mxu0  ;;  %v1641_v51 = vpack.c.bf16 %v1206_v34, %v1206_v34  ;;  %1905 = vpow2.f32 %v1068_v28  ;;  %v2226_v55 = vadd.f32 %v2150_v38, %v919_v37 }
 0x10b   : > { %v619_v50 = vpop.f32.mrb[19].mxu1  ;;  %v1886_v46 = vpop.eup %1885  ;;  %v1207_v53 = vmul.f32 %v1884_v41, %v2160_v52  ;;  %v1639_v58 = vpack.c.bf16 %v1204_v43, %v1204_v43  ;;  %1907 = vpow2.f32 %v1074_v35  ;;  %v922_v2 = vadd.f32 %v1760_v48, %v1726_v40 }
 0x10c   : > { %v913_v56 = vpop.f32.mrb[19].mxu0  ;;  %v1888_v57 = vpop.eup %1887  ;;  %v1205_v49 = vmul.f32 %v1886_v46, %v2164_v54  ;;  %v2230_v59 = vadd.f32 %v2150_v38, %v911_v45  ;;  %1367 = vst.msk [vmem:[%s2221_s13 + $0x8] sm:$0xf] %vm1364_vm4, %v1641_v51  ;;  %1909 = vpow2.f32 %v1070_v44  ;;  %v1030_v62 = vsub.f32 0.0, %v2226_v55 }
 0x10d   : > { %v1890_v60 = vpop.eup %1889  ;;  %v1642_v61 = vpack.c.bf16 %v1207_v53, %v1207_v53  ;;  %v1118_v52 = vadd.f32 1.0, %v1888_v57  ;;  %1365 = vst.msk [vmem:[%s2221_s13] sm:$0xf] %vm1364_vm4, %v1639_v58  ;;  %v914_v8 = vadd.f32 %v913_v56, %v619_v50  ;;  %v2243_v17 = vadd.f32 %v2150_v38, %v922_v2 }
 0x10e   : > { %v1892_v63 = vpop.eup %1891  ;;  %v1640_v0 = vpack.c.bf16 %v1205_v49, %v1205_v49  ;;  %v1116_v1 = vadd.f32 1.0, %v1890_v60  ;;  %v1028_v54 = vsub.f32 0.0, %v2230_v59  ;;  %v1080_v7 = vmul.f32 1.442695, %v1030_v62  ;;  %v1729_v10 = vpop.f32.mrb[20].mxu1 }
 0x10f   : > { %v1894_v3 = vpop.eup %1893  ;;  %1368 = vst.msk [vmem:[%s2221_s13 + $0xc] sm:$0xf] %vm1364_vm4, %v1642_v61  ;;  %1911 = vrcp.f32 %v1118_v52  ;;  %v1119_v5 = vadd.f32 1.0, %v1892_v63  ;;  %v1763_v19 = vpop.f32.mrb[20].mxu0  ;;  %v2247_v24 = vadd.f32 %v2150_v38, %v914_v8  ;;  %v1031_v30 = vsub.f32 0.0, %v2243_v17 }
 0x110   : > { %v1896_v13 = vpop.eup %1895  ;;  %1366 = vst.msk [vmem:[%s2221_s13 + $0x4] sm:$0xf] %vm1364_vm4, %v1640_v0  ;;  %1913 = vrcp.f32 %v1116_v1  ;;  %v1117_v15 = vadd.f32 1.0, %v1894_v3  ;;  %v1076_v16 = vmul.f32 1.442695, %v1028_v54  ;;  %v632_v20 = vpop.f32.mrb[21].mxu1  ;;  %v935_v25 = vadd.f32 %v1763_v19, %v1729_v10 }
 0x111   : > { %v1898_v21 = vpop.eup %1897  ;;  %v1210_v23 = vmul.f32 %v1896_v13, %v2169_v6  ;;  %1915 = vrcp.f32 %v1119_v5  ;;  %v926_v26 = vpop.f32.mrb[21].mxu0  ;;  %v1029_v39 = vsub.f32 0.0, %v2247_v24  ;;  %v1082_v44 = vmul.f32 1.442695, %v1031_v30 }
 0x112   : > { %v1730_v27 = vpop.f32.mrb[22].mxu1  ;;  %v1900_v28 = vpop.eup %1899  ;;  %v1208_v29 = vmul.f32 %v1898_v21, %v2172_v9  ;;  %1917 = vrcp.f32 %v1117_v15  ;;  %v927_v32 = vadd.f32 %v926_v26, %v632_v20 }
 0x113   : > { %v1764_v33 = vpop.f32.mrb[22].mxu0  ;;  %v635_v34 = vpop.f32.mrb[23].mxu1  ;;  %v1645_v37 = vpack.c.bf16 %v1210_v23, %v1210_v23  ;;  %v1211_v6 = vmul.f32 %v1900_v28, %v2176_v12  ;;  %1919 = vpow2.f32 %v1080_v7  ;;  %v1078_v46 = vmul.f32 1.442695, %v1029_v39 }
 0x114   : > { %v1902_v35 = vpop.eup %1901  ;;  %v929_v40 = vpop.f32.mrb[23].mxu0  ;;  %v1643_v43 = vpack.c.bf16 %v1208_v29, %v1208_v29  ;;  %1921 = vpow2.f32 %v1076_v16  ;;  %v2257_v12 = vadd.f32 %v2150_v38, %v935_v25  ;;  %v938_v60 = vadd.f32 %v1764_v33, %v1730_v27 }
 0x115   : > { %v1904_v41 = vpop.eup %1903  ;;  %v1209_v9 = vmul.f32 %v1902_v35, %v2180_v14  ;;  %1371 = vst.msk [vmem:[%s2221_s13 + $0x18] sm:$0xf] %vm1364_vm4, %v1645_v37  ;;  %v1646_v48 = vpack.c.bf16 %v1211_v6, %v1211_v6  ;;  %1923 = vpow2.f32 %v1082_v44  ;;  %v2262_v14 = vadd.f32 %v2150_v38, %v927_v32 }
 0x116   : > { %v1906_v45 = vpop.eup %1905  ;;  %v1122_v50 = vadd.f32 1.0, %v1904_v41  ;;  %1369 = vst.msk [vmem:[%s2221_s13 + $0x10] sm:$0xf] %vm1364_vm4, %v1643_v43  ;;  %v1034_v49 = vsub.f32 0.0, %v2257_v12  ;;  %v1733_v61 = vpop.f32.mrb[24].mxu1  ;;  %v930_v63 = vadd.f32 %v929_v40, %v635_v34  ;;  %v2271_v3 = vadd.f32 %v2150_v38, %v938_v60 }
 0x117   : > { %v1908_v51 = vpop.eup %1907  ;;  %v1644_v53 = vpack.c.bf16 %v1209_v9, %v1209_v9  ;;  %v1120_v56 = vadd.f32 1.0, %v1906_v45  ;;  %1372 = vst.msk [vmem:[%s2221_s13 + $0x1c] sm:$0xf] %vm1364_vm4, %v1646_v48  ;;  %v1032_v62 = vsub.f32 0.0, %v2262_v14  ;;  %v1767_v0 = vpop.f32.mrb[24].mxu0 }
 0x118   : > { %v1910_v57 = vpop.eup %1909  ;;  %1925 = vrcp.f32 %v1122_v50  ;;  %v1123_v58 = vadd.f32 1.0, %v1908_v51  ;;  %v648_v1 = vpop.f32.mrb[25].mxu1  ;;  %v1088_v2 = vmul.f32 1.442695, %v1034_v49  ;;  %v951_v5 = vadd.f32 %v1767_v0, %v1733_v61 }
 0x119   : > { %1370 = vst.msk [vmem:[%s2221_s13 + $0x14] sm:$0xf] %vm1364_vm4, %v1644_v53  ;;  %1927 = vrcp.f32 %v1120_v56  ;;  %v1121_v52 = vadd.f32 1.0, %v1910_v57  ;;  %v1912_v54 = vpop.eup %1911  ;;  %v942_v7 = vpop.f32.mrb[25].mxu0  ;;  %v1084_v15 = vmul.f32 1.442695, %v1032_v62  ;;  %v2275_v16 = vadd.f32 %v2150_v38, %v930_v63 }
 0x11a   : > { %1929 = vrcp.f32 %v1123_v58  ;;  %v1734_v8 = vpop.f32.mrb[26].mxu1  ;;  %v1914_v10 = vpop.eup %1913  ;;  %v1214_v13 = vmul.f32 %v1912_v54, %v2185_v31  ;;  %v1035_v25 = vsub.f32 0.0, %v2271_v3  ;;  %v2280_v26 = vadd.f32 %v2150_v38, %v951_v5 }
 0x11b   : > { %1931 = vrcp.f32 %v1121_v52  ;;  %v1768_v19 = vpop.f32.mrb[26].mxu0  ;;  %v651_v20 = vpop.f32.mrb[27].mxu1  ;;  %v1212_v23 = vmul.f32 %v1914_v10, %v2188_v36  ;;  %v1033_v30 = vsub.f32 0.0, %v2275_v16  ;;  %v943_v43 = vadd.f32 %v942_v7, %v648_v1 }
 0x11c   : > { %v1916_v21 = vpop.eup %1915  ;;  %1933 = vpow2.f32 %v1078_v46  ;;  %v945_v27 = vpop.f32.mrb[27].mxu0  ;;  %v1649_v31 = vpack.c.bf16 %v1214_v13, %v1214_v13  ;;  %v1090_v34 = vmul.f32 1.442695, %v1035_v25  ;;  %v1038_v40 = vsub.f32 0.0, %v2280_v26 }
 0x11d   : > { %v1918_v28 = vpop.eup %1917  ;;  %v1215_v29 = vmul.f32 %v1916_v21, %v2192_v42  ;;  %1935 = vpow2.f32 %v1088_v2  ;;  %v1647_v33 = vpack.c.bf16 %v1212_v23, %v1212_v23  ;;  %v1086_v39 = vmul.f32 1.442695, %v1033_v30 }
 0x11e   : > { %v1920_v32 = vpop.eup %1919  ;;  %v1213_v36 = vmul.f32 %v1918_v28, %v2196_v47  ;;  %1937 = vpow2.f32 %v1084_v15  ;;  %1375 = vst.msk [vmem:[%s2221_s13 + $0x28] sm:$0xf] %vm1364_vm4, %v1649_v31  ;;  %v1737_v9 = vpop.f32.mrb[28].mxu1  ;;  %v1096_v44 = vmul.f32 1.442695, %v1038_v40  ;;  %v954_v45 = vadd.f32 %v1768_v19, %v1734_v8 }
 0x11f   : > { %v1922_v35 = vpop.eup %1921  ;;  %v1650_v37 = vpack.c.bf16 %v1215_v29, %v1215_v29  ;;  %v1126_v6 = vadd.f32 1.0, %v1920_v32  ;;  %1373 = vst.msk [vmem:[%s2221_s13 + $0x20] sm:$0xf] %vm1364_vm4, %v1647_v33  ;;  %1939 = vpow2.f32 %v1090_v34  ;;  %v946_v48 = vadd.f32 %v945_v27, %v651_v20  ;;  %v1771_v50 = vpop.f32.mrb[28].mxu0 }
 0x120   : > { %v1648_v42 = vpack.c.bf16 %v1213_v36, %v1213_v36  ;;  %v1124_v41 = vadd.f32 1.0, %v1922_v35  ;;  %v1924_v47 = vpop.eup %1923  ;;  %v664_v46 = vpop.f32.mrb[29].mxu1  ;;  %v2295_v56 = vadd.f32 %v2150_v38, %v943_v43  ;;  %v967_v57 = vadd.f32 %v1771_v50, %v1737_v9 }
 0x121   : > { %1376 = vst.msk [vmem:[%s2221_s13 + $0x2c] sm:$0xf] %vm1364_vm4, %v1650_v37  ;;  %1941 = vrcp.f32 %v1126_v6  ;;  %v1127_v53 = vadd.f32 1.0, %v1924_v47  ;;  %v958_v58 = vpop.f32.mrb[29].mxu0  ;;  %v1738_v49 = vpop.f32.mrb[30].mxu1  ;;  %v2299_v52 = vadd.f32 %v2150_v38, %v954_v45  ;;  %v2302_v62 = vadd.f32 %v2150_v38, %v946_v48 }
 0x122   : > { %v1926_v51 = vpop.eup %1925  ;;  %1374 = vst.msk [vmem:[%s2221_s13 + $0x24] sm:$0xf] %vm1364_vm4, %v1648_v42  ;;  %1943 = vrcp.f32 %v1124_v41  ;;  %v1772_v63 = vpop.f32.mrb[30].mxu0  ;;  %v1036_v2 = vsub.f32 0.0, %v2295_v56  ;;  %v2307_v5 = vadd.f32 %v2150_v38, %v967_v57  ;;  %v959_v32 = vadd.f32 %v958_v58, %v664_v46 }
 0x123   : > { %v1928_v60 = vpop.eup %1927  ;;  %v1218_v61 = vmul.f32 %v1926_v51, %v2201_v4  ;;  %1945 = vpow2.f32 %v1086_v39  ;;  %v667_v0 = vpop.f32.mrb[31].mxu1  ;;  %v1039_v13 = vsub.f32 0.0, %v2299_v52  ;;  %v1037_v21 = vsub.f32 0.0, %v2302_v62 }
 0x124   : > { %v1930_v1 = vpop.eup %1929  ;;  %v1216_v54 = vmul.f32 %v1928_v60, %v2204_v11  ;;  %1947 = vrcp.f32 %v1127_v53  ;;  %v961_v4 = vpop.f32.mrb[31].mxu0  ;;  %v1092_v20 = vmul.f32 1.442695, %v1036_v2  ;;  %v1042_v28 = vsub.f32 0.0, %v2307_v5 }
 0x125   : > { %v1932_v7 = vpop.eup %1931  ;;  %v1653_v8 = vpack.c.bf16 %v1218_v61, %v1218_v61  ;;  %v1219_v10 = vmul.f32 %v1930_v1, %v2208_v18  ;;  %1949 = vpow2.f32 %v1096_v44  ;;  %v1098_v30 = vmul.f32 1.442695, %v1039_v13 }
 0x126   : > { %v1934_v15 = vpop.eup %1933  ;;  %v1651_v19 = vpack.c.bf16 %v1216_v54, %v1216_v54  ;;  %v1217_v11 = vmul.f32 %v1932_v7, %v2212_v22  ;;  %1951 = vpow2.f32 %v1092_v20  ;;  %v1094_v36 = vmul.f32 1.442695, %v1037_v21 }
 0x127   : > { %v1936_v23 = vpop.eup %1935  ;;  %1379 = vst.msk [vmem:[%s2221_s13 + $0x38] sm:$0xf] %vm1364_vm4, %v1653_v8  ;;  %v1654_v25 = vpack.c.bf16 %v1219_v10, %v1219_v10  ;;  %v1125_v27 = vadd.f32 1.0, %v1934_v15  ;;  %v970_v34 = vadd.f32 %v1772_v63, %v1738_v49  ;;  %v962_v35 = vadd.f32 %v961_v4, %v667_v0 }
 0x128   : > { %v1938_v18 = vpop.eup %1937  ;;  %1377 = vst.msk [vmem:[%s2221_s13 + $0x30] sm:$0xf] %vm1364_vm4, %v1651_v19  ;;  %v1652_v31 = vpack.c.bf16 %v1217_v11, %v1217_v11  ;;  %v1130_v29 = vadd.f32 1.0, %v1936_v23  ;;  %v1104_v39 = vmul.f32 1.442695, %v1042_v28  ;;  %v2323_v40 = vadd.f32 %v2150_v38, %v959_v32 }
 0x129   : > { %1380 = vst.msk [vmem:[%s2221_s13 + $0x3c] sm:$0xf] %vm1364_vm4, %v1654_v25  ;;  %1953 = vrcp.f32 %v1125_v27  ;;  %v1128_v22 = vadd.f32 1.0, %v1938_v18  ;;  %v1940_v33 = vpop.eup %1939  ;;  %v2327_v43 = vadd.f32 %v2150_v38, %v970_v34  ;;  %v2330_v9 = vadd.f32 %v2150_v38, %v962_v35 }
 0x12a   : > { %1378 = vst.msk [vmem:[%s2221_s13 + $0x34] sm:$0xf] %vm1364_vm4, %v1652_v31  ;;  %1955 = vrcp.f32 %v1130_v29  ;;  %v1131_v6 = vadd.f32 1.0, %v1940_v33  ;;  %v1040_v45 = vsub.f32 0.0, %v2323_v40 }
 0x12b   : > { %v1942_v37 = vpop.eup %1941  ;;  %1957 = vrcp.f32 %v1128_v22  ;;  %v1041_v49 = vsub.f32 0.0, %v2330_v9 }
 0x12c   : > { %v1944_v42 = vpop.eup %1943  ;;  %v1222_v41 = vmul.f32 %v1942_v37, %v2226_v55  ;;  %1959 = vpow2.f32 %v1098_v30  ;;  %v1043_v55 = vsub.f32 0.0, %v2327_v43  ;;  %v1100_v38 = vmul.f32 1.442695, %v1040_v45 }
 0x12d   : > { %v1946_v47 = vpop.eup %1945  ;;  %v1220_v44 = vmul.f32 %v1944_v42, %v2230_v59  ;;  %1961 = vrcp.f32 %v1131_v6  ;;  %v1102_v63 = vmul.f32 1.442695, %v1041_v49 }
 0x12e   : > { %v1948_v48 = vpop.eup %1947  ;;  %v1657_v50 = vpack.c.bf16 %v1222_v41, %v1222_v41  ;;  %v1129_v46 = vadd.f32 1.0, %v1946_v47  ;;  %1963 = vpow2.f32 %v1094_v36  ;;  %v1106_v58 = vmul.f32 1.442695, %v1043_v55 }
 0x12f   : > { %v1950_v51 = vpop.eup %1949  ;;  %v1655_v53 = vpack.c.bf16 %v1220_v44, %v1220_v44  ;;  %v1223_v57 = vmul.f32 %v1948_v48, %v2243_v17  ;;  %1965 = vpow2.f32 %v1104_v39 }
 0x130   : > { %1383 = vst.msk [vmem:[%s2221_s13 + $0x48] sm:$0xf] %vm1364_vm4, %v1657_v50  ;;  %1967 = vrcp.f32 %v1129_v46  ;;  %v1134_v59 = vadd.f32 1.0, %v1950_v51  ;;  %v1952_v61 = vpop.eup %1951 }
 0x131   : > { %1381 = vst.msk [vmem:[%s2221_s13 + $0x40] sm:$0xf] %vm1364_vm4, %v1655_v53  ;;  %v1658_v60 = vpack.c.bf16 %v1223_v57, %v1223_v57  ;;  %1969 = vpow2.f32 %v1100_v38  ;;  %v1132_v17 = vadd.f32 1.0, %v1952_v61 }
 0x132   : > { %1971 = vrcp.f32 %v1134_v59 }
 0x133   : > { %v1954_v0 = vpop.eup %1953  ;;  %1384 = vst.msk [vmem:[%s2221_s13 + $0x4c] sm:$0xf] %vm1364_vm4, %v1658_v60  ;;  %1973 = vpow2.f32 %v1106_v58 }
 0x134   : > { %v1956_v1 = vpop.eup %1955  ;;  %v1221_v54 = vmul.f32 %v1954_v0, %v2247_v24  ;;  %1975 = vpow2.f32 %v1102_v63 }
 0x135   : > { %v1958_v2 = vpop.eup %1957  ;;  %v1226_v4 = vmul.f32 %v1956_v1, %v2257_v12  ;;  %1977 = vrcp.f32 %v1132_v17 }
 0x136   : > { %v1960_v7 = vpop.eup %1959  ;;  %v1656_v8 = vpack.c.bf16 %v1221_v54, %v1221_v54  ;;  %v1224_v10 = vmul.f32 %v1958_v2, %v2262_v14 }
 0x137   : > { %v1962_v13 = vpop.eup %1961  ;;  %v1661_v15 = vpack.c.bf16 %v1226_v4, %v1226_v4  ;;  %v1135_v19 = vadd.f32 1.0, %v1960_v7 }
 0x138   : > { %v1964_v11 = vpop.eup %1963  ;;  %1382 = vst.msk [vmem:[%s2221_s13 + $0x44] sm:$0xf] %vm1364_vm4, %v1656_v8  ;;  %v1659_v20 = vpack.c.bf16 %v1224_v10, %v1224_v10  ;;  %v1227_v24 = vmul.f32 %v1962_v13, %v2271_v3 }
 0x139   : > { %v1966_v21 = vpop.eup %1965  ;;  %1387 = vst.msk [vmem:[%s2221_s13 + $0x58] sm:$0xf] %vm1364_vm4, %v1661_v15  ;;  %1979 = vrcp.f32 %v1135_v19  ;;  %v1133_v12 = vadd.f32 1.0, %v1964_v11 }
 0x13a   : > { %v1968_v23 = vpop.eup %1967  ;;  %1385 = vst.msk [vmem:[%s2221_s13 + $0x50] sm:$0xf] %vm1364_vm4, %v1659_v20  ;;  %v1662_v25 = vpack.c.bf16 %v1227_v24, %v1227_v24  ;;  %v1138_v14 = vadd.f32 1.0, %v1966_v21 }
 0x13b   : > { %v1970_v27 = vpop.eup %1969  ;;  %v1225_v28 = vmul.f32 %v1968_v23, %v2275_v16  ;;  %1981 = vrcp.f32 %v1133_v12 }
 0x13c   : > { %v1972_v18 = vpop.eup %1971  ;;  %1388 = vst.msk [vmem:[%s2221_s13 + $0x5c] sm:$0xf] %vm1364_vm4, %v1662_v25  ;;  %1983 = vrcp.f32 %v1138_v14  ;;  %v1136_v3 = vadd.f32 1.0, %v1970_v27 }
 0x13d   : > { %v1974_v31 = vpop.eup %1973  ;;  %v1660_v29 = vpack.c.bf16 %v1225_v28, %v1225_v28  ;;  %v1230_v30 = vmul.f32 %v1972_v18, %v2280_v26 }
 0x13e   : > { %v1976_v22 = vpop.eup %1975  ;;  %1985 = vrcp.f32 %v1136_v3  ;;  %v1139_v32 = vadd.f32 1.0, %v1974_v31 }
 0x13f   : > { %v1978_v33 = vpop.eup %1977  ;;  %1386 = vst.msk [vmem:[%s2221_s13 + $0x54] sm:$0xf] %vm1364_vm4, %v1660_v29  ;;  %v1665_v36 = vpack.c.bf16 %v1230_v30, %v1230_v30  ;;  %v1137_v16 = vadd.f32 1.0, %v1976_v22 }
 0x140   : > { %v1228_v34 = vmul.f32 %v1978_v33, %v2295_v56  ;;  %1987 = vrcp.f32 %v1139_v32 }
 0x141   : > { %1391 = vst.msk [vmem:[%s2221_s13 + $0x68] sm:$0xf] %vm1364_vm4, %v1665_v36  ;;  %1989 = vrcp.f32 %v1137_v16 }
 0x142   : > { %v1663_v35 = vpack.c.bf16 %v1228_v34, %v1228_v34 }
 0x143   : > { %v1980_v37 = vpop.eup %1979 }
 0x144   : > { %1389 = vst.msk [vmem:[%s2221_s13 + $0x60] sm:$0xf] %vm1364_vm4, %v1663_v35  ;;  %v1231_v26 = vmul.f32 %v1980_v37, %v2299_v52 }
 0x145   : > { %v1982_v6 = vpop.eup %1981 }
 0x146   : > { %v1984_v39 = vpop.eup %1983  ;;  %v1666_v42 = vpack.c.bf16 %v1231_v26, %v1231_v26  ;;  %v1229_v41 = vmul.f32 %v1982_v6, %v2302_v62 }
 0x147   : > { %v1234_v56 = vmul.f32 %v1984_v39, %v2307_v5 }
 0x148   : > { %v1986_v47 = vpop.eup %1985  ;;  %1392 = vst.msk [vmem:[%s2221_s13 + $0x6c] sm:$0xf] %vm1364_vm4, %v1666_v42  ;;  %v1664_v44 = vpack.c.bf16 %v1229_v41, %v1229_v41 }
 0x149   : > { %v1669_v45 = vpack.c.bf16 %v1234_v56, %v1234_v56  ;;  %v1232_v48 = vmul.f32 %v1986_v47, %v2323_v40 }
 0x14a   : > { %v1988_v50 = vpop.eup %1987  ;;  %1390 = vst.msk [vmem:[%s2221_s13 + $0x64] sm:$0xf] %vm1364_vm4, %v1664_v44 }
 0x14b   : > { %v1990_v52 = vpop.eup %1989  ;;  %1395 = vst.msk [vmem:[%s2221_s13 + $0x78] sm:$0xf] %vm1364_vm4, %v1669_v45  ;;  %v1667_v46 = vpack.c.bf16 %v1232_v48, %v1232_v48  ;;  %v1235_v62 = vmul.f32 %v1988_v50, %v2327_v43 }
 0x14c   : > { %v1233_v5 = vmul.f32 %v1990_v52, %v2330_v9 }
 0x14d   : > { %1393 = vst.msk [vmem:[%s2221_s13 + $0x70] sm:$0xf] %vm1364_vm4, %v1667_v46  ;;  %v1670_v55 = vpack.c.bf16 %v1235_v62, %v1235_v62 }
 0x14e   : > { %v1668_v51 = vpack.c.bf16 %v1233_v5, %v1233_v5 }
 0x14f   : > { %1396 = vst.msk [vmem:[%s2221_s13 + $0x7c] sm:$0xf] %vm1364_vm4, %v1670_v55 }
 0x150   : > { %1394 = vst.msk [vmem:[%s2221_s13 + $0x74] sm:$0xf] %vm1364_vm4, %v1668_v51 }
 0x151 PF: > { %s15_s20 = sadd.s32 1, %s2013_s20   ;;  %s2397_s18 = smov %s2009_s19 }
 0x152   : > { %p12_p5 = scmp.ge.s32.totalorder %s15_s20, 4   ;;  %s2398_s19 = smov %s2400_s21 }
 0x154   :  { %14 = sbr.rel (!%p12_p5) target bundleno = 2 (0x2), region = 82 }

// kernel: _lambda_.23
= control target key start
LH: loop header
LB: loop body
LE: loop exit
PB: predicated region body
PF: predicated region fallthrough
CT: control target
= control target key end

     0   :  { %s1690_s12 = smov 0   ;;  %s1692_s13 = smov 0   ;;  %s2132_s0 = inlined_call_operand.vmem [shape: bf16[512,18], index: 0, kind: input, shape index: {}]   ;;  %s2133_s1 = inlined_call_operand.vmem [shape: bf16[18,2], index: 1, kind: input, shape index: {}]   ;;  %s2134_s2 = inlined_call_operand.vmem [shape: f32[1,2], index: 2, kind: input, shape index: {}]   ;;  %s2135_s3 = inlined_call_operand.vmem [shape: bf16[512,2], index: 3, kind: output, shape index: {}]  }
   0x1   :  { %s1694_s14 = smov 0  }
   0x2 LB: > { %s32_s15 = sadd.s32 1, %s1663_s13  ;;  %p1308_p0 = scmp.ge.s32.totalorder %s1667_s14, 1  ;;  %s1667_s14 = sphi %s1694_s14, %s13_s14   ;;  %s1663_s13 = sphi %s1692_s13, %s2138_s13   ;;  %s1659_s12 = sphi %s1690_s12, %s2137_s12  }
   0x3   : > { %p34_p1 = scmp.ge.s32.totalorder %s32_s15, 2  ;;  %p188_p2 = scmp.lt.s32.totalorder %s1667_s14, 3 }
   0x5   : > { %s2140_s15 = smov (%p34_p1, %s32_s15), 0  ;;  %p189_p3 = pnand %p1308_p0, %p188_p2 }
   0x6   : > { %v1499_v0 = vld [vmem:[%s2133_s1] sm:$0xff] (!%p189_p3)   ;;  %vm502_vm0 = vcmask (!%p189_p3), 1040384   ;;  %v1500_v1 = vld [vmem:[%s2133_s1 + $0x8] ss:$0 sps:$4 sm:$0x11] (!%p189_p3)   ;;  %s1309_s20 = sshll.u32 (!%p189_p3), %s1659_s12, 5 }
   0x7   : > { %192 = sbr.rel (%p189_p3) target bundleno = 334 (0x14e), region = 32  ;;  %1432 = vmatprep.subr.bf16.mxu0 (!%p189_p3), %v1499_v0  ;;  %1468 = vmatprep.subr.bf16.mxu1 (!%p189_p3), %v1499_v0  ;;  %p1719_p4 = scmp.lt.s32.totalorder (!%p189_p3), %s1309_s20, 63  ;;  %vm264_vm1 = vcmask (!%p189_p3), 15360   ;;  %v1669_v2 = vmov (!%p189_p3), 0.0   ;;  %v504_v3 = vsel (!%p189_p3), %vm502_vm0, %v1500_v1, 0  ;;  %vm453_vm2 = vcmask (!%p189_p3), 146432  }
   0x8   : > { %1433 = vmatpush3.bf16.msra.mxu0 (!%p189_p3), %v1499_v0  ;;  %1470 = vmatpush3.bf16.msra.mxu1 (!%p189_p3), %v1499_v0  ;;  %267 = vst.msk [vmem:[#allocation2 + $0x10] sm:$0xff] (!%p189_p3), %vm264_vm1, %v1669_v2  ;;  %265 = vst.msk [vmem:[#allocation2] sm:$0xff] (!%p189_p3), %vm264_vm1, %v1669_v2  ;;  %v1815_v47 = vld [vmem:[%s2134_s2] ss:$0 sm:$0xff] (!%p189_p3)  ;;  %vm1158_vm3 = vcmask (!%p189_p3), 11264  }
   0x9   : > { %266 = vst.msk [vmem:[#allocation2 + $0x8] sm:$0xff] (!%p189_p3), %vm264_vm1, %v1669_v2  ;;  %268 = vst.msk [vmem:[#allocation2 + $0x18] sm:$0xff] (!%p189_p3), %vm264_vm1, %v1669_v2  ;;  %1472 = vmatprep.subr.msk.bf16.mxu0 (!%p189_p3), %vm502_vm0, %v1500_v1  ;;  %1473 = vmatprep.subr.msk.bf16.mxu1 (!%p189_p3), %vm502_vm0, %v1500_v1 }
   0xa   : > { %269 = vst.msk [vmem:[#allocation2 + $0x20] sm:$0xff] (!%p189_p3), %vm264_vm1, %v1669_v2  ;;  %270 = vst.msk [vmem:[#allocation2 + $0x28] sm:$0xff] (!%p189_p3), %vm264_vm1, %v1669_v2 }
   0xb   : > { %271 = vst.msk [vmem:[#allocation2 + $0x30] sm:$0xff] (!%p189_p3), %vm264_vm1, %v1669_v2  ;;  %272 = vst.msk [vmem:[#allocation2 + $0x38] sm:$0xff] (!%p189_p3), %vm264_vm1, %v1669_v2 }
   0xc   : > { %273 = vst.msk [vmem:[#allocation2 + $0x40] sm:$0xff] (!%p189_p3), %vm264_vm1, %v1669_v2  ;;  %274 = vst.msk [vmem:[#allocation2 + $0x48] sm:$0xff] (!%p189_p3), %vm264_vm1, %v1669_v2  ;;  %1435 = vmatpush3.bf16.msra.mxu0 (!%p189_p3), %v504_v3  ;;  %1471 = vmatpush3.bf16.msra.mxu1 (!%p189_p3), %v504_v3 }
   0xd   : > { %275 = vst.msk [vmem:[#allocation2 + $0x50] sm:$0xff] (!%p189_p3), %vm264_vm1, %v1669_v2  ;;  %276 = vst.msk [vmem:[#allocation2 + $0x58] sm:$0xff] (!%p189_p3), %vm264_vm1, %v1669_v2 }
   0xe   : > { %277 = vst.msk [vmem:[#allocation2 + $0x60] sm:$0xff] %vm264_vm1, %v1669_v2  ;;  %278 = vst.msk [vmem:[#allocation2 + $0x68] sm:$0xff] %vm264_vm1, %v1669_v2  ;;  %s2142_s20 = smov (!%p1719_p4, %s1309_s20), 63 }
   0xf   : > { %279 = vst.msk [vmem:[#allocation2 + $0x70] sm:$0xff] %vm264_vm1, %v1669_v2  ;;  %280 = vst.msk [vmem:[#allocation2 + $0x78] sm:$0xff] %vm264_vm1, %v1669_v2  ;;  %s1310_s22 = sshll.u32 %s2142_s20, 2  ;;  %v299_v20 = vld [vmem:[#allocation2 + $0x10] sm:$0xff]  ;;  %v297_v22 = vld [vmem:[#allocation2] sm:$0xff] }
  0x10   : > { %281 = vst.msk [vmem:[#allocation2 + $0x80] sm:$0xff] %vm264_vm1, %v1669_v2  ;;  %282 = vst.msk [vmem:[#allocation2 + $0x88] sm:$0xff] %vm264_vm1, %v1669_v2  ;;  %s1770_s25 = scalar_lea.vmem %s2132_s0, %s1310_s22  ;;  %v300_v25 = vld [vmem:[#allocation2 + $0x18] sm:$0xff]  ;;  %v298_v30 = vld [vmem:[#allocation2 + $0x8] sm:$0xff]  ;;  %s1972_s30 = scalar_lea.vmem %s2135_s3, %s1310_s22 }
  0x11   : > { %283 = vst.msk [vmem:[#allocation2 + $0x90] sm:$0xff] %vm264_vm1, %v1669_v2  ;;  %284 = vst.msk [vmem:[#allocation2 + $0x98] sm:$0xff] %vm264_vm1, %v1669_v2  ;;  %v1501_v4 = vld [vmem:[%s1770_s25] sm:$0xff]   ;;  %v1503_v6 = vld [vmem:[%s1770_s25 + $0x8] sm:$0xff]  }
  0x12   : > { %285 = vst.msk [vmem:[#allocation2 + $0xa0] sm:$0xff] %vm264_vm1, %v1669_v2  ;;  %286 = vst.msk [vmem:[#allocation2 + $0xa8] sm:$0xff] %vm264_vm1, %v1669_v2  ;;  %v1502_v5 = vld [vmem:[%s1770_s25 + $0x40] sm:$0xff]   ;;  %1436 = vmatprep.mubr.msk.bf16.mxu0 %vm453_vm2, %v1501_v4  ;;  %v1504_v7 = vld [vmem:[%s1770_s25 + $0x48] sm:$0xff]  }
  0x13   : > { %287 = vst.msk [vmem:[#allocation2 + $0xb0] sm:$0xff] %vm264_vm1, %v1669_v2  ;;  %288 = vst.msk [vmem:[#allocation2 + $0xb8] sm:$0xff] %vm264_vm1, %v1669_v2  ;;  %1452 = vmatprep.mubr.msk.bf16.mxu1 %vm453_vm2, %v1502_v5  ;;  %1437 = vmatmul.mubr.msk.bf16.vlgmr.msra.gmra.mrb[0].mxu0 %vm453_vm2, %v1503_v6  ;;  %v1505_v8 = vld [vmem:[%s1770_s25 + $0x10] sm:$0xff]   ;;  %v1507_v10 = vld [vmem:[%s1770_s25 + $0x18] sm:$0xff]  }
  0x14   : > { %289 = vst.msk [vmem:[#allocation2 + $0xc0] sm:$0xff] %vm264_vm1, %v1669_v2  ;;  %290 = vst.msk [vmem:[#allocation2 + $0xc8] sm:$0xff] %vm264_vm1, %v1669_v2  ;;  %1453 = vmatmul.mubr.msk.bf16.vlgmr.msra.gmra.mrb[0].mxu1 %vm453_vm2, %v1504_v7  ;;  %v1506_v9 = vld [vmem:[%s1770_s25 + $0x50] sm:$0xff]   ;;  %1440 = vmatprep.mubr.msk.bf16.mxu0 %vm453_vm2, %v1505_v8  ;;  %v1508_v11 = vld [vmem:[%s1770_s25 + $0x58] sm:$0xff]  }
  0x15   : > { %291 = vst.msk [vmem:[#allocation2 + $0xd0] sm:$0xff] %vm264_vm1, %v1669_v2  ;;  %292 = vst.msk [vmem:[#allocation2 + $0xd8] sm:$0xff] %vm264_vm1, %v1669_v2  ;;  %1456 = vmatprep.mubr.msk.bf16.mxu1 %vm453_vm2, %v1506_v9  ;;  %v1509_v12 = vld [vmem:[%s1770_s25 + $0x20] sm:$0xff]   ;;  %v1511_v14 = vld [vmem:[%s1770_s25 + $0x28] sm:$0xff]  }
  0x16   : > { %293 = vst.msk [vmem:[#allocation2 + $0xe0] sm:$0xff] %vm264_vm1, %v1669_v2  ;;  %294 = vst.msk [vmem:[#allocation2 + $0xe8] sm:$0xff] %vm264_vm1, %v1669_v2  ;;  %v1510_v13 = vld [vmem:[%s1770_s25 + $0x60] sm:$0xff]   ;;  %v1512_v15 = vld [vmem:[%s1770_s25 + $0x68] sm:$0xff]  }
  0x17   : > { %295 = vst.msk [vmem:[#allocation2 + $0xf0] sm:$0xff] %vm264_vm1, %v1669_v2  ;;  %296 = vst.msk [vmem:[#allocation2 + $0xf8] sm:$0xff] %vm264_vm1, %v1669_v2  ;;  %v1513_v16 = vld [vmem:[%s1770_s25 + $0x30] sm:$0xff]   ;;  %v1515_v18 = vld [vmem:[%s1770_s25 + $0x38] sm:$0xff]  }
  0x18   : > { %v1514_v17 = vld [vmem:[%s1770_s25 + $0x70] sm:$0xff]   ;;  %v1516_v19 = vld [vmem:[%s1770_s25 + $0x78] sm:$0xff]   ;;  %v313_v24 = vld [vmem:[#allocation2 + $0x80] sm:$0xff] }
  0x19   : > { %v315_v21 = vld [vmem:[#allocation2 + $0x90] sm:$0xff]  ;;  %v316_v29 = vld [vmem:[#allocation2 + $0x98] sm:$0xff]  ;;  %v314_v35 = vld [vmem:[#allocation2 + $0x88] sm:$0xff] }
  0x1a   : > { %v303_v44 = vld [vmem:[#allocation2 + $0x30] sm:$0xff]  ;;  %v301_v46 = vld [vmem:[#allocation2 + $0x20] sm:$0xff]  ;;  %v304_v50 = vld [vmem:[#allocation2 + $0x38] sm:$0xff] }
  0x1b   : > { %1441 = vmatmul.mubr.msk.bf16.gmra.mrb[4].mxu0 %vm453_vm2, %v1507_v10  ;;  %v319_v45 = vld [vmem:[#allocation2 + $0xb0] sm:$0xff]  ;;  %v317_v49 = vld [vmem:[#allocation2 + $0xa0] sm:$0xff]  ;;  %v320_v54 = vld [vmem:[#allocation2 + $0xb8] sm:$0xff] }
  0x1c   : > { %1457 = vmatmul.mubr.msk.bf16.gmra.mrb[4].mxu1 %vm453_vm2, %v1508_v11  ;;  %1444 = vmatprep.mubr.msk.bf16.mxu0 %vm453_vm2, %v1509_v12  ;;  %v302_v55 = vld [vmem:[#allocation2 + $0x28] sm:$0xff] }
  0x1d   : > { %1460 = vmatprep.mubr.msk.bf16.mxu1 %vm453_vm2, %v1510_v13  ;;  %v318_v61 = vld [vmem:[#allocation2 + $0xa8] sm:$0xff] }
  0x23   : > { %1445 = vmatmul.mubr.msk.bf16.gmra.mrb[8].mxu0 %vm453_vm2, %v1511_v14 }
  0x24   : > { %1461 = vmatmul.mubr.msk.bf16.gmra.mrb[8].mxu1 %vm453_vm2, %v1512_v15  ;;  %1448 = vmatprep.mubr.msk.bf16.mxu0 %vm453_vm2, %v1513_v16 }
  0x25   : > { %1464 = vmatprep.mubr.msk.bf16.mxu1 %vm453_vm2, %v1514_v17 }
  0x2b   : > { %1449 = vmatmul.mubr.msk.bf16.gmra.mrb[12].mxu0 %vm453_vm2, %v1515_v18 }
  0x2c   : > { %1465 = vmatmul.mubr.msk.bf16.gmra.mrb[12].mxu1 %vm453_vm2, %v1516_v19 }
  0xe6   : > { %v1438_v23 = vpop.f32.mrb[0].mxu0 }
  0xe7   : > { %v669_v26 = vadd.f32 %v1438_v23, %v299_v20  ;;  %v1454_v27 = vpop.f32.mrb[0].mxu1  ;;  %v540_v28 = vpop.f32.mrb[1].mxu0  ;;  %v307_v23 = vld [vmem:[#allocation2 + $0x50] sm:$0xff] }
  0xe8   : > { %v685_v31 = vadd.f32 %v1454_v27, %v315_v21  ;;  %v667_v32 = vadd.f32 %v540_v28, %v297_v22  ;;  %v604_v33 = vpop.f32.mrb[1].mxu1  ;;  %v1439_v34 = vpop.f32.mrb[2].mxu0  ;;  %v323_v28 = vld [vmem:[#allocation2 + $0xd0] sm:$0xff] }
  0xe9   : > { %702 = vst.msk [vmem:[#allocation2 + $0x10] sm:$0xff] %vm264_vm1, %v669_v26  ;;  %v683_v36 = vadd.f32 %v604_v33, %v313_v24  ;;  %v670_v37 = vadd.f32 %v1439_v34, %v300_v25  ;;  %v1455_v38 = vpop.f32.mrb[2].mxu1  ;;  %v543_v39 = vpop.f32.mrb[3].mxu0 }
  0xea   : > { %718 = vst.msk [vmem:[#allocation2 + $0x90] sm:$0xff] %vm264_vm1, %v685_v31  ;;  %700 = vst.msk [vmem:[#allocation2] sm:$0xff] %vm264_vm1, %v667_v32  ;;  %v686_v40 = vadd.f32 %v1455_v38, %v316_v29  ;;  %v668_v41 = vadd.f32 %v543_v39, %v298_v30  ;;  %v607_v42 = vpop.f32.mrb[3].mxu1  ;;  %v305_v29 = vld [vmem:[#allocation2 + $0x40] sm:$0xff] }
  0xeb   : > { %716 = vst.msk [vmem:[#allocation2 + $0x80] sm:$0xff] %vm264_vm1, %v683_v36  ;;  %703 = vst.msk [vmem:[#allocation2 + $0x18] sm:$0xff] %vm264_vm1, %v670_v37  ;;  %v684_v43 = vadd.f32 %v607_v42, %v314_v35 }
  0xec   : > { %719 = vst.msk [vmem:[#allocation2 + $0x98] sm:$0xff] %vm264_vm1, %v686_v40  ;;  %701 = vst.msk [vmem:[#allocation2 + $0x8] sm:$0xff] %vm264_vm1, %v668_v41 }
  0xed   : > { %717 = vst.msk [vmem:[#allocation2 + $0x88] sm:$0xff] %vm264_vm1, %v684_v43 }
  0xee   : > { %v1442_v48 = vpop.f32.mrb[4].mxu0 }
  0xef   : > { %v673_v51 = vadd.f32 %v1442_v48, %v303_v44  ;;  %v1458_v52 = vpop.f32.mrb[4].mxu1  ;;  %v556_v53 = vpop.f32.mrb[5].mxu0 }
  0xf0   : > { %v737_v56 = vld [vmem:[#allocation2 + $0x10] sm:$0xff]  ;;  %v689_v57 = vadd.f32 %v1458_v52, %v319_v45  ;;  %v671_v58 = vadd.f32 %v556_v53, %v301_v46  ;;  %v620_v59 = vpop.f32.mrb[5].mxu1  ;;  %v1443_v60 = vpop.f32.mrb[6].mxu0 }
  0xf1   : > { %v1818_v62 = vadd.f32 %v1815_v47, %v737_v56  ;;  %v753_v63 = vld [vmem:[#allocation2 + $0x90] sm:$0xff]  ;;  %v735_v0 = vld [vmem:[#allocation2] sm:$0xff]  ;;  %706 = vst.msk [vmem:[#allocation2 + $0x30] sm:$0xff] %vm264_vm1, %v673_v51  ;;  %v687_v1 = vadd.f32 %v620_v59, %v317_v49  ;;  %v674_v2 = vadd.f32 %v1443_v60, %v304_v50  ;;  %v1459_v3 = vpop.f32.mrb[6].mxu1  ;;  %v559_v4 = vpop.f32.mrb[7].mxu0 }
  0xf2   : > { %v1822_v5 = vadd.f32 %v1815_v47, %v753_v63  ;;  %v1825_v6 = vadd.f32 %v1815_v47, %v735_v0  ;;  %v751_v7 = vld [vmem:[#allocation2 + $0x80] sm:$0xff]  ;;  %v738_v8 = vld [vmem:[#allocation2 + $0x18] sm:$0xff]  ;;  %722 = vst.msk [vmem:[#allocation2 + $0xb0] sm:$0xff] %vm264_vm1, %v689_v57  ;;  %704 = vst.msk [vmem:[#allocation2 + $0x20] sm:$0xff] %vm264_vm1, %v671_v58  ;;  %v690_v9 = vadd.f32 %v1459_v3, %v320_v54  ;;  %v623_v11 = vpop.f32.mrb[7].mxu1 }
  0xf3   : > { %v672_v10 = vadd.f32 %v559_v4, %v302_v55  ;;  %v808_v12 = vsub.f32 0.0, %v1818_v62  ;;  %v1831_v13 = vadd.f32 %v1815_v47, %v751_v7  ;;  %v1834_v14 = vadd.f32 %v1815_v47, %v738_v8  ;;  %v754_v15 = vld [vmem:[#allocation2 + $0x98] sm:$0xff]  ;;  %v736_v16 = vld [vmem:[#allocation2 + $0x8] sm:$0xff]  ;;  %720 = vst.msk [vmem:[#allocation2 + $0xa0] sm:$0xff] %vm264_vm1, %v687_v1  ;;  %707 = vst.msk [vmem:[#allocation2 + $0x38] sm:$0xff] %vm264_vm1, %v674_v2 }
  0xf4   : > { %v688_v17 = vadd.f32 %v623_v11, %v318_v61  ;;  %v824_v18 = vsub.f32 0.0, %v1822_v5  ;;  %v806_v19 = vsub.f32 0.0, %v1825_v6  ;;  %v1841_v20 = vadd.f32 %v1815_v47, %v754_v15  ;;  %v752_v22 = vld [vmem:[#allocation2 + $0x88] sm:$0xff]  ;;  %723 = vst.msk [vmem:[#allocation2 + $0xb8] sm:$0xff] %vm264_vm1, %v690_v9  ;;  %v321_v7 = vld [vmem:[#allocation2 + $0xc0] sm:$0xff]  ;;  %v308_v8 = vld [vmem:[#allocation2 + $0x58] sm:$0xff] }
  0xf5   : > { %v1844_v21 = vadd.f32 %v1815_v47, %v736_v16  ;;  %705 = vst.msk [vmem:[#allocation2 + $0x28] sm:$0xff] %vm264_vm1, %v672_v10  ;;  %v842_v24 = vmul.f32 1.442695, %v808_v12  ;;  %v822_v25 = vsub.f32 0.0, %v1831_v13  ;;  %v809_v26 = vsub.f32 0.0, %v1834_v14  ;;  %v324_v15 = vld [vmem:[#allocation2 + $0xd8] sm:$0xff] }
  0xf6   : > { %v1851_v27 = vadd.f32 %v1815_v47, %v752_v22  ;;  %721 = vst.msk [vmem:[#allocation2 + $0xa8] sm:$0xff] %vm264_vm1, %v688_v17  ;;  %v874_v30 = vmul.f32 1.442695, %v824_v18  ;;  %v838_v31 = vmul.f32 1.442695, %v806_v19  ;;  %v825_v32 = vsub.f32 0.0, %v1841_v20 }
  0xf7   : > { %v807_v33 = vsub.f32 0.0, %v1844_v21  ;;  %1517 = vpow2.f32 %v842_v24  ;;  %v870_v34 = vmul.f32 1.442695, %v822_v25  ;;  %v844_v35 = vmul.f32 1.442695, %v809_v26  ;;  %v1446_v37 = vpop.f32.mrb[8].mxu0 }
  0xf8   : > { %v823_v36 = vsub.f32 0.0, %v1851_v27  ;;  %1519 = vpow2.f32 %v874_v30  ;;  %v876_v38 = vmul.f32 1.442695, %v825_v32  ;;  %v741_v40 = vld [vmem:[#allocation2 + $0x30] sm:$0xff]  ;;  %v677_v41 = vadd.f32 %v1446_v37, %v307_v23  ;;  %v1462_v42 = vpop.f32.mrb[8].mxu1  ;;  %v572_v49 = vpop.f32.mrb[9].mxu0 }
  0xf9   : > { %v840_v39 = vmul.f32 1.442695, %v807_v33  ;;  %1521 = vpow2.f32 %v838_v31  ;;  %v1858_v44 = vadd.f32 %v1815_v47, %v741_v40  ;;  %v757_v45 = vld [vmem:[#allocation2 + $0xb0] sm:$0xff]  ;;  %v739_v46 = vld [vmem:[#allocation2 + $0x20] sm:$0xff]  ;;  %v693_v48 = vadd.f32 %v1462_v42, %v323_v28  ;;  %v636_v50 = vpop.f32.mrb[9].mxu1  ;;  %v1447_v56 = vpop.f32.mrb[10].mxu0 }
  0xfa   : > { %v872_v43 = vmul.f32 1.442695, %v823_v36  ;;  %1523 = vpow2.f32 %v870_v34  ;;  %v1861_v51 = vadd.f32 %v1815_v47, %v757_v45  ;;  %v1864_v52 = vadd.f32 %v1815_v47, %v739_v46  ;;  %v755_v53 = vld [vmem:[#allocation2 + $0xa0] sm:$0xff]  ;;  %v742_v54 = vld [vmem:[#allocation2 + $0x38] sm:$0xff]  ;;  %710 = vst.msk [vmem:[#allocation2 + $0x50] sm:$0xff] %vm264_vm1, %v677_v41  ;;  %v1463_v57 = vpop.f32.mrb[10].mxu1 }
  0xfb   : > { %v675_v55 = vadd.f32 %v572_v49, %v305_v29  ;;  %1525 = vpow2.f32 %v844_v35  ;;  %v812_v58 = vsub.f32 0.0, %v1858_v44  ;;  %v1869_v59 = vadd.f32 %v1815_v47, %v755_v53  ;;  %v758_v61 = vld [vmem:[#allocation2 + $0xb8] sm:$0xff]  ;;  %726 = vst.msk [vmem:[#allocation2 + $0xd0] sm:$0xff] %vm264_vm1, %v693_v48  ;;  %v1875_v63 = vpop.f32.mrb[11].mxu0  ;;  %v1877_v0 = vpop.f32.mrb[11].mxu1 }
  0xfc   : > { %v1872_v60 = vadd.f32 %v1815_v47, %v742_v54  ;;  %1527 = vpow2.f32 %v876_v38  ;;  %v828_v1 = vsub.f32 0.0, %v1861_v51  ;;  %v810_v2 = vsub.f32 0.0, %v1864_v52  ;;  %v740_v4 = vld [vmem:[#allocation2 + $0x28] sm:$0xff] }
  0xfd   : > { %v1882_v3 = vadd.f32 %v1815_v47, %v758_v61  ;;  %708 = vst.msk [vmem:[#allocation2 + $0x40] sm:$0xff] %vm264_vm1, %v675_v55  ;;  %1529 = vpow2.f32 %v840_v39  ;;  %v850_v9 = vmul.f32 1.442695, %v812_v58  ;;  %v826_v10 = vsub.f32 0.0, %v1869_v59  ;;  %v756_v12 = vld [vmem:[#allocation2 + $0xa8] sm:$0xff] }
  0xfe   : > { %v813_v11 = vsub.f32 0.0, %v1872_v60  ;;  %1531 = vpow2.f32 %v872_v43  ;;  %v882_v16 = vmul.f32 1.442695, %v828_v1  ;;  %v846_v17 = vmul.f32 1.442695, %v810_v2  ;;  %v1888_v19 = vpop.f32.mrb[12].mxu0 }
  0xff   : > { %v829_v18 = vsub.f32 0.0, %v1882_v3  ;;  %1533 = vpow2.f32 %v850_v9  ;;  %v878_v22 = vmul.f32 1.442695, %v826_v10  ;;  %v1891_v24 = vadd.f32 %v1815_v47, %v740_v4  ;;  %v1893_v25 = vpop.f32.mrb[12].mxu1  ;;  %v1895_v26 = vpop.f32.mrb[13].mxu0  ;;  %v306_v55 = vld [vmem:[#allocation2 + $0x48] sm:$0xff] }
 0x100   : > { %v852_v23 = vmul.f32 1.442695, %v813_v11  ;;  %1535 = vpow2.f32 %v882_v16  ;;  %v1900_v29 = vadd.f32 %v1815_v47, %v756_v12  ;;  %v691_v30 = vadd.f32 %v636_v50, %v321_v7  ;;  %v1902_v31 = vpop.f32.mrb[13].mxu1  ;;  %v1904_v32 = vpop.f32.mrb[14].mxu0  ;;  %v311_v9 = vld [vmem:[#allocation2 + $0x70] sm:$0xff] }
 0x101   : > { %v1897_v28 = vmul.f32 1.442695, %v829_v18  ;;  %v1518_v33 = vpop.eup %1517  ;;  %1537 = vpow2.f32 %v846_v17  ;;  %v811_v34 = vsub.f32 0.0, %v1891_v24  ;;  %v745_v35 = vld [vmem:[#allocation2 + $0x50] sm:$0xff]  ;;  %v678_v36 = vadd.f32 %v1447_v56, %v308_v8  ;;  %v1907_v38 = vpop.f32.mrb[14].mxu1  ;;  %v322_v8 = vld [vmem:[#allocation2 + $0xc8] sm:$0xff] }
 0x102   : > { %v694_v37 = vadd.f32 %v1463_v57, %v324_v15  ;;  %v1909_v39 = vpop.f32.mrb[15].mxu0  ;;  %v1520_v40 = vpop.eup %1519  ;;  %v904_v41 = vadd.f32 1.0, %v1518_v33  ;;  %1539 = vpow2.f32 %v878_v22  ;;  %v827_v42 = vsub.f32 0.0, %v1900_v29  ;;  %v761_v45 = vld [vmem:[#allocation2 + $0xd0] sm:$0xff]  ;;  %724 = vst.msk [vmem:[#allocation2 + $0xc0] sm:$0xff] %vm264_vm1, %v691_v30  ;;  %v309_v30 = vld [vmem:[#allocation2 + $0x60] sm:$0xff] }
 0x103   : > { %v1913_v43 = vadd.f32 %v1815_v47, %v745_v35  ;;  %v1916_v46 = vpop.f32.mrb[15].mxu1  ;;  %v1522_v48 = vpop.eup %1521  ;;  %v920_v49 = vadd.f32 1.0, %v1520_v40  ;;  %1541 = vpow2.f32 %v852_v23  ;;  %v1918_v50 = vmul.f32 1.442695, %v811_v34  ;;  %711 = vst.msk [vmem:[#allocation2 + $0x58] sm:$0xff] %vm264_vm1, %v678_v36  ;;  %v327_v16 = vld [vmem:[#allocation2 + $0xf0] sm:$0xff] }
 0x104   : > { %v1921_v53 = vadd.f32 %v1815_v47, %v761_v45  ;;  %v743_v54 = vld [vmem:[#allocation2 + $0x40] sm:$0xff]  ;;  %727 = vst.msk [vmem:[#allocation2 + $0xd8] sm:$0xff] %vm264_vm1, %v694_v37  ;;  %v1524_v56 = vpop.eup %1523  ;;  %1543 = vrcp.f32 %v904_v41  ;;  %v902_v57 = vadd.f32 1.0, %v1522_v48  ;;  %v1925_v58 = vmul.f32 1.442695, %v827_v42 }
 0x105   : > { %v816_v61 = vsub.f32 0.0, %v1913_v43  ;;  %v1526_v1 = vpop.eup %1525  ;;  %1545 = vrcp.f32 %v920_v49  ;;  %v918_v2 = vadd.f32 1.0, %v1524_v56  ;;  %v1930_v7 = vadd.f32 %v1815_v47, %v743_v54  ;;  %v325_v45 = vld [vmem:[#allocation2 + $0xe0] sm:$0xff] }
 0x106   : > { %v832_v4 = vsub.f32 0.0, %v1921_v53  ;;  %v1528_v10 = vpop.eup %1527  ;;  %1547 = vrcp.f32 %v902_v57  ;;  %v905_v11 = vadd.f32 1.0, %v1526_v1  ;;  %v676_v15 = vadd.f32 %v1875_v63, %v306_v55  ;;  %v312_v1 = vld [vmem:[#allocation2 + $0x78] sm:$0xff] }
 0x107   : > { %v1932_v12 = vmul.f32 1.442695, %v816_v61  ;;  %v1530_v17 = vpop.eup %1529  ;;  %1549 = vrcp.f32 %v918_v2  ;;  %v921_v18 = vadd.f32 1.0, %v1528_v10  ;;  %v814_v23 = vsub.f32 0.0, %v1930_v7 }
 0x108   : > { %v1935_v22 = vmul.f32 1.442695, %v832_v4  ;;  %v1532_v33 = vpop.eup %1531  ;;  %1551 = vrcp.f32 %v905_v11  ;;  %v903_v34 = vadd.f32 1.0, %v1530_v17  ;;  %709 = vst.msk [vmem:[#allocation2 + $0x48] sm:$0xff] %vm264_vm1, %v676_v15  ;;  %v692_v35 = vadd.f32 %v1877_v0, %v322_v8 }
 0x109   : > { %v681_v36 = vadd.f32 %v1888_v19, %v311_v9  ;;  %v1534_v63 = vpop.eup %1533  ;;  %1553 = vrcp.f32 %v921_v18  ;;  %v919_v37 = vadd.f32 1.0, %v1532_v33  ;;  %v1941_v40 = vmul.f32 1.442695, %v814_v23  ;;  %v759_v41 = vld [vmem:[#allocation2 + $0xc0] sm:$0xff]  ;;  %v310_v33 = vld [vmem:[#allocation2 + $0x68] sm:$0xff] }
 0x10a   : > { %v697_v42 = vadd.f32 %v1893_v25, %v327_v16  ;;  %v1536_v48 = vpop.eup %1535  ;;  %1555 = vrcp.f32 %v903_v34  ;;  %v908_v49 = vadd.f32 1.0, %v1534_v63  ;;  %v1945_v54 = vadd.f32 %v1815_v47, %v759_v41  ;;  %v746_v55 = vld [vmem:[#allocation2 + $0x58] sm:$0xff]  ;;  %725 = vst.msk [vmem:[#allocation2 + $0xc8] sm:$0xff] %vm264_vm1, %v692_v35 }
 0x10b   : > { %v762_v56 = vld [vmem:[#allocation2 + $0xd8] sm:$0xff]  ;;  %714 = vst.msk [vmem:[#allocation2 + $0x70] sm:$0xff] %vm264_vm1, %v681_v36  ;;  %v679_v0 = vadd.f32 %v1895_v26, %v309_v30  ;;  %v1538_v19 = vpop.eup %1537  ;;  %1557 = vrcp.f32 %v919_v37  ;;  %v924_v57 = vadd.f32 1.0, %v1536_v48  ;;  %v1951_v25 = vadd.f32 %v1815_v47, %v746_v55 }
 0x10c   : > { %v1954_v61 = vadd.f32 %v1815_v47, %v762_v56  ;;  %730 = vst.msk [vmem:[#allocation2 + $0xf0] sm:$0xff] %vm264_vm1, %v697_v42  ;;  %v1540_v2 = vpop.eup %1539  ;;  %1559 = vrcp.f32 %v908_v49  ;;  %v906_v4 = vadd.f32 1.0, %v1538_v19  ;;  %v830_v8 = vsub.f32 0.0, %v1945_v54  ;;  %v328_v16 = vld [vmem:[#allocation2 + $0xf8] sm:$0xff] }
 0x10d   : > { %712 = vst.msk [vmem:[#allocation2 + $0x60] sm:$0xff] %vm264_vm1, %v679_v0  ;;  %v695_v26 = vadd.f32 %v1902_v31, %v325_v45  ;;  %v1542_v9 = vpop.eup %1541  ;;  %1561 = vrcp.f32 %v924_v57  ;;  %v922_v10 = vadd.f32 1.0, %v1540_v2  ;;  %v817_v11 = vsub.f32 0.0, %v1951_v25 }
 0x10e   : > { %v833_v15 = vsub.f32 0.0, %v1954_v61  ;;  %v1544_v17 = vpop.eup %1543  ;;  %1563 = vrcp.f32 %v906_v4  ;;  %v909_v18 = vadd.f32 1.0, %v1542_v9  ;;  %v886_v23 = vmul.f32 1.442695, %v830_v8 }
 0x10f   : > { %728 = vst.msk [vmem:[#allocation2 + $0xe0] sm:$0xff] %vm264_vm1, %v695_v26  ;;  %v682_v30 = vadd.f32 %v1904_v32, %v312_v1  ;;  %v1546_v34 = vpop.eup %1545  ;;  %v1000_v31 = vmul.f32 %v1544_v17, %v1818_v62  ;;  %1565 = vrcp.f32 %v922_v10  ;;  %v860_v35 = vmul.f32 1.442695, %v817_v11  ;;  %v744_v63 = vld [vmem:[#allocation2 + $0x48] sm:$0xff] }
 0x110   : > { %v1965_v36 = vmul.f32 1.442695, %v833_v15  ;;  %v1548_v37 = vpop.eup %1547  ;;  %v1016_v41 = vmul.f32 %v1546_v34, %v1822_v5  ;;  %1567 = vrcp.f32 %v909_v18  ;;  %v1976_v32 = vadd.f32 %v1815_v47, %v744_v63 }
 0x111   : > { %715 = vst.msk [vmem:[#allocation2 + $0x78] sm:$0xff] %vm264_vm1, %v682_v30  ;;  %v698_v62 = vadd.f32 %v1907_v38, %v328_v16  ;;  %v1550_v42 = vpop.eup %1549  ;;  %v1384_v45 = vpack.c.bf16 %v1000_v31, %v1000_v31  ;;  %v998_v48 = vmul.f32 %v1548_v37, %v1825_v6  ;;  %1569 = vpow2.f32 %v1897_v28  ;;  %v760_v49 = vld [vmem:[#allocation2 + $0xc8] sm:$0xff] }
 0x112   : > { %v680_v55 = vadd.f32 %v1909_v39, %v310_v33  ;;  %v1552_v5 = vpop.eup %1551  ;;  %v1400_v56 = vpack.c.bf16 %v1016_v41, %v1016_v41  ;;  %v1014_v0 = vmul.f32 %v1550_v42, %v1831_v13  ;;  %1571 = vpow2.f32 %v1918_v50  ;;  %v749_v13 = vld [vmem:[#allocation2 + $0x70] sm:$0xff] }
 0x113   : > { %v815_v19 = vsub.f32 0.0, %v1976_v32  ;;  %731 = vst.msk [vmem:[#allocation2 + $0xf8] sm:$0xff] %vm264_vm1, %v698_v62  ;;  %v1554_v38 = vpop.eup %1553  ;;  %v1382_v6 = vpack.c.bf16 %v998_v48, %v998_v48  ;;  %v1001_v28 = vmul.f32 %v1552_v5, %v1834_v14  ;;  %1573 = vpow2.f32 %v1925_v58  ;;  %v765_v34 = vld [vmem:[#allocation2 + $0xf0] sm:$0xff] }
 0x114   : > { %1161 = vst.msk [vmem:[%s1972_s30 + $0x8] sm:$0xf] %vm1158_vm3, %v1384_v45  ;;  %v1992_v39 = vadd.f32 %v1815_v47, %v760_v49  ;;  %v1556_v50 = vpop.eup %1555  ;;  %1177 = vst.msk [vmem:[%s1972_s30 + $0x48] sm:$0xf] %vm1158_vm3, %v1400_v56  ;;  %v1398_v57 = vpack.c.bf16 %v1014_v0, %v1014_v0  ;;  %v1017_v1 = vmul.f32 %v1554_v38, %v1841_v20  ;;  %1575 = vpow2.f32 %v1932_v12  ;;  %v747_v63 = vld [vmem:[#allocation2 + $0x60] sm:$0xff] }
 0x115   : > { %713 = vst.msk [vmem:[#allocation2 + $0x68] sm:$0xff] %vm264_vm1, %v680_v55  ;;  %v856_v2 = vmul.f32 1.442695, %v815_v19  ;;  %v1558_v14 = vpop.eup %1557  ;;  %v1385_v58 = vpack.c.bf16 %v1001_v28, %v1001_v28  ;;  %v999_v4 = vmul.f32 %v1556_v50, %v1844_v21  ;;  %1577 = vpow2.f32 %v1935_v22  ;;  %v326_v50 = vld [vmem:[#allocation2 + $0xe8] sm:$0xff] }
 0x116   : > { %1159 = vst.msk [vmem:[%s1972_s30] sm:$0xf] %vm1158_vm3, %v1382_v6  ;;  %v831_v8 = vsub.f32 0.0, %v1992_v39  ;;  %v1560_v26 = vpop.eup %1559  ;;  %1175 = vst.msk [vmem:[%s1972_s30 + $0x40] sm:$0xf] %vm1158_vm3, %v1398_v57  ;;  %v1401_v9 = vpack.c.bf16 %v1017_v1, %v1017_v1  ;;  %v1015_v20 = vmul.f32 %v1558_v14, %v1851_v27  ;;  %1579 = vpow2.f32 %v1941_v40  ;;  %v763_v48 = vld [vmem:[#allocation2 + $0xe0] sm:$0xff] }
 0x117   : > { %v2009_v12 = vadd.f32 %v1815_v47, %v749_v13  ;;  %v1562_v10 = vpop.eup %1561  ;;  %1162 = vst.msk [vmem:[%s1972_s30 + $0xc] sm:$0xf] %vm1158_vm3, %v1385_v58  ;;  %v1383_v21 = vpack.c.bf16 %v999_v4, %v999_v4  ;;  %v1004_v22 = vmul.f32 %v1560_v26, %v1858_v44  ;;  %1581 = vpow2.f32 %v886_v23 }
 0x118   : > { %v888_v11 = vmul.f32 1.442695, %v831_v8  ;;  %v1564_v15 = vpop.eup %1563  ;;  %1178 = vst.msk [vmem:[%s1972_s30 + $0x4c] sm:$0xf] %vm1158_vm3, %v1401_v9  ;;  %v1399_v16 = vpack.c.bf16 %v1015_v20, %v1015_v20  ;;  %v1020_v27 = vmul.f32 %v1562_v10, %v1861_v51  ;;  %1583 = vpow2.f32 %v860_v35  ;;  %v750_v5 = vld [vmem:[#allocation2 + $0x78] sm:$0xff] }
 0x119   : > { %v820_v40 = vsub.f32 0.0, %v2009_v12  ;;  %v1566_v17 = vpop.eup %1565  ;;  %1160 = vst.msk [vmem:[%s1972_s30 + $0x4] sm:$0xf] %vm1158_vm3, %v1383_v21  ;;  %v1388_v18 = vpack.c.bf16 %v1004_v22, %v1004_v22  ;;  %v1002_v30 = vmul.f32 %v1564_v15, %v1864_v52  ;;  %1585 = vpow2.f32 %v1965_v36 }
 0x11a   : > { %v1568_v44 = vpop.eup %1567  ;;  %1176 = vst.msk [vmem:[%s1972_s30 + $0x44] sm:$0xf] %vm1158_vm3, %v1399_v16  ;;  %v1404_v23 = vpack.c.bf16 %v1020_v27, %v1020_v27  ;;  %v1018_v33 = vmul.f32 %v1566_v17, %v1869_v59  ;;  %1587 = vpow2.f32 %v856_v2  ;;  %v2033_v45 = vadd.f32 %v1815_v47, %v765_v34  ;;  %v766_v19 = vld [vmem:[#allocation2 + $0xf8] sm:$0xff] }
 0x11b   : > { %v866_v51 = vmul.f32 1.442695, %v820_v40  ;;  %v1570_v31 = vpop.eup %1569  ;;  %1165 = vst.msk [vmem:[%s1972_s30 + $0x18] sm:$0xf] %vm1158_vm3, %v1388_v18  ;;  %v1386_v35 = vpack.c.bf16 %v1002_v30, %v1002_v30  ;;  %v1005_v52 = vmul.f32 %v1568_v44, %v1872_v60  ;;  %1589 = vpow2.f32 %v888_v11 }
 0x11c   : > { %v1572_v36 = vpop.eup %1571  ;;  %1181 = vst.msk [vmem:[%s1972_s30 + $0x58] sm:$0xf] %vm1158_vm3, %v1404_v23  ;;  %v1402_v37 = vpack.c.bf16 %v1018_v33, %v1018_v33  ;;  %v925_v41 = vadd.f32 1.0, %v1570_v31  ;;  %v2038_v55 = vadd.f32 %v1815_v47, %v747_v63  ;;  %v2043_v28 = vadd.f32 %v1815_v47, %v763_v48  ;;  %v748_v13 = vld [vmem:[#allocation2 + $0x68] sm:$0xff] }
 0x11d   : > { %1591 = vpow2.f32 %v866_v51  ;;  %v1574_v59 = vpop.eup %1573  ;;  %1163 = vst.msk [vmem:[%s1972_s30 + $0x10] sm:$0xf] %vm1158_vm3, %v1386_v35  ;;  %v1389_v62 = vpack.c.bf16 %v1005_v52, %v1005_v52  ;;  %v907_v42 = vadd.f32 1.0, %v1572_v36  ;;  %v836_v2 = vsub.f32 0.0, %v2033_v45 }
 0x11e   : > { %v1576_v49 = vpop.eup %1575  ;;  %1179 = vst.msk [vmem:[%s1972_s30 + $0x50] sm:$0xf] %vm1158_vm3, %v1402_v37  ;;  %1593 = vrcp.f32 %v925_v41  ;;  %v923_v60 = vadd.f32 1.0, %v1574_v59  ;;  %v2047_v14 = vadd.f32 %v1815_v47, %v750_v5  ;;  %v818_v8 = vsub.f32 0.0, %v2038_v55 }
 0x11f   : > { %v1578_v56 = vpop.eup %1577  ;;  %1166 = vst.msk [vmem:[%s1972_s30 + $0x1c] sm:$0xf] %vm1158_vm3, %v1389_v62  ;;  %1595 = vrcp.f32 %v907_v42  ;;  %v912_v0 = vadd.f32 1.0, %v1576_v49  ;;  %v2051_v26 = vadd.f32 %v1815_v47, %v766_v19  ;;  %v2054_v10 = vadd.f32 %v1815_v47, %v748_v13 }
 0x120   : > { %v1580_v38 = vpop.eup %1579  ;;  %1597 = vrcp.f32 %v923_v60  ;;  %v928_v6 = vadd.f32 1.0, %v1578_v56  ;;  %v696_v21 = vadd.f32 %v1916_v46, %v326_v50  ;;  %v834_v15 = vsub.f32 0.0, %v2043_v28 }
 0x121   : > { %v1582_v57 = vpop.eup %1581  ;;  %1599 = vrcp.f32 %v912_v0  ;;  %v910_v1 = vadd.f32 1.0, %v1580_v38  ;;  %v821_v40 = vsub.f32 0.0, %v2047_v14  ;;  %v898_v30 = vmul.f32 1.442695, %v836_v2 }
 0x122   : > { %v1584_v58 = vpop.eup %1583  ;;  %1601 = vrcp.f32 %v928_v6  ;;  %v926_v4 = vadd.f32 1.0, %v1582_v57  ;;  %729 = vst.msk [vmem:[#allocation2 + $0xe8] sm:$0xff] %vm264_vm1, %v696_v21  ;;  %v837_v44 = vsub.f32 0.0, %v2051_v26  ;;  %v862_v23 = vmul.f32 1.442695, %v818_v8 }
 0x123   : > { %v1586_v9 = vpop.eup %1585  ;;  %1603 = vrcp.f32 %v910_v1  ;;  %v913_v20 = vadd.f32 1.0, %v1584_v58  ;;  %v819_v33 = vsub.f32 0.0, %v2054_v10  ;;  %v894_v34 = vmul.f32 1.442695, %v834_v15 }
 0x124   : > { %v1588_v22 = vpop.eup %1587  ;;  %1605 = vrcp.f32 %v926_v4  ;;  %v929_v11 = vadd.f32 1.0, %v1586_v9  ;;  %v868_v52 = vmul.f32 1.442695, %v821_v40  ;;  %v900_v37 = vmul.f32 1.442695, %v837_v44 }
 0x125   : > { %v1590_v16 = vpop.eup %1589  ;;  %1607 = vrcp.f32 %v913_v20  ;;  %v911_v27 = vadd.f32 1.0, %v1588_v22  ;;  %v864_v42 = vmul.f32 1.442695, %v819_v33 }
 0x126   : > { %1609 = vrcp.f32 %v929_v11  ;;  %v927_v18 = vadd.f32 1.0, %v1590_v16 }
 0x127   : > { %v1592_v17 = vpop.eup %1591  ;;  %1611 = vrcp.f32 %v911_v27 }
 0x128   : > { %v916_v46 = vadd.f32 1.0, %v1592_v17  ;;  %v1594_v51 = vpop.eup %1593  ;;  %1613 = vrcp.f32 %v927_v18 }
 0x129   : > { %v1596_v31 = vpop.eup %1595  ;;  %v1021_v35 = vmul.f32 %v1594_v51, %v1882_v3  ;;  %v764_v60 = vld [vmem:[#allocation2 + $0xe8] sm:$0xff] }
 0x12a   : > { %1615 = vrcp.f32 %v916_v46  ;;  %v1598_v63 = vpop.eup %1597  ;;  %v1003_v36 = vmul.f32 %v1596_v31, %v1891_v24  ;;  %v2070_v0 = vadd.f32 %v1815_v47, %v764_v60 }
 0x12b   : > { %1617 = vpow2.f32 %v898_v30  ;;  %v1600_v41 = vpop.eup %1599  ;;  %v1405_v59 = vpack.c.bf16 %v1021_v35, %v1021_v35  ;;  %v1019_v62 = vmul.f32 %v1598_v63, %v1900_v29 }
 0x12c   : > { %1619 = vpow2.f32 %v862_v23  ;;  %v1602_v48 = vpop.eup %1601  ;;  %v1387_v49 = vpack.c.bf16 %v1003_v36, %v1003_v36  ;;  %v1008_v3 = vmul.f32 %v1600_v41, %v1913_v43  ;;  %v835_v47 = vsub.f32 0.0, %v2070_v0 }
 0x12d   : > { %1621 = vpow2.f32 %v894_v34  ;;  %v1604_v5 = vpop.eup %1603  ;;  %1182 = vst.msk [vmem:[%s1972_s30 + $0x5c] sm:$0xf] %vm1158_vm3, %v1405_v59  ;;  %v1403_v24 = vpack.c.bf16 %v1019_v62, %v1019_v62  ;;  %v1024_v56 = vmul.f32 %v1602_v48, %v1921_v53 }
 0x12e   : > { %1623 = vpow2.f32 %v868_v52  ;;  %v1606_v29 = vpop.eup %1605  ;;  %1164 = vst.msk [vmem:[%s1972_s30 + $0x14] sm:$0xf] %vm1158_vm3, %v1387_v49  ;;  %v1392_v19 = vpack.c.bf16 %v1008_v3, %v1008_v3  ;;  %v1006_v43 = vmul.f32 %v1604_v5, %v1930_v7  ;;  %v896_v58 = vmul.f32 1.442695, %v835_v47 }
 0x12f   : > { %1625 = vpow2.f32 %v900_v37  ;;  %v1608_v38 = vpop.eup %1607  ;;  %1180 = vst.msk [vmem:[%s1972_s30 + $0x54] sm:$0xf] %vm1158_vm3, %v1403_v24  ;;  %v1408_v6 = vpack.c.bf16 %v1024_v56, %v1024_v56  ;;  %v1022_v13 = vmul.f32 %v1606_v29, %v1945_v54 }
 0x130   : > { %1627 = vpow2.f32 %v864_v42  ;;  %v1610_v53 = vpop.eup %1609  ;;  %1169 = vst.msk [vmem:[%s1972_s30 + $0x28] sm:$0xf] %vm1158_vm3, %v1392_v19  ;;  %v1390_v50 = vpack.c.bf16 %v1006_v43, %v1006_v43  ;;  %v1009_v57 = vmul.f32 %v1608_v38, %v1951_v25 }
 0x131   : > { %v1612_v7 = vpop.eup %1611  ;;  %1185 = vst.msk [vmem:[%s1972_s30 + $0x68] sm:$0xf] %vm1158_vm3, %v1408_v6  ;;  %v1406_v1 = vpack.c.bf16 %v1022_v13, %v1022_v13  ;;  %v1025_v2 = vmul.f32 %v1610_v53, %v1954_v61  ;;  %1629 = vpow2.f32 %v896_v58 }
 0x132   : > { %v1614_v54 = vpop.eup %1613  ;;  %1167 = vst.msk [vmem:[%s1972_s30 + $0x20] sm:$0xf] %vm1158_vm3, %v1390_v50  ;;  %v1393_v4 = vpack.c.bf16 %v1009_v57, %v1009_v57  ;;  %v1007_v8 = vmul.f32 %v1612_v7, %v1976_v32 }
 0x133   : > { %1183 = vst.msk [vmem:[%s1972_s30 + $0x60] sm:$0xf] %vm1158_vm3, %v1406_v1  ;;  %v1409_v25 = vpack.c.bf16 %v1025_v2, %v1025_v2  ;;  %v1023_v20 = vmul.f32 %v1614_v54, %v1992_v39 }
 0x134   : > { %v1616_v9 = vpop.eup %1615  ;;  %1170 = vst.msk [vmem:[%s1972_s30 + $0x2c] sm:$0xf] %vm1158_vm3, %v1393_v4  ;;  %v1391_v61 = vpack.c.bf16 %v1007_v8, %v1007_v8 }
 0x135   : > { %v1618_v21 = vpop.eup %1617  ;;  %v1012_v22 = vmul.f32 %v1616_v9, %v2009_v12  ;;  %1186 = vst.msk [vmem:[%s1972_s30 + $0x6c] sm:$0xf] %vm1158_vm3, %v1409_v25  ;;  %v1407_v15 = vpack.c.bf16 %v1023_v20, %v1023_v20 }
 0x136   : > { %v1620_v11 = vpop.eup %1619  ;;  %v932_v32 = vadd.f32 1.0, %v1618_v21  ;;  %1168 = vst.msk [vmem:[%s1972_s30 + $0x24] sm:$0xf] %vm1158_vm3, %v1391_v61 }
 0x137   : > { %v1622_v16 = vpop.eup %1621  ;;  %v1396_v27 = vpack.c.bf16 %v1012_v22, %v1012_v22  ;;  %v914_v40 = vadd.f32 1.0, %v1620_v11  ;;  %1184 = vst.msk [vmem:[%s1972_s30 + $0x64] sm:$0xf] %vm1158_vm3, %v1407_v15 }
 0x138   : > { %v1624_v17 = vpop.eup %1623  ;;  %1631 = vrcp.f32 %v932_v32  ;;  %v930_v39 = vadd.f32 1.0, %v1622_v16 }
 0x139   : > { %v1626_v18 = vpop.eup %1625  ;;  %1173 = vst.msk [vmem:[%s1972_s30 + $0x38] sm:$0xf] %vm1158_vm3, %v1396_v27  ;;  %1633 = vrcp.f32 %v914_v40  ;;  %v917_v12 = vadd.f32 1.0, %v1624_v17 }
 0x13a   : > { %v1628_v30 = vpop.eup %1627  ;;  %1635 = vrcp.f32 %v930_v39  ;;  %v933_v44 = vadd.f32 1.0, %v1626_v18 }
 0x13b   : > { %1637 = vrcp.f32 %v917_v12  ;;  %v915_v46 = vadd.f32 1.0, %v1628_v30  ;;  %v1630_v23 = vpop.eup %1629 }
 0x13c   : > { %1639 = vrcp.f32 %v933_v44  ;;  %v931_v33 = vadd.f32 1.0, %v1630_v23 }
 0x13d   : > { %1641 = vrcp.f32 %v915_v46 }
 0x13e   : > { %1643 = vrcp.f32 %v931_v33 }
 0x142   : > { %v1632_v51 = vpop.eup %1631 }
 0x143   : > { %v1634_v34 = vpop.eup %1633  ;;  %v1028_v31 = vmul.f32 %v1632_v51, %v2033_v45 }
 0x144   : > { %v1636_v35 = vpop.eup %1635  ;;  %v1010_v52 = vmul.f32 %v1634_v34, %v2038_v55 }
 0x145   : > { %v1638_v63 = vpop.eup %1637  ;;  %v1412_v36 = vpack.c.bf16 %v1028_v31, %v1028_v31  ;;  %v1026_v37 = vmul.f32 %v1636_v35, %v2043_v28 }
 0x146   : > { %v1640_v41 = vpop.eup %1639  ;;  %v1394_v59 = vpack.c.bf16 %v1010_v52, %v1010_v52  ;;  %v1013_v62 = vmul.f32 %v1638_v63, %v2047_v14 }
 0x147   : > { %v1642_v42 = vpop.eup %1641  ;;  %1189 = vst.msk [vmem:[%s1972_s30 + $0x78] sm:$0xf] %vm1158_vm3, %v1412_v36  ;;  %v1410_v45 = vpack.c.bf16 %v1026_v37, %v1026_v37  ;;  %v1029_v48 = vmul.f32 %v1640_v41, %v2051_v26 }
 0x148   : > { %1171 = vst.msk [vmem:[%s1972_s30 + $0x30] sm:$0xf] %vm1158_vm3, %v1394_v59  ;;  %v1397_v55 = vpack.c.bf16 %v1013_v62, %v1013_v62  ;;  %v1011_v49 = vmul.f32 %v1642_v42, %v2054_v10  ;;  %v1644_v60 = vpop.eup %1643 }
 0x149   : > { %1187 = vst.msk [vmem:[%s1972_s30 + $0x70] sm:$0xf] %vm1158_vm3, %v1410_v45  ;;  %v1413_v28 = vpack.c.bf16 %v1029_v48, %v1029_v48  ;;  %v1027_v14 = vmul.f32 %v1644_v60, %v2070_v0 }
 0x14a   : > { %1174 = vst.msk [vmem:[%s1972_s30 + $0x3c] sm:$0xf] %vm1158_vm3, %v1397_v55  ;;  %v1395_v3 = vpack.c.bf16 %v1011_v49, %v1011_v49 }
 0x14b   : > { %1190 = vst.msk [vmem:[%s1972_s30 + $0x7c] sm:$0xf] %vm1158_vm3, %v1413_v28  ;;  %v1411_v5 = vpack.c.bf16 %v1027_v14, %v1027_v14 }
 0x14c   : > { %1172 = vst.msk [vmem:[%s1972_s30 + $0x34] sm:$0xf] %vm1158_vm3, %v1395_v3 }
 0x14d   : > { %1188 = vst.msk [vmem:[%s1972_s30 + $0x74] sm:$0xf] %vm1158_vm3, %v1411_v5 }
 0x14e PF: > { %s13_s14 = sadd.s32 1, %s1667_s14   ;;  %s2137_s12 = smov %s1663_s13 }
 0x14f   : > { %p10_p5 = scmp.ge.s32.totalorder %s13_s14, 4   ;;  %s2138_s13 = smov %s2140_s15 }
 0x151   :  { %12 = sbr.rel (!%p10_p5) target bundleno = 2 (0x2), region = 76 }

// kernel: _lambda_.24
= control target key start
LH: loop header
LB: loop body
LE: loop exit
PB: predicated region body
PF: predicated region fallthrough
CT: control target
= control target key end

     0   :  { %s1947_s15 = smov 0   ;;  %s1949_s16 = smov 0   ;;  %s2487_s0 = inlined_call_operand.vmem [shape: bf16[512,18], index: 0, kind: input, shape index: {}]   ;;  %s2488_s1 = inlined_call_operand.vmem [shape: bf16[18,2], index: 1, kind: input, shape index: {}]   ;;  %s2489_s2 = inlined_call_operand.vmem [shape: f32[1,2], index: 2, kind: input, shape index: {}]   ;;  %s2490_s3 = inlined_call_operand.vmem [shape: bf16[512,2], index: 3, kind: input, shape index: {}]   ;;  %s2491_s4 = inlined_call_operand.vmem [shape: bf16[512,2], index: 4, kind: output, shape index: {}]  }
   0x1   :  { %s1951_s17 = smov 0  }
   0x2 LB: > { %s33_s18 = sadd.s32 1, %s1915_s16  ;;  %p1479_p0 = scmp.ge.s32.totalorder %s1919_s17, 1  ;;  %s1919_s17 = sphi %s1951_s17, %s14_s17   ;;  %s1915_s16 = sphi %s1949_s16, %s2508_s16   ;;  %s1911_s15 = sphi %s1947_s15, %s2507_s15  }
   0x3   : > { %p35_p1 = scmp.ge.s32.totalorder %s33_s18, 2  ;;  %p229_p2 = scmp.lt.s32.totalorder %s1919_s17, 3 }
   0x5   : > { %s2510_s18 = smov (%p35_p1, %s33_s18), 0  ;;  %p230_p3 = pnand %p1479_p0, %p229_p2 }
   0x6   : > { %v1751_v0 = vld [vmem:[%s2488_s1] sm:$0xff] (!%p230_p3)   ;;  %vm562_vm0 = vcmask (!%p230_p3), 1040384   ;;  %v1752_v1 = vld [vmem:[%s2488_s1 + $0x8] ss:$0 sps:$4 sm:$0x11] (!%p230_p3)   ;;  %s1480_s23 = sshll.u32 (!%p230_p3), %s1911_s15, 5 }
   0x7   : > { %233 = sbr.rel (%p230_p3) target bundleno = 345 (0x159), region = 36  ;;  %1684 = vmatprep.subr.bf16.mxu0 (!%p230_p3), %v1751_v0  ;;  %1720 = vmatprep.subr.bf16.mxu1 (!%p230_p3), %v1751_v0  ;;  %p1976_p4 = scmp.lt.s32.totalorder (!%p230_p3), %s1480_s23, 63  ;;  %vm324_vm1 = vcmask (!%p230_p3), 15360   ;;  %v1921_v2 = vmov (!%p230_p3), 0.0   ;;  %v564_v3 = vsel (!%p230_p3), %vm562_vm0, %v1752_v1, 0  ;;  %vm513_vm2 = vcmask (!%p230_p3), 146432  }
   0x8   : > { %1685 = vmatpush3.bf16.msra.mxu0 (!%p230_p3), %v1751_v0  ;;  %1722 = vmatpush3.bf16.msra.mxu1 (!%p230_p3), %v1751_v0  ;;  %327 = vst.msk [vmem:[#allocation2 + $0x10] sm:$0xff] (!%p230_p3), %vm324_vm1, %v1921_v2  ;;  %325 = vst.msk [vmem:[#allocation2] sm:$0xff] (!%p230_p3), %vm324_vm1, %v1921_v2  ;;  %v2106_v61 = vld [vmem:[%s2489_s2] ss:$0 sm:$0xff] (!%p230_p3)  ;;  %vm1314_vm3 = vcmask (!%p230_p3), 11264  }
   0x9   : > { %326 = vst.msk [vmem:[#allocation2 + $0x8] sm:$0xff] (!%p230_p3), %vm324_vm1, %v1921_v2  ;;  %328 = vst.msk [vmem:[#allocation2 + $0x18] sm:$0xff] (!%p230_p3), %vm324_vm1, %v1921_v2  ;;  %1724 = vmatprep.subr.msk.bf16.mxu0 (!%p230_p3), %vm562_vm0, %v1752_v1  ;;  %1725 = vmatprep.subr.msk.bf16.mxu1 (!%p230_p3), %vm562_vm0, %v1752_v1 }
   0xa   : > { %329 = vst.msk [vmem:[#allocation2 + $0x20] sm:$0xff] (!%p230_p3), %vm324_vm1, %v1921_v2  ;;  %330 = vst.msk [vmem:[#allocation2 + $0x28] sm:$0xff] (!%p230_p3), %vm324_vm1, %v1921_v2 }
   0xb   : > { %331 = vst.msk [vmem:[#allocation2 + $0x30] sm:$0xff] (!%p230_p3), %vm324_vm1, %v1921_v2  ;;  %332 = vst.msk [vmem:[#allocation2 + $0x38] sm:$0xff] (!%p230_p3), %vm324_vm1, %v1921_v2 }
   0xc   : > { %333 = vst.msk [vmem:[#allocation2 + $0x40] sm:$0xff] (!%p230_p3), %vm324_vm1, %v1921_v2  ;;  %334 = vst.msk [vmem:[#allocation2 + $0x48] sm:$0xff] (!%p230_p3), %vm324_vm1, %v1921_v2  ;;  %1687 = vmatpush3.bf16.msra.mxu0 (!%p230_p3), %v564_v3  ;;  %1723 = vmatpush3.bf16.msra.mxu1 (!%p230_p3), %v564_v3 }
   0xd   : > { %335 = vst.msk [vmem:[#allocation2 + $0x50] sm:$0xff] (!%p230_p3), %vm324_vm1, %v1921_v2  ;;  %336 = vst.msk [vmem:[#allocation2 + $0x58] sm:$0xff] (!%p230_p3), %vm324_vm1, %v1921_v2 }
   0xe   : > { %337 = vst.msk [vmem:[#allocation2 + $0x60] sm:$0xff] %vm324_vm1, %v1921_v2  ;;  %338 = vst.msk [vmem:[#allocation2 + $0x68] sm:$0xff] %vm324_vm1, %v1921_v2  ;;  %s2512_s23 = smov (!%p1976_p4, %s1480_s23), 63 }
   0xf   : > { %339 = vst.msk [vmem:[#allocation2 + $0x70] sm:$0xff] %vm324_vm1, %v1921_v2  ;;  %340 = vst.msk [vmem:[#allocation2 + $0x78] sm:$0xff] %vm324_vm1, %v1921_v2  ;;  %s2019_s25 = sshll.u32 %s2512_s23, 2  ;;  %v359_v20 = vld [vmem:[#allocation2 + $0x10] sm:$0xff]  ;;  %v357_v22 = vld [vmem:[#allocation2] sm:$0xff] }
  0x10   : > { %341 = vst.msk [vmem:[#allocation2 + $0x80] sm:$0xff] %vm324_vm1, %v1921_v2  ;;  %342 = vst.msk [vmem:[#allocation2 + $0x88] sm:$0xff] %vm324_vm1, %v1921_v2  ;;  %s2025_s28 = scalar_lea.vmem %s2487_s0, %s2019_s25  ;;  %s2063_s5 = scalar_lea.vmem %s2490_s3, %s2019_s25  ;;  %v360_v25 = vld [vmem:[#allocation2 + $0x18] sm:$0xff]  ;;  %v358_v30 = vld [vmem:[#allocation2 + $0x8] sm:$0xff] }
  0x11   : > { %343 = vst.msk [vmem:[#allocation2 + $0x90] sm:$0xff] %vm324_vm1, %v1921_v2  ;;  %344 = vst.msk [vmem:[#allocation2 + $0x98] sm:$0xff] %vm324_vm1, %v1921_v2  ;;  %v1753_v4 = vld [vmem:[%s2025_s28] sm:$0xff]   ;;  %v1755_v6 = vld [vmem:[%s2025_s28 + $0x8] sm:$0xff]   ;;  %s2281_s10 = scalar_lea.vmem %s2491_s4, %s2019_s25 }
  0x12   : > { %345 = vst.msk [vmem:[#allocation2 + $0xa0] sm:$0xff] %vm324_vm1, %v1921_v2  ;;  %346 = vst.msk [vmem:[#allocation2 + $0xa8] sm:$0xff] %vm324_vm1, %v1921_v2  ;;  %v1754_v5 = vld [vmem:[%s2025_s28 + $0x40] sm:$0xff]   ;;  %1688 = vmatprep.mubr.msk.bf16.mxu0 %vm513_vm2, %v1753_v4  ;;  %v1756_v7 = vld [vmem:[%s2025_s28 + $0x48] sm:$0xff]  }
  0x13   : > { %347 = vst.msk [vmem:[#allocation2 + $0xb0] sm:$0xff] %vm324_vm1, %v1921_v2  ;;  %348 = vst.msk [vmem:[#allocation2 + $0xb8] sm:$0xff] %vm324_vm1, %v1921_v2  ;;  %1704 = vmatprep.mubr.msk.bf16.mxu1 %vm513_vm2, %v1754_v5  ;;  %1689 = vmatmul.mubr.msk.bf16.vlgmr.msra.gmra.mrb[0].mxu0 %vm513_vm2, %v1755_v6  ;;  %v1757_v8 = vld [vmem:[%s2025_s28 + $0x10] sm:$0xff]   ;;  %v1759_v10 = vld [vmem:[%s2025_s28 + $0x18] sm:$0xff]  }
  0x14   : > { %349 = vst.msk [vmem:[#allocation2 + $0xc0] sm:$0xff] %vm324_vm1, %v1921_v2  ;;  %350 = vst.msk [vmem:[#allocation2 + $0xc8] sm:$0xff] %vm324_vm1, %v1921_v2  ;;  %1705 = vmatmul.mubr.msk.bf16.vlgmr.msra.gmra.mrb[0].mxu1 %vm513_vm2, %v1756_v7  ;;  %v1758_v9 = vld [vmem:[%s2025_s28 + $0x50] sm:$0xff]   ;;  %1692 = vmatprep.mubr.msk.bf16.mxu0 %vm513_vm2, %v1757_v8  ;;  %v1760_v11 = vld [vmem:[%s2025_s28 + $0x58] sm:$0xff]  }
  0x15   : > { %351 = vst.msk [vmem:[#allocation2 + $0xd0] sm:$0xff] %vm324_vm1, %v1921_v2  ;;  %352 = vst.msk [vmem:[#allocation2 + $0xd8] sm:$0xff] %vm324_vm1, %v1921_v2  ;;  %1708 = vmatprep.mubr.msk.bf16.mxu1 %vm513_vm2, %v1758_v9  ;;  %v1761_v12 = vld [vmem:[%s2025_s28 + $0x20] sm:$0xff]   ;;  %v1763_v14 = vld [vmem:[%s2025_s28 + $0x28] sm:$0xff]  }
  0x16   : > { %353 = vst.msk [vmem:[#allocation2 + $0xe0] sm:$0xff] %vm324_vm1, %v1921_v2  ;;  %354 = vst.msk [vmem:[#allocation2 + $0xe8] sm:$0xff] %vm324_vm1, %v1921_v2  ;;  %v1762_v13 = vld [vmem:[%s2025_s28 + $0x60] sm:$0xff]   ;;  %v1764_v15 = vld [vmem:[%s2025_s28 + $0x68] sm:$0xff]  }
  0x17   : > { %355 = vst.msk [vmem:[#allocation2 + $0xf0] sm:$0xff] %vm324_vm1, %v1921_v2  ;;  %356 = vst.msk [vmem:[#allocation2 + $0xf8] sm:$0xff] %vm324_vm1, %v1921_v2  ;;  %v1765_v16 = vld [vmem:[%s2025_s28 + $0x30] sm:$0xff]   ;;  %v1767_v18 = vld [vmem:[%s2025_s28 + $0x38] sm:$0xff]  }
  0x18   : > { %v1766_v17 = vld [vmem:[%s2025_s28 + $0x70] sm:$0xff]   ;;  %v1768_v19 = vld [vmem:[%s2025_s28 + $0x78] sm:$0xff]   ;;  %v373_v24 = vld [vmem:[#allocation2 + $0x80] sm:$0xff] }
  0x19   : > { %v375_v21 = vld [vmem:[#allocation2 + $0x90] sm:$0xff]  ;;  %v376_v29 = vld [vmem:[#allocation2 + $0x98] sm:$0xff]  ;;  %v374_v35 = vld [vmem:[#allocation2 + $0x88] sm:$0xff] }
  0x1a   : > { %v2067_v36 = vld [vmem:[%s2063_s5 + $0x8] sm:$0xff]   ;;  %v2075_v42 = vld [vmem:[%s2063_s5] sm:$0xff]   ;;  %v2083_v48 = vld [vmem:[%s2063_s5 + $0x18] sm:$0xff]  }
  0x1b   : > { %1693 = vmatmul.mubr.msk.bf16.gmra.mrb[4].mxu0 %vm513_vm2, %v1759_v10  ;;  %v2070_v37 = vld [vmem:[%s2063_s5 + $0x48] sm:$0xff]   ;;  %v2078_v43 = vld [vmem:[%s2063_s5 + $0x40] sm:$0xff]   ;;  %v2086_v49 = vld [vmem:[%s2063_s5 + $0x58] sm:$0xff]   ;;  %v1593_v50 = vunpack.c.l.bf16 %v2067_v36 }
  0x1c   : > { %1709 = vmatmul.mubr.msk.bf16.gmra.mrb[4].mxu1 %vm513_vm2, %v1760_v11  ;;  %1696 = vmatprep.mubr.msk.bf16.mxu0 %vm513_vm2, %v1761_v12  ;;  %v1625_v51 = vunpack.c.l.bf16 %v2070_v37  ;;  %v363_v52 = vld [vmem:[#allocation2 + $0x30] sm:$0xff]  ;;  %v361_v60 = vld [vmem:[#allocation2 + $0x20] sm:$0xff]  ;;  %v364_v4 = vld [vmem:[#allocation2 + $0x38] sm:$0xff] }
  0x1d   : > { %1712 = vmatprep.mubr.msk.bf16.mxu1 %vm513_vm2, %v1762_v13  ;;  %v2093_v53 = vld [vmem:[%s2063_s5 + $0x10] sm:$0xff]   ;;  %v377_v3 = vld [vmem:[#allocation2 + $0xa0] sm:$0xff]  ;;  %v380_v11 = vld [vmem:[#allocation2 + $0xb8] sm:$0xff] }
  0x1e   : > { %v2096_v54 = vld [vmem:[%s2063_s5 + $0x50] sm:$0xff]   ;;  %v362_v12 = vld [vmem:[#allocation2 + $0x28] sm:$0xff]  ;;  %v369_v57 = vld [vmem:[#allocation2 + $0x60] sm:$0xff] }
  0x1f   : > { %v379_v59 = vld [vmem:[#allocation2 + $0xb0] sm:$0xff]  ;;  %v382_v1 = vld [vmem:[#allocation2 + $0xc8] sm:$0xff] }
  0x23   : > { %1697 = vmatmul.mubr.msk.bf16.gmra.mrb[8].mxu0 %vm513_vm2, %v1763_v14 }
  0x24   : > { %1713 = vmatmul.mubr.msk.bf16.gmra.mrb[8].mxu1 %vm513_vm2, %v1764_v15  ;;  %1700 = vmatprep.mubr.msk.bf16.mxu0 %vm513_vm2, %v1765_v16 }
  0x25   : > { %1716 = vmatprep.mubr.msk.bf16.mxu1 %vm513_vm2, %v1766_v17 }
  0x2b   : > { %1701 = vmatmul.mubr.msk.bf16.gmra.mrb[12].mxu0 %vm513_vm2, %v1767_v18 }
  0x2c   : > { %1717 = vmatmul.mubr.msk.bf16.gmra.mrb[12].mxu1 %vm513_vm2, %v1768_v19 }
  0xe6   : > { %v1690_v23 = vpop.f32.mrb[0].mxu0 }
  0xe7   : > { %v729_v26 = vadd.f32 %v1690_v23, %v359_v20  ;;  %v1706_v27 = vpop.f32.mrb[0].mxu1  ;;  %v600_v28 = vpop.f32.mrb[1].mxu0  ;;  %v378_v20 = vld [vmem:[#allocation2 + $0xa8] sm:$0xff] }
  0xe8   : > { %v745_v31 = vadd.f32 %v1706_v27, %v375_v21  ;;  %v727_v32 = vadd.f32 %v600_v28, %v357_v22  ;;  %v664_v33 = vpop.f32.mrb[1].mxu1  ;;  %v1691_v34 = vpop.f32.mrb[2].mxu0 }
  0xe9   : > { %762 = vst.msk [vmem:[#allocation2 + $0x10] sm:$0xff] %vm324_vm1, %v729_v26  ;;  %v743_v38 = vadd.f32 %v664_v33, %v373_v24  ;;  %v730_v39 = vadd.f32 %v1691_v34, %v360_v25  ;;  %v1707_v40 = vpop.f32.mrb[2].mxu1  ;;  %v603_v41 = vpop.f32.mrb[3].mxu0 }
  0xea   : > { %778 = vst.msk [vmem:[#allocation2 + $0x90] sm:$0xff] %vm324_vm1, %v745_v31  ;;  %760 = vst.msk [vmem:[#allocation2] sm:$0xff] %vm324_vm1, %v727_v32  ;;  %v746_v44 = vadd.f32 %v1707_v40, %v376_v29  ;;  %v728_v45 = vadd.f32 %v603_v41, %v358_v30  ;;  %v667_v46 = vpop.f32.mrb[3].mxu1 }
  0xeb   : > { %776 = vst.msk [vmem:[#allocation2 + $0x80] sm:$0xff] %vm324_vm1, %v743_v38  ;;  %763 = vst.msk [vmem:[#allocation2 + $0x18] sm:$0xff] %vm324_vm1, %v730_v39  ;;  %v744_v47 = vadd.f32 %v667_v46, %v374_v35 }
  0xec   : > { %779 = vst.msk [vmem:[#allocation2 + $0x98] sm:$0xff] %vm324_vm1, %v746_v44  ;;  %761 = vst.msk [vmem:[#allocation2 + $0x8] sm:$0xff] %vm324_vm1, %v728_v45 }
  0xed   : > { %777 = vst.msk [vmem:[#allocation2 + $0x88] sm:$0xff] %vm324_vm1, %v744_v47 }
  0xee   : > { %v1694_v0 = vpop.f32.mrb[4].mxu0 }
  0xef   : > { %v733_v5 = vadd.f32 %v1694_v0, %v363_v52  ;;  %v1710_v6 = vpop.f32.mrb[4].mxu1  ;;  %v616_v7 = vpop.f32.mrb[5].mxu0  ;;  %v367_v0 = vld [vmem:[#allocation2 + $0x50] sm:$0xff] }
  0xf0   : > { %v797_v13 = vld [vmem:[#allocation2 + $0x10] sm:$0xff]  ;;  %v749_v14 = vadd.f32 %v1710_v6, %v379_v59  ;;  %v731_v15 = vadd.f32 %v616_v7, %v361_v60  ;;  %v680_v16 = vpop.f32.mrb[5].mxu1  ;;  %v1695_v17 = vpop.f32.mrb[6].mxu0 }
  0xf1   : > { %v2118_v21 = vadd.f32 %v2106_v61, %v797_v13  ;;  %v813_v22 = vld [vmem:[#allocation2 + $0x90] sm:$0xff]  ;;  %v795_v23 = vld [vmem:[#allocation2] sm:$0xff]  ;;  %766 = vst.msk [vmem:[#allocation2 + $0x30] sm:$0xff] %vm324_vm1, %v733_v5  ;;  %v747_v24 = vadd.f32 %v680_v16, %v377_v3  ;;  %v734_v25 = vadd.f32 %v1695_v17, %v364_v4  ;;  %v1711_v26 = vpop.f32.mrb[6].mxu1  ;;  %v619_v27 = vpop.f32.mrb[7].mxu0 }
  0xf2   : > { %v2123_v29 = vadd.f32 %v2106_v61, %v813_v22  ;;  %v2126_v30 = vadd.f32 %v2106_v61, %v795_v23  ;;  %v811_v31 = vld [vmem:[#allocation2 + $0x80] sm:$0xff]  ;;  %v798_v32 = vld [vmem:[#allocation2 + $0x18] sm:$0xff]  ;;  %782 = vst.msk [vmem:[#allocation2 + $0xb0] sm:$0xff] %vm324_vm1, %v749_v14  ;;  %764 = vst.msk [vmem:[#allocation2 + $0x20] sm:$0xff] %vm324_vm1, %v731_v15  ;;  %v750_v33 = vadd.f32 %v1711_v26, %v380_v11  ;;  %v683_v35 = vpop.f32.mrb[7].mxu1 }
  0xf3   : > { %v732_v34 = vadd.f32 %v619_v27, %v362_v12  ;;  %v868_v38 = vsub.f32 0.0, %v2118_v21  ;;  %v2132_v39 = vadd.f32 %v2106_v61, %v811_v31  ;;  %v2135_v40 = vadd.f32 %v2106_v61, %v798_v32  ;;  %v814_v41 = vld [vmem:[#allocation2 + $0x98] sm:$0xff]  ;;  %v796_v44 = vld [vmem:[#allocation2 + $0x8] sm:$0xff]  ;;  %780 = vst.msk [vmem:[#allocation2 + $0xa0] sm:$0xff] %vm324_vm1, %v747_v24  ;;  %767 = vst.msk [vmem:[#allocation2 + $0x38] sm:$0xff] %vm324_vm1, %v734_v25 }
  0xf4   : > { %v748_v45 = vadd.f32 %v683_v35, %v378_v20  ;;  %v884_v46 = vsub.f32 0.0, %v2123_v29  ;;  %v866_v47 = vsub.f32 0.0, %v2126_v30  ;;  %v2142_v52 = vadd.f32 %v2106_v61, %v814_v41  ;;  %v812_v60 = vld [vmem:[#allocation2 + $0x88] sm:$0xff]  ;;  %783 = vst.msk [vmem:[#allocation2 + $0xb8] sm:$0xff] %vm324_vm1, %v750_v33  ;;  %v383_v7 = vld [vmem:[#allocation2 + $0xd0] sm:$0xff]  ;;  %v365_v11 = vld [vmem:[#allocation2 + $0x40] sm:$0xff] }
  0xf5   : > { %v2145_v59 = vadd.f32 %v2106_v61, %v796_v44  ;;  %765 = vst.msk [vmem:[#allocation2 + $0x28] sm:$0xff] %vm324_vm1, %v732_v34  ;;  %v902_v3 = vmul.f32 1.442695, %v868_v38  ;;  %v882_v4 = vsub.f32 0.0, %v2132_v39  ;;  %v869_v5 = vsub.f32 0.0, %v2135_v40 }
  0xf6   : > { %v2152_v6 = vadd.f32 %v2106_v61, %v812_v60  ;;  %781 = vst.msk [vmem:[#allocation2 + $0xa8] sm:$0xff] %vm324_vm1, %v748_v45  ;;  %v934_v12 = vmul.f32 1.442695, %v884_v46  ;;  %v898_v13 = vmul.f32 1.442695, %v866_v47  ;;  %v885_v14 = vsub.f32 0.0, %v2142_v52 }
  0xf7   : > { %v867_v15 = vsub.f32 0.0, %v2145_v59  ;;  %1769 = vpow2.f32 %v902_v3  ;;  %v930_v16 = vmul.f32 1.442695, %v882_v4  ;;  %v904_v17 = vmul.f32 1.442695, %v869_v5  ;;  %v1698_v22 = vpop.f32.mrb[8].mxu0 }
  0xf8   : > { %v883_v20 = vsub.f32 0.0, %v2152_v6  ;;  %1771 = vpow2.f32 %v934_v12  ;;  %v936_v23 = vmul.f32 1.442695, %v885_v14  ;;  %v801_v25 = vld [vmem:[#allocation2 + $0x30] sm:$0xff]  ;;  %v737_v26 = vadd.f32 %v1698_v22, %v367_v0  ;;  %v1714_v27 = vpop.f32.mrb[8].mxu1  ;;  %v632_v38 = vpop.f32.mrb[9].mxu0 }
  0xf9   : > { %v900_v24 = vmul.f32 1.442695, %v867_v15  ;;  %1773 = vpow2.f32 %v898_v13  ;;  %v2159_v32 = vadd.f32 %v2106_v61, %v801_v25  ;;  %v817_v33 = vld [vmem:[#allocation2 + $0xb0] sm:$0xff]  ;;  %v799_v34 = vld [vmem:[#allocation2 + $0x20] sm:$0xff]  ;;  %v753_v35 = vadd.f32 %v1714_v27, %v383_v7  ;;  %v696_v41 = vpop.f32.mrb[9].mxu1  ;;  %v1699_v0 = vpop.f32.mrb[10].mxu0 }
  0xfa   : > { %v932_v31 = vmul.f32 1.442695, %v883_v20  ;;  %1775 = vpow2.f32 %v930_v16  ;;  %v2162_v44 = vadd.f32 %v2106_v61, %v817_v33  ;;  %v2165_v45 = vadd.f32 %v2106_v61, %v799_v34  ;;  %v815_v46 = vld [vmem:[#allocation2 + $0xa0] sm:$0xff]  ;;  %v802_v47 = vld [vmem:[#allocation2 + $0x38] sm:$0xff]  ;;  %770 = vst.msk [vmem:[#allocation2 + $0x50] sm:$0xff] %vm324_vm1, %v737_v26  ;;  %v1715_v3 = vpop.f32.mrb[10].mxu1 }
  0xfb   : > { %v735_v60 = vadd.f32 %v632_v38, %v365_v11  ;;  %1777 = vpow2.f32 %v904_v17  ;;  %v872_v4 = vsub.f32 0.0, %v2159_v32  ;;  %v2170_v5 = vadd.f32 %v2106_v61, %v815_v46  ;;  %v818_v12 = vld [vmem:[#allocation2 + $0xb8] sm:$0xff]  ;;  %786 = vst.msk [vmem:[#allocation2 + $0xd0] sm:$0xff] %vm324_vm1, %v753_v35  ;;  %v2176_v13 = vpop.f32.mrb[11].mxu0  ;;  %v2178_v14 = vpop.f32.mrb[11].mxu1  ;;  %v381_v20 = vld [vmem:[#allocation2 + $0xc0] sm:$0xff] }
  0xfc   : > { %v2173_v7 = vadd.f32 %v2106_v61, %v802_v47  ;;  %1779 = vpow2.f32 %v936_v23  ;;  %v888_v11 = vsub.f32 0.0, %v2162_v44  ;;  %v870_v15 = vsub.f32 0.0, %v2165_v45  ;;  %v800_v17 = vld [vmem:[#allocation2 + $0x28] sm:$0xff]  ;;  %v368_v22 = vld [vmem:[#allocation2 + $0x58] sm:$0xff] }
  0xfd   : > { %v2183_v16 = vadd.f32 %v2106_v61, %v818_v12  ;;  %768 = vst.msk [vmem:[#allocation2 + $0x40] sm:$0xff] %vm324_vm1, %v735_v60  ;;  %1781 = vpow2.f32 %v900_v24  ;;  %v910_v25 = vmul.f32 1.442695, %v872_v4  ;;  %v886_v26 = vsub.f32 0.0, %v2170_v5  ;;  %v816_v33 = vld [vmem:[#allocation2 + $0xa8] sm:$0xff]  ;;  %v384_v23 = vld [vmem:[#allocation2 + $0xd8] sm:$0xff] }
  0xfe   : > { %v873_v27 = vsub.f32 0.0, %v2173_v7  ;;  %1783 = vpow2.f32 %v932_v31  ;;  %v942_v34 = vmul.f32 1.442695, %v888_v11  ;;  %v906_v35 = vmul.f32 1.442695, %v870_v15  ;;  %v2189_v46 = vpop.f32.mrb[12].mxu0 }
  0xff   : > { %v889_v38 = vsub.f32 0.0, %v2183_v16  ;;  %1785 = vpow2.f32 %v910_v25  ;;  %v938_v47 = vmul.f32 1.442695, %v886_v26  ;;  %v2192_v12 = vadd.f32 %v2106_v61, %v800_v17  ;;  %v2194_v24 = vpop.f32.mrb[12].mxu1  ;;  %v2196_v4 = vpop.f32.mrb[13].mxu0 }
 0x100   : > { %v912_v60 = vmul.f32 1.442695, %v873_v27  ;;  %1787 = vpow2.f32 %v942_v34  ;;  %v2201_v31 = vadd.f32 %v2106_v61, %v816_v33  ;;  %v751_v11 = vadd.f32 %v696_v41, %v381_v20  ;;  %v2203_v15 = vpop.f32.mrb[13].mxu1  ;;  %v2205_v19 = vpop.f32.mrb[14].mxu0 }
 0x101   : > { %v2198_v28 = vmul.f32 1.442695, %v889_v38  ;;  %v1770_v25 = vpop.eup %1769  ;;  %1789 = vpow2.f32 %v906_v35  ;;  %v871_v17 = vsub.f32 0.0, %v2192_v12  ;;  %v805_v26 = vld [vmem:[#allocation2 + $0x50] sm:$0xff]  ;;  %v738_v27 = vadd.f32 %v1699_v0, %v368_v22  ;;  %v2208_v10 = vpop.f32.mrb[14].mxu1 }
 0x102   : > { %v754_v18 = vadd.f32 %v1715_v3, %v384_v23  ;;  %v2210_v34 = vpop.f32.mrb[15].mxu0  ;;  %v1772_v38 = vpop.eup %1771  ;;  %v964_v9 = vadd.f32 1.0, %v1770_v25  ;;  %1791 = vpow2.f32 %v938_v47  ;;  %v887_v41 = vsub.f32 0.0, %v2201_v31  ;;  %v821_v33 = vld [vmem:[#allocation2 + $0xd0] sm:$0xff]  ;;  %784 = vst.msk [vmem:[#allocation2 + $0xc0] sm:$0xff] %vm324_vm1, %v751_v11  ;;  %v366_v47 = vld [vmem:[#allocation2 + $0x48] sm:$0xff] }
 0x103   : > { %v2214_v20 = vadd.f32 %v2106_v61, %v805_v26  ;;  %v2217_v35 = vpop.f32.mrb[15].mxu1  ;;  %v1774_v8 = vpop.eup %1773  ;;  %v980_v0 = vadd.f32 1.0, %v1772_v38  ;;  %1793 = vpow2.f32 %v912_v60  ;;  %v2219_v3 = vmul.f32 1.442695, %v871_v17  ;;  %771 = vst.msk [vmem:[#allocation2 + $0x58] sm:$0xff] %vm324_vm1, %v738_v27  ;;  %v371_v27 = vld [vmem:[#allocation2 + $0x70] sm:$0xff] }
 0x104   : > { %v2222_v22 = vadd.f32 %v2106_v61, %v821_v33  ;;  %v803_v23 = vld [vmem:[#allocation2 + $0x40] sm:$0xff]  ;;  %787 = vst.msk [vmem:[#allocation2 + $0xd8] sm:$0xff] %vm324_vm1, %v754_v18  ;;  %v1776_v25 = vpop.eup %1775  ;;  %1795 = vrcp.f32 %v964_v9  ;;  %v962_v26 = vadd.f32 1.0, %v1774_v8  ;;  %v2226_v11 = vmul.f32 1.442695, %v887_v41  ;;  %v387_v9 = vld [vmem:[#allocation2 + $0xf0] sm:$0xff] }
 0x105   : > { %v876_v2 = vsub.f32 0.0, %v2214_v20  ;;  %v1778_v38 = vpop.eup %1777  ;;  %1797 = vrcp.f32 %v980_v0  ;;  %v978_v60 = vadd.f32 1.0, %v1776_v25  ;;  %v2231_v33 = vadd.f32 %v2106_v61, %v803_v23 }
 0x106   : > { %v892_v17 = vsub.f32 0.0, %v2222_v22  ;;  %v1780_v63 = vpop.eup %1779  ;;  %1799 = vrcp.f32 %v962_v26  ;;  %v965_v18 = vadd.f32 1.0, %v1778_v38  ;;  %v736_v8 = vadd.f32 %v2176_v13, %v366_v47 }
 0x107   : > { %v2233_v62 = vmul.f32 1.442695, %v876_v2  ;;  %v1782_v41 = vpop.eup %1781  ;;  %1801 = vrcp.f32 %v978_v60  ;;  %v981_v58 = vadd.f32 1.0, %v1780_v63  ;;  %v874_v25 = vsub.f32 0.0, %v2231_v33 }
 0x108   : > { %v2236_v0 = vmul.f32 1.442695, %v892_v17  ;;  %v1784_v23 = vpop.eup %1783  ;;  %1803 = vrcp.f32 %v965_v18  ;;  %v963_v56 = vadd.f32 1.0, %v1782_v41  ;;  %769 = vst.msk [vmem:[#allocation2 + $0x48] sm:$0xff] %vm324_vm1, %v736_v8  ;;  %v752_v26 = vadd.f32 %v2178_v14, %v382_v1  ;;  %v385_v17 = vld [vmem:[#allocation2 + $0xe0] sm:$0xff] }
 0x109   : > { %v741_v2 = vadd.f32 %v2189_v46, %v371_v27  ;;  %v1786_v38 = vpop.eup %1785  ;;  %1805 = vrcp.f32 %v981_v58  ;;  %v979_v13 = vadd.f32 1.0, %v1784_v23  ;;  %v2242_v47 = vmul.f32 1.442695, %v874_v25  ;;  %v819_v63 = vld [vmem:[#allocation2 + $0xc0] sm:$0xff]  ;;  %v372_v27 = vld [vmem:[#allocation2 + $0x78] sm:$0xff] }
 0x10a   : > { %v757_v60 = vadd.f32 %v2194_v24, %v387_v9  ;;  %v1788_v55 = vpop.eup %1787  ;;  %1807 = vrcp.f32 %v963_v56  ;;  %v968_v18 = vadd.f32 1.0, %v1786_v38  ;;  %v2246_v41 = vadd.f32 %v2106_v61, %v819_v63  ;;  %v806_v8 = vld [vmem:[#allocation2 + $0x58] sm:$0xff]  ;;  %785 = vst.msk [vmem:[#allocation2 + $0xc8] sm:$0xff] %vm324_vm1, %v752_v26 }
 0x10b   : > { %v822_v1 = vld [vmem:[#allocation2 + $0xd8] sm:$0xff]  ;;  %774 = vst.msk [vmem:[#allocation2 + $0x70] sm:$0xff] %vm324_vm1, %v741_v2  ;;  %v739_v58 = vadd.f32 %v2196_v4, %v369_v57  ;;  %v1790_v14 = vpop.eup %1789  ;;  %1809 = vrcp.f32 %v979_v13  ;;  %v984_v46 = vadd.f32 1.0, %v1788_v55  ;;  %v2252_v24 = vadd.f32 %v2106_v61, %v806_v8  ;;  %v370_v8 = vld [vmem:[#allocation2 + $0x68] sm:$0xff] }
 0x10c   : > { %v2255_v56 = vadd.f32 %v2106_v61, %v822_v1  ;;  %790 = vst.msk [vmem:[#allocation2 + $0xf0] sm:$0xff] %vm324_vm1, %v757_v60  ;;  %v1792_v9 = vpop.eup %1791  ;;  %1811 = vrcp.f32 %v968_v18  ;;  %v966_v25 = vadd.f32 1.0, %v1790_v14  ;;  %v890_v23 = vsub.f32 0.0, %v2246_v41  ;;  %v388_v38 = vld [vmem:[#allocation2 + $0xf8] sm:$0xff] }
 0x10d   : > { %772 = vst.msk [vmem:[#allocation2 + $0x60] sm:$0xff] %vm324_vm1, %v739_v58  ;;  %v755_v57 = vadd.f32 %v2203_v15, %v385_v17  ;;  %v1794_v4 = vpop.eup %1793  ;;  %1813 = vrcp.f32 %v984_v46  ;;  %v982_v55 = vadd.f32 1.0, %v1792_v9  ;;  %v877_v26 = vsub.f32 0.0, %v2252_v24 }
 0x10e   : > { %v893_v2 = vsub.f32 0.0, %v2255_v56  ;;  %v1796_v13 = vpop.eup %1795  ;;  %1815 = vrcp.f32 %v966_v25  ;;  %v969_v63 = vadd.f32 1.0, %v1794_v4  ;;  %v946_v60 = vmul.f32 1.442695, %v890_v23 }
 0x10f   : > { %788 = vst.msk [vmem:[#allocation2 + $0xe0] sm:$0xff] %vm324_vm1, %v755_v57  ;;  %v742_v18 = vadd.f32 %v2205_v19, %v372_v27  ;;  %v1798_v1 = vpop.eup %1797  ;;  %v1060_v15 = vmul.f32 %v1796_v13, %v2118_v21  ;;  %1817 = vrcp.f32 %v982_v55  ;;  %v920_v17 = vmul.f32 1.442695, %v877_v26  ;;  %v804_v14 = vld [vmem:[#allocation2 + $0x48] sm:$0xff] }
 0x110   : > { %v952_v58 = vmul.f32 1.442695, %v893_v2  ;;  %v1800_v46 = vpop.eup %1799  ;;  %v1076_v9 = vmul.f32 %v1798_v1, %v2123_v29  ;;  %1819 = vrcp.f32 %v969_v63  ;;  %v2268_v25 = vadd.f32 %v2106_v61, %v804_v14 }
 0x111   : > { %775 = vst.msk [vmem:[#allocation2 + $0x78] sm:$0xff] %vm324_vm1, %v742_v18  ;;  %v758_v19 = vadd.f32 %v2208_v10, %v388_v38  ;;  %v1802_v27 = vpop.eup %1801  ;;  %v1156_v21 = vadd.f32 %v1593_v50, %v1060_v15  ;;  %v1058_v23 = vmul.f32 %v1800_v46, %v2126_v30  ;;  %1821 = vpow2.f32 %v2198_v28 }
 0x112   : > { %v740_v57 = vadd.f32 %v2210_v34, %v370_v8  ;;  %v1804_v4 = vpop.eup %1803  ;;  %v1172_v29 = vadd.f32 %v1625_v51, %v1076_v9  ;;  %v1074_v10 = vmul.f32 %v1802_v27, %v2132_v39  ;;  %1823 = vpow2.f32 %v2219_v3  ;;  %v820_v27 = vld [vmem:[#allocation2 + $0xc8] sm:$0xff] }
 0x113   : > { %v875_v50 = vsub.f32 0.0, %v2268_v25  ;;  %791 = vst.msk [vmem:[#allocation2 + $0xf8] sm:$0xff] %vm324_vm1, %v758_v19  ;;  %v1806_v28 = vpop.eup %1805  ;;  %v1557_v30 = vpack.c.bf16 %v1156_v21, %v1156_v21  ;;  %v2493_v34 = vunpack.c.l.bf16 %v2075_v42  ;;  %v1061_v26 = vmul.f32 %v1804_v4, %v2135_v40 }
 0x114   : > { %1825 = vpow2.f32 %v2226_v11  ;;  %773 = vst.msk [vmem:[#allocation2 + $0x68] sm:$0xff] %vm324_vm1, %v740_v57  ;;  %v1808_v51 = vpop.eup %1807  ;;  %v1573_v39 = vpack.c.bf16 %v1172_v29, %v1172_v29  ;;  %v2494_v3 = vunpack.c.l.bf16 %v2078_v43  ;;  %v1077_v38 = vmul.f32 %v1806_v28, %v2142_v52 }
 0x115   : > { %v1154_v55 = vadd.f32 %v2493_v34, %v1058_v23  ;;  %1827 = vpow2.f32 %v2233_v62  ;;  %v1810_v13 = vpop.eup %1809  ;;  %1317 = vst.msk [vmem:[%s2281_s10 + $0x8] sm:$0xf] %vm1314_vm3, %v1557_v30  ;;  %v2495_v40 = vunpack.c.h.bf16 %v2067_v36  ;;  %v1059_v11 = vmul.f32 %v1808_v51, %v2145_v59 }
 0x116   : > { %v1170_v2 = vadd.f32 %v2494_v3, %v1074_v10  ;;  %1829 = vpow2.f32 %v2236_v0  ;;  %v1812_v8 = vpop.eup %1811  ;;  %1333 = vst.msk [vmem:[%s2281_s10 + $0x48] sm:$0xf] %vm1314_vm3, %v1573_v39  ;;  %v2496_v52 = vunpack.c.h.bf16 %v2070_v37  ;;  %v1075_v62 = vmul.f32 %v1810_v13, %v2152_v6  ;;  %v2343_v3 = vld [vmem:[%s2063_s5 + $0x28] sm:$0xff]  }
 0x117   : > { %v1555_v63 = vpack.c.bf16 %v1154_v55, %v1154_v55  ;;  %v1157_v18 = vadd.f32 %v2495_v40, %v1061_v26  ;;  %1831 = vpow2.f32 %v2242_v47  ;;  %v1814_v14 = vpop.eup %1813  ;;  %v2497_v59 = vunpack.c.h.bf16 %v2075_v42  ;;  %v809_v55 = vld [vmem:[#allocation2 + $0x70] sm:$0xff] }
 0x118   : > { %v1571_v1 = vpack.c.bf16 %v1170_v2, %v1170_v2  ;;  %v1173_v15 = vadd.f32 %v2496_v52, %v1077_v38  ;;  %v1064_v0 = vmul.f32 %v1812_v8, %v2159_v32  ;;  %1833 = vpow2.f32 %v946_v60  ;;  %v1816_v9 = vpop.eup %1815 }
 0x119   : > { %1315 = vst.msk [vmem:[%s2281_s10] sm:$0xf] %vm1314_vm3, %v1555_v63  ;;  %v1558_v36 = vpack.c.bf16 %v1157_v18, %v1157_v18  ;;  %v1155_v46 = vadd.f32 %v2497_v59, %v1059_v11  ;;  %v2498_v6 = vunpack.c.h.bf16 %v2078_v43  ;;  %v1080_v47 = vmul.f32 %v1814_v14, %v2162_v44  ;;  %v1818_v21 = vpop.eup %1817  ;;  %v825_v18 = vld [vmem:[#allocation2 + $0xf0] sm:$0xff] }
 0x11a   : > { %1331 = vst.msk [vmem:[%s2281_s10 + $0x40] sm:$0xf] %vm1314_vm3, %v1571_v1  ;;  %v1574_v37 = vpack.c.bf16 %v1173_v15, %v1173_v15  ;;  %1835 = vpow2.f32 %v920_v17  ;;  %v2499_v32 = vunpack.c.l.bf16 %v2083_v48  ;;  %v1062_v60 = vmul.f32 %v1816_v9, %v2165_v45  ;;  %v1820_v57 = vpop.eup %1819  ;;  %v807_v15 = vld [vmem:[#allocation2 + $0x60] sm:$0xff] }
 0x11b   : > { %v1171_v19 = vadd.f32 %v2498_v6, %v1075_v62  ;;  %1318 = vst.msk [vmem:[%s2281_s10 + $0xc] sm:$0xf] %vm1314_vm3, %v1558_v36  ;;  %v1556_v42 = vpack.c.bf16 %v1155_v46, %v1155_v46  ;;  %1837 = vpow2.f32 %v952_v58  ;;  %v2500_v44 = vunpack.c.l.bf16 %v2086_v49  ;;  %v1822_v10 = vpop.eup %1821  ;;  %v823_v62 = vld [vmem:[#allocation2 + $0xe0] sm:$0xff] }
 0x11c   : > { %v1160_v23 = vadd.f32 %v2499_v32, %v1064_v0  ;;  %1334 = vst.msk [vmem:[%s2281_s10 + $0x4c] sm:$0xf] %vm1314_vm3, %v1574_v37  ;;  %v1078_v4 = vmul.f32 %v1818_v21, %v2170_v5  ;;  %v916_v29 = vmul.f32 1.442695, %v875_v50  ;;  %v2501_v45 = vunpack.c.l.bf16 %v2093_v53  ;;  %v1824_v26 = vpop.eup %1823  ;;  %v810_v21 = vld [vmem:[#allocation2 + $0x78] sm:$0xff]  ;;  %v2373_v32 = vld [vmem:[%s2063_s5 + $0x68] sm:$0xff]  }
 0x11d   : > { %v1572_v43 = vpack.c.bf16 %v1171_v19, %v1171_v19  ;;  %v1176_v17 = vadd.f32 %v2500_v44, %v1080_v47  ;;  %1316 = vst.msk [vmem:[%s2281_s10 + $0x4] sm:$0xf] %vm1314_vm3, %v1556_v42  ;;  %v1065_v58 = vmul.f32 %v1820_v57, %v2173_v7  ;;  %v2336_v34 = vadd.f32 %v2106_v61, %v820_v27 }
 0x11e   : > { %v1561_v28 = vpack.c.bf16 %v1160_v23, %v1160_v23  ;;  %v1158_v30 = vadd.f32 %v2501_v45, %v1062_v60  ;;  %v2502_v50 = vunpack.c.l.bf16 %v2096_v54  ;;  %v985_v39 = vadd.f32 1.0, %v1822_v10  ;;  %v1826_v2 = vpop.eup %1825  ;;  %v808_v10 = vld [vmem:[#allocation2 + $0x68] sm:$0xff] }
 0x11f   : > { %1332 = vst.msk [vmem:[%s2281_s10 + $0x44] sm:$0xf] %vm1314_vm3, %v1572_v43  ;;  %v1577_v5 = vpack.c.bf16 %v1176_v17, %v1176_v17  ;;  %1839 = vpow2.f32 %v916_v29  ;;  %v2503_v38 = vunpack.c.h.bf16 %v2083_v48  ;;  %v967_v63 = vadd.f32 1.0, %v1824_v26  ;;  %v1828_v11 = vpop.eup %1827  ;;  %v826_v43 = vld [vmem:[#allocation2 + $0xf8] sm:$0xff]  ;;  %v2383_v26 = vld [vmem:[%s2063_s5 + $0x20] sm:$0xff]  }
 0x120   : > { %v1174_v51 = vadd.f32 %v2502_v50, %v1078_v4  ;;  %1321 = vst.msk [vmem:[%s2281_s10 + $0x18] sm:$0xf] %vm1314_vm3, %v1561_v28  ;;  %v1559_v7 = vpack.c.bf16 %v1158_v30, %v1158_v30  ;;  %v891_v40 = vsub.f32 0.0, %v2336_v34  ;;  %1841 = vrcp.f32 %v985_v39  ;;  %v1830_v14 = vpop.eup %1829  ;;  %v386_v28 = vld [vmem:[#allocation2 + $0xe8] sm:$0xff]  ;;  %v2389_v39 = vld [vmem:[%s2063_s5 + $0x60] sm:$0xff]  }
 0x121   : > { %v1161_v13 = vadd.f32 %v2503_v38, %v1065_v58  ;;  %1337 = vst.msk [vmem:[%s2281_s10 + $0x58] sm:$0xf] %vm1314_vm3, %v1577_v5  ;;  %v983_v1 = vadd.f32 1.0, %v1826_v2  ;;  %v2353_v52 = vadd.f32 %v2106_v61, %v809_v55  ;;  %1843 = vrcp.f32 %v967_v63  ;;  %v1832_v46 = vpop.eup %1831 }
 0x122   : > { %v1575_v8 = vpack.c.bf16 %v1174_v51, %v1174_v51  ;;  %1319 = vst.msk [vmem:[%s2281_s10 + $0x10] sm:$0xf] %vm1314_vm3, %v1559_v7  ;;  %v972_v36 = vadd.f32 1.0, %v1828_v11  ;;  %v1609_v59 = vunpack.c.l.bf16 %v2343_v3  ;;  %v988_v0 = vadd.f32 1.0, %v1830_v14  ;;  %v1834_v6 = vpop.eup %1833 }
 0x123   : > { %v1562_v48 = vpack.c.bf16 %v1161_v13, %v1161_v13  ;;  %1845 = vrcp.f32 %v983_v1  ;;  %v880_v9 = vsub.f32 0.0, %v2353_v52  ;;  %v2362_v37 = vadd.f32 %v2106_v61, %v825_v18 }
 0x124   : > { %1335 = vst.msk [vmem:[%s2281_s10 + $0x50] sm:$0xf] %vm1314_vm3, %v1575_v8  ;;  %1847 = vrcp.f32 %v972_v36  ;;  %v970_v19 = vadd.f32 1.0, %v1832_v46  ;;  %v2367_v47 = vadd.f32 %v2106_v61, %v807_v15  ;;  %v2370_v27 = vadd.f32 %v2106_v61, %v823_v62  ;;  %v1836_v42 = vpop.eup %1835 }
 0x125   : > { %1322 = vst.msk [vmem:[%s2281_s10 + $0x1c] sm:$0xf] %vm1314_vm3, %v1562_v48  ;;  %1849 = vrcp.f32 %v988_v0  ;;  %v986_v23 = vadd.f32 1.0, %v1834_v6  ;;  %v948_v60 = vmul.f32 1.442695, %v891_v40  ;;  %v896_v57 = vsub.f32 0.0, %v2362_v37  ;;  %v1838_v44 = vpop.eup %1837 }
 0x126   : > { %1851 = vrcp.f32 %v970_v19  ;;  %v973_v17 = vadd.f32 1.0, %v1836_v42  ;;  %v926_v4 = vmul.f32 1.442695, %v880_v9  ;;  %v878_v29 = vsub.f32 0.0, %v2367_v47 }
 0x127   : > { %1853 = vrcp.f32 %v986_v23  ;;  %v989_v45 = vadd.f32 1.0, %v1838_v44  ;;  %v894_v30 = vsub.f32 0.0, %v2370_v27  ;;  %v2379_v58 = vadd.f32 %v2106_v61, %v810_v21 }
 0x128   : > { %v1641_v55 = vunpack.c.l.bf16 %v2373_v32  ;;  %1855 = vrcp.f32 %v973_v17  ;;  %v958_v5 = vmul.f32 1.442695, %v896_v57  ;;  %v2386_v50 = vadd.f32 %v2106_v61, %v826_v43 }
 0x129   : > { %v1840_v51 = vpop.eup %1839  ;;  %1857 = vrcp.f32 %v989_v45  ;;  %v881_v2 = vsub.f32 0.0, %v2379_v58  ;;  %v2393_v7 = vadd.f32 %v2106_v61, %v808_v10  ;;  %v756_v38 = vadd.f32 %v2217_v35, %v386_v28 }
 0x12a   : > { %v971_v13 = vadd.f32 1.0, %v1840_v51  ;;  %1859 = vpow2.f32 %v948_v60  ;;  %v922_v63 = vmul.f32 1.442695, %v878_v29  ;;  %v897_v40 = vsub.f32 0.0, %v2386_v50  ;;  %v1842_v18 = vpop.eup %1841 }
 0x12b   : > { %v1605_v11 = vunpack.c.l.bf16 %v2383_v26  ;;  %1861 = vpow2.f32 %v926_v4  ;;  %v954_v8 = vmul.f32 1.442695, %v894_v30  ;;  %v879_v1 = vsub.f32 0.0, %v2393_v7  ;;  %789 = vst.msk [vmem:[#allocation2 + $0xe8] sm:$0xff] %vm324_vm1, %v756_v38  ;;  %v1844_v15 = vpop.eup %1843 }
 0x12c   : > { %v1081_v62 = vmul.f32 %v1842_v18, %v2183_v16  ;;  %v1637_v14 = vunpack.c.l.bf16 %v2389_v39  ;;  %1863 = vrcp.f32 %v971_v13  ;;  %v928_v35 = vmul.f32 1.442695, %v881_v2 }
 0x12d   : > { %v1846_v48 = vpop.eup %1845  ;;  %v1063_v36 = vmul.f32 %v1844_v15, %v2192_v12  ;;  %v1610_v46 = vunpack.c.h.bf16 %v2343_v3  ;;  %1865 = vpow2.f32 %v958_v5  ;;  %v960_v0 = vmul.f32 1.442695, %v897_v40 }
 0x12e   : > { %v1848_v9 = vpop.eup %1847  ;;  %v2504_v6 = vunpack.c.h.bf16 %v2086_v49  ;;  %v1079_v21 = vmul.f32 %v1846_v48, %v2201_v31  ;;  %1867 = vpow2.f32 %v922_v63  ;;  %v924_v42 = vmul.f32 1.442695, %v879_v1 }
 0x12f   : > { %v1850_v16 = vpop.eup %1849  ;;  %v2505_v23 = vunpack.c.h.bf16 %v2093_v53  ;;  %v1068_v57 = vmul.f32 %v1848_v9, %v2214_v20  ;;  %v1642_v12 = vunpack.c.h.bf16 %v2373_v32  ;;  %1869 = vpow2.f32 %v954_v8 }
 0x130   : > { %v1177_v19 = vadd.f32 %v2504_v6, %v1081_v62  ;;  %v1852_v43 = vpop.eup %1851  ;;  %v2506_v17 = vunpack.c.h.bf16 %v2096_v54  ;;  %v1084_v31 = vmul.f32 %v1850_v16, %v2222_v22  ;;  %1871 = vpow2.f32 %v928_v35 }
 0x131   : > { %v1159_v60 = vadd.f32 %v2505_v23, %v1063_v36  ;;  %v1854_v4 = vpop.eup %1853  ;;  %v1164_v53 = vadd.f32 %v1609_v59, %v1068_v57  ;;  %v1066_v10 = vmul.f32 %v1852_v43, %v2231_v33  ;;  %1873 = vpow2.f32 %v960_v0  ;;  %v1657_v23 = vld [vmem:[%s2063_s5 + $0x38] sm:$0xff]  }
 0x132   : > { %v1578_v44 = vpack.c.bf16 %v1177_v19, %v1177_v19  ;;  %v1175_v49 = vadd.f32 %v2506_v17, %v1079_v21  ;;  %v1856_v20 = vpop.eup %1855  ;;  %v1180_v28 = vadd.f32 %v1641_v55, %v1084_v31  ;;  %v1082_v54 = vmul.f32 %v1854_v4, %v2246_v41  ;;  %v824_v22 = vld [vmem:[#allocation2 + $0xe8] sm:$0xff]  ;;  %v1665_v57 = vld [vmem:[%s2063_s5 + $0x78] sm:$0xff]   ;;  %v1664_v31 = vld [vmem:[%s2063_s5 + $0x70] sm:$0xff]  }
 0x133   : > { %v1560_v29 = vpack.c.bf16 %v1159_v60, %v1159_v60  ;;  %1875 = vpow2.f32 %v924_v42  ;;  %v1858_v45 = vpop.eup %1857  ;;  %v1565_v30 = vpack.c.bf16 %v1164_v53, %v1164_v53  ;;  %v1162_v3 = vadd.f32 %v1605_v11, %v1066_v10 }
 0x134   : > { %1338 = vst.msk [vmem:[%s2281_s10 + $0x5c] sm:$0xf] %vm1314_vm3, %v1578_v44  ;;  %v1576_v32 = vpack.c.bf16 %v1175_v49, %v1175_v49  ;;  %v1069_v33 = vmul.f32 %v1856_v20, %v2252_v24  ;;  %v2424_v59 = vadd.f32 %v2106_v61, %v824_v22  ;;  %v1860_v5 = vpop.eup %1859  ;;  %v1581_v55 = vpack.c.bf16 %v1180_v28, %v1180_v28  ;;  %v1656_v44 = vld [vmem:[%s2063_s5 + $0x30] sm:$0xff]  }
 0x135   : > { %1320 = vst.msk [vmem:[%s2281_s10 + $0x14] sm:$0xf] %vm1314_vm3, %v1560_v29  ;;  %v1178_v41 = vadd.f32 %v1637_v14, %v1082_v54  ;;  %v1085_v51 = vmul.f32 %v1858_v45, %v2255_v56  ;;  %v1606_v2 = vunpack.c.h.bf16 %v2383_v26  ;;  %v1862_v38 = vpop.eup %1861  ;;  %1325 = vst.msk [vmem:[%s2281_s10 + $0x28] sm:$0xf] %vm1314_vm3, %v1565_v30  ;;  %v1563_v13 = vpack.c.bf16 %v1162_v3, %v1162_v3 }
 0x136   : > { %1336 = vst.msk [vmem:[%s2281_s10 + $0x54] sm:$0xf] %vm1314_vm3, %v1576_v32  ;;  %v1165_v63 = vadd.f32 %v1610_v46, %v1069_v33  ;;  %v987_v24 = vadd.f32 1.0, %v1860_v5  ;;  %v895_v61 = vsub.f32 0.0, %v2424_v59  ;;  %v1864_v40 = vpop.eup %1863  ;;  %1341 = vst.msk [vmem:[%s2281_s10 + $0x68] sm:$0xf] %vm1314_vm3, %v1581_v55  ;;  %v1638_v60 = vunpack.c.h.bf16 %v2389_v39 }
 0x137   : > { %v1579_v18 = vpack.c.bf16 %v1178_v41, %v1178_v41  ;;  %v1181_v11 = vadd.f32 %v1642_v12, %v1085_v51  ;;  %v976_v8 = vadd.f32 1.0, %v1862_v38  ;;  %v1866_v1 = vpop.eup %1865  ;;  %1323 = vst.msk [vmem:[%s2281_s10 + $0x20] sm:$0xf] %vm1314_vm3, %v1563_v13  ;;  %v1067_v26 = vmul.f32 %v1864_v40, %v2268_v25 }
 0x138   : > { %v1566_v56 = vpack.c.bf16 %v1165_v63, %v1165_v63  ;;  %1877 = vrcp.f32 %v987_v24  ;;  %v956_v15 = vmul.f32 1.442695, %v895_v61  ;;  %v1868_v62 = vpop.eup %1867  ;;  %v992_v35 = vadd.f32 1.0, %v1866_v1 }
 0x139   : > { %1339 = vst.msk [vmem:[%s2281_s10 + $0x60] sm:$0xf] %vm1314_vm3, %v1579_v18  ;;  %v1582_v14 = vpack.c.bf16 %v1181_v11, %v1181_v11  ;;  %1879 = vrcp.f32 %v976_v8  ;;  %v1870_v48 = vpop.eup %1869  ;;  %v1163_v36 = vadd.f32 %v1606_v2, %v1067_v26  ;;  %v974_v46 = vadd.f32 1.0, %v1868_v62 }
 0x13a   : > { %1326 = vst.msk [vmem:[%s2281_s10 + $0x2c] sm:$0xf] %vm1314_vm3, %v1566_v56  ;;  %1881 = vpow2.f32 %v956_v15  ;;  %v1872_v0 = vpop.eup %1871  ;;  %v990_v25 = vadd.f32 1.0, %v1870_v48  ;;  %v1617_v43 = vunpack.c.l.bf16 %v1657_v23  ;;  %v1649_v53 = vunpack.c.l.bf16 %v1665_v57 }
 0x13b   : > { %1342 = vst.msk [vmem:[%s2281_s10 + $0x6c] sm:$0xf] %vm1314_vm3, %v1582_v14  ;;  %1883 = vrcp.f32 %v992_v35  ;;  %v1874_v9 = vpop.eup %1873  ;;  %v1564_v6 = vpack.c.bf16 %v1163_v36, %v1163_v36  ;;  %v977_v19 = vadd.f32 1.0, %v1872_v0  ;;  %v1613_v32 = vunpack.c.l.bf16 %v1656_v44 }
 0x13c   : > { %1885 = vrcp.f32 %v974_v46  ;;  %v993_v42 = vadd.f32 1.0, %v1874_v9  ;;  %v1645_v45 = vunpack.c.l.bf16 %v1664_v31  ;;  %v1618_v33 = vunpack.c.h.bf16 %v1657_v23 }
 0x13d   : > { %v1876_v21 = vpop.eup %1875  ;;  %1887 = vrcp.f32 %v990_v25  ;;  %1324 = vst.msk [vmem:[%s2281_s10 + $0x24] sm:$0xf] %vm1314_vm3, %v1564_v6  ;;  %v1650_v51 = vunpack.c.h.bf16 %v1665_v57  ;;  %v1614_v13 = vunpack.c.h.bf16 %v1656_v44  ;;  %v1646_v26 = vunpack.c.h.bf16 %v1664_v31 }
 0x13e   : > { %1889 = vrcp.f32 %v977_v19  ;;  %v975_v16 = vadd.f32 1.0, %v1876_v21 }
 0x13f   : > { %1891 = vrcp.f32 %v993_v42 }
 0x140   : > { %1893 = vrcp.f32 %v975_v16 }
 0x142   : > { %v1878_v12 = vpop.eup %1877 }
 0x143   : > { %v1880_v17 = vpop.eup %1879  ;;  %v1083_v49 = vmul.f32 %v1878_v12, %v2336_v34 }
 0x144   : > { %v1882_v4 = vpop.eup %1881  ;;  %v1072_v29 = vmul.f32 %v1880_v17, %v2353_v52 }
 0x145   : > { %v1884_v10 = vpop.eup %1883  ;;  %v1179_v20 = vadd.f32 %v1638_v60, %v1083_v49  ;;  %v991_v28 = vadd.f32 1.0, %v1882_v4 }
 0x146   : > { %v1886_v54 = vpop.eup %1885  ;;  %v1168_v22 = vadd.f32 %v1617_v43, %v1072_v29  ;;  %v1088_v39 = vmul.f32 %v1884_v10, %v2362_v37 }
 0x147   : > { %v1888_v30 = vpop.eup %1887  ;;  %v1580_v3 = vpack.c.bf16 %v1179_v20, %v1179_v20  ;;  %v1070_v34 = vmul.f32 %v1886_v54, %v2367_v47  ;;  %1895 = vrcp.f32 %v991_v28 }
 0x148   : > { %v1890_v5 = vpop.eup %1889  ;;  %v1569_v52 = vpack.c.bf16 %v1168_v22, %v1168_v22  ;;  %v1184_v55 = vadd.f32 %v1649_v53, %v1088_v39  ;;  %v1086_v41 = vmul.f32 %v1888_v30, %v2370_v27 }
 0x149   : > { %v1892_v2 = vpop.eup %1891  ;;  %1340 = vst.msk [vmem:[%s2281_s10 + $0x64] sm:$0xf] %vm1314_vm3, %v1580_v3  ;;  %v1166_v37 = vadd.f32 %v1613_v32, %v1070_v34  ;;  %v1073_v38 = vmul.f32 %v1890_v5, %v2379_v58 }
 0x14a   : > { %v1894_v63 = vpop.eup %1893  ;;  %1329 = vst.msk [vmem:[%s2281_s10 + $0x38] sm:$0xf] %vm1314_vm3, %v1569_v52  ;;  %v1585_v47 = vpack.c.bf16 %v1184_v55, %v1184_v55  ;;  %v1182_v24 = vadd.f32 %v1645_v45, %v1086_v41  ;;  %v1089_v61 = vmul.f32 %v1892_v2, %v2386_v50 }
 0x14b   : > { %v1567_v27 = vpack.c.bf16 %v1166_v37, %v1166_v37  ;;  %v1169_v40 = vadd.f32 %v1618_v33, %v1073_v38  ;;  %v1071_v18 = vmul.f32 %v1894_v63, %v2393_v7 }
 0x14c   : > { %1345 = vst.msk [vmem:[%s2281_s10 + $0x78] sm:$0xf] %vm1314_vm3, %v1585_v47  ;;  %v1583_v11 = vpack.c.bf16 %v1182_v24, %v1182_v24  ;;  %v1185_v58 = vadd.f32 %v1650_v51, %v1089_v61 }
 0x14d   : > { %1327 = vst.msk [vmem:[%s2281_s10 + $0x30] sm:$0xf] %vm1314_vm3, %v1567_v27  ;;  %v1570_v8 = vpack.c.bf16 %v1169_v40, %v1169_v40  ;;  %v1167_v1 = vadd.f32 %v1614_v13, %v1071_v18 }
 0x14e   : > { %1343 = vst.msk [vmem:[%s2281_s10 + $0x70] sm:$0xf] %vm1314_vm3, %v1583_v11  ;;  %v1586_v56 = vpack.c.bf16 %v1185_v58, %v1185_v58 }
 0x14f   : > { %1330 = vst.msk [vmem:[%s2281_s10 + $0x3c] sm:$0xf] %vm1314_vm3, %v1570_v8  ;;  %v1568_v50 = vpack.c.bf16 %v1167_v1, %v1167_v1 }
 0x150   : > { %1346 = vst.msk [vmem:[%s2281_s10 + $0x7c] sm:$0xf] %vm1314_vm3, %v1586_v56 }
 0x151   : > { %v1896_v15 = vpop.eup %1895  ;;  %1328 = vst.msk [vmem:[%s2281_s10 + $0x34] sm:$0xf] %vm1314_vm3, %v1568_v50 }
 0x152   : > { %v1087_v7 = vmul.f32 %v1896_v15, %v2424_v59 }
 0x154   : > { %v1183_v62 = vadd.f32 %v1646_v26, %v1087_v7 }
 0x156   : > { %v1584_v14 = vpack.c.bf16 %v1183_v62, %v1183_v62 }
 0x158   : > { %1344 = vst.msk [vmem:[%s2281_s10 + $0x74] sm:$0xf] %vm1314_vm3, %v1584_v14 }
 0x159 PF: > { %s14_s17 = sadd.s32 1, %s1919_s17   ;;  %s2507_s15 = smov %s1915_s16 }
 0x15a   : > { %p11_p5 = scmp.ge.s32.totalorder %s14_s17, 4   ;;  %s2508_s16 = smov %s2510_s18 }
 0x15c   :  { %13 = sbr.rel (!%p11_p5) target bundleno = 2 (0x2), region = 83 }

// kernel: _lambda_.25
= control target key start
LH: loop header
LB: loop body
LE: loop exit
PB: predicated region body
PF: predicated region fallthrough
CT: control target
= control target key end

     0   :  { %s2650_s24 = smov 0   ;;  %s2652_s25 = smov 0   ;;  %s3059_s0 = inlined_call_operand.vmem [shape: bf16[512,2], index: 0, kind: input, shape index: {}]   ;;  %s3060_s1 = inlined_call_operand.vmem [shape: bf16[512,2], index: 1, kind: input, shape index: {}]   ;;  %s3061_s2 = inlined_call_operand.vmem [shape: bf16[512,2], index: 2, kind: input, shape index: {}]   ;;  %s3062_s3 = inlined_call_operand.vmem [shape: bf16[2,4], index: 3, kind: input, shape index: {}]   ;;  %s3063_s4 = inlined_call_operand.vmem [shape: bf16[2,4], index: 4, kind: input, shape index: {}]   ;;  %s3064_s5 = inlined_call_operand.vmem [shape: bf16[2,4], index: 5, kind: input, shape index: {}]   ;;  %s3065_s6 = inlined_call_operand.vmem [shape: f32[1,4], index: 6, kind: input, shape index: {}]   ;;  %s3066_s7 = inlined_call_operand.vmem [shape: bf16[512,4], index: 7, kind: output, shape index: {}]  }
   0x1   :  { %s2654_s26 = smov 0  }
   0x2 LB: > { %s29_s27 = sadd.s32 1, %s2604_s25  ;;  %p1991_p0 = scmp.ge.s32.totalorder %s2608_s26, 1  ;;  %s2608_s26 = sphi %s2654_s26, %s17_s26   ;;  %s2604_s25 = sphi %s2652_s25, %s3068_s25   ;;  %s2600_s24 = sphi %s2650_s24, %s3067_s24  }
   0x3   : > { %p31_p1 = scmp.ge.s32.totalorder %s29_s27, 2  ;;  %p306_p2 = scmp.lt.s32.totalorder %s2608_s26, 3 }
   0x5   : > { %s3070_s27 = smov (%p31_p1, %s29_s27), 0  ;;  %p307_p3 = pnand %p1991_p0, %p306_p2 }
   0x6   : > { %v468_v0 = vld [vmem:[%s3063_s4] sm:$0x1] (!%p307_p3)  ;;  %vm598_vm0 = vcmask (!%p307_p3), 1040384   ;;  %s1992_s9 = sshll.u32 (!%p307_p3), %s2600_s24, 5  ;;  %vm549_vm1 = vcmask (!%p307_p3), 15360   ;;  %vm1803_vm2 = vcmask (!%p307_p3), 27648  }
   0x7   : > { %310 = sbr.rel (%p307_p3) target bundleno = 369 (0x171), region = 48  ;;  %v435_v1 = vld [vmem:[%s3062_s3] sm:$0x1] (!%p307_p3)  ;;  %2382 = vmatprep.subr.msk.bf16.mxu1 (!%p307_p3), %vm598_vm0, %v468_v0  ;;  %v600_v2 = vsel (!%p307_p3), %vm598_vm0, %v468_v0, 0  ;;  %p364_p4 = scmp.lt.s32.totalorder (!%p307_p3), %s1992_s9, 63 }
   0x8   : > { %2383 = vmatprep.subr.msk.bf16.mxu0 (!%p307_p3), %vm598_vm0, %v435_v1  ;;  %v892_v3 = vsel (!%p307_p3), %vm598_vm0, %v435_v1, 0  ;;  %v1087_v4 = vld [vmem:[%s3064_s5] sm:$0x1] (!%p307_p3)  ;;  %2215 = vmatpush3.bf16.msra.mxu1 (!%p307_p3), %v600_v2 }
   0x9   : > { %2249 = vmatpush3.bf16.msra.mxu0 (!%p307_p3), %v892_v3  ;;  %2384 = vmatprep.subr.msk.bf16.mxu1 (!%p307_p3), %vm598_vm0, %v435_v1  ;;  %v1217_v9 = vsel (!%p307_p3), %vm598_vm0, %v1087_v4, 0 }
   0xa   : > { %2385 = vmatprep.subr.msk.bf16.mxu0 (!%p307_p3), %vm598_vm0, %v1087_v4 }
   0xe   : > { %s3072_s9 = smov (!%p364_p4, %s1992_s9), 63 }
   0xf   : > { %s2683_s12 = sshll.u32 %s3072_s9, 2 }
  0x10   : > { %s2689_s15 = scalar_lea.vmem %s3060_s1, %s2683_s12  ;;  %s2695_s18 = scalar_lea.vmem %s3059_s0, %s2683_s12 }
  0x11   : > { %v2410_v5 = vld [vmem:[%s2689_s15] sm:$0xff]   ;;  %v2412_v7 = vld [vmem:[%s2689_s15 + $0x8] sm:$0xff]   ;;  %v2414_v10 = vld [vmem:[%s2689_s15 + $0x10] sm:$0xff]   ;;  %s2724_s21 = scalar_lea.vmem %s3061_s2, %s2683_s12  ;;  %s2889_s29 = scalar_lea.vmem %s3066_s7, %s2683_s12 }
  0x12   : > { %v2411_v6 = vld [vmem:[%s2695_s18] sm:$0xff]   ;;  %2216 = vmatprep.mubr.msk.bf16.mxu1 %vm549_vm1, %v2410_v5  ;;  %v2413_v8 = vld [vmem:[%s2695_s18 + $0x8] sm:$0xff]   ;;  %v2415_v11 = vld [vmem:[%s2695_s18 + $0x10] sm:$0xff]  }
  0x13   : > { %2250 = vmatprep.mubr.msk.bf16.mxu0 %vm549_vm1, %v2411_v6  ;;  %2217 = vmatmul.mubr.msk.bf16.vlgmr.msra.gmra.mrb[0].mxu1 %vm549_vm1, %v2412_v7  ;;  %v2416_v12 = vld [vmem:[%s2689_s15 + $0x18] sm:$0xff]   ;;  %v2418_v14 = vld [vmem:[%s2689_s15 + $0x20] sm:$0xff]   ;;  %v2420_v16 = vld [vmem:[%s2689_s15 + $0x28] sm:$0xff]  }
  0x14   : > { %2317 = vmatpush3.bf16.msra.mxu1 %v892_v3  ;;  %2251 = vmatmul.mubr.msk.bf16.vlgmr.msra.gmra.mrb[0].mxu0 %vm549_vm1, %v2413_v8  ;;  %v2417_v13 = vld [vmem:[%s2695_s18 + $0x18] sm:$0xff]   ;;  %v2419_v15 = vld [vmem:[%s2695_s18 + $0x20] sm:$0xff]   ;;  %v2421_v17 = vld [vmem:[%s2695_s18 + $0x28] sm:$0xff]  }
  0x15   : > { %2283 = vmatpush3.bf16.msra.mxu0 %v1217_v9  ;;  %2220 = vmatprep.mubr.msk.bf16.mxu1 %vm549_vm1, %v2414_v10  ;;  %v2422_v18 = vld [vmem:[%s2689_s15 + $0x30] sm:$0xff]   ;;  %v2424_v20 = vld [vmem:[%s2689_s15 + $0x38] sm:$0xff]   ;;  %v2426_v22 = vld [vmem:[%s2689_s15 + $0x40] sm:$0xff]  }
  0x16   : > { %2254 = vmatprep.mubr.msk.bf16.mxu0 %vm549_vm1, %v2415_v11  ;;  %v2423_v19 = vld [vmem:[%s2695_s18 + $0x30] sm:$0xff]   ;;  %v2425_v21 = vld [vmem:[%s2695_s18 + $0x38] sm:$0xff]   ;;  %v2427_v23 = vld [vmem:[%s2724_s21] sm:$0xff]  }
  0x17   : > { %v2428_v24 = vld [vmem:[%s2689_s15 + $0x48] sm:$0xff]   ;;  %v2430_v26 = vld [vmem:[%s2689_s15 + $0x50] sm:$0xff]   ;;  %v2432_v28 = vld [vmem:[%s2689_s15 + $0x58] sm:$0xff]  }
  0x18   : > { %v2429_v25 = vld [vmem:[%s2724_s21 + $0x8] sm:$0xff]   ;;  %v2431_v27 = vld [vmem:[%s2724_s21 + $0x10] sm:$0xff]   ;;  %v2433_v29 = vld [vmem:[%s2724_s21 + $0x18] sm:$0xff]  }
  0x19   : > { %v2434_v30 = vld [vmem:[%s2689_s15 + $0x60] sm:$0xff]   ;;  %v2436_v32 = vld [vmem:[%s2689_s15 + $0x68] sm:$0xff]   ;;  %v2438_v34 = vld [vmem:[%s2689_s15 + $0x70] sm:$0xff]  }
  0x1a   : > { %v2435_v31 = vld [vmem:[%s2724_s21 + $0x20] sm:$0xff]   ;;  %v2437_v33 = vld [vmem:[%s2724_s21 + $0x28] sm:$0xff]   ;;  %v2439_v35 = vld [vmem:[%s2724_s21 + $0x30] sm:$0xff]  }
  0x1b   : > { %2221 = vmatmul.mubr.msk.bf16.gmra.mrb[4].mxu1 %vm549_vm1, %v2416_v12  ;;  %v2440_v36 = vld [vmem:[%s2689_s15 + $0x78] sm:$0xff]   ;;  %v2442_v38 = vld [vmem:[%s2695_s18 + $0x40] sm:$0xff]   ;;  %v2444_v40 = vld [vmem:[%s2695_s18 + $0x48] sm:$0xff]  }
  0x1c   : > { %2255 = vmatmul.mubr.msk.bf16.gmra.mrb[4].mxu0 %vm549_vm1, %v2417_v13  ;;  %2224 = vmatprep.mubr.msk.bf16.mxu1 %vm549_vm1, %v2418_v14  ;;  %v2441_v37 = vld [vmem:[%s2724_s21 + $0x38] sm:$0xff]   ;;  %v2443_v39 = vld [vmem:[%s2724_s21 + $0x40] sm:$0xff]   ;;  %v2445_v41 = vld [vmem:[%s2724_s21 + $0x48] sm:$0xff]  }
  0x1d   : > { %2258 = vmatprep.mubr.msk.bf16.mxu0 %vm549_vm1, %v2419_v15  ;;  %v2446_v42 = vld [vmem:[%s2695_s18 + $0x50] sm:$0xff]   ;;  %v2448_v44 = vld [vmem:[%s2695_s18 + $0x58] sm:$0xff]   ;;  %v2450_v46 = vld [vmem:[%s2695_s18 + $0x60] sm:$0xff]  }
  0x1e   : > { %v2447_v43 = vld [vmem:[%s2724_s21 + $0x50] sm:$0xff]   ;;  %v2449_v45 = vld [vmem:[%s2724_s21 + $0x58] sm:$0xff]   ;;  %v2451_v47 = vld [vmem:[%s2724_s21 + $0x60] sm:$0xff]  }
  0x1f   : > { %v2452_v48 = vld [vmem:[%s2695_s18 + $0x68] sm:$0xff]   ;;  %v2454_v50 = vld [vmem:[%s2695_s18 + $0x70] sm:$0xff]   ;;  %v2456_v52 = vld [vmem:[%s2695_s18 + $0x78] sm:$0xff]  }
  0x20   : > { %v2453_v49 = vld [vmem:[%s2724_s21 + $0x68] sm:$0xff]   ;;  %v2455_v51 = vld [vmem:[%s2724_s21 + $0x70] sm:$0xff]   ;;  %v2457_v53 = vld [vmem:[%s2724_s21 + $0x78] sm:$0xff]  }
  0x21   : > { %v2813_v7 = vld [vmem:[%s3065_s6] ss:$0 sm:$0xff] }
  0x23   : > { %2225 = vmatmul.mubr.msk.bf16.gmra.mrb[8].mxu1 %vm549_vm1, %v2420_v16 }
  0x24   : > { %2259 = vmatmul.mubr.msk.bf16.gmra.mrb[8].mxu0 %vm549_vm1, %v2421_v17  ;;  %2228 = vmatprep.mubr.msk.bf16.mxu1 %vm549_vm1, %v2422_v18 }
  0x25   : > { %2262 = vmatprep.mubr.msk.bf16.mxu0 %vm549_vm1, %v2423_v19 }
  0x2b   : > { %2229 = vmatmul.mubr.msk.bf16.gmra.mrb[12].mxu1 %vm549_vm1, %v2424_v20 }
  0x2c   : > { %2263 = vmatmul.mubr.msk.bf16.gmra.mrb[12].mxu0 %vm549_vm1, %v2425_v21  ;;  %2232 = vmatprep.mubr.msk.bf16.mxu1 %vm549_vm1, %v2426_v22 }
  0x2d   : > { %2284 = vmatprep.mubr.msk.bf16.mxu0 %vm549_vm1, %v2427_v23 }
  0x33   : > { %2233 = vmatmul.mubr.msk.bf16.gmra.mrb[16].mxu1 %vm549_vm1, %v2428_v24 }
  0x34   : > { %2285 = vmatmul.mubr.msk.bf16.vlgmr.msra.gmra.mrb[0].mxu0 %vm549_vm1, %v2429_v25  ;;  %2236 = vmatprep.mubr.msk.bf16.mxu1 %vm549_vm1, %v2430_v26 }
  0x35   : > { %2288 = vmatprep.mubr.msk.bf16.mxu0 %vm549_vm1, %v2431_v27 }
  0x3b   : > { %2237 = vmatmul.mubr.msk.bf16.gmra.mrb[20].mxu1 %vm549_vm1, %v2432_v28 }
  0x3c   : > { %2289 = vmatmul.mubr.msk.bf16.gmra.mrb[4].mxu0 %vm549_vm1, %v2433_v29  ;;  %2240 = vmatprep.mubr.msk.bf16.mxu1 %vm549_vm1, %v2434_v30 }
  0x3d   : > { %2292 = vmatprep.mubr.msk.bf16.mxu0 %vm549_vm1, %v2435_v31 }
  0x43   : > { %2241 = vmatmul.mubr.msk.bf16.gmra.mrb[24].mxu1 %vm549_vm1, %v2436_v32 }
  0x44   : > { %2293 = vmatmul.mubr.msk.bf16.gmra.mrb[8].mxu0 %vm549_vm1, %v2437_v33  ;;  %2244 = vmatprep.mubr.msk.bf16.mxu1 %vm549_vm1, %v2438_v34 }
  0x45   : > { %2296 = vmatprep.mubr.msk.bf16.mxu0 %vm549_vm1, %v2439_v35 }
  0x4b   : > { %2245 = vmatmul.mubr.msk.bf16.gmra.mrb[28].mxu1 %vm549_vm1, %v2440_v36 }
  0x4c   : > { %2297 = vmatmul.mubr.msk.bf16.gmra.mrb[12].mxu0 %vm549_vm1, %v2441_v37  ;;  %2266 = vmatprep.mubr.msk.bf16.mxu1 %vm549_vm1, %v2442_v38 }
  0x4d   : > { %2300 = vmatprep.mubr.msk.bf16.mxu0 %vm549_vm1, %v2443_v39 }
  0x53   : > { %2267 = vmatmul.mubr.msk.bf16.vlgmr.msra.gmra.mrb[16].mxu1 %vm549_vm1, %v2444_v40 }
  0x54   : > { %2301 = vmatmul.mubr.msk.bf16.gmra.mrb[16].mxu0 %vm549_vm1, %v2445_v41  ;;  %2270 = vmatprep.mubr.msk.bf16.mxu1 %vm549_vm1, %v2446_v42 }
  0x55   : > { %2304 = vmatprep.mubr.msk.bf16.mxu0 %vm549_vm1, %v2447_v43 }
  0x5b   : > { %2271 = vmatmul.mubr.msk.bf16.gmra.mrb[20].mxu1 %vm549_vm1, %v2448_v44 }
  0x5c   : > { %2305 = vmatmul.mubr.msk.bf16.gmra.mrb[20].mxu0 %vm549_vm1, %v2449_v45  ;;  %2274 = vmatprep.mubr.msk.bf16.mxu1 %vm549_vm1, %v2450_v46 }
  0x5d   : > { %2308 = vmatprep.mubr.msk.bf16.mxu0 %vm549_vm1, %v2451_v47 }
  0x63   : > { %2275 = vmatmul.mubr.msk.bf16.gmra.mrb[24].mxu1 %vm549_vm1, %v2452_v48 }
  0x64   : > { %2309 = vmatmul.mubr.msk.bf16.gmra.mrb[24].mxu0 %vm549_vm1, %v2453_v49  ;;  %2278 = vmatprep.mubr.msk.bf16.mxu1 %vm549_vm1, %v2454_v50 }
  0x65   : > { %2312 = vmatprep.mubr.msk.bf16.mxu0 %vm549_vm1, %v2455_v51 }
  0x6b   : > { %2279 = vmatmul.mubr.msk.bf16.gmra.mrb[28].mxu1 %vm549_vm1, %v2456_v52 }
  0x6c   : > { %2313 = vmatmul.mubr.msk.bf16.gmra.mrb[28].mxu0 %vm549_vm1, %v2457_v53 }
  0xe6   : > { %v2218_v54 = vpop.f32.mrb[0].mxu1 }
  0xe7   : > { %v636_v55 = vpop.f32.mrb[1].mxu1 }
  0xe8   : > { %v2219_v56 = vpop.f32.mrb[2].mxu1 }
  0xe9   : > { %v639_v57 = vpop.f32.mrb[3].mxu1 }
  0xee   : > { %v2222_v58 = vpop.f32.mrb[4].mxu1 }
  0xef   : > { %v652_v59 = vpop.f32.mrb[5].mxu1 }
  0xf0   : > { %v2223_v60 = vpop.f32.mrb[6].mxu1 }
  0xf1   : > { %v655_v61 = vpop.f32.mrb[7].mxu1 }
  0xf6   : > { %v2226_v62 = vpop.f32.mrb[8].mxu1 }
  0xf7   : > { %v668_v63 = vpop.f32.mrb[9].mxu1 }
  0xf8   : > { %v2227_v0 = vpop.f32.mrb[10].mxu1 }
  0xf9   : > { %v2800_v1 = vpop.f32.mrb[11].mxu1 }
  0xfe   : > { %v2802_v2 = vpop.f32.mrb[12].mxu1 }
  0xff   : > { %v2804_v3 = vpop.f32.mrb[13].mxu1 }
 0x100   : > { %v2806_v4 = vpop.f32.mrb[14].mxu1 }
 0x101   : > { %v2808_v5 = vpop.f32.mrb[15].mxu1 }
 0x107   : > { %v2286_v6 = vpop.f32.mrb[0].mxu0 }
 0x108   : > { %v2318_v8 = vadd.f32 %v2286_v6, %v2218_v54  ;;  %v1253_v9 = vpop.f32.mrb[1].mxu0 }
 0x109   : > { %v2319_v10 = vadd.f32 %v1253_v9, %v636_v55  ;;  %v2287_v11 = vpop.f32.mrb[2].mxu0 }
 0x10a   : > { %v2816_v12 = vadd.f32 %v2318_v8, %v2813_v7  ;;  %v2320_v13 = vadd.f32 %v2287_v11, %v2219_v56  ;;  %v1256_v14 = vpop.f32.mrb[3].mxu0 }
 0x10b   : > { %v2819_v15 = vadd.f32 %v2319_v10, %v2813_v7  ;;  %v2321_v16 = vadd.f32 %v1256_v14, %v639_v57 }
 0x10c   : > { %v1453_v17 = vsub.f32 0.0, %v2816_v12  ;;  %v2823_v18 = vadd.f32 %v2320_v13, %v2813_v7 }
 0x10d   : > { %v1451_v19 = vsub.f32 0.0, %v2819_v15  ;;  %v2827_v20 = vadd.f32 %v2321_v16, %v2813_v7 }
 0x10e   : > { %v1487_v21 = vmul.f32 1.442695, %v1453_v17  ;;  %v1454_v22 = vsub.f32 0.0, %v2823_v18 }
 0x10f   : > { %v1483_v23 = vmul.f32 1.442695, %v1451_v19  ;;  %v1452_v24 = vsub.f32 0.0, %v2827_v20  ;;  %v2290_v25 = vpop.f32.mrb[4].mxu0 }
 0x110   : > { %2458 = vpow2.f32 %v1487_v21  ;;  %v1489_v26 = vmul.f32 1.442695, %v1454_v22  ;;  %v2322_v27 = vadd.f32 %v2290_v25, %v2222_v58  ;;  %v1269_v28 = vpop.f32.mrb[5].mxu0 }
 0x111   : > { %2460 = vpow2.f32 %v1483_v23  ;;  %v1485_v29 = vmul.f32 1.442695, %v1452_v24  ;;  %v2323_v30 = vadd.f32 %v1269_v28, %v652_v59  ;;  %v2291_v31 = vpop.f32.mrb[6].mxu0 }
 0x112   : > { %2462 = vpow2.f32 %v1489_v26  ;;  %v2832_v32 = vadd.f32 %v2322_v27, %v2813_v7  ;;  %v2324_v33 = vadd.f32 %v2291_v31, %v2223_v60  ;;  %v1272_v34 = vpop.f32.mrb[7].mxu0 }
 0x113   : > { %2464 = vpow2.f32 %v1485_v29  ;;  %v2835_v35 = vadd.f32 %v2323_v30, %v2813_v7  ;;  %v2325_v36 = vadd.f32 %v1272_v34, %v655_v61 }
 0x114   : > { %v1457_v37 = vsub.f32 0.0, %v2832_v32  ;;  %v2839_v38 = vadd.f32 %v2324_v33, %v2813_v7 }
 0x115   : > { %v1455_v39 = vsub.f32 0.0, %v2835_v35  ;;  %v2843_v40 = vadd.f32 %v2325_v36, %v2813_v7 }
 0x116   : > { %v1495_v41 = vmul.f32 1.442695, %v1457_v37  ;;  %v1458_v42 = vsub.f32 0.0, %v2839_v38 }
 0x117   : > { %v1491_v43 = vmul.f32 1.442695, %v1455_v39  ;;  %v1456_v44 = vsub.f32 0.0, %v2843_v40  ;;  %v2294_v45 = vpop.f32.mrb[8].mxu0 }
 0x118   : > { %2466 = vpow2.f32 %v1495_v41  ;;  %v1497_v46 = vmul.f32 1.442695, %v1458_v42  ;;  %v2326_v47 = vadd.f32 %v2294_v45, %v2226_v62  ;;  %v1285_v48 = vpop.f32.mrb[9].mxu0 }
 0x119   : > { %2468 = vpow2.f32 %v1491_v43  ;;  %v1493_v49 = vmul.f32 1.442695, %v1456_v44  ;;  %v2327_v50 = vadd.f32 %v1285_v48, %v668_v63  ;;  %v2295_v51 = vpop.f32.mrb[10].mxu0 }
 0x11a   : > { %v2459_v52 = vpop.eup %2458  ;;  %2470 = vpow2.f32 %v1497_v46  ;;  %v2848_v53 = vadd.f32 %v2326_v47, %v2813_v7  ;;  %v2328_v54 = vadd.f32 %v2295_v51, %v2227_v0  ;;  %v1288_v55 = vpop.f32.mrb[11].mxu0 }
 0x11b   : > { %v2461_v56 = vpop.eup %2460  ;;  %v1549_v57 = vadd.f32 1.0, %v2459_v52  ;;  %2472 = vpow2.f32 %v1493_v49  ;;  %v2851_v58 = vadd.f32 %v2327_v50, %v2813_v7  ;;  %v2329_v59 = vadd.f32 %v1288_v55, %v2800_v1 }
 0x11c   : > { %v2463_v60 = vpop.eup %2462  ;;  %v1547_v61 = vadd.f32 1.0, %v2461_v56  ;;  %v1461_v62 = vsub.f32 0.0, %v2848_v53  ;;  %v2856_v63 = vadd.f32 %v2328_v54, %v2813_v7 }
 0x11d   : > { %v2465_v6 = vpop.eup %2464  ;;  %2474 = vrcp.f32 %v1549_v57  ;;  %v1550_v8 = vadd.f32 1.0, %v2463_v60  ;;  %v1459_v0 = vsub.f32 0.0, %v2851_v58  ;;  %v2860_v9 = vadd.f32 %v2329_v59, %v2813_v7 }
 0x11e   : > { %2476 = vrcp.f32 %v1547_v61  ;;  %v1548_v10 = vadd.f32 1.0, %v2465_v6  ;;  %v1503_v11 = vmul.f32 1.442695, %v1461_v62  ;;  %v1462_v1 = vsub.f32 0.0, %v2856_v63 }
 0x11f   : > { %2478 = vrcp.f32 %v1550_v8  ;;  %v1499_v13 = vmul.f32 1.442695, %v1459_v0  ;;  %v1460_v14 = vsub.f32 0.0, %v2860_v9  ;;  %v2298_v16 = vpop.f32.mrb[12].mxu0 }
 0x120   : > { %2480 = vrcp.f32 %v1548_v10  ;;  %v1505_v17 = vmul.f32 1.442695, %v1462_v1  ;;  %v2330_v19 = vadd.f32 %v2298_v16, %v2802_v2  ;;  %v1301_v21 = vpop.f32.mrb[13].mxu0 }
 0x121   : > { %2482 = vpow2.f32 %v1503_v11  ;;  %v1501_v22 = vmul.f32 1.442695, %v1460_v14  ;;  %v2331_v23 = vadd.f32 %v1301_v21, %v2804_v3  ;;  %v2299_v24 = vpop.f32.mrb[14].mxu0 }
 0x122   : > { %v2467_v25 = vpop.eup %2466  ;;  %2484 = vpow2.f32 %v1499_v13  ;;  %v2867_v26 = vadd.f32 %v2330_v19, %v2813_v7  ;;  %v2332_v27 = vadd.f32 %v2299_v24, %v2806_v4  ;;  %v1304_v28 = vpop.f32.mrb[15].mxu0 }
 0x123   : > { %v2469_v29 = vpop.eup %2468  ;;  %v1553_v30 = vadd.f32 1.0, %v2467_v25  ;;  %2486 = vpow2.f32 %v1505_v17  ;;  %v2871_v31 = vadd.f32 %v2331_v23, %v2813_v7  ;;  %v2333_v2 = vadd.f32 %v1304_v28, %v2808_v5 }
 0x124   : > { %v2471_v33 = vpop.eup %2470  ;;  %v1551_v34 = vadd.f32 1.0, %v2469_v29  ;;  %2488 = vpow2.f32 %v1501_v22  ;;  %v1465_v3 = vsub.f32 0.0, %v2867_v26  ;;  %v2876_v36 = vadd.f32 %v2332_v27, %v2813_v7 }
 0x125   : > { %v2473_v37 = vpop.eup %2472  ;;  %2490 = vrcp.f32 %v1553_v30  ;;  %v1554_v4 = vadd.f32 1.0, %v2471_v33  ;;  %v1463_v39 = vsub.f32 0.0, %v2871_v31  ;;  %v2880_v41 = vadd.f32 %v2333_v2, %v2813_v7 }
 0x126   : > { %2492 = vrcp.f32 %v1551_v34  ;;  %v1552_v42 = vadd.f32 1.0, %v2473_v37  ;;  %v1511_v43 = vmul.f32 1.442695, %v1465_v3  ;;  %v1466_v5 = vsub.f32 0.0, %v2876_v36  ;;  %v2268_v44 = vpop.f32.mrb[16].mxu1 }
 0x127   : > { %v2475_v45 = vpop.eup %2474  ;;  %2494 = vrcp.f32 %v1554_v4  ;;  %v1507_v46 = vmul.f32 1.442695, %v1463_v39  ;;  %v1464_v47 = vsub.f32 0.0, %v2880_v41  ;;  %v2302_v48 = vpop.f32.mrb[16].mxu0 }
 0x128   : > { %v992_v49 = vpop.f32.mrb[17].mxu1  ;;  %v2477_v50 = vpop.eup %2476  ;;  %v1645_v51 = vmul.f32 %v2475_v45, %v2816_v12  ;;  %2496 = vrcp.f32 %v1552_v42  ;;  %v1513_v52 = vmul.f32 1.442695, %v1466_v5  ;;  %v2334_v54 = vadd.f32 %v2302_v48, %v2268_v44 }
 0x129   : > { %v1317_v55 = vpop.f32.mrb[17].mxu0  ;;  %v2269_v56 = vpop.f32.mrb[18].mxu1  ;;  %v1643_v59 = vmul.f32 %v2477_v50, %v2819_v15  ;;  %2498 = vpow2.f32 %v1511_v43  ;;  %v1509_v60 = vmul.f32 1.442695, %v1464_v47 }
 0x12a   : > { %v2479_v57 = vpop.eup %2478  ;;  %v2335_v61 = vadd.f32 %v1317_v55, %v992_v49  ;;  %v2303_v62 = vpop.f32.mrb[18].mxu0  ;;  %v2133_v8 = vpack.c.bf16 %v1645_v51, %v1645_v51  ;;  %2500 = vpow2.f32 %v1507_v46  ;;  %v2894_v10 = vadd.f32 %v2334_v54, %v2813_v7 }
 0x12b   : > { %v995_v6 = vpop.f32.mrb[19].mxu1  ;;  %v2481_v12 = vpop.eup %2480  ;;  %v1646_v0 = vmul.f32 %v2479_v57, %v2823_v18  ;;  %v2131_v13 = vpack.c.bf16 %v1643_v59, %v1643_v59  ;;  %2502 = vpow2.f32 %v1513_v52  ;;  %v2336_v24 = vadd.f32 %v2303_v62, %v2269_v56 }
 0x12c   : > { %v1320_v11 = vpop.f32.mrb[19].mxu0  ;;  %v2483_v1 = vpop.eup %2482  ;;  %v1644_v15 = vmul.f32 %v2481_v12, %v2827_v20  ;;  %v2898_v14 = vadd.f32 %v2335_v61, %v2813_v7  ;;  %1806 = vst.msk [vmem:[%s2889_s29 + $0x8] sm:$0xf] %vm1803_vm2, %v2133_v8  ;;  %2504 = vpow2.f32 %v1509_v60  ;;  %v1469_v19 = vsub.f32 0.0, %v2894_v10 }
 0x12d   : > { %v2485_v16 = vpop.eup %2484  ;;  %v2134_v17 = vpack.c.bf16 %v1646_v0, %v1646_v0  ;;  %v1557_v18 = vadd.f32 1.0, %v2483_v1  ;;  %1804 = vst.msk [vmem:[%s2889_s29] sm:$0xf] %vm1803_vm2, %v2131_v13  ;;  %v2337_v29 = vadd.f32 %v1320_v11, %v995_v6  ;;  %v2911_v3 = vadd.f32 %v2336_v24, %v2813_v7 }
 0x12e   : > { %v2487_v21 = vpop.eup %2486  ;;  %v2132_v22 = vpack.c.bf16 %v1644_v15, %v1644_v15  ;;  %v1555_v23 = vadd.f32 1.0, %v2485_v16  ;;  %v1467_v20 = vsub.f32 0.0, %v2898_v14  ;;  %v1519_v28 = vmul.f32 1.442695, %v1469_v19  ;;  %v2272_v30 = vpop.f32.mrb[20].mxu1 }
 0x12f   : > { %v2489_v25 = vpop.eup %2488  ;;  %1807 = vst.msk [vmem:[%s2889_s29 + $0xc] sm:$0xf] %vm1803_vm2, %v2134_v17  ;;  %2506 = vrcp.f32 %v1557_v18  ;;  %v1558_v27 = vadd.f32 1.0, %v2487_v21  ;;  %v2306_v37 = vpop.f32.mrb[20].mxu0  ;;  %v2915_v43 = vadd.f32 %v2337_v29, %v2813_v7  ;;  %v1470_v48 = vsub.f32 0.0, %v2911_v3 }
 0x130   : > { %v2491_v2 = vpop.eup %2490  ;;  %1805 = vst.msk [vmem:[%s2889_s29 + $0x4] sm:$0xf] %vm1803_vm2, %v2132_v22  ;;  %2508 = vrcp.f32 %v1555_v23  ;;  %v1556_v33 = vadd.f32 1.0, %v2489_v25  ;;  %v1515_v34 = vmul.f32 1.442695, %v1467_v20  ;;  %v1008_v4 = vpop.f32.mrb[21].mxu1  ;;  %v2338_v5 = vadd.f32 %v2306_v37, %v2272_v30 }
 0x131   : > { %v2493_v39 = vpop.eup %2492  ;;  %v1649_v42 = vmul.f32 %v2491_v2, %v2832_v32  ;;  %2510 = vrcp.f32 %v1558_v27  ;;  %v1333_v44 = vpop.f32.mrb[21].mxu0  ;;  %v1468_v55 = vsub.f32 0.0, %v2915_v43  ;;  %v1521_v60 = vmul.f32 1.442695, %v1470_v48 }
 0x132   : > { %v2273_v45 = vpop.f32.mrb[22].mxu1  ;;  %v2495_v46 = vpop.eup %2494  ;;  %v1647_v47 = vmul.f32 %v2493_v39, %v2835_v35  ;;  %2512 = vrcp.f32 %v1556_v33  ;;  %v2339_v49 = vadd.f32 %v1333_v44, %v1008_v4 }
 0x133   : > { %v2307_v50 = vpop.f32.mrb[22].mxu0  ;;  %v1011_v51 = vpop.f32.mrb[23].mxu1  ;;  %v2137_v54 = vpack.c.bf16 %v1649_v42, %v1649_v42  ;;  %v1650_v32 = vmul.f32 %v2495_v46, %v2839_v38  ;;  %2514 = vpow2.f32 %v1519_v28  ;;  %v1517_v12 = vmul.f32 1.442695, %v1468_v55 }
 0x134   : > { %v2497_v52 = vpop.eup %2496  ;;  %v1336_v56 = vpop.f32.mrb[23].mxu0  ;;  %v2135_v59 = vpack.c.bf16 %v1647_v47, %v1647_v47  ;;  %2516 = vpow2.f32 %v1515_v34  ;;  %v2925_v38 = vadd.f32 %v2338_v5, %v2813_v7  ;;  %v2340_v16 = vadd.f32 %v2307_v50, %v2273_v45 }
 0x135   : > { %v2499_v57 = vpop.eup %2498  ;;  %v1648_v35 = vmul.f32 %v2497_v52, %v2843_v40  ;;  %1810 = vst.msk [vmem:[%s2889_s29 + $0x18] sm:$0xf] %vm1803_vm2, %v2137_v54  ;;  %v2138_v62 = vpack.c.bf16 %v1650_v32, %v1650_v32  ;;  %2518 = vpow2.f32 %v1521_v60  ;;  %v2930_v40 = vadd.f32 %v2339_v49, %v2813_v7 }
 0x136   : > { %v2501_v61 = vpop.eup %2500  ;;  %v1561_v6 = vadd.f32 1.0, %v2499_v57  ;;  %1808 = vst.msk [vmem:[%s2889_s29 + $0x10] sm:$0xf] %vm1803_vm2, %v2135_v59  ;;  %v1473_v15 = vsub.f32 0.0, %v2925_v38  ;;  %v2276_v17 = vpop.f32.mrb[24].mxu1  ;;  %v2341_v21 = vadd.f32 %v1336_v56, %v1011_v51  ;;  %v2939_v25 = vadd.f32 %v2340_v16, %v2813_v7 }
 0x137   : > { %v2503_v8 = vpop.eup %2502  ;;  %v2136_v0 = vpack.c.bf16 %v1648_v35, %v1648_v35  ;;  %v1559_v11 = vadd.f32 1.0, %v2501_v61  ;;  %1811 = vst.msk [vmem:[%s2889_s29 + $0x1c] sm:$0xf] %vm1803_vm2, %v2138_v62  ;;  %v1471_v19 = vsub.f32 0.0, %v2930_v40  ;;  %v2310_v22 = vpop.f32.mrb[24].mxu0 }
 0x138   : > { %v2505_v1 = vpop.eup %2504  ;;  %2520 = vrcp.f32 %v1561_v6  ;;  %v1562_v13 = vadd.f32 1.0, %v2503_v8  ;;  %v1024_v23 = vpop.f32.mrb[25].mxu1  ;;  %v1527_v24 = vmul.f32 1.442695, %v1473_v15  ;;  %v2342_v27 = vadd.f32 %v2310_v22, %v2276_v17 }
 0x139   : > { %1809 = vst.msk [vmem:[%s2889_s29 + $0x14] sm:$0xf] %vm1803_vm2, %v2136_v0  ;;  %2522 = vrcp.f32 %v1559_v11  ;;  %v1560_v18 = vadd.f32 1.0, %v2505_v1  ;;  %v2507_v20 = vpop.eup %2506  ;;  %v1349_v28 = vpop.f32.mrb[25].mxu0  ;;  %v1523_v33 = vmul.f32 1.442695, %v1471_v19  ;;  %v2943_v34 = vadd.f32 %v2341_v21, %v2813_v7 }
 0x13a   : > { %2524 = vrcp.f32 %v1562_v13  ;;  %v2277_v29 = vpop.f32.mrb[26].mxu1  ;;  %v2509_v30 = vpop.eup %2508  ;;  %v1653_v2 = vmul.f32 %v2507_v20, %v2848_v53  ;;  %v1474_v5 = vsub.f32 0.0, %v2939_v25  ;;  %v2948_v44 = vadd.f32 %v2342_v27, %v2813_v7 }
 0x13b   : > { %2526 = vrcp.f32 %v1560_v18  ;;  %v2311_v37 = vpop.f32.mrb[26].mxu0  ;;  %v1027_v4 = vpop.f32.mrb[27].mxu1  ;;  %v1651_v42 = vmul.f32 %v2509_v30, %v2851_v58  ;;  %v1472_v48 = vsub.f32 0.0, %v2943_v34  ;;  %v2343_v59 = vadd.f32 %v1349_v28, %v1024_v23 }
 0x13c   : > { %v2511_v39 = vpop.eup %2510  ;;  %2528 = vpow2.f32 %v1517_v12  ;;  %v1352_v45 = vpop.f32.mrb[27].mxu0  ;;  %v2141_v53 = vpack.c.bf16 %v1653_v2, %v1653_v2  ;;  %v1529_v51 = vmul.f32 1.442695, %v1474_v5  ;;  %v1477_v56 = vsub.f32 0.0, %v2948_v44 }
 0x13d   : > { %v2513_v46 = vpop.eup %2512  ;;  %v1654_v47 = vmul.f32 %v2511_v39, %v2856_v63  ;;  %2530 = vpow2.f32 %v1527_v24  ;;  %v2139_v50 = vpack.c.bf16 %v1651_v42, %v1651_v42  ;;  %v1525_v55 = vmul.f32 1.442695, %v1472_v48 }
 0x13e   : > { %v2515_v49 = vpop.eup %2514  ;;  %v1652_v58 = vmul.f32 %v2513_v46, %v2860_v9  ;;  %2532 = vpow2.f32 %v1523_v33  ;;  %1814 = vst.msk [vmem:[%s2889_s29 + $0x28] sm:$0xf] %vm1803_vm2, %v2141_v53  ;;  %v2280_v35 = vpop.f32.mrb[28].mxu1  ;;  %v1535_v60 = vmul.f32 1.442695, %v1477_v56  ;;  %v2344_v61 = vadd.f32 %v2311_v37, %v2277_v29 }
 0x13f   : > { %v2517_v52 = vpop.eup %2516  ;;  %v2142_v54 = vpack.c.bf16 %v1654_v47, %v1654_v47  ;;  %v1565_v32 = vadd.f32 1.0, %v2515_v49  ;;  %1812 = vst.msk [vmem:[%s2889_s29 + $0x20] sm:$0xf] %vm1803_vm2, %v2139_v50  ;;  %2534 = vpow2.f32 %v1529_v51  ;;  %v2345_v62 = vadd.f32 %v1352_v45, %v1027_v4  ;;  %v2314_v6 = vpop.f32.mrb[28].mxu0 }
 0x140   : > { %v2140_v63 = vpack.c.bf16 %v1652_v58, %v1652_v58  ;;  %v1563_v57 = vadd.f32 1.0, %v2517_v52  ;;  %v2519_v9 = vpop.eup %2518  ;;  %v1040_v12 = vpop.f32.mrb[29].mxu1  ;;  %v2963_v11 = vadd.f32 %v2343_v59, %v2813_v7  ;;  %v2346_v1 = vadd.f32 %v2314_v6, %v2280_v35 }
 0x141   : > { %1815 = vst.msk [vmem:[%s2889_s29 + $0x2c] sm:$0xf] %vm1803_vm2, %v2142_v54  ;;  %2536 = vrcp.f32 %v1565_v32  ;;  %v1566_v0 = vadd.f32 1.0, %v2519_v9  ;;  %v1365_v13 = vpop.f32.mrb[29].mxu0  ;;  %v2281_v15 = vpop.f32.mrb[30].mxu1  ;;  %v2967_v18 = vadd.f32 %v2344_v61, %v2813_v7  ;;  %v2970_v19 = vadd.f32 %v2345_v62, %v2813_v7 }
 0x142   : > { %v2521_v8 = vpop.eup %2520  ;;  %1813 = vst.msk [vmem:[%s2889_s29 + $0x24] sm:$0xf] %vm1803_vm2, %v2140_v63  ;;  %2538 = vrcp.f32 %v1563_v57  ;;  %v2315_v21 = vpop.f32.mrb[30].mxu0  ;;  %v1475_v24 = vsub.f32 0.0, %v2963_v11  ;;  %v2975_v27 = vadd.f32 %v2346_v1, %v2813_v7  ;;  %v2347_v49 = vadd.f32 %v1365_v13, %v1040_v12 }
 0x143   : > { %v2523_v16 = vpop.eup %2522  ;;  %v1657_v17 = vmul.f32 %v2521_v8, %v2867_v26  ;;  %2540 = vpow2.f32 %v1525_v55  ;;  %v1043_v22 = vpop.f32.mrb[31].mxu1  ;;  %v1478_v2 = vsub.f32 0.0, %v2967_v18  ;;  %v1476_v39 = vsub.f32 0.0, %v2970_v19 }
 0x144   : > { %v2525_v23 = vpop.eup %2524  ;;  %v1655_v20 = vmul.f32 %v2523_v16, %v2871_v31  ;;  %2542 = vrcp.f32 %v1566_v0  ;;  %v1368_v26 = vpop.f32.mrb[31].mxu0  ;;  %v1531_v4 = vmul.f32 1.442695, %v1475_v24  ;;  %v1481_v46 = vsub.f32 0.0, %v2975_v27 }
 0x145   : > { %v2527_v28 = vpop.eup %2526  ;;  %v2145_v29 = vpack.c.bf16 %v1657_v17, %v1657_v17  ;;  %v1658_v30 = vmul.f32 %v2525_v23, %v2876_v36  ;;  %2544 = vpow2.f32 %v1535_v60  ;;  %v1537_v48 = vmul.f32 1.442695, %v1478_v2 }
 0x146   : > { %v2529_v33 = vpop.eup %2528  ;;  %v2143_v37 = vpack.c.bf16 %v1655_v20, %v1655_v20  ;;  %v1656_v31 = vmul.f32 %v2527_v28, %v2880_v41  ;;  %2546 = vpow2.f32 %v1531_v4  ;;  %v1533_v58 = vmul.f32 1.442695, %v1476_v39 }
 0x147   : > { %v2531_v42 = vpop.eup %2530  ;;  %1818 = vst.msk [vmem:[%s2889_s29 + $0x38] sm:$0xf] %vm1803_vm2, %v2145_v29  ;;  %v2146_v5 = vpack.c.bf16 %v1658_v30, %v1658_v30  ;;  %v1564_v45 = vadd.f32 1.0, %v2529_v33  ;;  %v2348_v51 = vadd.f32 %v2315_v21, %v2281_v15  ;;  %v2349_v52 = vadd.f32 %v1368_v26, %v1043_v22 }
 0x148   : > { %v2533_v36 = vpop.eup %2532  ;;  %1816 = vst.msk [vmem:[%s2889_s29 + $0x30] sm:$0xf] %vm1803_vm2, %v2143_v37  ;;  %v2144_v53 = vpack.c.bf16 %v1656_v31, %v1656_v31  ;;  %v1569_v47 = vadd.f32 1.0, %v2531_v42  ;;  %v1543_v55 = vmul.f32 1.442695, %v1481_v46  ;;  %v2991_v56 = vadd.f32 %v2347_v49, %v2813_v7 }
 0x149   : > { %1819 = vst.msk [vmem:[%s2889_s29 + $0x3c] sm:$0xf] %vm1803_vm2, %v2146_v5  ;;  %2548 = vrcp.f32 %v1564_v45  ;;  %v1567_v41 = vadd.f32 1.0, %v2533_v36  ;;  %v2535_v50 = vpop.eup %2534  ;;  %v2995_v59 = vadd.f32 %v2348_v51, %v2813_v7  ;;  %v2998_v35 = vadd.f32 %v2349_v52, %v2813_v7 }
 0x14a   : > { %1817 = vst.msk [vmem:[%s2889_s29 + $0x34] sm:$0xf] %vm1803_vm2, %v2144_v53  ;;  %2550 = vrcp.f32 %v1569_v47  ;;  %v1570_v32 = vadd.f32 1.0, %v2535_v50  ;;  %v1479_v61 = vsub.f32 0.0, %v2991_v56 }
 0x14b   : > { %v2537_v54 = vpop.eup %2536  ;;  %2552 = vrcp.f32 %v1567_v41  ;;  %v1480_v15 = vsub.f32 0.0, %v2998_v35 }
 0x14c   : > { %v2539_v63 = vpop.eup %2538  ;;  %v1661_v57 = vmul.f32 %v2537_v54, %v2894_v10  ;;  %2554 = vpow2.f32 %v1537_v48  ;;  %v1482_v10 = vsub.f32 0.0, %v2995_v59  ;;  %v1539_v7 = vmul.f32 1.442695, %v1479_v61 }
 0x14d   : > { %v2541_v9 = vpop.eup %2540  ;;  %v1659_v60 = vmul.f32 %v2539_v63, %v2898_v14  ;;  %2556 = vrcp.f32 %v1570_v32  ;;  %v1541_v21 = vmul.f32 1.442695, %v1480_v15 }
 0x14e   : > { %v2543_v62 = vpop.eup %2542  ;;  %v2149_v6 = vpack.c.bf16 %v1661_v57, %v1661_v57  ;;  %v1568_v12 = vadd.f32 1.0, %v2541_v9  ;;  %2558 = vpow2.f32 %v1533_v58  ;;  %v1545_v13 = vmul.f32 1.442695, %v1482_v10 }
 0x14f   : > { %v2545_v8 = vpop.eup %2544  ;;  %v2147_v0 = vpack.c.bf16 %v1659_v60, %v1659_v60  ;;  %v1662_v1 = vmul.f32 %v2543_v62, %v2911_v3  ;;  %2560 = vpow2.f32 %v1543_v55 }
 0x150   : > { %1822 = vst.msk [vmem:[%s2889_s29 + $0x48] sm:$0xf] %vm1803_vm2, %v2149_v6  ;;  %2562 = vrcp.f32 %v1568_v12  ;;  %v1573_v14 = vadd.f32 1.0, %v2545_v8  ;;  %v2547_v17 = vpop.eup %2546 }
 0x151   : > { %1820 = vst.msk [vmem:[%s2889_s29 + $0x40] sm:$0xf] %vm1803_vm2, %v2147_v0  ;;  %v2150_v16 = vpack.c.bf16 %v1662_v1, %v1662_v1  ;;  %2564 = vpow2.f32 %v1539_v7  ;;  %v1571_v3 = vadd.f32 1.0, %v2547_v17 }
 0x152   : > { %2566 = vrcp.f32 %v1573_v14 }
 0x153   : > { %v2549_v22 = vpop.eup %2548  ;;  %1823 = vst.msk [vmem:[%s2889_s29 + $0x4c] sm:$0xf] %vm1803_vm2, %v2150_v16  ;;  %2568 = vpow2.f32 %v1545_v13 }
 0x154   : > { %v2551_v23 = vpop.eup %2550  ;;  %v1660_v20 = vmul.f32 %v2549_v22, %v2915_v43  ;;  %2570 = vpow2.f32 %v1541_v21 }
 0x155   : > { %v2553_v24 = vpop.eup %2552  ;;  %v1665_v26 = vmul.f32 %v2551_v23, %v2925_v38  ;;  %2572 = vrcp.f32 %v1571_v3 }
 0x156   : > { %v2555_v28 = vpop.eup %2554  ;;  %v2148_v29 = vpack.c.bf16 %v1660_v20, %v1660_v20  ;;  %v1663_v30 = vmul.f32 %v2553_v24, %v2930_v40 }
 0x157   : > { %v2557_v2 = vpop.eup %2556  ;;  %v2153_v33 = vpack.c.bf16 %v1665_v26, %v1665_v26  ;;  %v1574_v37 = vadd.f32 1.0, %v2555_v28 }
 0x158   : > { %v2559_v31 = vpop.eup %2558  ;;  %1821 = vst.msk [vmem:[%s2889_s29 + $0x44] sm:$0xf] %vm1803_vm2, %v2148_v29  ;;  %v2151_v4 = vpack.c.bf16 %v1663_v30, %v1663_v30  ;;  %v1666_v43 = vmul.f32 %v2557_v2, %v2939_v25 }
 0x159   : > { %v2561_v39 = vpop.eup %2560  ;;  %1826 = vst.msk [vmem:[%s2889_s29 + $0x58] sm:$0xf] %vm1803_vm2, %v2153_v33  ;;  %2574 = vrcp.f32 %v1574_v37  ;;  %v1572_v38 = vadd.f32 1.0, %v2559_v31 }
 0x15a   : > { %v2563_v42 = vpop.eup %2562  ;;  %1824 = vst.msk [vmem:[%s2889_s29 + $0x50] sm:$0xf] %vm1803_vm2, %v2151_v4  ;;  %v2154_v5 = vpack.c.bf16 %v1666_v43, %v1666_v43  ;;  %v1577_v40 = vadd.f32 1.0, %v2561_v39 }
 0x15b   : > { %v2565_v45 = vpop.eup %2564  ;;  %v1664_v46 = vmul.f32 %v2563_v42, %v2943_v34  ;;  %2576 = vrcp.f32 %v1572_v38 }
 0x15c   : > { %v2567_v36 = vpop.eup %2566  ;;  %1827 = vst.msk [vmem:[%s2889_s29 + $0x5c] sm:$0xf] %vm1803_vm2, %v2154_v5  ;;  %2578 = vrcp.f32 %v1577_v40  ;;  %v1575_v25 = vadd.f32 1.0, %v2565_v45 }
 0x15d   : > { %v2569_v53 = vpop.eup %2568  ;;  %v2152_v47 = vpack.c.bf16 %v1664_v46, %v1664_v46  ;;  %v1669_v48 = vmul.f32 %v2567_v36, %v2948_v44 }
 0x15e   : > { %v2571_v41 = vpop.eup %2570  ;;  %2580 = vrcp.f32 %v1575_v25  ;;  %v1578_v49 = vadd.f32 1.0, %v2569_v53 }
 0x15f   : > { %v2573_v50 = vpop.eup %2572  ;;  %1825 = vst.msk [vmem:[%s2889_s29 + $0x54] sm:$0xf] %vm1803_vm2, %v2152_v47  ;;  %v2157_v58 = vpack.c.bf16 %v1669_v48, %v1669_v48  ;;  %v1576_v34 = vadd.f32 1.0, %v2571_v41 }
 0x160   : > { %v1667_v51 = vmul.f32 %v2573_v50, %v2963_v11  ;;  %2582 = vrcp.f32 %v1578_v49 }
 0x161   : > { %1830 = vst.msk [vmem:[%s2889_s29 + $0x68] sm:$0xf] %vm1803_vm2, %v2157_v58  ;;  %2584 = vrcp.f32 %v1576_v34 }
 0x162   : > { %v2155_v52 = vpack.c.bf16 %v1667_v51, %v1667_v51 }
 0x163   : > { %v2575_v54 = vpop.eup %2574 }
 0x164   : > { %1828 = vst.msk [vmem:[%s2889_s29 + $0x60] sm:$0xf] %vm1803_vm2, %v2155_v52  ;;  %v1670_v44 = vmul.f32 %v2575_v54, %v2967_v18 }
 0x165   : > { %v2577_v32 = vpop.eup %2576 }
 0x166   : > { %v2579_v55 = vpop.eup %2578  ;;  %v2158_v63 = vpack.c.bf16 %v1670_v44, %v1670_v44  ;;  %v1668_v57 = vmul.f32 %v2577_v32, %v2970_v19 }
 0x167   : > { %v1673_v11 = vmul.f32 %v2579_v55, %v2975_v27 }
 0x168   : > { %v2581_v9 = vpop.eup %2580  ;;  %1831 = vst.msk [vmem:[%s2889_s29 + $0x6c] sm:$0xf] %vm1803_vm2, %v2158_v63  ;;  %v2156_v60 = vpack.c.bf16 %v1668_v57, %v1668_v57 }
 0x169   : > { %v2161_v61 = vpack.c.bf16 %v1673_v11, %v1673_v11  ;;  %v1671_v62 = vmul.f32 %v2581_v9, %v2991_v56 }
 0x16a   : > { %v2583_v6 = vpop.eup %2582  ;;  %1829 = vst.msk [vmem:[%s2889_s29 + $0x64] sm:$0xf] %vm1803_vm2, %v2156_v60 }
 0x16b   : > { %v2585_v18 = vpop.eup %2584  ;;  %1834 = vst.msk [vmem:[%s2889_s29 + $0x78] sm:$0xf] %vm1803_vm2, %v2161_v61  ;;  %v2159_v12 = vpack.c.bf16 %v1671_v62, %v1671_v62  ;;  %v1674_v19 = vmul.f32 %v2583_v6, %v2995_v59 }
 0x16c   : > { %v1672_v27 = vmul.f32 %v2585_v18, %v2998_v35 }
 0x16d   : > { %1832 = vst.msk [vmem:[%s2889_s29 + $0x70] sm:$0xf] %vm1803_vm2, %v2159_v12  ;;  %v2162_v10 = vpack.c.bf16 %v1674_v19, %v1674_v19 }
 0x16e   : > { %v2160_v8 = vpack.c.bf16 %v1672_v27, %v1672_v27 }
 0x16f   : > { %1835 = vst.msk [vmem:[%s2889_s29 + $0x7c] sm:$0xf] %vm1803_vm2, %v2162_v10 }
 0x170   : > { %1833 = vst.msk [vmem:[%s2889_s29 + $0x74] sm:$0xf] %vm1803_vm2, %v2160_v8 }
 0x171 PF: > { %s17_s26 = sadd.s32 1, %s2608_s26   ;;  %s3067_s24 = smov %s2604_s25 }
 0x172   : > { %p14_p5 = scmp.ge.s32.totalorder %s17_s26, 4   ;;  %s3068_s25 = smov %s3070_s27 }
 0x174   :  { %16 = sbr.rel (!%p14_p5) target bundleno = 2 (0x2), region = 96 }

// kernel: _lambda_.27
= control target key start
LH: loop header
LB: loop body
LE: loop exit
PB: predicated region body
PF: predicated region fallthrough
CT: control target
= control target key end

     0   :  { %vm120_vm0 = vcmask 1043456   ;;  %vm286_vm1 = vcmask 1041408   ;;  %vm95_vm2 = vcmask 64512   ;;  %vm261_vm3 = vcmask 31744   ;;  %s1073_s3 = inlined_call_operand.vmem [shape: bf16[8,8], index: 3, kind: input, shape index: {}]   ;;  %s1074_s2 = inlined_call_operand.vmem [shape: bf16[4,8], index: 2, kind: input, shape index: {}]   ;;  %s1075_s1 = inlined_call_operand.vmem [shape: bf16[128,8], index: 1, kind: input, shape index: {}]   ;;  %s1076_s0 = inlined_call_operand.vmem [shape: bf16[128,4], index: 0, kind: input, shape index: {}]   ;;  %s1077_s4 = inlined_call_operand.vmem [shape: f32[1,8], index: 4, kind: input, shape index: {}]   ;;  %s1078_s5 = inlined_call_operand.vmem [shape: bf16[128,8], index: 5, kind: output, shape index: {}]  }
   0x1   :  { %v54_v0 = vld [vmem:[%s1073_s3] sm:$0xf]  ;;  %v746_v6 = vld [vmem:[%s1075_s1 + $0x8] sm:$0xff]   ;;  %v748_v8 = vld [vmem:[%s1075_s1 + $0x10] sm:$0xff]   ;;  %vm586_vm4 = vcmask 60416  }
   0x2   :  { %v37_v1 = vld [vmem:[%s1074_s2] sm:$0x3]  ;;  %742 = vmatprep.subr.msk.bf16.mxu1 %vm120_vm0, %v54_v0  ;;  %v122_v2 = vsel %vm120_vm0, %v54_v0, 0  ;;  %v747_v7 = vld [vmem:[%s1076_s0 + $0x8] sm:$0xff]   ;;  %v749_v9 = vld [vmem:[%s1076_s0 + $0x10] sm:$0xff]  }
   0x3   :  { %743 = vmatprep.subr.msk.bf16.mxu0 %vm286_vm1, %v37_v1  ;;  %v288_v3 = vsel %vm286_vm1, %v37_v1, 0  ;;  %v744_v4 = vld [vmem:[%s1075_s1] sm:$0xff]   ;;  %691 = vmatpush3.bf16.msra.mxu1 %v122_v2  ;;  %v750_v10 = vld [vmem:[%s1075_s1 + $0x18] sm:$0xff]   ;;  %v754_v14 = vld [vmem:[%s1075_s1 + $0x28] sm:$0xff]  }
   0x4   :  { %v745_v5 = vld [vmem:[%s1076_s0] sm:$0xff]   ;;  %709 = vmatpush3.bf16.msra.mxu0 %v288_v3  ;;  %692 = vmatprep.mubr.msk.bf16.mxu1 %vm95_vm2, %v744_v4  ;;  %v751_v11 = vld [vmem:[%s1076_s0 + $0x18] sm:$0xff]   ;;  %v755_v15 = vld [vmem:[%s1076_s0 + $0x28] sm:$0xff]  }
   0x5   :  { %710 = vmatprep.mubr.msk.bf16.mxu0 %vm261_vm3, %v745_v5  ;;  %v752_v12 = vld [vmem:[%s1075_s1 + $0x20] sm:$0xff]   ;;  %v756_v16 = vld [vmem:[%s1075_s1 + $0x30] sm:$0xff]   ;;  %v758_v18 = vld [vmem:[%s1075_s1 + $0x38] sm:$0xff]  }
   0x6   :  { %693 = vmatmul.mubr.msk.bf16.vlgmr.msra.gmra.mrb[0].mxu1 %vm95_vm2, %v746_v6  ;;  %v753_v13 = vld [vmem:[%s1076_s0 + $0x20] sm:$0xff]   ;;  %v757_v17 = vld [vmem:[%s1076_s0 + $0x30] sm:$0xff]   ;;  %v759_v19 = vld [vmem:[%s1076_s0 + $0x38] sm:$0xff]  }
   0x7   :  { %711 = vmatmul.mubr.msk.bf16.vlgmr.msra.gmra.mrb[0].mxu0 %vm261_vm3, %v747_v7  ;;  %696 = vmatprep.mubr.msk.bf16.mxu1 %vm95_vm2, %v748_v8  ;;  %v927_v22 = vld [vmem:[%s1077_s4] ss:$0 sm:$0xff] }
   0x8   :  { %714 = vmatprep.mubr.msk.bf16.mxu0 %vm261_vm3, %v749_v9 }
   0xe   :  { %697 = vmatmul.mubr.msk.bf16.gmra.mrb[4].mxu1 %vm95_vm2, %v750_v10 }
   0xf   :  { %715 = vmatmul.mubr.msk.bf16.gmra.mrb[4].mxu0 %vm261_vm3, %v751_v11  ;;  %700 = vmatprep.mubr.msk.bf16.mxu1 %vm95_vm2, %v752_v12 }
  0x10   :  { %718 = vmatprep.mubr.msk.bf16.mxu0 %vm261_vm3, %v753_v13 }
  0x16   :  { %701 = vmatmul.mubr.msk.bf16.gmra.mrb[8].mxu1 %vm95_vm2, %v754_v14 }
  0x17   :  { %719 = vmatmul.mubr.msk.bf16.gmra.mrb[8].mxu0 %vm261_vm3, %v755_v15  ;;  %704 = vmatprep.mubr.msk.bf16.mxu1 %vm95_vm2, %v756_v16 }
  0x18   :  { %722 = vmatprep.mubr.msk.bf16.mxu0 %vm261_vm3, %v757_v17 }
  0x1e   :  { %705 = vmatmul.mubr.msk.bf16.gmra.mrb[12].mxu1 %vm95_vm2, %v758_v18 }
  0x1f   :  { %723 = vmatmul.mubr.msk.bf16.gmra.mrb[12].mxu0 %vm261_vm3, %v759_v19 }
  0xd9   :  { %v694_v20 = vpop.f32.mrb[0].mxu1 }
  0xda   :  { %v712_v21 = vpop.f32.mrb[0].mxu0  ;;  %v158_v23 = vpop.f32.mrb[1].mxu1 }
  0xdb   :  { %v333_v24 = vadd.f32 %v712_v21, %v694_v20  ;;  %v324_v25 = vpop.f32.mrb[1].mxu0  ;;  %v695_v26 = vpop.f32.mrb[2].mxu1 }
  0xdc   :  { %v325_v27 = vadd.f32 %v324_v25, %v158_v23  ;;  %v713_v28 = vpop.f32.mrb[2].mxu0  ;;  %v161_v29 = vpop.f32.mrb[3].mxu1 }
  0xdd   :  { %v930_v30 = vadd.f32 %v927_v22, %v333_v24  ;;  %v336_v31 = vadd.f32 %v713_v28, %v695_v26  ;;  %v327_v32 = vpop.f32.mrb[3].mxu0 }
  0xde   :  { %v933_v33 = vadd.f32 %v927_v22, %v325_v27  ;;  %v328_v34 = vadd.f32 %v327_v32, %v161_v29 }
  0xdf   :  { %v412_v35 = vsub.f32 0.0, %v930_v30  ;;  %v937_v36 = vadd.f32 %v927_v22, %v336_v31 }
  0xe0   :  { %v410_v37 = vsub.f32 0.0, %v933_v33  ;;  %v941_v38 = vadd.f32 %v927_v22, %v328_v34 }
  0xe1   :  { %v430_v39 = vmul.f32 1.442695, %v412_v35  ;;  %v413_v40 = vsub.f32 0.0, %v937_v36  ;;  %v698_v41 = vpop.f32.mrb[4].mxu1 }
  0xe2   :  { %v426_v42 = vmul.f32 1.442695, %v410_v37  ;;  %v411_v43 = vsub.f32 0.0, %v941_v38  ;;  %v716_v44 = vpop.f32.mrb[4].mxu0  ;;  %v174_v45 = vpop.f32.mrb[5].mxu1 }
  0xe3   :  { %760 = vpow2.f32 %v430_v39  ;;  %v432_v46 = vmul.f32 1.442695, %v413_v40  ;;  %v349_v47 = vadd.f32 %v716_v44, %v698_v41  ;;  %v340_v48 = vpop.f32.mrb[5].mxu0  ;;  %v699_v49 = vpop.f32.mrb[6].mxu1 }
  0xe4   :  { %762 = vpow2.f32 %v426_v42  ;;  %v428_v50 = vmul.f32 1.442695, %v411_v43  ;;  %v341_v51 = vadd.f32 %v340_v48, %v174_v45  ;;  %v717_v52 = vpop.f32.mrb[6].mxu0  ;;  %v177_v53 = vpop.f32.mrb[7].mxu1 }
  0xe5   :  { %764 = vpow2.f32 %v432_v46  ;;  %v946_v54 = vadd.f32 %v927_v22, %v349_v47  ;;  %v352_v55 = vadd.f32 %v717_v52, %v699_v49  ;;  %v343_v56 = vpop.f32.mrb[7].mxu0 }
  0xe6   :  { %766 = vpow2.f32 %v428_v50  ;;  %v949_v57 = vadd.f32 %v927_v22, %v341_v51  ;;  %v344_v58 = vadd.f32 %v343_v56, %v177_v53 }
  0xe7   :  { %v416_v59 = vsub.f32 0.0, %v946_v54  ;;  %v953_v60 = vadd.f32 %v927_v22, %v352_v55 }
  0xe8   :  { %v414_v61 = vsub.f32 0.0, %v949_v57  ;;  %v957_v62 = vadd.f32 %v927_v22, %v344_v58 }
  0xe9   :  { %v438_v63 = vmul.f32 1.442695, %v416_v59  ;;  %v417_v0 = vsub.f32 0.0, %v953_v60  ;;  %v702_v1 = vpop.f32.mrb[8].mxu1 }
  0xea   :  { %v434_v2 = vmul.f32 1.442695, %v414_v61  ;;  %v415_v3 = vsub.f32 0.0, %v957_v62  ;;  %v720_v4 = vpop.f32.mrb[8].mxu0  ;;  %v190_v5 = vpop.f32.mrb[9].mxu1 }
  0xeb   :  { %768 = vpow2.f32 %v438_v63  ;;  %v440_v6 = vmul.f32 1.442695, %v417_v0  ;;  %v365_v7 = vadd.f32 %v720_v4, %v702_v1  ;;  %v356_v8 = vpop.f32.mrb[9].mxu0  ;;  %v703_v9 = vpop.f32.mrb[10].mxu1 }
  0xec   :  { %770 = vpow2.f32 %v434_v2  ;;  %v436_v10 = vmul.f32 1.442695, %v415_v3  ;;  %v357_v11 = vadd.f32 %v356_v8, %v190_v5  ;;  %v721_v12 = vpop.f32.mrb[10].mxu0  ;;  %v193_v13 = vpop.f32.mrb[11].mxu1 }
  0xed   :  { %v761_v14 = vpop.eup %760  ;;  %772 = vpow2.f32 %v440_v6  ;;  %v962_v15 = vadd.f32 %v927_v22, %v365_v7  ;;  %v368_v16 = vadd.f32 %v721_v12, %v703_v9  ;;  %v359_v17 = vpop.f32.mrb[11].mxu0 }
  0xee   :  { %v763_v18 = vpop.eup %762  ;;  %v460_v19 = vadd.f32 1.0, %v761_v14  ;;  %774 = vpow2.f32 %v436_v10  ;;  %v965_v20 = vadd.f32 %v927_v22, %v357_v11  ;;  %v360_v21 = vadd.f32 %v359_v17, %v193_v13 }
  0xef   :  { %v765_v23 = vpop.eup %764  ;;  %v458_v24 = vadd.f32 1.0, %v763_v18  ;;  %v420_v25 = vsub.f32 0.0, %v962_v15  ;;  %v969_v26 = vadd.f32 %v927_v22, %v368_v16 }
  0xf0   :  { %v767_v27 = vpop.eup %766  ;;  %776 = vrcp.f32 %v460_v19  ;;  %v461_v28 = vadd.f32 1.0, %v765_v23  ;;  %v418_v29 = vsub.f32 0.0, %v965_v20  ;;  %v973_v31 = vadd.f32 %v927_v22, %v360_v21 }
  0xf1   :  { %778 = vrcp.f32 %v458_v24  ;;  %v459_v32 = vadd.f32 1.0, %v767_v27  ;;  %v446_v34 = vmul.f32 1.442695, %v420_v25  ;;  %v421_v35 = vsub.f32 0.0, %v969_v26  ;;  %v706_v37 = vpop.f32.mrb[12].mxu1 }
  0xf2   :  { %780 = vrcp.f32 %v461_v28  ;;  %v442_v39 = vmul.f32 1.442695, %v418_v29  ;;  %v419_v40 = vsub.f32 0.0, %v973_v31  ;;  %v724_v41 = vpop.f32.mrb[12].mxu0  ;;  %v206_v42 = vpop.f32.mrb[13].mxu1 }
  0xf3   :  { %782 = vrcp.f32 %v459_v32  ;;  %v448_v43 = vmul.f32 1.442695, %v421_v35  ;;  %v381_v44 = vadd.f32 %v724_v41, %v706_v37  ;;  %v372_v45 = vpop.f32.mrb[13].mxu0  ;;  %v707_v46 = vpop.f32.mrb[14].mxu1 }
  0xf4   :  { %784 = vpow2.f32 %v446_v34  ;;  %v444_v47 = vmul.f32 1.442695, %v419_v40  ;;  %v373_v48 = vadd.f32 %v372_v45, %v206_v42  ;;  %v725_v49 = vpop.f32.mrb[14].mxu0  ;;  %v209_v50 = vpop.f32.mrb[15].mxu1 }
  0xf5   :  { %v769_v51 = vpop.eup %768  ;;  %786 = vpow2.f32 %v442_v39  ;;  %v978_v52 = vadd.f32 %v927_v22, %v381_v44  ;;  %v384_v53 = vadd.f32 %v725_v49, %v707_v46  ;;  %v375_v55 = vpop.f32.mrb[15].mxu0 }
  0xf6   :  { %v771_v56 = vpop.eup %770  ;;  %v464_v58 = vadd.f32 1.0, %v769_v51  ;;  %788 = vpow2.f32 %v448_v43  ;;  %v981_v59 = vadd.f32 %v927_v22, %v373_v48  ;;  %v376_v61 = vadd.f32 %v375_v55, %v209_v50 }
  0xf7   :  { %v773_v63 = vpop.eup %772  ;;  %v462_v0 = vadd.f32 1.0, %v771_v56  ;;  %790 = vpow2.f32 %v444_v47  ;;  %v424_v1 = vsub.f32 0.0, %v978_v52  ;;  %v985_v2 = vadd.f32 %v927_v22, %v384_v53 }
  0xf8   :  { %v775_v3 = vpop.eup %774  ;;  %792 = vrcp.f32 %v464_v58  ;;  %v465_v4 = vadd.f32 1.0, %v773_v63  ;;  %v422_v5 = vsub.f32 0.0, %v981_v59  ;;  %v989_v6 = vadd.f32 %v927_v22, %v376_v61 }
  0xf9   :  { %794 = vrcp.f32 %v462_v0  ;;  %v463_v7 = vadd.f32 1.0, %v775_v3  ;;  %v454_v8 = vmul.f32 1.442695, %v424_v1  ;;  %v425_v9 = vsub.f32 0.0, %v985_v2 }
  0xfa   :  { %v777_v10 = vpop.eup %776  ;;  %796 = vrcp.f32 %v465_v4  ;;  %v450_v11 = vmul.f32 1.442695, %v422_v5  ;;  %v423_v12 = vsub.f32 0.0, %v989_v6 }
  0xfb   :  { %v779_v13 = vpop.eup %778  ;;  %v508_v14 = vmul.f32 %v777_v10, %v930_v30  ;;  %798 = vrcp.f32 %v463_v7  ;;  %v456_v16 = vmul.f32 1.442695, %v425_v9 }
  0xfc   :  { %v781_v17 = vpop.eup %780  ;;  %v506_v22 = vmul.f32 %v779_v13, %v933_v33  ;;  %800 = vpow2.f32 %v454_v8  ;;  %v452_v18 = vmul.f32 1.442695, %v423_v12 }
  0xfd   :  { %v783_v19 = vpop.eup %782  ;;  %v658_v21 = vpack.c.bf16 %v508_v14, %v508_v14  ;;  %v509_v23 = vmul.f32 %v781_v17, %v937_v36  ;;  %802 = vpow2.f32 %v450_v11 }
  0xfe   :  { %v785_v24 = vpop.eup %784  ;;  %v656_v25 = vpack.c.bf16 %v506_v22, %v506_v22  ;;  %v507_v27 = vmul.f32 %v783_v19, %v941_v38  ;;  %804 = vpow2.f32 %v456_v16 }
  0xff   :  { %v787_v28 = vpop.eup %786  ;;  %589 = vst.msk [vmem:[%s1078_s5 + $0x8] sm:$0xf] %vm586_vm4, %v658_v21  ;;  %v659_v30 = vpack.c.bf16 %v509_v23, %v509_v23  ;;  %v468_v33 = vadd.f32 1.0, %v785_v24  ;;  %806 = vpow2.f32 %v452_v18 }
 0x100   :  { %v789_v29 = vpop.eup %788  ;;  %587 = vst.msk [vmem:[%s1078_s5] sm:$0xf] %vm586_vm4, %v656_v25  ;;  %v657_v36 = vpack.c.bf16 %v507_v27, %v507_v27  ;;  %v466_v32 = vadd.f32 1.0, %v787_v28 }
 0x101   :  { %v791_v34 = vpop.eup %790  ;;  %590 = vst.msk [vmem:[%s1078_s5 + $0xc] sm:$0xf] %vm586_vm4, %v659_v30  ;;  %808 = vrcp.f32 %v468_v33  ;;  %v469_v38 = vadd.f32 1.0, %v789_v29 }
 0x102   :  { %v793_v35 = vpop.eup %792  ;;  %588 = vst.msk [vmem:[%s1078_s5 + $0x4] sm:$0xf] %vm586_vm4, %v657_v36  ;;  %810 = vrcp.f32 %v466_v32  ;;  %v467_v37 = vadd.f32 1.0, %v791_v34 }
 0x103   :  { %v795_v39 = vpop.eup %794  ;;  %v512_v40 = vmul.f32 %v793_v35, %v946_v54  ;;  %812 = vrcp.f32 %v469_v38 }
 0x104   :  { %v797_v41 = vpop.eup %796  ;;  %v510_v42 = vmul.f32 %v795_v39, %v949_v57  ;;  %814 = vrcp.f32 %v467_v37 }
 0x105   :  { %v799_v43 = vpop.eup %798  ;;  %v662_v44 = vpack.c.bf16 %v512_v40, %v512_v40  ;;  %v513_v45 = vmul.f32 %v797_v41, %v953_v60 }
 0x106   :  { %v801_v46 = vpop.eup %800  ;;  %v660_v47 = vpack.c.bf16 %v510_v42, %v510_v42  ;;  %v511_v48 = vmul.f32 %v799_v43, %v957_v62 }
 0x107   :  { %v803_v49 = vpop.eup %802  ;;  %593 = vst.msk [vmem:[%s1078_s5 + $0x18] sm:$0xf] %vm586_vm4, %v662_v44  ;;  %v663_v54 = vpack.c.bf16 %v513_v45, %v513_v45  ;;  %v472_v50 = vadd.f32 1.0, %v801_v46 }
 0x108   :  { %v805_v51 = vpop.eup %804  ;;  %591 = vst.msk [vmem:[%s1078_s5 + $0x10] sm:$0xf] %vm586_vm4, %v660_v47  ;;  %v661_v57 = vpack.c.bf16 %v511_v48, %v511_v48  ;;  %v470_v60 = vadd.f32 1.0, %v803_v49 }
 0x109   :  { %v807_v53 = vpop.eup %806  ;;  %594 = vst.msk [vmem:[%s1078_s5 + $0x1c] sm:$0xf] %vm586_vm4, %v663_v54  ;;  %816 = vrcp.f32 %v472_v50  ;;  %v473_v62 = vadd.f32 1.0, %v805_v51 }
 0x10a   :  { %592 = vst.msk [vmem:[%s1078_s5 + $0x14] sm:$0xf] %vm586_vm4, %v661_v57  ;;  %818 = vrcp.f32 %v470_v60  ;;  %v471_v55 = vadd.f32 1.0, %v807_v53 }
 0x10b   :  { %v809_v56 = vpop.eup %808  ;;  %820 = vrcp.f32 %v473_v62 }
 0x10c   :  { %v811_v58 = vpop.eup %810  ;;  %v516_v61 = vmul.f32 %v809_v56, %v962_v15  ;;  %822 = vrcp.f32 %v471_v55 }
 0x10d   :  { %v813_v63 = vpop.eup %812  ;;  %v514_v0 = vmul.f32 %v811_v58, %v965_v20 }
 0x10e   :  { %v815_v1 = vpop.eup %814  ;;  %v666_v3 = vpack.c.bf16 %v516_v61, %v516_v61  ;;  %v517_v4 = vmul.f32 %v813_v63, %v969_v26 }
 0x10f   :  { %v664_v5 = vpack.c.bf16 %v514_v0, %v514_v0  ;;  %v515_v7 = vmul.f32 %v815_v1, %v973_v31 }
 0x110   :  { %597 = vst.msk [vmem:[%s1078_s5 + $0x28] sm:$0xf] %vm586_vm4, %v666_v3  ;;  %v667_v8 = vpack.c.bf16 %v517_v4, %v517_v4 }
 0x111   :  { %595 = vst.msk [vmem:[%s1078_s5 + $0x20] sm:$0xf] %vm586_vm4, %v664_v5  ;;  %v665_v15 = vpack.c.bf16 %v515_v7, %v515_v7 }
 0x112   :  { %598 = vst.msk [vmem:[%s1078_s5 + $0x2c] sm:$0xf] %vm586_vm4, %v667_v8 }
 0x113   :  { %v817_v20 = vpop.eup %816  ;;  %596 = vst.msk [vmem:[%s1078_s5 + $0x24] sm:$0xf] %vm586_vm4, %v665_v15 }
 0x114   :  { %v819_v26 = vpop.eup %818  ;;  %v520_v31 = vmul.f32 %v817_v20, %v978_v52 }
 0x115   :  { %v821_v9 = vpop.eup %820  ;;  %v518_v10 = vmul.f32 %v819_v26, %v981_v59 }
 0x116   :  { %v823_v11 = vpop.eup %822  ;;  %v670_v12 = vpack.c.bf16 %v520_v31, %v520_v31  ;;  %v521_v13 = vmul.f32 %v821_v9, %v985_v2 }
 0x117   :  { %v668_v14 = vpack.c.bf16 %v518_v10, %v518_v10  ;;  %v519_v16 = vmul.f32 %v823_v11, %v989_v6 }
 0x118   :  { %601 = vst.msk [vmem:[%s1078_s5 + $0x38] sm:$0xf] %vm586_vm4, %v670_v12  ;;  %v671_v17 = vpack.c.bf16 %v521_v13, %v521_v13 }
 0x119   :  { %599 = vst.msk [vmem:[%s1078_s5 + $0x30] sm:$0xf] %vm586_vm4, %v668_v14  ;;  %v669_v52 = vpack.c.bf16 %v519_v16, %v519_v16 }
 0x11a   :  { %602 = vst.msk [vmem:[%s1078_s5 + $0x3c] sm:$0xf] %vm586_vm4, %v671_v17 }
 0x11b   :  { %600 = vst.msk [vmem:[%s1078_s5 + $0x34] sm:$0xf] %vm586_vm4, %v669_v52 }

// kernel: _lambda_.31
= control target key start
LH: loop header
LB: loop body
LE: loop exit
PB: predicated region body
PF: predicated region fallthrough
CT: control target
= control target key end

     0   :  { %vm19_vm0 = vcmask 64512   ;;  %v282_v1 = vmov 0.0   ;;  %vm78_vm1 = vcmask 588800   ;;  %vm85_vm2 = vcmask 1043456   ;;  %s347_s1 = inlined_call_operand.vmem [shape: bf16[72,8], index: 1, kind: input, shape index: {}]   ;;  %s348_s0 = inlined_call_operand.vmem [shape: bf16[32,72], index: 0, kind: input, shape index: {}]   ;;  %s349_s2 = inlined_call_operand.vmem [shape: f32[1,8], index: 2, kind: input, shape index: {}]   ;;  %s350_s3 = inlined_call_operand.vmem [shape: bf16[32,8], index: 3, kind: output, shape index: {}]  }
   0x1   :  { %v259_v0 = vld [vmem:[%s347_s1] sm:$0xff]   ;;  %22 = vst.msk [vmem:[#allocation2 + $0x10] sm:$0xff] %vm19_vm0, %v282_v1  ;;  %20 = vst.msk [vmem:[#allocation2] sm:$0xff] %vm19_vm0, %v282_v1  ;;  %v260_v2 = vld [vmem:[%s347_s1 + $0x8] sm:$0xff]   ;;  %vm209_vm3 = vcmask 60416  }
   0x2   :  { %21 = vst.msk [vmem:[#allocation2 + $0x8] sm:$0xff] %vm19_vm0, %v282_v1  ;;  %23 = vst.msk [vmem:[#allocation2 + $0x18] sm:$0xff] %vm19_vm0, %v282_v1  ;;  %243 = vmatprep.subr.bf16.mxu0 %v259_v0  ;;  %v261_v3 = vld [vmem:[%s347_s1 + $0x10] sm:$0xff]   ;;  %v264_v4 = vld [vmem:[%s348_s0] sm:$0xff]  }
   0x3   :  { %244 = vmatpush3.bf16.msra.mxu0 %v259_v0  ;;  %253 = vmatprep.mubr.msk.bf16.mxu0 %vm78_vm1, %v264_v4  ;;  %v262_v5 = vld [vmem:[%s347_s1 + $0x18] sm:$0xff]   ;;  %v263_v6 = vld [vmem:[%s347_s1 + $0x20] ss:$0 sps:$4 sm:$0xff]   ;;  %v265_v8 = vld [vmem:[%s348_s0 + $0x8] sm:$0xff]  }
   0x4   :  { %245 = vmatprep.subr.bf16.mxu0 %v260_v2  ;;  %v87_v7 = vsel %vm85_vm2, %v263_v6, 0  ;;  %v227_v21 = vld [vmem:[%s349_s2] ss:$0 sm:$0xff] }
   0x7   :  { %246 = vmatpush3.bf16.msra.mxu0 %v260_v2 }
   0x8   :  { %247 = vmatprep.subr.bf16.mxu0 %v261_v3  ;;  %v26_v9 = vld [vmem:[#allocation2 + $0x10] sm:$0xff]  ;;  %v24_v10 = vld [vmem:[#allocation2] sm:$0xff] }
   0x9   :  { %v27_v12 = vld [vmem:[#allocation2 + $0x18] sm:$0xff]  ;;  %v25_v15 = vld [vmem:[#allocation2 + $0x8] sm:$0xff] }
   0xb   :  { %248 = vmatpush3.bf16.msra.mxu0 %v261_v3 }
   0xc   :  { %249 = vmatprep.subr.bf16.mxu0 %v262_v5 }
   0xf   :  { %250 = vmatpush3.bf16.msra.mxu0 %v262_v5 }
  0x10   :  { %257 = vmatprep.subr.msk.bf16.mxu0 %vm85_vm2, %v263_v6 }
  0x13   :  { %252 = vmatpush3.bf16.msra.mxu0 %v87_v7 }
  0x16   :  { %254 = vmatmul.mubr.msk.bf16.vlgmr.msra.gmra.mrb[0].mxu0 %vm78_vm1, %v265_v8 }
  0xe9   :  { %v255_v11 = vpop.f32.mrb[0].mxu0 }
  0xea   :  { %v140_v13 = vadd.f32 %v255_v11, %v26_v9  ;;  %v123_v14 = vpop.f32.mrb[1].mxu0 }
  0xeb   :  { %v138_v16 = vadd.f32 %v123_v14, %v24_v10  ;;  %v256_v17 = vpop.f32.mrb[2].mxu0 }
  0xec   :  { %145 = vst.msk [vmem:[#allocation2 + $0x10] sm:$0xff] %vm19_vm0, %v140_v13  ;;  %v141_v18 = vadd.f32 %v256_v17, %v27_v12  ;;  %v126_v19 = vpop.f32.mrb[3].mxu0 }
  0xed   :  { %143 = vst.msk [vmem:[#allocation2] sm:$0xff] %vm19_vm0, %v138_v16  ;;  %v139_v20 = vadd.f32 %v126_v19, %v25_v15 }
  0xee   :  { %146 = vst.msk [vmem:[#allocation2 + $0x18] sm:$0xff] %vm19_vm0, %v141_v18 }
  0xef   :  { %144 = vst.msk [vmem:[#allocation2 + $0x8] sm:$0xff] %vm19_vm0, %v139_v20 }
  0xf3   :  { %v152_v22 = vld [vmem:[#allocation2 + $0x10] sm:$0xff] }
  0xf4   :  { %v163_v23 = vadd.f32 %v227_v21, %v152_v22  ;;  %v150_v24 = vld [vmem:[#allocation2] sm:$0xff] }
  0xf5   :  { %v161_v25 = vadd.f32 %v227_v21, %v150_v24  ;;  %v153_v26 = vld [vmem:[#allocation2 + $0x18] sm:$0xff] }
  0xf6   :  { %v167_v27 = vsub.f32 0.0, %v163_v23  ;;  %v164_v28 = vadd.f32 %v227_v21, %v153_v26  ;;  %v151_v29 = vld [vmem:[#allocation2 + $0x8] sm:$0xff] }
  0xf7   :  { %v165_v30 = vsub.f32 0.0, %v161_v25  ;;  %v162_v31 = vadd.f32 %v227_v21, %v151_v29 }
  0xf8   :  { %v173_v32 = vmul.f32 1.442695, %v167_v27  ;;  %v168_v33 = vsub.f32 0.0, %v164_v28 }
  0xf9   :  { %v169_v34 = vmul.f32 1.442695, %v165_v30  ;;  %v166_v35 = vsub.f32 0.0, %v162_v31 }
  0xfa   :  { %266 = vpow2.f32 %v173_v32  ;;  %v175_v36 = vmul.f32 1.442695, %v168_v33 }
  0xfb   :  { %268 = vpow2.f32 %v169_v34  ;;  %v171_v37 = vmul.f32 1.442695, %v166_v35 }
  0xfc   :  { %270 = vpow2.f32 %v175_v36 }
  0xfd   :  { %272 = vpow2.f32 %v171_v37 }
 0x104   :  { %v267_v38 = vpop.eup %266 }
 0x105   :  { %v269_v39 = vpop.eup %268  ;;  %v179_v40 = vadd.f32 1.0, %v267_v38 }
 0x106   :  { %v271_v41 = vpop.eup %270  ;;  %v177_v42 = vadd.f32 1.0, %v269_v39 }
 0x107   :  { %v273_v43 = vpop.eup %272  ;;  %274 = vrcp.f32 %v179_v40  ;;  %v180_v44 = vadd.f32 1.0, %v271_v41 }
 0x108   :  { %276 = vrcp.f32 %v177_v42  ;;  %v178_v45 = vadd.f32 1.0, %v273_v43 }
 0x109   :  { %278 = vrcp.f32 %v180_v44 }
 0x10a   :  { %280 = vrcp.f32 %v178_v45 }
 0x111   :  { %v275_v46 = vpop.eup %274 }
 0x112   :  { %v277_v47 = vpop.eup %276  ;;  %v191_v48 = vmul.f32 %v275_v46, %v163_v23 }
 0x113   :  { %v279_v49 = vpop.eup %278  ;;  %v189_v50 = vmul.f32 %v277_v47, %v161_v25 }
 0x114   :  { %v281_v51 = vpop.eup %280  ;;  %v234_v52 = vpack.c.bf16 %v191_v48, %v191_v48  ;;  %v192_v53 = vmul.f32 %v279_v49, %v164_v28 }
 0x115   :  { %v232_v54 = vpack.c.bf16 %v189_v50, %v189_v50  ;;  %v190_v55 = vmul.f32 %v281_v51, %v162_v31 }
 0x116   :  { %212 = vst.msk [vmem:[%s350_s3 + $0x8] sm:$0xf] %vm209_vm3, %v234_v52  ;;  %v235_v56 = vpack.c.bf16 %v192_v53, %v192_v53 }
 0x117   :  { %210 = vst.msk [vmem:[%s350_s3] sm:$0xf] %vm209_vm3, %v232_v54  ;;  %v233_v57 = vpack.c.bf16 %v190_v55, %v190_v55 }
 0x118   :  { %213 = vst.msk [vmem:[%s350_s3 + $0xc] sm:$0xf] %vm209_vm3, %v235_v56 }
 0x119   :  { %211 = vst.msk [vmem:[%s350_s3 + $0x4] sm:$0xf] %vm209_vm3, %v233_v57 }

// kernel: _lambda_.32
= control target key start
LH: loop header
LB: loop body
LE: loop exit
PB: predicated region body
PF: predicated region fallthrough
CT: control target
= control target key end

     0   :  { %vm121_vm0 = vcmask 1043456   ;;  %vm114_vm1 = vcmask 64512   ;;  %vm48_vm2 = vcmask 130048   ;;  %vm229_vm3 = vcmask 125952   ;;  %s363_s2 = inlined_call_operand.vmem [shape: bf16[8,16], index: 2, kind: input, shape index: {}]   ;;  %s364_s3 = inlined_call_operand.vmem [shape: bf16[16,16], index: 3, kind: input, shape index: {}]   ;;  %s365_s0 = inlined_call_operand.vmem [shape: bf16[32,8], index: 0, kind: input, shape index: {}]   ;;  %s366_s1 = inlined_call_operand.vmem [shape: bf16[32,16], index: 1, kind: input, shape index: {}]   ;;  %s367_s4 = inlined_call_operand.vmem [shape: f32[1,16], index: 4, kind: input, shape index: {}]   ;;  %s368_s5 = inlined_call_operand.vmem [shape: bf16[32,16], index: 5, kind: output, shape index: {}]  }
   0x1   :  { %v25_v0 = vld [vmem:[%s363_s2] sm:$0xf]  ;;  %v281_v4 = vld [vmem:[%s365_s0 + $0x8] sm:$0xff]  }
   0x2   :  { %278 = vmatprep.subr.msk.bf16.mxu0 %vm121_vm0, %v25_v0  ;;  %v123_v1 = vsel %vm121_vm0, %v25_v0, 0  ;;  %v279_v2 = vld [vmem:[%s364_s3] sm:$0xff]   ;;  %v283_v6 = vld [vmem:[%s366_s1 + $0x8] sm:$0xff]  }
   0x3   :  { %269 = vmatpush3.bf16.msra.mxu0 %v123_v1  ;;  %v280_v3 = vld [vmem:[%s365_s0] sm:$0xff]   ;;  %262 = vmatprep.subr.bf16.mxu1 %v279_v2 }
   0x4   :  { %263 = vmatpush3.bf16.msra.mxu1 %v279_v2  ;;  %270 = vmatprep.mubr.msk.bf16.mxu0 %vm114_vm1, %v280_v3  ;;  %v282_v5 = vld [vmem:[%s366_s1] sm:$0xff]  }
   0x5   :  { %264 = vmatprep.mubr.msk.bf16.mxu1 %vm48_vm2, %v282_v5  ;;  %v247_v10 = vld [vmem:[%s367_s4] ss:$0 sm:$0xff] }
   0x6   :  { %271 = vmatmul.mubr.msk.bf16.vlgmr.msra.gmra.mrb[0].mxu0 %vm114_vm1, %v281_v4 }
   0x7   :  { %265 = vmatmul.mubr.msk.bf16.vlgmr.msra.gmra.mrb[0].mxu1 %vm48_vm2, %v283_v6 }
  0xd9   :  { %v272_v7 = vpop.f32.mrb[0].mxu0 }
  0xda   :  { %v159_v8 = vpop.f32.mrb[1].mxu0  ;;  %v266_v9 = vpop.f32.mrb[0].mxu1 }
  0xdb   :  { %v273_v11 = vpop.f32.mrb[2].mxu0  ;;  %v168_v12 = vadd.f32 %v272_v7, %v266_v9  ;;  %v89_v13 = vpop.f32.mrb[1].mxu1 }
  0xdc   :  { %v162_v14 = vpop.f32.mrb[3].mxu0  ;;  %v160_v15 = vadd.f32 %v159_v8, %v89_v13  ;;  %v267_v16 = vpop.f32.mrb[2].mxu1 }
  0xdd   :  { %v183_v17 = vadd.f32 %v247_v10, %v168_v12  ;;  %v171_v18 = vadd.f32 %v273_v11, %v267_v16  ;;  %v92_v19 = vpop.f32.mrb[3].mxu1 }
  0xde   :  { %v181_v20 = vadd.f32 %v247_v10, %v160_v15  ;;  %v163_v21 = vadd.f32 %v162_v14, %v92_v19 }
  0xdf   :  { %v187_v22 = vsub.f32 0.0, %v183_v17  ;;  %v184_v23 = vadd.f32 %v247_v10, %v171_v18 }
  0xe0   :  { %v185_v24 = vsub.f32 0.0, %v181_v20  ;;  %v182_v25 = vadd.f32 %v247_v10, %v163_v21 }
  0xe1   :  { %v193_v26 = vmul.f32 1.442695, %v187_v22  ;;  %v188_v27 = vsub.f32 0.0, %v184_v23 }
  0xe2   :  { %v189_v28 = vmul.f32 1.442695, %v185_v24  ;;  %v186_v29 = vsub.f32 0.0, %v182_v25 }
  0xe3   :  { %284 = vpow2.f32 %v193_v26  ;;  %v195_v30 = vmul.f32 1.442695, %v188_v27 }
  0xe4   :  { %286 = vpow2.f32 %v189_v28  ;;  %v191_v31 = vmul.f32 1.442695, %v186_v29 }
  0xe5   :  { %288 = vpow2.f32 %v195_v30 }
  0xe6   :  { %290 = vpow2.f32 %v191_v31 }
  0xed   :  { %v285_v32 = vpop.eup %284 }
  0xee   :  { %v287_v33 = vpop.eup %286  ;;  %v199_v34 = vadd.f32 1.0, %v285_v32 }
  0xef   :  { %v289_v35 = vpop.eup %288  ;;  %v197_v36 = vadd.f32 1.0, %v287_v33 }
  0xf0   :  { %v291_v37 = vpop.eup %290  ;;  %292 = vrcp.f32 %v199_v34  ;;  %v200_v38 = vadd.f32 1.0, %v289_v35 }
  0xf1   :  { %294 = vrcp.f32 %v197_v36  ;;  %v198_v39 = vadd.f32 1.0, %v291_v37 }
  0xf2   :  { %296 = vrcp.f32 %v200_v38 }
  0xf3   :  { %298 = vrcp.f32 %v198_v39 }
  0xfa   :  { %v293_v40 = vpop.eup %292 }
  0xfb   :  { %v295_v41 = vpop.eup %294  ;;  %v211_v42 = vmul.f32 %v293_v40, %v183_v17 }
  0xfc   :  { %v297_v43 = vpop.eup %296  ;;  %v209_v44 = vmul.f32 %v295_v41, %v181_v20 }
  0xfd   :  { %v299_v45 = vpop.eup %298  ;;  %v254_v46 = vpack.c.bf16 %v211_v42, %v211_v42  ;;  %v212_v47 = vmul.f32 %v297_v43, %v184_v23 }
  0xfe   :  { %v252_v48 = vpack.c.bf16 %v209_v44, %v209_v44  ;;  %v210_v49 = vmul.f32 %v299_v45, %v182_v25 }
  0xff   :  { %232 = vst.msk [vmem:[%s368_s5 + $0x8] sm:$0xf] %vm229_vm3, %v254_v46  ;;  %v255_v50 = vpack.c.bf16 %v212_v47, %v212_v47 }
 0x100   :  { %230 = vst.msk [vmem:[%s368_s5] sm:$0xf] %vm229_vm3, %v252_v48  ;;  %v253_v51 = vpack.c.bf16 %v210_v49, %v210_v49 }
 0x101   :  { %233 = vst.msk [vmem:[%s368_s5 + $0xc] sm:$0xf] %vm229_vm3, %v255_v50 }
 0x102   :  { %231 = vst.msk [vmem:[%s368_s5 + $0x4] sm:$0xf] %vm229_vm3, %v253_v51 }

// kernel: _lambda_.35
= control target key start
LH: loop header
LB: loop body
LE: loop exit
PB: predicated region body
PF: predicated region fallthrough
CT: control target
= control target key end

     0   :  { %vm54_vm0 = vcmask 1043456   ;;  %vm47_vm1 = vcmask 64512   ;;  %vm307_vm2 = vcmask 125952   ;;  %s491_s3 = inlined_call_operand.vmem [shape: bf16[8,16], index: 3, kind: input, shape index: {}]   ;;  %s492_s0 = inlined_call_operand.vmem [shape: bf16[32,8], index: 0, kind: input, shape index: {}]   ;;  %s493_s5 = inlined_call_operand.vmem [shape: bf16[8,16], index: 5, kind: input, shape index: {}]   ;;  %s494_s4 = inlined_call_operand.vmem [shape: bf16[8,16], index: 4, kind: input, shape index: {}]   ;;  %s495_s1 = inlined_call_operand.vmem [shape: bf16[32,8], index: 1, kind: input, shape index: {}]   ;;  %s496_s2 = inlined_call_operand.vmem [shape: bf16[32,8], index: 2, kind: input, shape index: {}]   ;;  %s497_s6 = inlined_call_operand.vmem [shape: f32[1,16], index: 6, kind: input, shape index: {}]   ;;  %s498_s7 = inlined_call_operand.vmem [shape: bf16[32,16], index: 7, kind: output, shape index: {}]  }
   0x1   :  { %v31_v0 = vld [vmem:[%s491_s3] sm:$0xf]  ;;  %v376_v3 = vld [vmem:[%s492_s0 + $0x8] sm:$0xff]  }
   0x2   :  { %373 = vmatprep.subr.msk.bf16.mxu0 %vm54_vm0, %v31_v0  ;;  %v124_v1 = vsel %vm54_vm0, %v31_v0, 0  ;;  %v375_v2 = vld [vmem:[%s492_s0] sm:$0xff]   ;;  %v378_v9 = vld [vmem:[%s495_s1 + $0x8] sm:$0xff]  }
   0x3   :  { %353 = vmatpush3.bf16.msra.mxu0 %v124_v1  ;;  %v179_v4 = vld [vmem:[%s493_s5] sm:$0xf]  ;;  %354 = vmatprep.mubr.msk.bf16.mxu0 %vm47_vm1, %v375_v2  ;;  %v380_v11 = vld [vmem:[%s496_s2 + $0x8] sm:$0xff]  }
   0x4   :  { %v36_v5 = vld [vmem:[%s494_s4] sm:$0xf]  ;;  %374 = vmatprep.subr.msk.bf16.mxu0 %vm54_vm0, %v179_v4  ;;  %v197_v6 = vsel %vm54_vm0, %v179_v4, 0 }
   0x5   :  { %v56_v7 = vsel %vm54_vm0, %v36_v5, 0  ;;  %372 = vmatprep.subr.msk.bf16.mxu1 %vm54_vm0, %v36_v5  ;;  %v377_v8 = vld [vmem:[%s495_s1] sm:$0xff]  }
   0x6   :  { %355 = vmatmul.mubr.msk.bf16.vlgmr.msra.gmra.mrb[0].mxu0 %vm47_vm1, %v376_v3  ;;  %347 = vmatpush3.bf16.msra.mxu1 %v56_v7  ;;  %v379_v10 = vld [vmem:[%s496_s2] sm:$0xff]  }
   0x7   :  { %359 = vmatpush3.bf16.msra.mxu0 %v197_v6  ;;  %348 = vmatprep.mubr.msk.bf16.mxu1 %vm47_vm1, %v377_v8  ;;  %v328_v17 = vld [vmem:[%s497_s6] ss:$0 sm:$0xff] }
   0x8   :  { %360 = vmatprep.mubr.msk.bf16.mxu0 %vm47_vm1, %v379_v10 }
   0x9   :  { %349 = vmatmul.mubr.msk.bf16.vlgmr.msra.gmra.mrb[0].mxu1 %vm47_vm1, %v378_v9 }
  0x12   :  { %361 = vmatmul.mubr.msk.bf16.vlgmr.msra.gmra.mrb[0].mxu0 %vm47_vm1, %v380_v11 }
  0xdc   :  { %v350_v12 = vpop.f32.mrb[0].mxu1 }
  0xdd   :  { %v92_v13 = vpop.f32.mrb[1].mxu1 }
  0xde   :  { %v351_v14 = vpop.f32.mrb[2].mxu1 }
  0xdf   :  { %v95_v15 = vpop.f32.mrb[3].mxu1 }
  0xe5   :  { %v362_v16 = vpop.f32.mrb[0].mxu0 }
  0xe6   :  { %v364_v18 = vadd.f32 %v362_v16, %v350_v12  ;;  %v233_v19 = vpop.f32.mrb[1].mxu0 }
  0xe7   :  { %v365_v20 = vadd.f32 %v233_v19, %v92_v13  ;;  %v363_v21 = vpop.f32.mrb[2].mxu0 }
  0xe8   :  { %v261_v22 = vadd.f32 %v364_v18, %v328_v17  ;;  %v366_v23 = vadd.f32 %v363_v21, %v351_v14  ;;  %v236_v24 = vpop.f32.mrb[3].mxu0 }
  0xe9   :  { %v259_v25 = vadd.f32 %v365_v20, %v328_v17  ;;  %v367_v26 = vadd.f32 %v236_v24, %v95_v15 }
  0xea   :  { %v265_v27 = vsub.f32 0.0, %v261_v22  ;;  %v262_v28 = vadd.f32 %v366_v23, %v328_v17 }
  0xeb   :  { %v263_v29 = vsub.f32 0.0, %v259_v25  ;;  %v260_v30 = vadd.f32 %v367_v26, %v328_v17 }
  0xec   :  { %v271_v31 = vmul.f32 1.442695, %v265_v27  ;;  %v266_v32 = vsub.f32 0.0, %v262_v28 }
  0xed   :  { %v267_v33 = vmul.f32 1.442695, %v263_v29  ;;  %v264_v34 = vsub.f32 0.0, %v260_v30 }
  0xee   :  { %381 = vpow2.f32 %v271_v31  ;;  %v273_v35 = vmul.f32 1.442695, %v266_v32 }
  0xef   :  { %383 = vpow2.f32 %v267_v33  ;;  %v269_v36 = vmul.f32 1.442695, %v264_v34 }
  0xf0   :  { %385 = vpow2.f32 %v273_v35 }
  0xf1   :  { %387 = vpow2.f32 %v269_v36 }
  0xf8   :  { %v382_v37 = vpop.eup %381 }
  0xf9   :  { %v384_v38 = vpop.eup %383  ;;  %v277_v39 = vadd.f32 1.0, %v382_v37 }
  0xfa   :  { %v386_v40 = vpop.eup %385  ;;  %v275_v41 = vadd.f32 1.0, %v384_v38 }
  0xfb   :  { %v388_v42 = vpop.eup %387  ;;  %389 = vrcp.f32 %v277_v39  ;;  %v278_v43 = vadd.f32 1.0, %v386_v40 }
  0xfc   :  { %391 = vrcp.f32 %v275_v41  ;;  %v276_v44 = vadd.f32 1.0, %v388_v42 }
  0xfd   :  { %393 = vrcp.f32 %v278_v43 }
  0xfe   :  { %395 = vrcp.f32 %v276_v44 }
 0x105   :  { %v390_v45 = vpop.eup %389 }
 0x106   :  { %v392_v46 = vpop.eup %391  ;;  %v289_v47 = vmul.f32 %v390_v45, %v261_v22 }
 0x107   :  { %v394_v48 = vpop.eup %393  ;;  %v287_v49 = vmul.f32 %v392_v46, %v259_v25 }
 0x108   :  { %v396_v50 = vpop.eup %395  ;;  %v335_v51 = vpack.c.bf16 %v289_v47, %v289_v47  ;;  %v290_v52 = vmul.f32 %v394_v48, %v262_v28 }
 0x109   :  { %v333_v53 = vpack.c.bf16 %v287_v49, %v287_v49  ;;  %v288_v54 = vmul.f32 %v396_v50, %v260_v30 }
 0x10a   :  { %310 = vst.msk [vmem:[%s498_s7 + $0x8] sm:$0xf] %vm307_vm2, %v335_v51  ;;  %v336_v55 = vpack.c.bf16 %v290_v52, %v290_v52 }
 0x10b   :  { %308 = vst.msk [vmem:[%s498_s7] sm:$0xf] %vm307_vm2, %v333_v53  ;;  %v334_v56 = vpack.c.bf16 %v288_v54, %v288_v54 }
 0x10c   :  { %311 = vst.msk [vmem:[%s498_s7 + $0xc] sm:$0xf] %vm307_vm2, %v336_v55 }
 0x10d   :  { %309 = vst.msk [vmem:[%s498_s7 + $0x4] sm:$0xf] %vm307_vm2, %v334_v56 }

// kernel: _lambda_.34
= control target key start
LH: loop header
LB: loop body
LE: loop exit
PB: predicated region body
PF: predicated region fallthrough
CT: control target
= control target key end

     0   :  { %vm22_vm0 = vcmask 64512   ;;  %v306_v1 = vmov 0.0   ;;  %vm81_vm1 = vcmask 588800   ;;  %vm88_vm2 = vcmask 1043456   ;;  %s382_s1 = inlined_call_operand.vmem [shape: bf16[72,8], index: 1, kind: input, shape index: {}]   ;;  %s383_s0 = inlined_call_operand.vmem [shape: bf16[32,72], index: 0, kind: input, shape index: {}]   ;;  %s384_s2 = inlined_call_operand.vmem [shape: f32[1,8], index: 2, kind: input, shape index: {}]   ;;  %s385_s3 = inlined_call_operand.vmem [shape: bf16[32,8], index: 3, kind: input, shape index: {}]   ;;  %s386_s4 = inlined_call_operand.vmem [shape: bf16[32,8], index: 4, kind: output, shape index: {}]  }
   0x1   :  { %v283_v0 = vld [vmem:[%s382_s1] sm:$0xff]   ;;  %25 = vst.msk [vmem:[#allocation2 + $0x10] sm:$0xff] %vm22_vm0, %v306_v1  ;;  %23 = vst.msk [vmem:[#allocation2] sm:$0xff] %vm22_vm0, %v306_v1  ;;  %v284_v2 = vld [vmem:[%s382_s1 + $0x8] sm:$0xff]   ;;  %vm224_vm3 = vcmask 60416  }
   0x2   :  { %24 = vst.msk [vmem:[#allocation2 + $0x8] sm:$0xff] %vm22_vm0, %v306_v1  ;;  %26 = vst.msk [vmem:[#allocation2 + $0x18] sm:$0xff] %vm22_vm0, %v306_v1  ;;  %267 = vmatprep.subr.bf16.mxu0 %v283_v0  ;;  %v285_v3 = vld [vmem:[%s382_s1 + $0x10] sm:$0xff]   ;;  %v288_v4 = vld [vmem:[%s383_s0] sm:$0xff]  }
   0x3   :  { %268 = vmatpush3.bf16.msra.mxu0 %v283_v0  ;;  %277 = vmatprep.mubr.msk.bf16.mxu0 %vm81_vm1, %v288_v4  ;;  %v286_v5 = vld [vmem:[%s382_s1 + $0x18] sm:$0xff]   ;;  %v287_v6 = vld [vmem:[%s382_s1 + $0x20] ss:$0 sps:$4 sm:$0xff]   ;;  %v289_v8 = vld [vmem:[%s383_s0 + $0x8] sm:$0xff]  }
   0x4   :  { %269 = vmatprep.subr.bf16.mxu0 %v284_v2  ;;  %v90_v7 = vsel %vm88_vm2, %v287_v6, 0  ;;  %v242_v21 = vld [vmem:[%s384_s2] ss:$0 sm:$0xff]  ;;  %v259_v46 = vld [vmem:[%s385_s3 + $0x8] sm:$0xff]  }
   0x5   :  { %v252_v47 = vld [vmem:[%s385_s3] sm:$0xff]   ;;  %v257_v48 = vunpack.c.l.bf16 %v259_v46  ;;  %v258_v53 = vunpack.c.h.bf16 %v259_v46 }
   0x6   :  { %v253_v50 = vunpack.c.l.bf16 %v252_v47  ;;  %v254_v56 = vunpack.c.h.bf16 %v252_v47 }
   0x7   :  { %270 = vmatpush3.bf16.msra.mxu0 %v284_v2 }
   0x8   :  { %271 = vmatprep.subr.bf16.mxu0 %v285_v3  ;;  %v29_v9 = vld [vmem:[#allocation2 + $0x10] sm:$0xff]  ;;  %v27_v10 = vld [vmem:[#allocation2] sm:$0xff] }
   0x9   :  { %v30_v12 = vld [vmem:[#allocation2 + $0x18] sm:$0xff]  ;;  %v28_v15 = vld [vmem:[#allocation2 + $0x8] sm:$0xff] }
   0xb   :  { %272 = vmatpush3.bf16.msra.mxu0 %v285_v3 }
   0xc   :  { %273 = vmatprep.subr.bf16.mxu0 %v286_v5 }
   0xf   :  { %274 = vmatpush3.bf16.msra.mxu0 %v286_v5 }
  0x10   :  { %281 = vmatprep.subr.msk.bf16.mxu0 %vm88_vm2, %v287_v6 }
  0x13   :  { %276 = vmatpush3.bf16.msra.mxu0 %v90_v7 }
  0x16   :  { %278 = vmatmul.mubr.msk.bf16.vlgmr.msra.gmra.mrb[0].mxu0 %vm81_vm1, %v289_v8 }
  0xe9   :  { %v279_v11 = vpop.f32.mrb[0].mxu0 }
  0xea   :  { %v143_v13 = vadd.f32 %v279_v11, %v29_v9  ;;  %v126_v14 = vpop.f32.mrb[1].mxu0 }
  0xeb   :  { %v141_v16 = vadd.f32 %v126_v14, %v27_v10  ;;  %v280_v17 = vpop.f32.mrb[2].mxu0 }
  0xec   :  { %148 = vst.msk [vmem:[#allocation2 + $0x10] sm:$0xff] %vm22_vm0, %v143_v13  ;;  %v144_v18 = vadd.f32 %v280_v17, %v30_v12  ;;  %v129_v19 = vpop.f32.mrb[3].mxu0 }
  0xed   :  { %146 = vst.msk [vmem:[#allocation2] sm:$0xff] %vm22_vm0, %v141_v16  ;;  %v142_v20 = vadd.f32 %v129_v19, %v28_v15 }
  0xee   :  { %149 = vst.msk [vmem:[#allocation2 + $0x18] sm:$0xff] %vm22_vm0, %v144_v18 }
  0xef   :  { %147 = vst.msk [vmem:[#allocation2 + $0x8] sm:$0xff] %vm22_vm0, %v142_v20 }
  0xf3   :  { %v155_v22 = vld [vmem:[#allocation2 + $0x10] sm:$0xff] }
  0xf4   :  { %v166_v23 = vadd.f32 %v242_v21, %v155_v22  ;;  %v153_v24 = vld [vmem:[#allocation2] sm:$0xff] }
  0xf5   :  { %v164_v25 = vadd.f32 %v242_v21, %v153_v24  ;;  %v156_v26 = vld [vmem:[#allocation2 + $0x18] sm:$0xff] }
  0xf6   :  { %v170_v27 = vsub.f32 0.0, %v166_v23  ;;  %v167_v28 = vadd.f32 %v242_v21, %v156_v26  ;;  %v154_v29 = vld [vmem:[#allocation2 + $0x8] sm:$0xff] }
  0xf7   :  { %v168_v30 = vsub.f32 0.0, %v164_v25  ;;  %v165_v31 = vadd.f32 %v242_v21, %v154_v29 }
  0xf8   :  { %v176_v32 = vmul.f32 1.442695, %v170_v27  ;;  %v171_v33 = vsub.f32 0.0, %v167_v28 }
  0xf9   :  { %v172_v34 = vmul.f32 1.442695, %v168_v30  ;;  %v169_v35 = vsub.f32 0.0, %v165_v31 }
  0xfa   :  { %290 = vpow2.f32 %v176_v32  ;;  %v178_v36 = vmul.f32 1.442695, %v171_v33 }
  0xfb   :  { %292 = vpow2.f32 %v172_v34  ;;  %v174_v37 = vmul.f32 1.442695, %v169_v35 }
  0xfc   :  { %294 = vpow2.f32 %v178_v36 }
  0xfd   :  { %296 = vpow2.f32 %v174_v37 }
 0x104   :  { %v291_v38 = vpop.eup %290 }
 0x105   :  { %v293_v39 = vpop.eup %292  ;;  %v182_v40 = vadd.f32 1.0, %v291_v38 }
 0x106   :  { %v295_v41 = vpop.eup %294  ;;  %v180_v42 = vadd.f32 1.0, %v293_v39 }
 0x107   :  { %v297_v43 = vpop.eup %296  ;;  %298 = vrcp.f32 %v182_v40  ;;  %v183_v44 = vadd.f32 1.0, %v295_v41 }
 0x108   :  { %300 = vrcp.f32 %v180_v42  ;;  %v181_v45 = vadd.f32 1.0, %v297_v43 }
 0x109   :  { %302 = vrcp.f32 %v183_v44 }
 0x10a   :  { %304 = vrcp.f32 %v181_v45 }
 0x111   :  { %v299_v49 = vpop.eup %298 }
 0x112   :  { %v301_v51 = vpop.eup %300  ;;  %v194_v52 = vmul.f32 %v299_v49, %v166_v23 }
 0x113   :  { %v303_v54 = vpop.eup %302  ;;  %v192_v55 = vmul.f32 %v301_v51, %v164_v25 }
 0x114   :  { %v305_v57 = vpop.eup %304  ;;  %v206_v58 = vadd.f32 %v257_v48, %v194_v52  ;;  %v195_v59 = vmul.f32 %v303_v54, %v167_v28 }
 0x115   :  { %v204_v60 = vadd.f32 %v253_v50, %v192_v55  ;;  %v193_v61 = vmul.f32 %v305_v57, %v165_v31 }
 0x116   :  { %v249_v62 = vpack.c.bf16 %v206_v58, %v206_v58  ;;  %v207_v63 = vadd.f32 %v258_v53, %v195_v59 }
 0x117   :  { %v247_v0 = vpack.c.bf16 %v204_v60, %v204_v60  ;;  %v205_v1 = vadd.f32 %v254_v56, %v193_v61 }
 0x118   :  { %227 = vst.msk [vmem:[%s386_s4 + $0x8] sm:$0xf] %vm224_vm3, %v249_v62  ;;  %v250_v2 = vpack.c.bf16 %v207_v63, %v207_v63 }
 0x119   :  { %225 = vst.msk [vmem:[%s386_s4] sm:$0xf] %vm224_vm3, %v247_v0  ;;  %v248_v3 = vpack.c.bf16 %v205_v1, %v205_v1 }
 0x11a   :  { %228 = vst.msk [vmem:[%s386_s4 + $0xc] sm:$0xf] %vm224_vm3, %v250_v2 }
 0x11b   :  { %226 = vst.msk [vmem:[%s386_s4 + $0x4] sm:$0xf] %vm224_vm3, %v248_v3 }

</bundles_post_ra>
